<compile_context>
chip_gen: v5e
topology: v5e:2x2
jax: 0.10.0
libtpu: 0.0.40
codegen_flags: <defaults>
</compile_context>

<pallas_src>
import functools
import math

import jax
import jax.numpy as jnp
from jax import lax
from jax.experimental import pallas as pl
from jax.experimental.pallas import tpu as pltpu

_LANE = 128
_SUB = 8  # sublane block: output rows batched into one unmasked store


def _round_up(x, m):
    return (x + m - 1) // m * m


def _lstm_kernel(x_ref, wxg_ref, bg_ref, whall_ref, wcr_ref, br_ref,
                 out_ref, h_ref, c_ref, xg_ref, *,
                 tile_t, h_pad, mxu_dtype):
    G = 4 * h_pad

    # Zero-init the carried (h, c) state on the first sequence tile only.
    @pl.when(pl.program_id(0) == 0)
    def _():
        h_ref[...] = jnp.zeros_like(h_ref)
        c_ref[...] = jnp.zeros_like(c_ref)

    # Hoisted input projection: one batched (T, inp_pad) @ (inp_pad, 4*h_pad)
    # MXU matmul per tile instead of one M=1 matmul per timestep.
    xg_ref[...] = (
        jnp.dot(x_ref[...], wxg_ref[...], preferred_element_type=jnp.float32)
        + bg_ref[...])

    def block_step(blk, carry):
        h, c = carry                                  # (1, h_pad) f32 carries
        base = pl.multiple_of(blk * _SUB, _SUB)
        xg_blk = xg_ref[pl.ds(base, _SUB), :]         # (8, 4*h_pad) f32

        rows = []
        for j in range(_SUB):                         # fully unrolled recurrence
            # Fused recurrent matmul: h @ [W_hg | W_hr] -> (1, 5*h_pad).
            hz = jnp.dot(h.astype(mxu_dtype), whall_ref[...],
                         preferred_element_type=jnp.float32)
            gates = xg_blk[j:j + 1, :] + hz[:, :G]    # (1, 4*h_pad)

            # One fused sigmoid over the contiguous o|f|i lane range (EUP),
            # then vreg-aligned 128-lane slices.
            sig = jax.nn.sigmoid(gates[:, :3 * h_pad])
            o_t = sig[:, 0 * h_pad:1 * h_pad]
            f_t = sig[:, 1 * h_pad:2 * h_pad]
            i_t = sig[:, 2 * h_pad:3 * h_pad]
            g_t = jnp.tanh(gates[:, 3 * h_pad:4 * h_pad])

            c = f_t * c + i_t * g_t
            # r uses the *previous* h (via the fused hz) -- matches the PyTorch line.
            r = (hz[:, G:G + h_pad]
                 + jnp.dot(c.astype(mxu_dtype), wcr_ref[...],
                           preferred_element_type=jnp.float32)
                 + br_ref[...])
            h = o_t * jnp.tanh(r)
            rows.append(h)

        # One unmasked (8, h_pad) store instead of 8 masked 1-sublane stores.
        out_ref[pl.ds(base, _SUB), :] = (
            jnp.concatenate(rows, axis=0).astype(out_ref.dtype))
        return (h, c)

    carry = lax.fori_loop(0, tile_t // _SUB, block_step,
                          (h_ref[...], c_ref[...]))
    h_ref[...] = carry[0]
    c_ref[...] = carry[1]


def _pad_gate_weight(w, H, h_pad, rows_pad=None):
    """Place each H-wide gate block of w (rows, 4H) at an h_pad lane boundary."""
    rows = w.shape[0]
    out_rows = rows if rows_pad is None else rows_pad
    out = jnp.zeros((out_rows, 4 * h_pad), w.dtype)
    for k in range(4):
        out = out.at[:rows, k * h_pad:k * h_pad + H].set(w[:, k * H:(k + 1) * H])
    return out


def main_lstm_forward(x, params, *, tile_t=256, mxu_dtype=jnp.float32,
                      interpret=False):
    """x: (seq, inp_dim). Returns hid_seq: (seq, 1, hid_dim), matching PyTorch."""
    seq_len, inp_dim = x.shape
    H = params["W_cr"].shape[0]
    h_pad = _round_up(max(H, _LANE), _LANE)
    inp_pad = _round_up(max(inp_dim, _LANE), _LANE)
    G = 4 * h_pad
    f32 = jnp.float32

    # Sequence tiling: large tiles amortise per-grid-step overhead; clamp so
    # short sequences do not pay for padded tail timesteps.
    tile_t = _round_up(max(8, min(tile_t, _round_up(seq_len, 8))), 8)
    seq_pad = _round_up(seq_len, tile_t)
    num_tiles = seq_pad // tile_t
    # NOTE: padded tail steps (x = 0) still evolve (h, c), but the module only
    # exposes hid_seq, which is sliced to seq_len below, so this is correct.

    # --- lane-padded / fused weights (pads are zero so padded h/c lanes stay 0)
    W_xg_p = _pad_gate_weight(params["W_xg"].astype(f32), H, h_pad,
                              rows_pad=inp_pad)                       # (inp_pad, 4Hp)
    b_g_p = _pad_gate_weight(params["b_g"].astype(f32), H, h_pad)     # (1, 4Hp)
    W_hg_p = _pad_gate_weight(params["W_hg"].astype(f32), H, h_pad,
                              rows_pad=h_pad)                         # (Hp, 4Hp)
    W_hr_p = jnp.zeros((h_pad, h_pad), f32).at[:H, :H].set(params["W_hr"].astype(f32))
    W_cr_p = jnp.zeros((h_pad, h_pad), f32).at[:H, :H].set(params["W_cr"].astype(f32))
    b_r_p = jnp.zeros((1, h_pad), f32).at[:, :H].set(params["b_r"].astype(f32))
    # Fused recurrent weight [W_hg | W_hr] -> single h-matmul per step.
    W_h_all = jnp.concatenate([W_hg_p, W_hr_p], axis=1)               # (Hp, 5Hp)

    x_p = jnp.zeros((seq_pad, inp_pad), f32).at[:seq_len, :inp_dim].set(
        x.astype(f32))

    # Generation-aware VMEM capacity (v7x: 64 MiB/TC; v5e/v6e: 128 MiB).
    try:
        vmem_cap = int(pltpu.get_tpu_info().vmem_capacity_bytes)
    except Exception:
        vmem_cap = 64 << 20  # conservative (v7x per-TensorCore) fallback

    # For very large H, f32 fused weights may not fit -> drop MXU inputs to
    # bf16 (accumulation stays f32).  Never triggers at small shapes.
    w_elems = W_xg_p.size + W_h_all.size + W_cr_p.size
    if mxu_dtype == jnp.float32 and 2 * w_elems * 4 > vmem_cap // 2:
        mxu_dtype = jnp.bfloat16

    x_p = x_p.astype(mxu_dtype)
    W_xg_m = W_xg_p.astype(mxu_dtype)
    W_h_all_m = W_h_all.astype(mxu_dtype)
    W_cr_m = W_cr_p.astype(mxu_dtype)

    isz = 2 if mxu_dtype == jnp.bfloat16 else 4
    w_bytes = w_elems * isz + (b_g_p.size + b_r_p.size) * 4
    io_bytes = 2 * (tile_t * inp_pad * isz + tile_t * h_pad * 4)   # double-buffered
    scratch_bytes = (tile_t * G + 2 * h_pad) * 4
    need = 2 * w_bytes + io_bytes + scratch_bytes + (4 << 20)
    vmem_limit = int(min(int(0.8 * vmem_cap), max(16 << 20, need)))

    # Advisory cost estimate so XLA schedules around this long serial call.
    flops = 2 * seq_pad * (inp_pad * G + h_pad * 5 * h_pad + h_pad * h_pad)
    cost = pl.CostEstimate(
        flops=int(flops),
        transcendentals=int(5 * seq_pad * h_pad),
        bytes_accessed=int(x_p.size * isz + w_elems * isz
                           + (b_g_p.size + b_r_p.size) * 4
                           + seq_pad * h_pad * 4),
    )

    kernel_fn = functools.partial(_lstm_kernel, tile_t=tile_t, h_pad=h_pad,
                                  mxu_dtype=mxu_dtype)
    out_shape = jax.ShapeDtypeStruct((seq_pad, h_pad), jnp.float32)

    def _run(single_buffer_weights):
        if single_buffer_weights:
            # Weights never change across grid steps -> single-buffer them so
            # the pipeline does not double their VMEM footprint (key on v7x).
            def w_spec(shape):
                return pl.BlockSpec(shape, lambda i: (0, 0),
                                    pipeline_mode=pl.Buffered(1))
        else:
            def w_spec(shape):
                return pl.BlockSpec(shape, lambda i: (0, 0))

        grid_spec = pltpu.PrefetchScalarGridSpec(
            num_scalar_prefetch=0,
            grid=(num_tiles,),
            in_specs=[
                pl.BlockSpec((tile_t, inp_pad), lambda i: (i, 0)),   # x tile
                w_spec((inp_pad, G)),          # W_xg (padded)
                w_spec((1, G)),                # b_g  (padded)
                w_spec((h_pad, 5 * h_pad)),    # [W_hg | W_hr]
                w_spec((h_pad, h_pad)),        # W_cr (padded)
                w_spec((1, h_pad)),            # b_r  (padded)
            ],
            out_specs=pl.BlockSpec((tile_t, h_pad), lambda i: (i, 0)),
            scratch_shapes=[
                pltpu.VMEM((1, h_pad), jnp.float32),    # h carry (persists)
                pltpu.VMEM((1, h_pad), jnp.float32),    # c carry (persists)
                pltpu.VMEM((tile_t, G), jnp.float32),   # hoisted x projection
            ],
        )

        call = pl.pallas_call(
            kernel_fn,
            out_shape=out_shape,
            grid_spec=grid_spec,
            compiler_params=pltpu.CompilerParams(
                dimension_semantics=("arbitrary",),
                vmem_limit_bytes=vmem_limit,
            ),
            cost_estimate=cost,
            interpret=interpret,
        )
        return call(x_p, W_xg_m, b_g_p, W_h_all_m, W_cr_m, b_r_p)

    try:
        out = _run(True)
    except Exception:
        # pl.Buffered(1) unsupported on this jax version/backend -> fall back
        # to default double-buffered weight specs (identical results).
        out = _run(False)

    return out[:seq_len, :H].reshape(seq_len, 1, H)


def init_params(key, inp_dim, hid_dim):
    """Deterministic uniform(-stdv, stdv) init, like MainLSTM.init_weights."""
    stdv = 1.0 / math.sqrt(hid_dim)
    ks = jax.random.split(key, 6)

    def u(k, shape):
        return jax.random.uniform(k, shape, jnp.float32, minval=-stdv, maxval=stdv)

    return {
        "W_xg": u(ks[0], (inp_dim, 4 * hid_dim)),
        "W_hg": u(ks[1], (hid_dim, 4 * hid_dim)),
        "b_g":  u(ks[2], (1, 4 * hid_dim)),
        "W_cr": u(ks[3], (hid_dim, hid_dim)),
        "W_hr": u(ks[4], (hid_dim, hid_dim)),
        "b_r":  u(ks[5], (1, hid_dim)),
    }


def _reference_forward(x, p):
    """Pure-JAX reference reproducing the PyTorch loop (for correctness check)."""
    hid_dim = p["W_cr"].shape[0]
    mm = functools.partial(jnp.dot, precision=lax.Precision.HIGHEST)

    def step(carry, x_t):
        h, c = carry
        x_t = x_t[None, :]
        gates = mm(x_t, p["W_xg"]) + mm(h, p["W_hg"]) + p["b_g"]
        o_t = jax.nn.sigmoid(gates[:, :hid_dim])
        f_t = jax.nn.sigmoid(gates[:, hid_dim:2 * hid_dim])
        i_t = jax.nn.sigmoid(gates[:, 2 * hid_dim:3 * hid_dim])
        g_t = jnp.tanh(gates[:, 3 * hid_dim:])
        c_new = f_t * c + i_t * g_t
        h_new = o_t * jnp.tanh(mm(h, p["W_hr"]) + mm(c_new, p["W_cr"]) + p["b_r"])
        return (h_new, c_new), h_new

    h0 = jnp.zeros((1, hid_dim), jnp.float32)
    c0 = jnp.zeros((1, hid_dim), jnp.float32)
    _, hs = lax.scan(step, (h0, c0), x)
    return hs  # (seq, 1, hid)


if __name__ == "__main__":
    key = jax.random.PRNGKey(0)
    SEQ, INP_DIM, HID_DIM = 8, 16, 32
    k_x, k_p, k_x2 = jax.random.split(key, 3)

    x = jax.random.normal(k_x, (SEQ, INP_DIM), jnp.float32)
    params = init_params(k_p, INP_DIM, HID_DIM)
    ref = _reference_forward(x, params)

    # f32 MXU path (recommended default; best on v5e).
    out_f32 = jax.block_until_ready(
        main_lstm_forward(x, params, mxu_dtype=jnp.float32))
    assert out_f32.shape == (SEQ, 1, HID_DIM), out_f32.shape
    assert jnp.allclose(out_f32, ref, atol=1e-3, rtol=1e-3), (
        "f32 mismatch vs reference")

    # bf16 MXU inputs (full-rate MXU on v6e/v7x), f32 accumulation.
    out_bf16 = jax.block_until_ready(
        main_lstm_forward(x, params, mxu_dtype=jnp.bfloat16))
    assert out_bf16.shape == (SEQ, 1, HID_DIM), out_bf16.shape
    assert jnp.allclose(out_bf16, ref, atol=3e-2, rtol=3e-2), (
        "bf16 mismatch vs reference")

    # Longer sequence: exercises the multi-tile grid, the cross-tile (h, c)
    # carry, and the padded sequence tail (outputs beyond seq_len discarded).
    SEQ2 = 200
    x2 = jax.random.normal(k_x2, (SEQ2, INP_DIM), jnp.float32)
    ref2 = _reference_forward(x2, params)
    out2 = jax.block_until_ready(
        main_lstm_forward(x2, params, tile_t=64, mxu_dtype=jnp.float32))
    assert out2.shape == (SEQ2, 1, HID_DIM), out2.shape
    assert jnp.allclose(out2, ref2, atol=2e-3, rtol=2e-3), "long-seq mismatch"

    print("KERNEL_OK")
</pallas_src>

<mosaic_0001>
module attributes {stable_mosaic.version = 11 : i64} {
  func.func @_lstm_kernel(%arg0: i32, %arg1: memref<8x128xf32, #tpu.memory_space<vmem>>, %arg2: memref<128x512xf32, #tpu.memory_space<vmem>>, %arg3: memref<1x512xf32, #tpu.memory_space<vmem>>, %arg4: memref<128x640xf32, #tpu.memory_space<vmem>>, %arg5: memref<128x128xf32, #tpu.memory_space<vmem>>, %arg6: memref<1x128xf32, #tpu.memory_space<vmem>>, %arg7: memref<8x128xf32, #tpu.memory_space<vmem>>, %arg8: memref<1x128xf32, #tpu.memory_space<vmem>>, %arg9: memref<1x128xf32, #tpu.memory_space<vmem>>, %arg10: memref<8x512xf32, #tpu.memory_space<vmem>>) attributes {dimension_semantics = [#tpu.dimension_semantics<arbitrary>], iteration_bounds = array<i64: 1>, scalar_prefetch = 0 : i64, scratch_operands = 3 : i64, tpu.core_type = #tpu.core_type<tc>, window_params = [{transform_indices = @transform_0, window_bounds = array<i64: 8, 128>}, {pipeline_mode = #tpu.pipeline_mode<synchronous>, transform_indices = @transform_1, window_bounds = array<i64: 128, 512>}, {pipeline_mode = #tpu.pipeline_mode<synchronous>, transform_indices = @transform_2, window_bounds = array<i64: 1, 512>}, {pipeline_mode = #tpu.pipeline_mode<synchronous>, transform_indices = @transform_3, window_bounds = array<i64: 128, 640>}, {pipeline_mode = #tpu.pipeline_mode<synchronous>, transform_indices = @transform_4, window_bounds = array<i64: 128, 128>}, {pipeline_mode = #tpu.pipeline_mode<synchronous>, transform_indices = @transform_5, window_bounds = array<i64: 1, 128>}, {transform_indices = @transform_6, window_bounds = array<i64: 8, 128>}]} {
    %c0_i32 = arith.constant 0 : i32
    %0 = arith.cmpi eq, %arg0, %c0_i32 : i32
    %1 = arith.extui %0 : i1 to i32
    %c0_i32_0 = arith.constant 0 : i32
    %2 = arith.cmpi ne, %1, %c0_i32_0 : i32
    scf.if %2 {
      %cst_91 = arith.constant 0.000000e+00 : f32
      %237 = vector.broadcast %cst_91 : f32 to vector<1x128xf32>
      %c0_92 = arith.constant 0 : index
      %c0_93 = arith.constant 0 : index
      %238 = vector.load %arg8[%c0_92, %c0_93] : memref<1x128xf32, #tpu.memory_space<vmem>>, vector<1x128xf32>
      tpu.vector_store %arg8[%c0_92, %c0_93], %237 {strides = array<i32>} : memref<1x128xf32, #tpu.memory_space<vmem>>, vector<1x128xf32>,
      %cst_94 = arith.constant 0.000000e+00 : f32
      %239 = vector.broadcast %cst_94 : f32 to vector<1x128xf32>
      %c0_95 = arith.constant 0 : index
      %c0_96 = arith.constant 0 : index
      %240 = vector.load %arg9[%c0_95, %c0_96] : memref<1x128xf32, #tpu.memory_space<vmem>>, vector<1x128xf32>
      tpu.vector_store %arg9[%c0_95, %c0_96], %239 {strides = array<i32>} : memref<1x128xf32, #tpu.memory_space<vmem>>, vector<1x128xf32>,
    } else {
    }
    %c0 = arith.constant 0 : index
    %c0_1 = arith.constant 0 : index
    %3 = vector.load %arg1[%c0, %c0_1] : memref<8x128xf32, #tpu.memory_space<vmem>>, vector<8x128xf32>
    %c0_2 = arith.constant 0 : index
    %c0_3 = arith.constant 0 : index
    %4 = vector.load %arg2[%c0_2, %c0_3] : memref<128x512xf32, #tpu.memory_space<vmem>>, vector<128x512xf32>
    %cst = arith.constant dense<0.000000e+00> : vector<8x512xf32>
    %5 = tpu.matmul %3, %4, %cst {dimension_numbers = #tpu.dot_dimension_numbers<[1], [0], [0], [1], [0, 0, 1, 1], [], []>} : vector<8x128xf32>, vector<128x512xf32>, vector<8x512xf32> -> vector<8x512xf32>
    %c0_4 = arith.constant 0 : index
    %c0_5 = arith.constant 0 : index
    %6 = vector.load %arg3[%c0_4, %c0_5] : memref<1x512xf32, #tpu.memory_space<vmem>>, vector<1x512xf32>
    %7 = vector.broadcast %6 : vector<1x512xf32> to vector<8x512xf32>
    %8 = arith.addf %5, %7 : vector<8x512xf32>
    %c0_6 = arith.constant 0 : index
    %c0_7 = arith.constant 0 : index
    %9 = vector.load %arg10[%c0_6, %c0_7] : memref<8x512xf32, #tpu.memory_space<vmem>>, vector<8x512xf32>
    tpu.vector_store %arg10[%c0_6, %c0_7], %8 {strides = array<i32>} : memref<8x512xf32, #tpu.memory_space<vmem>>, vector<8x512xf32>,
    %c0_8 = arith.constant 0 : index
    %c0_9 = arith.constant 0 : index
    %10 = vector.load %arg8[%c0_8, %c0_9] : memref<1x128xf32, #tpu.memory_space<vmem>>, vector<1x128xf32>
    %c0_10 = arith.constant 0 : index
    %c0_11 = arith.constant 0 : index
    %11 = vector.load %arg9[%c0_10, %c0_11] : memref<1x128xf32, #tpu.memory_space<vmem>>, vector<1x128xf32>
    %c0_i32_12 = arith.constant 0 : i32
    %c8_i32 = arith.constant 8 : i32
    %12 = arith.muli %c0_i32_12, %c8_i32 : i32
    %13 = tpu.assume_multiple %12, 8 : i32
    %14 = arith.index_cast %13 : i32 to index
    %c0_13 = arith.constant 0 : index
    %15 = vector.load %arg10[%14, %c0_13] : memref<8x512xf32, #tpu.memory_space<vmem>>, vector<8x512xf32>
    %c0_14 = arith.constant 0 : index
    %c0_15 = arith.constant 0 : index
    %16 = vector.load %arg4[%c0_14, %c0_15] : memref<128x640xf32, #tpu.memory_space<vmem>>, vector<128x640xf32>
    %cst_16 = arith.constant dense<0.000000e+00> : vector<1x640xf32>
    %17 = tpu.matmul %10, %16, %cst_16 {dimension_numbers = #tpu.dot_dimension_numbers<[1], [0], [0], [1], [0, 0, 1, 1], [], []>} : vector<1x128xf32>, vector<128x640xf32>, vector<1x640xf32> -> vector<1x640xf32>
    %18 = vector.extract_strided_slice %15 {offsets = [0, 0], sizes = [1, 512], strides = [1, 1]} : vector<8x512xf32> to vector<1x512xf32>
    %19 = vector.extract_strided_slice %17 {offsets = [0, 0], sizes = [1, 512], strides = [1, 1]} : vector<1x640xf32> to vector<1x512xf32>
    %20 = arith.addf %18, %19 : vector<1x512xf32>
    %21 = vector.extract_strided_slice %20 {offsets = [0, 0], sizes = [1, 384], strides = [1, 1]} : vector<1x512xf32> to vector<1x384xf32>
    %22 = arith.negf %21 : vector<1x384xf32>
    %23 = math.exp %22 : vector<1x384xf32>
    %cst_17 = arith.constant 1.000000e+00 : f32
    %24 = vector.broadcast %cst_17 : f32 to vector<1x384xf32>
    %25 = arith.addf %24, %23 : vector<1x384xf32>
    %26 = arith.divf %24, %25 : vector<1x384xf32>
    %27 = vector.extract_strided_slice %26 {offsets = [0, 0], sizes = [1, 128], strides = [1, 1]} : vector<1x384xf32> to vector<1x128xf32>
    %28 = vector.extract_strided_slice %26 {offsets = [0, 128], sizes = [1, 128], strides = [1, 1]} : vector<1x384xf32> to vector<1x128xf32>
    %29 = vector.extract_strided_slice %26 {offsets = [0, 256], sizes = [1, 128], strides = [1, 1]} : vector<1x384xf32> to vector<1x128xf32>
    %30 = vector.extract_strided_slice %20 {offsets = [0, 384], sizes = [1, 128], strides = [1, 1]} : vector<1x512xf32> to vector<1x128xf32>
    %31 = math.tanh %30 : vector<1x128xf32>
    %32 = arith.mulf %28, %11 : vector<1x128xf32>
    %33 = arith.mulf %29, %31 : vector<1x128xf32>
    %34 = arith.addf %32, %33 : vector<1x128xf32>
    %35 = vector.extract_strided_slice %17 {offsets = [0, 512], sizes = [1, 128], strides = [1, 1]} : vector<1x640xf32> to vector<1x128xf32>
    %c0_18 = arith.constant 0 : index
    %c0_19 = arith.constant 0 : index
    %36 = vector.load %arg5[%c0_18, %c0_19] : memref<128x128xf32, #tpu.memory_space<vmem>>, vector<128x128xf32>
    %cst_20 = arith.constant dense<0.000000e+00> : vector<1x128xf32>
    %37 = tpu.matmul %34, %36, %cst_20 {dimension_numbers = #tpu.dot_dimension_numbers<[1], [0], [0], [1], [0, 0, 1, 1], [], []>} : vector<1x128xf32>, vector<128x128xf32>, vector<1x128xf32> -> vector<1x128xf32>
    %38 = arith.addf %35, %37 : vector<1x128xf32>
    %c0_21 = arith.constant 0 : index
    %c0_22 = arith.constant 0 : index
    %39 = vector.load %arg6[%c0_21, %c0_22] : memref<1x128xf32, #tpu.memory_space<vmem>>, vector<1x128xf32>
    %40 = arith.addf %38, %39 : vector<1x128xf32>
    %41 = math.tanh %40 : vector<1x128xf32>
    %42 = arith.mulf %27, %41 : vector<1x128xf32>
    %c0_23 = arith.constant 0 : index
    %c0_24 = arith.constant 0 : index
    %43 = vector.load %arg4[%c0_23, %c0_24] : memref<128x640xf32, #tpu.memory_space<vmem>>, vector<128x640xf32>
    %cst_25 = arith.constant dense<0.000000e+00> : vector<1x640xf32>
    %44 = tpu.matmul %42, %43, %cst_25 {dimension_numbers = #tpu.dot_dimension_numbers<[1], [0], [0], [1], [0, 0, 1, 1], [], []>} : vector<1x128xf32>, vector<128x640xf32>, vector<1x640xf32> -> vector<1x640xf32>
    %45 = vector.extract_strided_slice %15 {offsets = [1, 0], sizes = [1, 512], strides = [1, 1]} : vector<8x512xf32> to vector<1x512xf32>
    %46 = vector.extract_strided_slice %44 {offsets = [0, 0], sizes = [1, 512], strides = [1, 1]} : vector<1x640xf32> to vector<1x512xf32>
    %47 = arith.addf %45, %46 : vector<1x512xf32>
    %48 = vector.extract_strided_slice %47 {offsets = [0, 0], sizes = [1, 384], strides = [1, 1]} : vector<1x512xf32> to vector<1x384xf32>
    %49 = arith.negf %48 : vector<1x384xf32>
    %50 = math.exp %49 : vector<1x384xf32>
    %cst_26 = arith.constant 1.000000e+00 : f32
    %51 = vector.broadcast %cst_26 : f32 to vector<1x384xf32>
    %52 = arith.addf %51, %50 : vector<1x384xf32>
    %53 = arith.divf %51, %52 : vector<1x384xf32>
    %54 = vector.extract_strided_slice %53 {offsets = [0, 0], sizes = [1, 128], strides = [1, 1]} : vector<1x384xf32> to vector<1x128xf32>
    %55 = vector.extract_strided_slice %53 {offsets = [0, 128], sizes = [1, 128], strides = [1, 1]} : vector<1x384xf32> to vector<1x128xf32>
    %56 = vector.extract_strided_slice %53 {offsets = [0, 256], sizes = [1, 128], strides = [1, 1]} : vector<1x384xf32> to vector<1x128xf32>
    %57 = vector.extract_strided_slice %47 {offsets = [0, 384], sizes = [1, 128], strides = [1, 1]} : vector<1x512xf32> to vector<1x128xf32>
    %58 = math.tanh %57 : vector<1x128xf32>
    %59 = arith.mulf %55, %34 : vector<1x128xf32>
    %60 = arith.mulf %56, %58 : vector<1x128xf32>
    %61 = arith.addf %59, %60 : vector<1x128xf32>
    %62 = vector.extract_strided_slice %44 {offsets = [0, 512], sizes = [1, 128], strides = [1, 1]} : vector<1x640xf32> to vector<1x128xf32>
    %c0_27 = arith.constant 0 : index
    %c0_28 = arith.constant 0 : index
    %63 = vector.load %arg5[%c0_27, %c0_28] : memref<128x128xf32, #tpu.memory_space<vmem>>, vector<128x128xf32>
    %cst_29 = arith.constant dense<0.000000e+00> : vector<1x128xf32>
    %64 = tpu.matmul %61, %63, %cst_29 {dimension_numbers = #tpu.dot_dimension_numbers<[1], [0], [0], [1], [0, 0, 1, 1], [], []>} : vector<1x128xf32>, vector<128x128xf32>, vector<1x128xf32> -> vector<1x128xf32>
    %65 = arith.addf %62, %64 : vector<1x128xf32>
    %c0_30 = arith.constant 0 : index
    %c0_31 = arith.constant 0 : index
    %66 = vector.load %arg6[%c0_30, %c0_31] : memref<1x128xf32, #tpu.memory_space<vmem>>, vector<1x128xf32>
    %67 = arith.addf %65, %66 : vector<1x128xf32>
    %68 = math.tanh %67 : vector<1x128xf32>
    %69 = arith.mulf %54, %68 : vector<1x128xf32>
    %c0_32 = arith.constant 0 : index
    %c0_33 = arith.constant 0 : index
    %70 = vector.load %arg4[%c0_32, %c0_33] : memref<128x640xf32, #tpu.memory_space<vmem>>, vector<128x640xf32>
    %cst_34 = arith.constant dense<0.000000e+00> : vector<1x640xf32>
    %71 = tpu.matmul %69, %70, %cst_34 {dimension_numbers = #tpu.dot_dimension_numbers<[1], [0], [0], [1], [0, 0, 1, 1], [], []>} : vector<1x128xf32>, vector<128x640xf32>, vector<1x640xf32> -> vector<1x640xf32>
    %72 = vector.extract_strided_slice %15 {offsets = [2, 0], sizes = [1, 512], strides = [1, 1]} : vector<8x512xf32> to vector<1x512xf32>
    %73 = vector.extract_strided_slice %71 {offsets = [0, 0], sizes = [1, 512], strides = [1, 1]} : vector<1x640xf32> to vector<1x512xf32>
    %74 = arith.addf %72, %73 : vector<1x512xf32>
    %75 = vector.extract_strided_slice %74 {offsets = [0, 0], sizes = [1, 384], strides = [1, 1]} : vector<1x512xf32> to vector<1x384xf32>
    %76 = arith.negf %75 : vector<1x384xf32>
    %77 = math.exp %76 : vector<1x384xf32>
    %cst_35 = arith.constant 1.000000e+00 : f32
    %78 = vector.broadcast %cst_35 : f32 to vector<1x384xf32>
    %79 = arith.addf %78, %77 : vector<1x384xf32>
    %80 = arith.divf %78, %79 : vector<1x384xf32>
    %81 = vector.extract_strided_slice %80 {offsets = [0, 0], sizes = [1, 128], strides = [1, 1]} : vector<1x384xf32> to vector<1x128xf32>
    %82 = vector.extract_strided_slice %80 {offsets = [0, 128], sizes = [1, 128], strides = [1, 1]} : vector<1x384xf32> to vector<1x128xf32>
    %83 = vector.extract_strided_slice %80 {offsets = [0, 256], sizes = [1, 128], strides = [1, 1]} : vector<1x384xf32> to vector<1x128xf32>
    %84 = vector.extract_strided_slice %74 {offsets = [0, 384], sizes = [1, 128], strides = [1, 1]} : vector<1x512xf32> to vector<1x128xf32>
    %85 = math.tanh %84 : vector<1x128xf32>
    %86 = arith.mulf %82, %61 : vector<1x128xf32>
    %87 = arith.mulf %83, %85 : vector<1x128xf32>
    %88 = arith.addf %86, %87 : vector<1x128xf32>
    %89 = vector.extract_strided_slice %71 {offsets = [0, 512], sizes = [1, 128], strides = [1, 1]} : vector<1x640xf32> to vector<1x128xf32>
    %c0_36 = arith.constant 0 : index
    %c0_37 = arith.constant 0 : index
    %90 = vector.load %arg5[%c0_36, %c0_37] : memref<128x128xf32, #tpu.memory_space<vmem>>, vector<128x128xf32>
    %cst_38 = arith.constant dense<0.000000e+00> : vector<1x128xf32>
    %91 = tpu.matmul %88, %90, %cst_38 {dimension_numbers = #tpu.dot_dimension_numbers<[1], [0], [0], [1], [0, 0, 1, 1], [], []>} : vector<1x128xf32>, vector<128x128xf32>, vector<1x128xf32> -> vector<1x128xf32>
    %92 = arith.addf %89, %91 : vector<1x128xf32>
    %c0_39 = arith.constant 0 : index
    %c0_40 = arith.constant 0 : index
    %93 = vector.load %arg6[%c0_39, %c0_40] : memref<1x128xf32, #tpu.memory_space<vmem>>, vector<1x128xf32>
    %94 = arith.addf %92, %93 : vector<1x128xf32>
    %95 = math.tanh %94 : vector<1x128xf32>
    %96 = arith.mulf %81, %95 : vector<1x128xf32>
    %c0_41 = arith.constant 0 : index
    %c0_42 = arith.constant 0 : index
    %97 = vector.load %arg4[%c0_41, %c0_42] : memref<128x640xf32, #tpu.memory_space<vmem>>, vector<128x640xf32>
    %cst_43 = arith.constant dense<0.000000e+00> : vector<1x640xf32>
    %98 = tpu.matmul %96, %97, %cst_43 {dimension_numbers = #tpu.dot_dimension_numbers<[1], [0], [0], [1], [0, 0, 1, 1], [], []>} : vector<1x128xf32>, vector<128x640xf32>, vector<1x640xf32> -> vector<1x640xf32>
    %99 = vector.extract_strided_slice %15 {offsets = [3, 0], sizes = [1, 512], strides = [1, 1]} : vector<8x512xf32> to vector<1x512xf32>
    %100 = vector.extract_strided_slice %98 {offsets = [0, 0], sizes = [1, 512], strides = [1, 1]} : vector<1x640xf32> to vector<1x512xf32>
    %101 = arith.addf %99, %100 : vector<1x512xf32>
    %102 = vector.extract_strided_slice %101 {offsets = [0, 0], sizes = [1, 384], strides = [1, 1]} : vector<1x512xf32> to vector<1x384xf32>
    %103 = arith.negf %102 : vector<1x384xf32>
    %104 = math.exp %103 : vector<1x384xf32>
    %cst_44 = arith.constant 1.000000e+00 : f32
    %105 = vector.broadcast %cst_44 : f32 to vector<1x384xf32>
    %106 = arith.addf %105, %104 : vector<1x384xf32>
    %107 = arith.divf %105, %106 : vector<1x384xf32>
    %108 = vector.extract_strided_slice %107 {offsets = [0, 0], sizes = [1, 128], strides = [1, 1]} : vector<1x384xf32> to vector<1x128xf32>
    %109 = vector.extract_strided_slice %107 {offsets = [0, 128], sizes = [1, 128], strides = [1, 1]} : vector<1x384xf32> to vector<1x128xf32>
    %110 = vector.extract_strided_slice %107 {offsets = [0, 256], sizes = [1, 128], strides = [1, 1]} : vector<1x384xf32> to vector<1x128xf32>
    %111 = vector.extract_strided_slice %101 {offsets = [0, 384], sizes = [1, 128], strides = [1, 1]} : vector<1x512xf32> to vector<1x128xf32>
    %112 = math.tanh %111 : vector<1x128xf32>
    %113 = arith.mulf %109, %88 : vector<1x128xf32>
    %114 = arith.mulf %110, %112 : vector<1x128xf32>
    %115 = arith.addf %113, %114 : vector<1x128xf32>
    %116 = vector.extract_strided_slice %98 {offsets = [0, 512], sizes = [1, 128], strides = [1, 1]} : vector<1x640xf32> to vector<1x128xf32>
    %c0_45 = arith.constant 0 : index
    %c0_46 = arith.constant 0 : index
    %117 = vector.load %arg5[%c0_45, %c0_46] : memref<128x128xf32, #tpu.memory_space<vmem>>, vector<128x128xf32>
    %cst_47 = arith.constant dense<0.000000e+00> : vector<1x128xf32>
    %118 = tpu.matmul %115, %117, %cst_47 {dimension_numbers = #tpu.dot_dimension_numbers<[1], [0], [0], [1], [0, 0, 1, 1], [], []>} : vector<1x128xf32>, vector<128x128xf32>, vector<1x128xf32> -> vector<1x128xf32>
    %119 = arith.addf %116, %118 : vector<1x128xf32>
    %c0_48 = arith.constant 0 : index
    %c0_49 = arith.constant 0 : index
    %120 = vector.load %arg6[%c0_48, %c0_49] : memref<1x128xf32, #tpu.memory_space<vmem>>, vector<1x128xf32>
    %121 = arith.addf %119, %120 : vector<1x128xf32>
    %122 = math.tanh %121 : vector<1x128xf32>
    %123 = arith.mulf %108, %122 : vector<1x128xf32>
    %c0_50 = arith.constant 0 : index
    %c0_51 = arith.constant 0 : index
    %124 = vector.load %arg4[%c0_50, %c0_51] : memref<128x640xf32, #tpu.memory_space<vmem>>, vector<128x640xf32>
    %cst_52 = arith.constant dense<0.000000e+00> : vector<1x640xf32>
    %125 = tpu.matmul %123, %124, %cst_52 {dimension_numbers = #tpu.dot_dimension_numbers<[1], [0], [0], [1], [0, 0, 1, 1], [], []>} : vector<1x128xf32>, vector<128x640xf32>, vector<1x640xf32> -> vector<1x640xf32>
    %126 = vector.extract_strided_slice %15 {offsets = [4, 0], sizes = [1, 512], strides = [1, 1]} : vector<8x512xf32> to vector<1x512xf32>
    %127 = vector.extract_strided_slice %125 {offsets = [0, 0], sizes = [1, 512], strides = [1, 1]} : vector<1x640xf32> to vector<1x512xf32>
    %128 = arith.addf %126, %127 : vector<1x512xf32>
    %129 = vector.extract_strided_slice %128 {offsets = [0, 0], sizes = [1, 384], strides = [1, 1]} : vector<1x512xf32> to vector<1x384xf32>
    %130 = arith.negf %129 : vector<1x384xf32>
    %131 = math.exp %130 : vector<1x384xf32>
    %cst_53 = arith.constant 1.000000e+00 : f32
    %132 = vector.broadcast %cst_53 : f32 to vector<1x384xf32>
    %133 = arith.addf %132, %131 : vector<1x384xf32>
    %134 = arith.divf %132, %133 : vector<1x384xf32>
    %135 = vector.extract_strided_slice %134 {offsets = [0, 0], sizes = [1, 128], strides = [1, 1]} : vector<1x384xf32> to vector<1x128xf32>
    %136 = vector.extract_strided_slice %134 {offsets = [0, 128], sizes = [1, 128], strides = [1, 1]} : vector<1x384xf32> to vector<1x128xf32>
    %137 = vector.extract_strided_slice %134 {offsets = [0, 256], sizes = [1, 128], strides = [1, 1]} : vector<1x384xf32> to vector<1x128xf32>
    %138 = vector.extract_strided_slice %128 {offsets = [0, 384], sizes = [1, 128], strides = [1, 1]} : vector<1x512xf32> to vector<1x128xf32>
    %139 = math.tanh %138 : vector<1x128xf32>
    %140 = arith.mulf %136, %115 : vector<1x128xf32>
    %141 = arith.mulf %137, %139 : vector<1x128xf32>
    %142 = arith.addf %140, %141 : vector<1x128xf32>
    %143 = vector.extract_strided_slice %125 {offsets = [0, 512], sizes = [1, 128], strides = [1, 1]} : vector<1x640xf32> to vector<1x128xf32>
    %c0_54 = arith.constant 0 : index
    %c0_55 = arith.constant 0 : index
    %144 = vector.load %arg5[%c0_54, %c0_55] : memref<128x128xf32, #tpu.memory_space<vmem>>, vector<128x128xf32>
    %cst_56 = arith.constant dense<0.000000e+00> : vector<1x128xf32>
    %145 = tpu.matmul %142, %144, %cst_56 {dimension_numbers = #tpu.dot_dimension_numbers<[1], [0], [0], [1], [0, 0, 1, 1], [], []>} : vector<1x128xf32>, vector<128x128xf32>, vector<1x128xf32> -> vector<1x128xf32>
    %146 = arith.addf %143, %145 : vector<1x128xf32>
    %c0_57 = arith.constant 0 : index
    %c0_58 = arith.constant 0 : index
    %147 = vector.load %arg6[%c0_57, %c0_58] : memref<1x128xf32, #tpu.memory_space<vmem>>, vector<1x128xf32>
    %148 = arith.addf %146, %147 : vector<1x128xf32>
    %149 = math.tanh %148 : vector<1x128xf32>
    %150 = arith.mulf %135, %149 : vector<1x128xf32>
    %c0_59 = arith.constant 0 : index
    %c0_60 = arith.constant 0 : index
    %151 = vector.load %arg4[%c0_59, %c0_60] : memref<128x640xf32, #tpu.memory_space<vmem>>, vector<128x640xf32>
    %cst_61 = arith.constant dense<0.000000e+00> : vector<1x640xf32>
    %152 = tpu.matmul %150, %151, %cst_61 {dimension_numbers = #tpu.dot_dimension_numbers<[1], [0], [0], [1], [0, 0, 1, 1], [], []>} : vector<1x128xf32>, vector<128x640xf32>, vector<1x640xf32> -> vector<1x640xf32>
    %153 = vector.extract_strided_slice %15 {offsets = [5, 0], sizes = [1, 512], strides = [1, 1]} : vector<8x512xf32> to vector<1x512xf32>
    %154 = vector.extract_strided_slice %152 {offsets = [0, 0], sizes = [1, 512], strides = [1, 1]} : vector<1x640xf32> to vector<1x512xf32>
    %155 = arith.addf %153, %154 : vector<1x512xf32>
    %156 = vector.extract_strided_slice %155 {offsets = [0, 0], sizes = [1, 384], strides = [1, 1]} : vector<1x512xf32> to vector<1x384xf32>
    %157 = arith.negf %156 : vector<1x384xf32>
    %158 = math.exp %157 : vector<1x384xf32>
    %cst_62 = arith.constant 1.000000e+00 : f32
    %159 = vector.broadcast %cst_62 : f32 to vector<1x384xf32>
    %160 = arith.addf %159, %158 : vector<1x384xf32>
    %161 = arith.divf %159, %160 : vector<1x384xf32>
    %162 = vector.extract_strided_slice %161 {offsets = [0, 0], sizes = [1, 128], strides = [1, 1]} : vector<1x384xf32> to vector<1x128xf32>
    %163 = vector.extract_strided_slice %161 {offsets = [0, 128], sizes = [1, 128], strides = [1, 1]} : vector<1x384xf32> to vector<1x128xf32>
    %164 = vector.extract_strided_slice %161 {offsets = [0, 256], sizes = [1, 128], strides = [1, 1]} : vector<1x384xf32> to vector<1x128xf32>
    %165 = vector.extract_strided_slice %155 {offsets = [0, 384], sizes = [1, 128], strides = [1, 1]} : vector<1x512xf32> to vector<1x128xf32>
    %166 = math.tanh %165 : vector<1x128xf32>
    %167 = arith.mulf %163, %142 : vector<1x128xf32>
    %168 = arith.mulf %164, %166 : vector<1x128xf32>
    %169 = arith.addf %167, %168 : vector<1x128xf32>
    %170 = vector.extract_strided_slice %152 {offsets = [0, 512], sizes = [1, 128], strides = [1, 1]} : vector<1x640xf32> to vector<1x128xf32>
    %c0_63 = arith.constant 0 : index
    %c0_64 = arith.constant 0 : index
    %171 = vector.load %arg5[%c0_63, %c0_64] : memref<128x128xf32, #tpu.memory_space<vmem>>, vector<128x128xf32>
    %cst_65 = arith.constant dense<0.000000e+00> : vector<1x128xf32>
    %172 = tpu.matmul %169, %171, %cst_65 {dimension_numbers = #tpu.dot_dimension_numbers<[1], [0], [0], [1], [0, 0, 1, 1], [], []>} : vector<1x128xf32>, vector<128x128xf32>, vector<1x128xf32> -> vector<1x128xf32>
    %173 = arith.addf %170, %172 : vector<1x128xf32>
    %c0_66 = arith.constant 0 : index
    %c0_67 = arith.constant 0 : index
    %174 = vector.load %arg6[%c0_66, %c0_67] : memref<1x128xf32, #tpu.memory_space<vmem>>, vector<1x128xf32>
    %175 = arith.addf %173, %174 : vector<1x128xf32>
    %176 = math.tanh %175 : vector<1x128xf32>
    %177 = arith.mulf %162, %176 : vector<1x128xf32>
    %c0_68 = arith.constant 0 : index
    %c0_69 = arith.constant 0 : index
    %178 = vector.load %arg4[%c0_68, %c0_69] : memref<128x640xf32, #tpu.memory_space<vmem>>, vector<128x640xf32>
    %cst_70 = arith.constant dense<0.000000e+00> : vector<1x640xf32>
    %179 = tpu.matmul %177, %178, %cst_70 {dimension_numbers = #tpu.dot_dimension_numbers<[1], [0], [0], [1], [0, 0, 1, 1], [], []>} : vector<1x128xf32>, vector<128x640xf32>, vector<1x640xf32> -> vector<1x640xf32>
    %180 = vector.extract_strided_slice %15 {offsets = [6, 0], sizes = [1, 512], strides = [1, 1]} : vector<8x512xf32> to vector<1x512xf32>
    %181 = vector.extract_strided_slice %179 {offsets = [0, 0], sizes = [1, 512], strides = [1, 1]} : vector<1x640xf32> to vector<1x512xf32>
    %182 = arith.addf %180, %181 : vector<1x512xf32>
    %183 = vector.extract_strided_slice %182 {offsets = [0, 0], sizes = [1, 384], strides = [1, 1]} : vector<1x512xf32> to vector<1x384xf32>
    %184 = arith.negf %183 : vector<1x384xf32>
    %185 = math.exp %184 : vector<1x384xf32>
    %cst_71 = arith.constant 1.000000e+00 : f32
    %186 = vector.broadcast %cst_71 : f32 to vector<1x384xf32>
    %187 = arith.addf %186, %185 : vector<1x384xf32>
    %188 = arith.divf %186, %187 : vector<1x384xf32>
    %189 = vector.extract_strided_slice %188 {offsets = [0, 0], sizes = [1, 128], strides = [1, 1]} : vector<1x384xf32> to vector<1x128xf32>
    %190 = vector.extract_strided_slice %188 {offsets = [0, 128], sizes = [1, 128], strides = [1, 1]} : vector<1x384xf32> to vector<1x128xf32>
    %191 = vector.extract_strided_slice %188 {offsets = [0, 256], sizes = [1, 128], strides = [1, 1]} : vector<1x384xf32> to vector<1x128xf32>
    %192 = vector.extract_strided_slice %182 {offsets = [0, 384], sizes = [1, 128], strides = [1, 1]} : vector<1x512xf32> to vector<1x128xf32>
    %193 = math.tanh %192 : vector<1x128xf32>
    %194 = arith.mulf %190, %169 : vector<1x128xf32>
    %195 = arith.mulf %191, %193 : vector<1x128xf32>
    %196 = arith.addf %194, %195 : vector<1x128xf32>
    %197 = vector.extract_strided_slice %179 {offsets = [0, 512], sizes = [1, 128], strides = [1, 1]} : vector<1x640xf32> to vector<1x128xf32>
    %c0_72 = arith.constant 0 : index
    %c0_73 = arith.constant 0 : index
    %198 = vector.load %arg5[%c0_72, %c0_73] : memref<128x128xf32, #tpu.memory_space<vmem>>, vector<128x128xf32>
    %cst_74 = arith.constant dense<0.000000e+00> : vector<1x128xf32>
    %199 = tpu.matmul %196, %198, %cst_74 {dimension_numbers = #tpu.dot_dimension_numbers<[1], [0], [0], [1], [0, 0, 1, 1], [], []>} : vector<1x128xf32>, vector<128x128xf32>, vector<1x128xf32> -> vector<1x128xf32>
    %200 = arith.addf %197, %199 : vector<1x128xf32>
    %c0_75 = arith.constant 0 : index
    %c0_76 = arith.constant 0 : index
    %201 = vector.load %arg6[%c0_75, %c0_76] : memref<1x128xf32, #tpu.memory_space<vmem>>, vector<1x128xf32>
    %202 = arith.addf %200, %201 : vector<1x128xf32>
    %203 = math.tanh %202 : vector<1x128xf32>
    %204 = arith.mulf %189, %203 : vector<1x128xf32>
    %c0_77 = arith.constant 0 : index
    %c0_78 = arith.constant 0 : index
    %205 = vector.load %arg4[%c0_77, %c0_78] : memref<128x640xf32, #tpu.memory_space<vmem>>, vector<128x640xf32>
    %cst_79 = arith.constant dense<0.000000e+00> : vector<1x640xf32>
    %206 = tpu.matmul %204, %205, %cst_79 {dimension_numbers = #tpu.dot_dimension_numbers<[1], [0], [0], [1], [0, 0, 1, 1], [], []>} : vector<1x128xf32>, vector<128x640xf32>, vector<1x640xf32> -> vector<1x640xf32>
    %207 = vector.extract_strided_slice %15 {offsets = [7, 0], sizes = [1, 512], strides = [1, 1]} : vector<8x512xf32> to vector<1x512xf32>
    %208 = vector.extract_strided_slice %206 {offsets = [0, 0], sizes = [1, 512], strides = [1, 1]} : vector<1x640xf32> to vector<1x512xf32>
    %209 = arith.addf %207, %208 : vector<1x512xf32>
    %210 = vector.extract_strided_slice %209 {offsets = [0, 0], sizes = [1, 384], strides = [1, 1]} : vector<1x512xf32> to vector<1x384xf32>
    %211 = arith.negf %210 : vector<1x384xf32>
    %212 = math.exp %211 : vector<1x384xf32>
    %cst_80 = arith.constant 1.000000e+00 : f32
    %213 = vector.broadcast %cst_80 : f32 to vector<1x384xf32>
    %214 = arith.addf %213, %212 : vector<1x384xf32>
    %215 = arith.divf %213, %214 : vector<1x384xf32>
    %216 = vector.extract_strided_slice %215 {offsets = [0, 0], sizes = [1, 128], strides = [1, 1]} : vector<1x384xf32> to vector<1x128xf32>
    %217 = vector.extract_strided_slice %215 {offsets = [0, 128], sizes = [1, 128], strides = [1, 1]} : vector<1x384xf32> to vector<1x128xf32>
    %218 = vector.extract_strided_slice %215 {offsets = [0, 256], sizes = [1, 128], strides = [1, 1]} : vector<1x384xf32> to vector<1x128xf32>
    %219 = vector.extract_strided_slice %209 {offsets = [0, 384], sizes = [1, 128], strides = [1, 1]} : vector<1x512xf32> to vector<1x128xf32>
    %220 = math.tanh %219 : vector<1x128xf32>
    %221 = arith.mulf %217, %196 : vector<1x128xf32>
    %222 = arith.mulf %218, %220 : vector<1x128xf32>
    %223 = arith.addf %221, %222 : vector<1x128xf32>
    %224 = vector.extract_strided_slice %206 {offsets = [0, 512], sizes = [1, 128], strides = [1, 1]} : vector<1x640xf32> to vector<1x128xf32>
    %c0_81 = arith.constant 0 : index
    %c0_82 = arith.constant 0 : index
    %225 = vector.load %arg5[%c0_81, %c0_82] : memref<128x128xf32, #tpu.memory_space<vmem>>, vector<128x128xf32>
    %cst_83 = arith.constant dense<0.000000e+00> : vector<1x128xf32>
    %226 = tpu.matmul %223, %225, %cst_83 {dimension_numbers = #tpu.dot_dimension_numbers<[1], [0], [0], [1], [0, 0, 1, 1], [], []>} : vector<1x128xf32>, vector<128x128xf32>, vector<1x128xf32> -> vector<1x128xf32>
    %227 = arith.addf %224, %226 : vector<1x128xf32>
    %c0_84 = arith.constant 0 : index
    %c0_85 = arith.constant 0 : index
    %228 = vector.load %arg6[%c0_84, %c0_85] : memref<1x128xf32, #tpu.memory_space<vmem>>, vector<1x128xf32>
    %229 = arith.addf %227, %228 : vector<1x128xf32>
    %230 = math.tanh %229 : vector<1x128xf32>
    %231 = arith.mulf %216, %230 : vector<1x128xf32>
    %232 = tpu.concatenate %42, %69, %96, %123, %150, %177, %204, %231 in 0 : vector<1x128xf32>, vector<1x128xf32>, vector<1x128xf32>, vector<1x128xf32>, vector<1x128xf32>, vector<1x128xf32>, vector<1x128xf32>, vector<1x128xf32> -> vector<8x128xf32>
    %233 = arith.index_cast %13 : i32 to index
    %c0_86 = arith.constant 0 : index
    %234 = vector.load %arg7[%233, %c0_86] : memref<8x128xf32, #tpu.memory_space<vmem>>, vector<8x128xf32>
    tpu.vector_store %arg7[%233, %c0_86], %232 {strides = array<i32>} : memref<8x128xf32, #tpu.memory_space<vmem>>, vector<8x128xf32>,
    %c1_i32 = arith.constant 1 : i32
    %c0_87 = arith.constant 0 : index
    %c0_88 = arith.constant 0 : index
    %235 = vector.load %arg8[%c0_87, %c0_88] : memref<1x128xf32, #tpu.memory_space<vmem>>, vector<1x128xf32>
    tpu.vector_store %arg8[%c0_87, %c0_88], %231 {strides = array<i32>} : memref<1x128xf32, #tpu.memory_space<vmem>>, vector<1x128xf32>,
    %c0_89 = arith.constant 0 : index
    %c0_90 = arith.constant 0 : index
    %236 = vector.load %arg9[%c0_89, %c0_90] : memref<1x128xf32, #tpu.memory_space<vmem>>, vector<1x128xf32>
    tpu.vector_store %arg9[%c0_89, %c0_90], %223 {strides = array<i32>} : memref<1x128xf32, #tpu.memory_space<vmem>>, vector<1x128xf32>,
    return
  }
  func.func @transform_0(%arg0: i32) -> (i32, i32) {
    %c0_i32 = arith.constant 0 : i32
    %c0_i32_0 = arith.constant 0 : i32
    return %arg0, %c0_i32 : i32, i32
  }
  func.func @transform_1(%arg0: i32) -> (i32, i32) {
    %c0_i32 = arith.constant 0 : i32
    %c0_i32_0 = arith.constant 0 : i32
    %c0_i32_1 = arith.constant 0 : i32
    return %c0_i32, %c0_i32_0 : i32, i32
  }
  func.func @transform_2(%arg0: i32) -> (i32, i32) {
    %c0_i32 = arith.constant 0 : i32
    %c0_i32_0 = arith.constant 0 : i32
    %c0_i32_1 = arith.constant 0 : i32
    return %c0_i32, %c0_i32_0 : i32, i32
  }
  func.func @transform_3(%arg0: i32) -> (i32, i32) {
    %c0_i32 = arith.constant 0 : i32
    %c0_i32_0 = arith.constant 0 : i32
    %c0_i32_1 = arith.constant 0 : i32
    return %c0_i32, %c0_i32_0 : i32, i32
  }
  func.func @transform_4(%arg0: i32) -> (i32, i32) {
    %c0_i32 = arith.constant 0 : i32
    %c0_i32_0 = arith.constant 0 : i32
    %c0_i32_1 = arith.constant 0 : i32
    return %c0_i32, %c0_i32_0 : i32, i32
  }
  func.func @transform_5(%arg0: i32) -> (i32, i32) {
    %c0_i32 = arith.constant 0 : i32
    %c0_i32_0 = arith.constant 0 : i32
    %c0_i32_1 = arith.constant 0 : i32
    return %c0_i32, %c0_i32_0 : i32, i32
  }
  func.func @transform_6(%arg0: i32) -> (i32, i32) {
    %c0_i32 = arith.constant 0 : i32
    %c0_i32_0 = arith.constant 0 : i32
    return %arg0, %c0_i32 : i32, i32
  }
}

module attributes {stable_mosaic.version = 11 : i64} {
  func.func @_lstm_kernel(%arg0: i32, %arg1: memref<8x128xf32, #tpu.memory_space<vmem>>, %arg2: memref<128x512xf32, #tpu.memory_space<vmem>>, %arg3: memref<1x512xf32, #tpu.memory_space<vmem>>, %arg4: memref<128x640xf32, #tpu.memory_space<vmem>>, %arg5: memref<128x128xf32, #tpu.memory_space<vmem>>, %arg6: memref<1x128xf32, #tpu.memory_space<vmem>>, %arg7: memref<8x128xf32, #tpu.memory_space<vmem>>, %arg8: memref<1x128xf32, #tpu.memory_space<vmem>>, %arg9: memref<1x128xf32, #tpu.memory_space<vmem>>, %arg10: memref<8x512xf32, #tpu.memory_space<vmem>>) attributes {dimension_semantics = [#tpu.dimension_semantics<arbitrary>], iteration_bounds = array<i64: 1>, scalar_prefetch = 0 : i64, scratch_operands = 3 : i64, tpu.core_type = #tpu.core_type<tc>, window_params = [{transform_indices = @transform_0, window_bounds = array<i64: 8, 128>}, {pipeline_mode = #tpu.pipeline_mode<synchronous>, transform_indices = @transform_1, window_bounds = array<i64: 128, 512>}, {pipeline_mode = #tpu.pipeline_mode<synchronous>, transform_indices = @transform_2, window_bounds = array<i64: 1, 512>}, {pipeline_mode = #tpu.pipeline_mode<synchronous>, transform_indices = @transform_3, window_bounds = array<i64: 128, 640>}, {pipeline_mode = #tpu.pipeline_mode<synchronous>, transform_indices = @transform_4, window_bounds = array<i64: 128, 128>}, {pipeline_mode = #tpu.pipeline_mode<synchronous>, transform_indices = @transform_5, window_bounds = array<i64: 1, 128>}, {transform_indices = @transform_6, window_bounds = array<i64: 8, 128>}]} {
    %c0_i32 = arith.constant 0 : i32
    %0 = arith.cmpi eq, %arg0, %c0_i32 : i32
    %1 = arith.extui %0 : i1 to i32
    %c0_i32_0 = arith.constant 0 : i32
    %2 = arith.cmpi ne, %1, %c0_i32_0 : i32
    scf.if %2 {
      %cst_91 = arith.constant 0.000000e+00 : f32
      %237 = vector.broadcast %cst_91 : f32 to vector<1x128xf32>
      %c0_92 = arith.constant 0 : index
      %c0_93 = arith.constant 0 : index
      %238 = vector.load %arg8[%c0_92, %c0_93] : memref<1x128xf32, #tpu.memory_space<vmem>>, vector<1x128xf32>
      tpu.vector_store %arg8[%c0_92, %c0_93], %237 {strides = array<i32>} : memref<1x128xf32, #tpu.memory_space<vmem>>, vector<1x128xf32>,
      %cst_94 = arith.constant 0.000000e+00 : f32
      %239 = vector.broadcast %cst_94 : f32 to vector<1x128xf32>
      %c0_95 = arith.constant 0 : index
      %c0_96 = arith.constant 0 : index
      %240 = vector.load %arg9[%c0_95, %c0_96] : memref<1x128xf32, #tpu.memory_space<vmem>>, vector<1x128xf32>
      tpu.vector_store %arg9[%c0_95, %c0_96], %239 {strides = array<i32>} : memref<1x128xf32, #tpu.memory_space<vmem>>, vector<1x128xf32>,
    } else {
    }
    %c0 = arith.constant 0 : index
    %c0_1 = arith.constant 0 : index
    %3 = vector.load %arg1[%c0, %c0_1] : memref<8x128xf32, #tpu.memory_space<vmem>>, vector<8x128xf32>
    %c0_2 = arith.constant 0 : index
    %c0_3 = arith.constant 0 : index
    %4 = vector.load %arg2[%c0_2, %c0_3] : memref<128x512xf32, #tpu.memory_space<vmem>>, vector<128x512xf32>
    %cst = arith.constant dense<0.000000e+00> : vector<8x512xf32>
    %5 = tpu.matmul %3, %4, %cst {dimension_numbers = #tpu.dot_dimension_numbers<[1], [0], [0], [1], [0, 0, 1, 1], [], []>} : vector<8x128xf32>, vector<128x512xf32>, vector<8x512xf32> -> vector<8x512xf32>
    %c0_4 = arith.constant 0 : index
    %c0_5 = arith.constant 0 : index
    %6 = vector.load %arg3[%c0_4, %c0_5] : memref<1x512xf32, #tpu.memory_space<vmem>>, vector<1x512xf32>
    %7 = vector.broadcast %6 : vector<1x512xf32> to vector<8x512xf32>
    %8 = arith.addf %5, %7 : vector<8x512xf32>
    %c0_6 = arith.constant 0 : index
    %c0_7 = arith.constant 0 : index
    %9 = vector.load %arg10[%c0_6, %c0_7] : memref<8x512xf32, #tpu.memory_space<vmem>>, vector<8x512xf32>
    tpu.vector_store %arg10[%c0_6, %c0_7], %8 {strides = array<i32>} : memref<8x512xf32, #tpu.memory_space<vmem>>, vector<8x512xf32>,
    %c0_8 = arith.constant 0 : index
    %c0_9 = arith.constant 0 : index
    %10 = vector.load %arg8[%c0_8, %c0_9] : memref<1x128xf32, #tpu.memory_space<vmem>>, vector<1x128xf32>
    %c0_10 = arith.constant 0 : index
    %c0_11 = arith.constant 0 : index
    %11 = vector.load %arg9[%c0_10, %c0_11] : memref<1x128xf32, #tpu.memory_space<vmem>>, vector<1x128xf32>
    %c0_i32_12 = arith.constant 0 : i32
    %c8_i32 = arith.constant 8 : i32
    %12 = arith.muli %c0_i32_12, %c8_i32 : i32
    %13 = tpu.assume_multiple %12, 8 : i32
    %14 = arith.index_cast %13 : i32 to index
    %c0_13 = arith.constant 0 : index
    %15 = vector.load %arg10[%14, %c0_13] : memref<8x512xf32, #tpu.memory_space<vmem>>, vector<8x512xf32>
    %c0_14 = arith.constant 0 : index
    %c0_15 = arith.constant 0 : index
    %16 = vector.load %arg4[%c0_14, %c0_15] : memref<128x640xf32, #tpu.memory_space<vmem>>, vector<128x640xf32>
    %cst_16 = arith.constant dense<0.000000e+00> : vector<1x640xf32>
    %17 = tpu.matmul %10, %16, %cst_16 {dimension_numbers = #tpu.dot_dimension_numbers<[1], [0], [0], [1], [0, 0, 1, 1], [], []>} : vector<1x128xf32>, vector<128x640xf32>, vector<1x640xf32> -> vector<1x640xf32>
    %18 = vector.extract_strided_slice %15 {offsets = [0, 0], sizes = [1, 512], strides = [1, 1]} : vector<8x512xf32> to vector<1x512xf32>
    %19 = vector.extract_strided_slice %17 {offsets = [0, 0], sizes = [1, 512], strides = [1, 1]} : vector<1x640xf32> to vector<1x512xf32>
    %20 = arith.addf %18, %19 : vector<1x512xf32>
    %21 = vector.extract_strided_slice %20 {offsets = [0, 0], sizes = [1, 384], strides = [1, 1]} : vector<1x512xf32> to vector<1x384xf32>
    %22 = arith.negf %21 : vector<1x384xf32>
    %23 = math.exp %22 : vector<1x384xf32>
    %cst_17 = arith.constant 1.000000e+00 : f32
    %24 = vector.broadcast %cst_17 : f32 to vector<1x384xf32>
    %25 = arith.addf %24, %23 : vector<1x384xf32>
    %26 = arith.divf %24, %25 : vector<1x384xf32>
    %27 = vector.extract_strided_slice %26 {offsets = [0, 0], sizes = [1, 128], strides = [1, 1]} : vector<1x384xf32> to vector<1x128xf32>
    %28 = vector.extract_strided_slice %26 {offsets = [0, 128], sizes = [1, 128], strides = [1, 1]} : vector<1x384xf32> to vector<1x128xf32>
    %29 = vector.extract_strided_slice %26 {offsets = [0, 256], sizes = [1, 128], strides = [1, 1]} : vector<1x384xf32> to vector<1x128xf32>
    %30 = vector.extract_strided_slice %20 {offsets = [0, 384], sizes = [1, 128], strides = [1, 1]} : vector<1x512xf32> to vector<1x128xf32>
    %31 = math.tanh %30 : vector<1x128xf32>
    %32 = arith.mulf %28, %11 : vector<1x128xf32>
    %33 = arith.mulf %29, %31 : vector<1x128xf32>
    %34 = arith.addf %32, %33 : vector<1x128xf32>
    %35 = vector.extract_strided_slice %17 {offsets = [0, 512], sizes = [1, 128], strides = [1, 1]} : vector<1x640xf32> to vector<1x128xf32>
    %c0_18 = arith.constant 0 : index
    %c0_19 = arith.constant 0 : index
    %36 = vector.load %arg5[%c0_18, %c0_19] : memref<128x128xf32, #tpu.memory_space<vmem>>, vector<128x128xf32>
    %cst_20 = arith.constant dense<0.000000e+00> : vector<1x128xf32>
    %37 = tpu.matmul %34, %36, %cst_20 {dimension_numbers = #tpu.dot_dimension_numbers<[1], [0], [0], [1], [0, 0, 1, 1], [], []>} : vector<1x128xf32>, vector<128x128xf32>, vector<1x128xf32> -> vector<1x128xf32>
    %38 = arith.addf %35, %37 : vector<1x128xf32>
    %c0_21 = arith.constant 0 : index
    %c0_22 = arith.constant 0 : index
    %39 = vector.load %arg6[%c0_21, %c0_22] : memref<1x128xf32, #tpu.memory_space<vmem>>, vector<1x128xf32>
    %40 = arith.addf %38, %39 : vector<1x128xf32>
    %41 = math.tanh %40 : vector<1x128xf32>
    %42 = arith.mulf %27, %41 : vector<1x128xf32>
    %c0_23 = arith.constant 0 : index
    %c0_24 = arith.constant 0 : index
    %43 = vector.load %arg4[%c0_23, %c0_24] : memref<128x640xf32, #tpu.memory_space<vmem>>, vector<128x640xf32>
    %cst_25 = arith.constant dense<0.000000e+00> : vector<1x640xf32>
    %44 = tpu.matmul %42, %43, %cst_25 {dimension_numbers = #tpu.dot_dimension_numbers<[1], [0], [0], [1], [0, 0, 1, 1], [], []>} : vector<1x128xf32>, vector<128x640xf32>, vector<1x640xf32> -> vector<1x640xf32>
    %45 = vector.extract_strided_slice %15 {offsets = [1, 0], sizes = [1, 512], strides = [1, 1]} : vector<8x512xf32> to vector<1x512xf32>
    %46 = vector.extract_strided_slice %44 {offsets = [0, 0], sizes = [1, 512], strides = [1, 1]} : vector<1x640xf32> to vector<1x512xf32>
    %47 = arith.addf %45, %46 : vector<1x512xf32>
    %48 = vector.extract_strided_slice %47 {offsets = [0, 0], sizes = [1, 384], strides = [1, 1]} : vector<1x512xf32> to vector<1x384xf32>
    %49 = arith.negf %48 : vector<1x384xf32>
    %50 = math.exp %49 : vector<1x384xf32>
    %cst_26 = arith.constant 1.000000e+00 : f32
    %51 = vector.broadcast %cst_26 : f32 to vector<1x384xf32>
    %52 = arith.addf %51, %50 : vector<1x384xf32>
    %53 = arith.divf %51, %52 : vector<1x384xf32>
    %54 = vector.extract_strided_slice %53 {offsets = [0, 0], sizes = [1, 128], strides = [1, 1]} : vector<1x384xf32> to vector<1x128xf32>
    %55 = vector.extract_strided_slice %53 {offsets = [0, 128], sizes = [1, 128], strides = [1, 1]} : vector<1x384xf32> to vector<1x128xf32>
    %56 = vector.extract_strided_slice %53 {offsets = [0, 256], sizes = [1, 128], strides = [1, 1]} : vector<1x384xf32> to vector<1x128xf32>
    %57 = vector.extract_strided_slice %47 {offsets = [0, 384], sizes = [1, 128], strides = [1, 1]} : vector<1x512xf32> to vector<1x128xf32>
    %58 = math.tanh %57 : vector<1x128xf32>
    %59 = arith.mulf %55, %34 : vector<1x128xf32>
    %60 = arith.mulf %56, %58 : vector<1x128xf32>
    %61 = arith.addf %59, %60 : vector<1x128xf32>
    %62 = vector.extract_strided_slice %44 {offsets = [0, 512], sizes = [1, 128], strides = [1, 1]} : vector<1x640xf32> to vector<1x128xf32>
    %c0_27 = arith.constant 0 : index
    %c0_28 = arith.constant 0 : index
    %63 = vector.load %arg5[%c0_27, %c0_28] : memref<128x128xf32, #tpu.memory_space<vmem>>, vector<128x128xf32>
    %cst_29 = arith.constant dense<0.000000e+00> : vector<1x128xf32>
    %64 = tpu.matmul %61, %63, %cst_29 {dimension_numbers = #tpu.dot_dimension_numbers<[1], [0], [0], [1], [0, 0, 1, 1], [], []>} : vector<1x128xf32>, vector<128x128xf32>, vector<1x128xf32> -> vector<1x128xf32>
    %65 = arith.addf %62, %64 : vector<1x128xf32>
    %c0_30 = arith.constant 0 : index
    %c0_31 = arith.constant 0 : index
    %66 = vector.load %arg6[%c0_30, %c0_31] : memref<1x128xf32, #tpu.memory_space<vmem>>, vector<1x128xf32>
    %67 = arith.addf %65, %66 : vector<1x128xf32>
    %68 = math.tanh %67 : vector<1x128xf32>
    %69 = arith.mulf %54, %68 : vector<1x128xf32>
    %c0_32 = arith.constant 0 : index
    %c0_33 = arith.constant 0 : index
    %70 = vector.load %arg4[%c0_32, %c0_33] : memref<128x640xf32, #tpu.memory_space<vmem>>, vector<128x640xf32>
    %cst_34 = arith.constant dense<0.000000e+00> : vector<1x640xf32>
    %71 = tpu.matmul %69, %70, %cst_34 {dimension_numbers = #tpu.dot_dimension_numbers<[1], [0], [0], [1], [0, 0, 1, 1], [], []>} : vector<1x128xf32>, vector<128x640xf32>, vector<1x640xf32> -> vector<1x640xf32>
    %72 = vector.extract_strided_slice %15 {offsets = [2, 0], sizes = [1, 512], strides = [1, 1]} : vector<8x512xf32> to vector<1x512xf32>
    %73 = vector.extract_strided_slice %71 {offsets = [0, 0], sizes = [1, 512], strides = [1, 1]} : vector<1x640xf32> to vector<1x512xf32>
    %74 = arith.addf %72, %73 : vector<1x512xf32>
    %75 = vector.extract_strided_slice %74 {offsets = [0, 0], sizes = [1, 384], strides = [1, 1]} : vector<1x512xf32> to vector<1x384xf32>
    %76 = arith.negf %75 : vector<1x384xf32>
    %77 = math.exp %76 : vector<1x384xf32>
    %cst_35 = arith.constant 1.000000e+00 : f32
    %78 = vector.broadcast %cst_35 : f32 to vector<1x384xf32>
    %79 = arith.addf %78, %77 : vector<1x384xf32>
    %80 = arith.divf %78, %79 : vector<1x384xf32>
    %81 = vector.extract_strided_slice %80 {offsets = [0, 0], sizes = [1, 128], strides = [1, 1]} : vector<1x384xf32> to vector<1x128xf32>
    %82 = vector.extract_strided_slice %80 {offsets = [0, 128], sizes = [1, 128], strides = [1, 1]} : vector<1x384xf32> to vector<1x128xf32>
    %83 = vector.extract_strided_slice %80 {offsets = [0, 256], sizes = [1, 128], strides = [1, 1]} : vector<1x384xf32> to vector<1x128xf32>
    %84 = vector.extract_strided_slice %74 {offsets = [0, 384], sizes = [1, 128], strides = [1, 1]} : vector<1x512xf32> to vector<1x128xf32>
    %85 = math.tanh %84 : vector<1x128xf32>
    %86 = arith.mulf %82, %61 : vector<1x128xf32>
    %87 = arith.mulf %83, %85 : vector<1x128xf32>
    %88 = arith.addf %86, %87 : vector<1x128xf32>
    %89 = vector.extract_strided_slice %71 {offsets = [0, 512], sizes = [1, 128], strides = [1, 1]} : vector<1x640xf32> to vector<1x128xf32>
    %c0_36 = arith.constant 0 : index
    %c0_37 = arith.constant 0 : index
    %90 = vector.load %arg5[%c0_36, %c0_37] : memref<128x128xf32, #tpu.memory_space<vmem>>, vector<128x128xf32>
    %cst_38 = arith.constant dense<0.000000e+00> : vector<1x128xf32>
    %91 = tpu.matmul %88, %90, %cst_38 {dimension_numbers = #tpu.dot_dimension_numbers<[1], [0], [0], [1], [0, 0, 1, 1], [], []>} : vector<1x128xf32>, vector<128x128xf32>, vector<1x128xf32> -> vector<1x128xf32>
    %92 = arith.addf %89, %91 : vector<1x128xf32>
    %c0_39 = arith.constant 0 : index
    %c0_40 = arith.constant 0 : index
    %93 = vector.load %arg6[%c0_39, %c0_40] : memref<1x128xf32, #tpu.memory_space<vmem>>, vector<1x128xf32>
    %94 = arith.addf %92, %93 : vector<1x128xf32>
    %95 = math.tanh %94 : vector<1x128xf32>
    %96 = arith.mulf %81, %95 : vector<1x128xf32>
    %c0_41 = arith.constant 0 : index
    %c0_42 = arith.constant 0 : index
    %97 = vector.load %arg4[%c0_41, %c0_42] : memref<128x640xf32, #tpu.memory_space<vmem>>, vector<128x640xf32>
    %cst_43 = arith.constant dense<0.000000e+00> : vector<1x640xf32>
    %98 = tpu.matmul %96, %97, %cst_43 {dimension_numbers = #tpu.dot_dimension_numbers<[1], [0], [0], [1], [0, 0, 1, 1], [], []>} : vector<1x128xf32>, vector<128x640xf32>, vector<1x640xf32> -> vector<1x640xf32>
    %99 = vector.extract_strided_slice %15 {offsets = [3, 0], sizes = [1, 512], strides = [1, 1]} : vector<8x512xf32> to vector<1x512xf32>
    %100 = vector.extract_strided_slice %98 {offsets = [0, 0], sizes = [1, 512], strides = [1, 1]} : vector<1x640xf32> to vector<1x512xf32>
    %101 = arith.addf %99, %100 : vector<1x512xf32>
    %102 = vector.extract_strided_slice %101 {offsets = [0, 0], sizes = [1, 384], strides = [1, 1]} : vector<1x512xf32> to vector<1x384xf32>
    %103 = arith.negf %102 : vector<1x384xf32>
    %104 = math.exp %103 : vector<1x384xf32>
    %cst_44 = arith.constant 1.000000e+00 : f32
    %105 = vector.broadcast %cst_44 : f32 to vector<1x384xf32>
    %106 = arith.addf %105, %104 : vector<1x384xf32>
    %107 = arith.divf %105, %106 : vector<1x384xf32>
    %108 = vector.extract_strided_slice %107 {offsets = [0, 0], sizes = [1, 128], strides = [1, 1]} : vector<1x384xf32> to vector<1x128xf32>
    %109 = vector.extract_strided_slice %107 {offsets = [0, 128], sizes = [1, 128], strides = [1, 1]} : vector<1x384xf32> to vector<1x128xf32>
    %110 = vector.extract_strided_slice %107 {offsets = [0, 256], sizes = [1, 128], strides = [1, 1]} : vector<1x384xf32> to vector<1x128xf32>
    %111 = vector.extract_strided_slice %101 {offsets = [0, 384], sizes = [1, 128], strides = [1, 1]} : vector<1x512xf32> to vector<1x128xf32>
    %112 = math.tanh %111 : vector<1x128xf32>
    %113 = arith.mulf %109, %88 : vector<1x128xf32>
    %114 = arith.mulf %110, %112 : vector<1x128xf32>
    %115 = arith.addf %113, %114 : vector<1x128xf32>
    %116 = vector.extract_strided_slice %98 {offsets = [0, 512], sizes = [1, 128], strides = [1, 1]} : vector<1x640xf32> to vector<1x128xf32>
    %c0_45 = arith.constant 0 : index
    %c0_46 = arith.constant 0 : index
    %117 = vector.load %arg5[%c0_45, %c0_46] : memref<128x128xf32, #tpu.memory_space<vmem>>, vector<128x128xf32>
    %cst_47 = arith.constant dense<0.000000e+00> : vector<1x128xf32>
    %118 = tpu.matmul %115, %117, %cst_47 {dimension_numbers = #tpu.dot_dimension_numbers<[1], [0], [0], [1], [0, 0, 1, 1], [], []>} : vector<1x128xf32>, vector<128x128xf32>, vector<1x128xf32> -> vector<1x128xf32>
    %119 = arith.addf %116, %118 : vector<1x128xf32>
    %c0_48 = arith.constant 0 : index
    %c0_49 = arith.constant 0 : index
    %120 = vector.load %arg6[%c0_48, %c0_49] : memref<1x128xf32, #tpu.memory_space<vmem>>, vector<1x128xf32>
    %121 = arith.addf %119, %120 : vector<1x128xf32>
    %122 = math.tanh %121 : vector<1x128xf32>
    %123 = arith.mulf %108, %122 : vector<1x128xf32>
    %c0_50 = arith.constant 0 : index
    %c0_51 = arith.constant 0 : index
    %124 = vector.load %arg4[%c0_50, %c0_51] : memref<128x640xf32, #tpu.memory_space<vmem>>, vector<128x640xf32>
    %cst_52 = arith.constant dense<0.000000e+00> : vector<1x640xf32>
    %125 = tpu.matmul %123, %124, %cst_52 {dimension_numbers = #tpu.dot_dimension_numbers<[1], [0], [0], [1], [0, 0, 1, 1], [], []>} : vector<1x128xf32>, vector<128x640xf32>, vector<1x640xf32> -> vector<1x640xf32>
    %126 = vector.extract_strided_slice %15 {offsets = [4, 0], sizes = [1, 512], strides = [1, 1]} : vector<8x512xf32> to vector<1x512xf32>
    %127 = vector.extract_strided_slice %125 {offsets = [0, 0], sizes = [1, 512], strides = [1, 1]} : vector<1x640xf32> to vector<1x512xf32>
    %128 = arith.addf %126, %127 : vector<1x512xf32>
    %129 = vector.extract_strided_slice %128 {offsets = [0, 0], sizes = [1, 384], strides = [1, 1]} : vector<1x512xf32> to vector<1x384xf32>
    %130 = arith.negf %129 : vector<1x384xf32>
    %131 = math.exp %130 : vector<1x384xf32>
    %cst_53 = arith.constant 1.000000e+00 : f32
    %132 = vector.broadcast %cst_53 : f32 to vector<1x384xf32>
    %133 = arith.addf %132, %131 : vector<1x384xf32>
    %134 = arith.divf %132, %133 : vector<1x384xf32>
    %135 = vector.extract_strided_slice %134 {offsets = [0, 0], sizes = [1, 128], strides = [1, 1]} : vector<1x384xf32> to vector<1x128xf32>
    %136 = vector.extract_strided_slice %134 {offsets = [0, 128], sizes = [1, 128], strides = [1, 1]} : vector<1x384xf32> to vector<1x128xf32>
    %137 = vector.extract_strided_slice %134 {offsets = [0, 256], sizes = [1, 128], strides = [1, 1]} : vector<1x384xf32> to vector<1x128xf32>
    %138 = vector.extract_strided_slice %128 {offsets = [0, 384], sizes = [1, 128], strides = [1, 1]} : vector<1x512xf32> to vector<1x128xf32>
    %139 = math.tanh %138 : vector<1x128xf32>
    %140 = arith.mulf %136, %115 : vector<1x128xf32>
    %141 = arith.mulf %137, %139 : vector<1x128xf32>
    %142 = arith.addf %140, %141 : vector<1x128xf32>
    %143 = vector.extract_strided_slice %125 {offsets = [0, 512], sizes = [1, 128], strides = [1, 1]} : vector<1x640xf32> to vector<1x128xf32>
    %c0_54 = arith.constant 0 : index
    %c0_55 = arith.constant 0 : index
    %144 = vector.load %arg5[%c0_54, %c0_55] : memref<128x128xf32, #tpu.memory_space<vmem>>, vector<128x128xf32>
    %cst_56 = arith.constant dense<0.000000e+00> : vector<1x128xf32>
    %145 = tpu.matmul %142, %144, %cst_56 {dimension_numbers = #tpu.dot_dimension_numbers<[1], [0], [0], [1], [0, 0, 1, 1], [], []>} : vector<1x128xf32>, vector<128x128xf32>, vector<1x128xf32> -> vector<1x128xf32>
    %146 = arith.addf %143, %145 : vector<1x128xf32>
    %c0_57 = arith.constant 0 : index
    %c0_58 = arith.constant 0 : index
    %147 = vector.load %arg6[%c0_57, %c0_58] : memref<1x128xf32, #tpu.memory_space<vmem>>, vector<1x128xf32>
    %148 = arith.addf %146, %147 : vector<1x128xf32>
    %149 = math.tanh %148 : vector<1x128xf32>
    %150 = arith.mulf %135, %149 : vector<1x128xf32>
    %c0_59 = arith.constant 0 : index
    %c0_60 = arith.constant 0 : index
    %151 = vector.load %arg4[%c0_59, %c0_60] : memref<128x640xf32, #tpu.memory_space<vmem>>, vector<128x640xf32>
    %cst_61 = arith.constant dense<0.000000e+00> : vector<1x640xf32>
    %152 = tpu.matmul %150, %151, %cst_61 {dimension_numbers = #tpu.dot_dimension_numbers<[1], [0], [0], [1], [0, 0, 1, 1], [], []>} : vector<1x128xf32>, vector<128x640xf32>, vector<1x640xf32> -> vector<1x640xf32>
    %153 = vector.extract_strided_slice %15 {offsets = [5, 0], sizes = [1, 512], strides = [1, 1]} : vector<8x512xf32> to vector<1x512xf32>
    %154 = vector.extract_strided_slice %152 {offsets = [0, 0], sizes = [1, 512], strides = [1, 1]} : vector<1x640xf32> to vector<1x512xf32>
    %155 = arith.addf %153, %154 : vector<1x512xf32>
    %156 = vector.extract_strided_slice %155 {offsets = [0, 0], sizes = [1, 384], strides = [1, 1]} : vector<1x512xf32> to vector<1x384xf32>
    %157 = arith.negf %156 : vector<1x384xf32>
    %158 = math.exp %157 : vector<1x384xf32>
    %cst_62 = arith.constant 1.000000e+00 : f32
    %159 = vector.broadcast %cst_62 : f32 to vector<1x384xf32>
    %160 = arith.addf %159, %158 : vector<1x384xf32>
    %161 = arith.divf %159, %160 : vector<1x384xf32>
    %162 = vector.extract_strided_slice %161 {offsets = [0, 0], sizes = [1, 128], strides = [1, 1]} : vector<1x384xf32> to vector<1x128xf32>
    %163 = vector.extract_strided_slice %161 {offsets = [0, 128], sizes = [1, 128], strides = [1, 1]} : vector<1x384xf32> to vector<1x128xf32>
    %164 = vector.extract_strided_slice %161 {offsets = [0, 256], sizes = [1, 128], strides = [1, 1]} : vector<1x384xf32> to vector<1x128xf32>
    %165 = vector.extract_strided_slice %155 {offsets = [0, 384], sizes = [1, 128], strides = [1, 1]} : vector<1x512xf32> to vector<1x128xf32>
    %166 = math.tanh %165 : vector<1x128xf32>
    %167 = arith.mulf %163, %142 : vector<1x128xf32>
    %168 = arith.mulf %164, %166 : vector<1x128xf32>
    %169 = arith.addf %167, %168 : vector<1x128xf32>
    %170 = vector.extract_strided_slice %152 {offsets = [0, 512], sizes = [1, 128], strides = [1, 1]} : vector<1x640xf32> to vector<1x128xf32>
    %c0_63 = arith.constant 0 : index
    %c0_64 = arith.constant 0 : index
    %171 = vector.load %arg5[%c0_63, %c0_64] : memref<128x128xf32, #tpu.memory_space<vmem>>, vector<128x128xf32>
    %cst_65 = arith.constant dense<0.000000e+00> : vector<1x128xf32>
    %172 = tpu.matmul %169, %171, %cst_65 {dimension_numbers = #tpu.dot_dimension_numbers<[1], [0], [0], [1], [0, 0, 1, 1], [], []>} : vector<1x128xf32>, vector<128x128xf32>, vector<1x128xf32> -> vector<1x128xf32>
    %173 = arith.addf %170, %172 : vector<1x128xf32>
    %c0_66 = arith.constant 0 : index
    %c0_67 = arith.constant 0 : index
    %174 = vector.load %arg6[%c0_66, %c0_67] : memref<1x128xf32, #tpu.memory_space<vmem>>, vector<1x128xf32>
    %175 = arith.addf %173, %174 : vector<1x128xf32>
    %176 = math.tanh %175 : vector<1x128xf32>
    %177 = arith.mulf %162, %176 : vector<1x128xf32>
    %c0_68 = arith.constant 0 : index
    %c0_69 = arith.constant 0 : index
    %178 = vector.load %arg4[%c0_68, %c0_69] : memref<128x640xf32, #tpu.memory_space<vmem>>, vector<128x640xf32>
    %cst_70 = arith.constant dense<0.000000e+00> : vector<1x640xf32>
    %179 = tpu.matmul %177, %178, %cst_70 {dimension_numbers = #tpu.dot_dimension_numbers<[1], [0], [0], [1], [0, 0, 1, 1], [], []>} : vector<1x128xf32>, vector<128x640xf32>, vector<1x640xf32> -> vector<1x640xf32>
    %180 = vector.extract_strided_slice %15 {offsets = [6, 0], sizes = [1, 512], strides = [1, 1]} : vector<8x512xf32> to vector<1x512xf32>
    %181 = vector.extract_strided_slice %179 {offsets = [0, 0], sizes = [1, 512], strides = [1, 1]} : vector<1x640xf32> to vector<1x512xf32>
    %182 = arith.addf %180, %181 : vector<1x512xf32>
    %183 = vector.extract_strided_slice %182 {offsets = [0, 0], sizes = [1, 384], strides = [1, 1]} : vector<1x512xf32> to vector<1x384xf32>
    %184 = arith.negf %183 : vector<1x384xf32>
    %185 = math.exp %184 : vector<1x384xf32>
    %cst_71 = arith.constant 1.000000e+00 : f32
    %186 = vector.broadcast %cst_71 : f32 to vector<1x384xf32>
    %187 = arith.addf %186, %185 : vector<1x384xf32>
    %188 = arith.divf %186, %187 : vector<1x384xf32>
    %189 = vector.extract_strided_slice %188 {offsets = [0, 0], sizes = [1, 128], strides = [1, 1]} : vector<1x384xf32> to vector<1x128xf32>
    %190 = vector.extract_strided_slice %188 {offsets = [0, 128], sizes = [1, 128], strides = [1, 1]} : vector<1x384xf32> to vector<1x128xf32>
    %191 = vector.extract_strided_slice %188 {offsets = [0, 256], sizes = [1, 128], strides = [1, 1]} : vector<1x384xf32> to vector<1x128xf32>
    %192 = vector.extract_strided_slice %182 {offsets = [0, 384], sizes = [1, 128], strides = [1, 1]} : vector<1x512xf32> to vector<1x128xf32>
    %193 = math.tanh %192 : vector<1x128xf32>
    %194 = arith.mulf %190, %169 : vector<1x128xf32>
    %195 = arith.mulf %191, %193 : vector<1x128xf32>
    %196 = arith.addf %194, %195 : vector<1x128xf32>
    %197 = vector.extract_strided_slice %179 {offsets = [0, 512], sizes = [1, 128], strides = [1, 1]} : vector<1x640xf32> to vector<1x128xf32>
    %c0_72 = arith.constant 0 : index
    %c0_73 = arith.constant 0 : index
    %198 = vector.load %arg5[%c0_72, %c0_73] : memref<128x128xf32, #tpu.memory_space<vmem>>, vector<128x128xf32>
    %cst_74 = arith.constant dense<0.000000e+00> : vector<1x128xf32>
    %199 = tpu.matmul %196, %198, %cst_74 {dimension_numbers = #tpu.dot_dimension_numbers<[1], [0], [0], [1], [0, 0, 1, 1], [], []>} : vector<1x128xf32>, vector<128x128xf32>, vector<1x128xf32> -> vector<1x128xf32>
    %200 = arith.addf %197, %199 : vector<1x128xf32>
    %c0_75 = arith.constant 0 : index
    %c0_76 = arith.constant 0 : index
    %201 = vector.load %arg6[%c0_75, %c0_76] : memref<1x128xf32, #tpu.memory_space<vmem>>, vector<1x128xf32>
    %202 = arith.addf %200, %201 : vector<1x128xf32>
    %203 = math.tanh %202 : vector<1x128xf32>
    %204 = arith.mulf %189, %203 : vector<1x128xf32>
    %c0_77 = arith.constant 0 : index
    %c0_78 = arith.constant 0 : index
    %205 = vector.load %arg4[%c0_77, %c0_78] : memref<128x640xf32, #tpu.memory_space<vmem>>, vector<128x640xf32>
    %cst_79 = arith.constant dense<0.000000e+00> : vector<1x640xf32>
    %206 = tpu.matmul %204, %205, %cst_79 {dimension_numbers = #tpu.dot_dimension_numbers<[1], [0], [0], [1], [0, 0, 1, 1], [], []>} : vector<1x128xf32>, vector<128x640xf32>, vector<1x640xf32> -> vector<1x640xf32>
    %207 = vector.extract_strided_slice %15 {offsets = [7, 0], sizes = [1, 512], strides = [1, 1]} : vector<8x512xf32> to vector<1x512xf32>
    %208 = vector.extract_strided_slice %206 {offsets = [0, 0], sizes = [1, 512], strides = [1, 1]} : vector<1x640xf32> to vector<1x512xf32>
    %209 = arith.addf %207, %208 : vector<1x512xf32>
    %210 = vector.extract_strided_slice %209 {offsets = [0, 0], sizes = [1, 384], strides = [1, 1]} : vector<1x512xf32> to vector<1x384xf32>
    %211 = arith.negf %210 : vector<1x384xf32>
    %212 = math.exp %211 : vector<1x384xf32>
    %cst_80 = arith.constant 1.000000e+00 : f32
    %213 = vector.broadcast %cst_80 : f32 to vector<1x384xf32>
    %214 = arith.addf %213, %212 : vector<1x384xf32>
    %215 = arith.divf %213, %214 : vector<1x384xf32>
    %216 = vector.extract_strided_slice %215 {offsets = [0, 0], sizes = [1, 128], strides = [1, 1]} : vector<1x384xf32> to vector<1x128xf32>
    %217 = vector.extract_strided_slice %215 {offsets = [0, 128], sizes = [1, 128], strides = [1, 1]} : vector<1x384xf32> to vector<1x128xf32>
    %218 = vector.extract_strided_slice %215 {offsets = [0, 256], sizes = [1, 128], strides = [1, 1]} : vector<1x384xf32> to vector<1x128xf32>
    %219 = vector.extract_strided_slice %209 {offsets = [0, 384], sizes = [1, 128], strides = [1, 1]} : vector<1x512xf32> to vector<1x128xf32>
    %220 = math.tanh %219 : vector<1x128xf32>
    %221 = arith.mulf %217, %196 : vector<1x128xf32>
    %222 = arith.mulf %218, %220 : vector<1x128xf32>
    %223 = arith.addf %221, %222 : vector<1x128xf32>
    %224 = vector.extract_strided_slice %206 {offsets = [0, 512], sizes = [1, 128], strides = [1, 1]} : vector<1x640xf32> to vector<1x128xf32>
    %c0_81 = arith.constant 0 : index
    %c0_82 = arith.constant 0 : index
    %225 = vector.load %arg5[%c0_81, %c0_82] : memref<128x128xf32, #tpu.memory_space<vmem>>, vector<128x128xf32>
    %cst_83 = arith.constant dense<0.000000e+00> : vector<1x128xf32>
    %226 = tpu.matmul %223, %225, %cst_83 {dimension_numbers = #tpu.dot_dimension_numbers<[1], [0], [0], [1], [0, 0, 1, 1], [], []>} : vector<1x128xf32>, vector<128x128xf32>, vector<1x128xf32> -> vector<1x128xf32>
    %227 = arith.addf %224, %226 : vector<1x128xf32>
    %c0_84 = arith.constant 0 : index
    %c0_85 = arith.constant 0 : index
    %228 = vector.load %arg6[%c0_84, %c0_85] : memref<1x128xf32, #tpu.memory_space<vmem>>, vector<1x128xf32>
    %229 = arith.addf %227, %228 : vector<1x128xf32>
    %230 = math.tanh %229 : vector<1x128xf32>
    %231 = arith.mulf %216, %230 : vector<1x128xf32>
    %232 = tpu.concatenate %42, %69, %96, %123, %150, %177, %204, %231 in 0 : vector<1x128xf32>, vector<1x128xf32>, vector<1x128xf32>, vector<1x128xf32>, vector<1x128xf32>, vector<1x128xf32>, vector<1x128xf32>, vector<1x128xf32> -> vector<8x128xf32>
    %233 = arith.index_cast %13 : i32 to index
    %c0_86 = arith.constant 0 : index
    %234 = vector.load %arg7[%233, %c0_86] : memref<8x128xf32, #tpu.memory_space<vmem>>, vector<8x128xf32>
    tpu.vector_store %arg7[%233, %c0_86], %232 {strides = array<i32>} : memref<8x128xf32, #tpu.memory_space<vmem>>, vector<8x128xf32>,
    %c1_i32 = arith.constant 1 : i32
    %c0_87 = arith.constant 0 : index
    %c0_88 = arith.constant 0 : index
    %235 = vector.load %arg8[%c0_87, %c0_88] : memref<1x128xf32, #tpu.memory_space<vmem>>, vector<1x128xf32>
    tpu.vector_store %arg8[%c0_87, %c0_88], %231 {strides = array<i32>} : memref<1x128xf32, #tpu.memory_space<vmem>>, vector<1x128xf32>,
    %c0_89 = arith.constant 0 : index
    %c0_90 = arith.constant 0 : index
    %236 = vector.load %arg9[%c0_89, %c0_90] : memref<1x128xf32, #tpu.memory_space<vmem>>, vector<1x128xf32>
    tpu.vector_store %arg9[%c0_89, %c0_90], %223 {strides = array<i32>} : memref<1x128xf32, #tpu.memory_space<vmem>>, vector<1x128xf32>,
    return
  }
  func.func @transform_0(%arg0: i32) -> (i32, i32) {
    %c0_i32 = arith.constant 0 : i32
    %c0_i32_0 = arith.constant 0 : i32
    return %arg0, %c0_i32 : i32, i32
  }
  func.func @transform_1(%arg0: i32) -> (i32, i32) {
    %c0_i32 = arith.constant 0 : i32
    %c0_i32_0 = arith.constant 0 : i32
    %c0_i32_1 = arith.constant 0 : i32
    return %c0_i32, %c0_i32_0 : i32, i32
  }
  func.func @transform_2(%arg0: i32) -> (i32, i32) {
    %c0_i32 = arith.constant 0 : i32
    %c0_i32_0 = arith.constant 0 : i32
    %c0_i32_1 = arith.constant 0 : i32
    return %c0_i32, %c0_i32_0 : i32, i32
  }
  func.func @transform_3(%arg0: i32) -> (i32, i32) {
    %c0_i32 = arith.constant 0 : i32
    %c0_i32_0 = arith.constant 0 : i32
    %c0_i32_1 = arith.constant 0 : i32
    return %c0_i32, %c0_i32_0 : i32, i32
  }
  func.func @transform_4(%arg0: i32) -> (i32, i32) {
    %c0_i32 = arith.constant 0 : i32
    %c0_i32_0 = arith.constant 0 : i32
    %c0_i32_1 = arith.constant 0 : i32
    return %c0_i32, %c0_i32_0 : i32, i32
  }
  func.func @transform_5(%arg0: i32) -> (i32, i32) {
    %c0_i32 = arith.constant 0 : i32
    %c0_i32_0 = arith.constant 0 : i32
    %c0_i32_1 = arith.constant 0 : i32
    return %c0_i32, %c0_i32_0 : i32, i32
  }
  func.func @transform_6(%arg0: i32) -> (i32, i32) {
    %c0_i32 = arith.constant 0 : i32
    %c0_i32_0 = arith.constant 0 : i32
    return %arg0, %c0_i32 : i32, i32
  }
}

</mosaic_0001>

<bundles_post_ra>
// kernel: tpu_custom_call.1
= control target key start
LH: loop header
LB: loop body
LE: loop exit
PB: predicated region body
PF: predicated region fallthrough
CT: control target
= control target key end

     0   :  { %11 = vsyncpa [#allocation6], 0  ;;  %s3993_s0 = inlined_call_operand.hbm [shape: f32[8,128], index: 0, kind: input, shape index: {}]   ;;  %s3994_s1 = inlined_call_operand.hbm [shape: f32[128,512], index: 1, kind: input, shape index: {}]   ;;  %s3995_s2 = inlined_call_operand.hbm [shape: f32[1,512], index: 2, kind: input, shape index: {}]   ;;  %s3996_s3 = inlined_call_operand.hbm [shape: f32[128,640], index: 3, kind: input, shape index: {}]   ;;  %s3997_s4 = inlined_call_operand.hbm [shape: f32[128,128], index: 4, kind: input, shape index: {}]   ;;  %s3998_s5 = inlined_call_operand.vmem [shape: f32[1,128], index: 5, kind: input, shape index: {}]   ;;  %s3999_s6 = inlined_call_operand.hbm [shape: f32[8,128], index: 6, kind: output, shape index: {}]  }
   0x1   :  { %12 = vsyncpa [#allocation9], 0 }
   0x2   :  { %13 = vsyncpa [#allocation12], 0  ;;  %s30_s23 = sshll.u32 %s3994_s1, 4  ;;  %s31_s23 = int_to_ptr.hbm [resolvable:$true] %s30_s23 }
   0x3   :  { %14 = vsyncpa [#allocation7], 0  ;;  %s2587_s24 = smov [#allocation8]   ;;  %s54_s28 = sshll.u32 %s3996_s3, 4  ;;  %s55_s28 = int_to_ptr.hbm [resolvable:$true] %s54_s28 }
   0x4   :  { %s32_s25 = sshll.u32 %s2587_s24, 4  ;;  %s2588_s29 = smov 512   ;;  %s33_s25 = int_to_ptr.vmem [resolvable:$true] %s32_s25 }
   0x5   :  { %s2589_s30 = smov 32   ;;  %s2590_s7 = smov [#allocation11]  }
   0x6   :  { %38 = dma.hbm_to_vmem [thread:$0]  %s31_s23, 8192, %s33_s25, [#allocation9], %s2588_s29, %s2588_s29, %s2589_s30  }
   0x7   :  { %s56_s8 = sshll.u32 %s2590_s7, 4  ;;  %s2591_s9 = smov 640   ;;  %s57_s8 = int_to_ptr.vmem [resolvable:$true] %s56_s8 }
   0x8   :  { %s2592_s10 = smov 40   ;;  %s20_s12 = sshll.u32 %s3993_s0, 4  ;;  %s21_s12 = int_to_ptr.hbm [resolvable:$true] %s20_s12 }
   0x9   :  { %62 = dma.hbm_to_vmem [thread:$0]  %s55_s28, 10240, %s57_s8, [#allocation12], %s2591_s9, %s2591_s9, %s2592_s10  }
   0xa   :  { %s2593_s13 = smov [#allocation5]   ;;  %s44_s16 = sshll.u32 %s3995_s2, 4  ;;  %s45_s16 = int_to_ptr.hbm [resolvable:$true] %s44_s16 }
   0xb   :  { %s22_s14 = sshll.u32 %s2593_s13, 4  ;;  %s2594_s17 = smov [#allocation10]   ;;  %s23_s14 = int_to_ptr.vmem [resolvable:$true] %s22_s14 }
   0xc   :  { %25 = dma.hbm_to_vmem [thread:$0]  %s21_s12, 128, %s23_s14, [#allocation6]  }
   0xd   :  { %s46_s18 = sshll.u32 %s2594_s17, 4  ;;  %s67_s21 = sshll.u32 %s3997_s4, 4  ;;  %s47_s18 = int_to_ptr.vmem [resolvable:$true] %s46_s18  ;;  %s68_s21 = int_to_ptr.hbm [resolvable:$true] %s67_s21 }
   0xe   :  { %49 = dma.hbm_to_vmem [thread:$0]  %s45_s16, 64, %s47_s18, [#allocation9]  }
   0xf   :  { %s2595_s0 = smov [#allocation13]   ;;  %s2596_s23 = smov 128  }
  0x10   :  { %s69_s22 = sshll.u32 %s2595_s0, 4  ;;  %s2597_s24 = smov 8   ;;  %s70_s22 = int_to_ptr.vmem [resolvable:$true] %s69_s22 }
  0x11   :  { %75 = dma.hbm_to_vmem [thread:$0]  %s68_s21, 2048, %s70_s22, [#allocation12], %s2596_s23, %s2596_s23, %s2597_s24  }
  0x12   :  { %2579 = dma.done.wait [#allocation6], 128  }
  0x13   :  { %2580 = vsyncadd [#allocation6], 4294967168 }
  0x14   :  { %2581 = dma.done.wait [#allocation9], 8256  }
  0x15   :  { %2582 = vsyncadd [#allocation9], 4294959040 }
  0x16   :  { %2583 = dma.done.wait [#allocation12], 12288  }
  0x17   :  { %2584 = vsyncadd [#allocation12], 4294955008  ;;  %v166_v0 = vld [vmem:[#allocation8 + $0x1e8] sm:$0xff]  ;;  %v167_v1 = vld [vmem:[#allocation8 + $0x1f0] sm:$0xff]  ;;  %v2598_v37 = vmov 0.0   ;;  %s2064_s8 = sshll.u32 %s3999_s6, 4  ;;  %s2065_s8 = int_to_ptr.hbm [resolvable:$true] %s2064_s8 }
  0x18   :  { %v162_v2 = vld [vmem:[#allocation8 + $0x1c8] sm:$0xff]  ;;  %199 = vmatpush.msra.mxu1 %v166_v0  ;;  %219 = vmatpush.msra.mxu2 %v167_v1  ;;  %v163_v3 = vld [vmem:[#allocation8 + $0x1d0] sm:$0xff]  ;;  %v168_v8 = vld [vmem:[#allocation8 + $0x1f8] sm:$0xff]  ;;  %102 = vst [vmem:[#allocation2] sm:$0x1] %v2598_v37 }
  0x19   :  { %v158_v4 = vld [vmem:[#allocation8 + $0x1a8] sm:$0xff]  ;;  %v159_v5 = vld [vmem:[#allocation8 + $0x1b0] sm:$0xff]  ;;  %239 = vmatpush.msra.mxu3 %v168_v8  ;;  %v164_v11 = vld [vmem:[#allocation8 + $0x1d8] sm:$0xff]  ;;  %103 = vst [vmem:[#allocation3] sm:$0x1] %v2598_v37 }
  0x1a   :  { %200 = vmatpush.msra.mxu1 %v162_v2  ;;  %220 = vmatpush.msra.mxu2 %v163_v3  ;;  %v154_v6 = vld [vmem:[#allocation8 + $0x188] sm:$0xff]  ;;  %v155_v7 = vld [vmem:[#allocation8 + $0x190] sm:$0xff]  ;;  %v160_v12 = vld [vmem:[#allocation8 + $0x1b8] sm:$0xff] }
  0x1b   :  { %v150_v9 = vld [vmem:[#allocation8 + $0x168] sm:$0xff]  ;;  %v151_v10 = vld [vmem:[#allocation8 + $0x170] sm:$0xff]  ;;  %240 = vmatpush.msra.mxu3 %v164_v11  ;;  %v156_v15 = vld [vmem:[#allocation8 + $0x198] sm:$0xff] }
  0x1c   :  { %201 = vmatpush.msra.mxu1 %v158_v4  ;;  %221 = vmatpush.msra.mxu2 %v159_v5  ;;  %v146_v13 = vld [vmem:[#allocation8 + $0x148] sm:$0xff]  ;;  %v147_v14 = vld [vmem:[#allocation8 + $0x150] sm:$0xff]  ;;  %v152_v18 = vld [vmem:[#allocation8 + $0x178] sm:$0xff] }
  0x1d   :  { %v142_v16 = vld [vmem:[#allocation8 + $0x128] sm:$0xff]  ;;  %v143_v17 = vld [vmem:[#allocation8 + $0x130] sm:$0xff]  ;;  %241 = vmatpush.msra.mxu3 %v160_v12  ;;  %v148_v21 = vld [vmem:[#allocation8 + $0x158] sm:$0xff] }
  0x1e   :  { %202 = vmatpush.msra.mxu1 %v154_v6  ;;  %222 = vmatpush.msra.mxu2 %v155_v7  ;;  %v138_v19 = vld [vmem:[#allocation8 + $0x108] sm:$0xff]  ;;  %v139_v20 = vld [vmem:[#allocation8 + $0x110] sm:$0xff]  ;;  %v144_v24 = vld [vmem:[#allocation8 + $0x138] sm:$0xff] }
  0x1f   :  { %242 = vmatpush.msra.mxu3 %v156_v15  ;;  %v134_v22 = vld [vmem:[#allocation8 + $0xe8] sm:$0xff]  ;;  %v135_v23 = vld [vmem:[#allocation8 + $0xf0] sm:$0xff]  ;;  %v140_v27 = vld [vmem:[#allocation8 + $0x118] sm:$0xff] }
  0x20   :  { %203 = vmatpush.msra.mxu1 %v150_v9  ;;  %223 = vmatpush.msra.mxu2 %v151_v10  ;;  %v130_v25 = vld [vmem:[#allocation8 + $0xc8] sm:$0xff]  ;;  %v131_v26 = vld [vmem:[#allocation8 + $0xd0] sm:$0xff]  ;;  %v136_v30 = vld [vmem:[#allocation8 + $0xf8] sm:$0xff] }
  0x21   :  { %243 = vmatpush.msra.mxu3 %v152_v18  ;;  %v126_v28 = vld [vmem:[#allocation8 + $0xa8] sm:$0xff]  ;;  %v127_v29 = vld [vmem:[#allocation8 + $0xb0] sm:$0xff]  ;;  %v132_v33 = vld [vmem:[#allocation8 + $0xd8] sm:$0xff] }
  0x22   :  { %204 = vmatpush.msra.mxu1 %v146_v13  ;;  %224 = vmatpush.msra.mxu2 %v147_v14  ;;  %v122_v31 = vld [vmem:[#allocation8 + $0x88] sm:$0xff]  ;;  %v123_v32 = vld [vmem:[#allocation8 + $0x90] sm:$0xff]  ;;  %v128_v36 = vld [vmem:[#allocation8 + $0xb8] sm:$0xff] }
  0x23   :  { %244 = vmatpush.msra.mxu3 %v148_v21  ;;  %v118_v34 = vld [vmem:[#allocation8 + $0x68] sm:$0xff]  ;;  %v119_v35 = vld [vmem:[#allocation8 + $0x70] sm:$0xff]  ;;  %v124_v40 = vld [vmem:[#allocation8 + $0x98] sm:$0xff] }
  0x24   :  { %205 = vmatpush.msra.mxu1 %v142_v16  ;;  %225 = vmatpush.msra.mxu2 %v143_v17  ;;  %v114_v38 = vld [vmem:[#allocation8 + $0x48] sm:$0xff]  ;;  %v115_v39 = vld [vmem:[#allocation8 + $0x50] sm:$0xff]  ;;  %v120_v43 = vld [vmem:[#allocation8 + $0x78] sm:$0xff] }
  0x25   :  { %245 = vmatpush.msra.mxu3 %v144_v24  ;;  %v110_v41 = vld [vmem:[#allocation8 + $0x28] sm:$0xff]  ;;  %v111_v42 = vld [vmem:[#allocation8 + $0x30] sm:$0xff]  ;;  %v116_v48 = vld [vmem:[#allocation8 + $0x58] sm:$0xff] }
  0x26   :  { %206 = vmatpush.msra.mxu1 %v138_v19  ;;  %226 = vmatpush.msra.mxu2 %v139_v20  ;;  %v106_v44 = vld [vmem:[#allocation8 + $0x8] sm:$0xff]  ;;  %v107_v45 = vld [vmem:[#allocation8 + $0x10] sm:$0xff]  ;;  %v2654_v49 = vld [vmem:[#allocation5] sm:$0xff] }
  0x27   :  { %246 = vmatpush.msra.mxu3 %v140_v27  ;;  %v2650_v46 = vld [vmem:[#allocation11 + $0x260] sm:$0xff]  ;;  %v2652_v47 = vld [vmem:[#allocation11 + $0x268] sm:$0xff]  ;;  %v2656_v50 = vld [vmem:[#allocation11 + $0x238] sm:$0xff] }
  0x28   :  { %207 = vmatpush.msra.mxu1 %v134_v22  ;;  %227 = vmatpush.msra.mxu2 %v135_v23  ;;  %v2658_v51 = vld [vmem:[#allocation11 + $0x240] sm:$0xff]  ;;  %v112_v52 = vld [vmem:[#allocation8 + $0x38] sm:$0xff]  ;;  %v2669_v56 = vld [vmem:[#allocation11 + $0x1e8] sm:$0xff] }
  0x29   :  { %247 = vmatpush.msra.mxu3 %v136_v30  ;;  %v2662_v53 = vld [vmem:[#allocation11 + $0x210] sm:$0xff]  ;;  %v2664_v54 = vld [vmem:[#allocation11 + $0x218] sm:$0xff]  ;;  %v2678_v59 = vld [vmem:[#allocation11 + $0x1c0] sm:$0xff] }
  0x2a   :  { %208 = vmatpush.msra.mxu1 %v130_v25  ;;  %228 = vmatpush.msra.mxu2 %v131_v26  ;;  %v108_v55 = vld [vmem:[#allocation8 + $0x18] sm:$0xff]  ;;  %v2680_v60 = vld [vmem:[#allocation11 + $0x1c8] sm:$0xff]  ;;  %v2688_v63 = vld [vmem:[#allocation11 + $0x1a0] sm:$0xff] }
  0x2b   :  { %248 = vmatpush.msra.mxu3 %v132_v33  ;;  %v2671_v57 = vld [vmem:[#allocation11 + $0x1f0] sm:$0xff]  ;;  %v2684_v61 = vld [vmem:[#allocation11 + $0x248] sm:$0xff]  ;;  %v2686_v62 = vld [vmem:[#allocation11 + $0x198] sm:$0xff] }
  0x2c   :  { %209 = vmatpush.msra.mxu1 %v126_v28  ;;  %229 = vmatpush.msra.mxu2 %v127_v29  ;;  %v2676_v58 = vld [vmem:[#allocation11 + $0x270] sm:$0xff]  ;;  %v2693_v0 = vld [vmem:[#allocation11 + $0x220] sm:$0xff]  ;;  %v2697_v4 = vld [vmem:[#allocation11 + $0x178] sm:$0xff] }
  0x2d   :  { %249 = vmatpush.msra.mxu3 %v128_v36  ;;  %v165_v1 = vld [vmem:[#allocation8 + $0x1e0] sm:$0xff]  ;;  %v2695_v3 = vld [vmem:[#allocation11 + $0x170] sm:$0xff]  ;;  %v2704_v7 = vld [vmem:[#allocation11 + $0x148] sm:$0xff] }
  0x2e   :  { %210 = vmatpush.msra.mxu1 %v122_v31  ;;  %230 = vmatpush.msra.mxu2 %v123_v32  ;;  %v161_v2 = vld [vmem:[#allocation8 + $0x1c0] sm:$0xff]  ;;  %v2706_v8 = vld [vmem:[#allocation11 + $0x150] sm:$0xff]  ;;  %v2715_v12 = vld [vmem:[#allocation11 + $0x128] sm:$0xff] }
  0x2f   :  { %250 = vmatpush.msra.mxu3 %v124_v40  ;;  %179 = vmatpush.msra.mxu0 %v165_v1  ;;  %v2702_v5 = vld [vmem:[#allocation11 + $0x1f8] sm:$0xff]  ;;  %v2711_v9 = vld [vmem:[#allocation11 + $0x1d0] sm:$0xff]  ;;  %v2713_v11 = vld [vmem:[#allocation11 + $0x120] sm:$0xff] }
  0x30   :  { %211 = vmatpush.msra.mxu1 %v118_v34  ;;  %231 = vmatpush.msra.mxu2 %v119_v35  ;;  %v157_v6 = vld [vmem:[#allocation8 + $0x1a0] sm:$0xff]  ;;  %v2720_v13 = vld [vmem:[#allocation11 + $0x1a8] sm:$0xff]  ;;  %v2731_v19 = vld [vmem:[#allocation11 + $0xd0] sm:$0xff] }
  0x31   :  { %251 = vmatpush.msra.mxu3 %v120_v43  ;;  %180 = vmatpush.msra.mxu0 %v161_v2  ;;  %v153_v10 = vld [vmem:[#allocation8 + $0x180] sm:$0xff]  ;;  %4222 = vst [vmem:[#allocation21_spill] sm:$0xff] %v2731_v19  ;;  %v2740_v23 = vld [vmem:[#allocation11 + $0xa8] sm:$0xff]  ;;  %v2742_v24 = vld [vmem:[#allocation11 + $0xb0] sm:$0xff] }
  0x32   :  { %212 = vmatpush.msra.mxu1 %v114_v38  ;;  %232 = vmatpush.msra.mxu2 %v115_v39  ;;  %v149_v14 = vld [vmem:[#allocation8 + $0x160] sm:$0xff]  ;;  %4224 = vst [vmem:[#allocation23_spill] sm:$0xff] %v2740_v23  ;;  %v2747_v25 = vld [vmem:[#allocation11 + $0x130] sm:$0xff]  ;;  %v2751_v28 = vld [vmem:[#allocation11 + $0x88] sm:$0xff] }
  0x33   :  { %252 = vmatpush.msra.mxu3 %v116_v48  ;;  %181 = vmatpush.msra.mxu0 %v157_v6  ;;  %v2722_v15 = vld [vmem:[#allocation11 + $0xf8] sm:$0xff]  ;;  %v2724_v16 = vld [vmem:[#allocation11 + $0x100] sm:$0xff]  ;;  %4225 = vst [vmem:[#allocation24_spill] sm:$0xff] %v2747_v25  ;;  %v2756_v29 = vld [vmem:[#allocation11 + $0x108] sm:$0xff] }
  0x34   :  { %213 = vmatpush.msra.mxu1 %v110_v41  ;;  %233 = vmatpush.msra.mxu2 %v111_v42  ;;  %4220 = vst [vmem:[#allocation19_spill] sm:$0xff] %v2722_v15  ;;  %v2729_v17 = vld [vmem:[#allocation11 + $0x180] sm:$0xff]  ;;  %v2733_v20 = vld [vmem:[#allocation11 + $0xd8] sm:$0xff]  ;;  %v2767_v35 = vld [vmem:[#allocation11 + $0x30] sm:$0xff] }
  0x35   :  { %253 = vmatpush.msra.mxu3 %v112_v52  ;;  %182 = vmatpush.msra.mxu0 %v153_v10  ;;  %4221 = vst [vmem:[#allocation20_spill] sm:$0xff] %v2729_v17  ;;  %v145_v18 = vld [vmem:[#allocation8 + $0x140] sm:$0xff]  ;;  %v2776_v39 = vld [vmem:[#allocation11 + $0x8] sm:$0xff]  ;;  %v2778_v40 = vld [vmem:[#allocation11 + $0x10] sm:$0xff] }
  0x36   :  { %214 = vmatpush.msra.mxu1 %v106_v44  ;;  %234 = vmatpush.msra.mxu2 %v107_v45  ;;  %4223 = vst [vmem:[#allocation22_spill] sm:$0xff] %v2733_v20  ;;  %v2738_v21 = vld [vmem:[#allocation11 + $0x158] sm:$0xff]  ;;  %v2749_v27 = vld [vmem:[#allocation11 + $0x80] sm:$0xff]  ;;  %v2783_v41 = vld [vmem:[#allocation2] sm:$0x1] }
  0x37   :  { %215 = vmatmul.f32.vlgmr.msra.gmra.mxu1 %v2654_v49  ;;  %235 = vmatmul.f32.vlgmr.msra.gmra.mxu2 %v2654_v49  ;;  %v141_v22 = vld [vmem:[#allocation8 + $0x120] sm:$0xff]  ;;  %4226 = vst [vmem:[#allocation25_spill] sm:$0xff] %v2749_v27  ;;  %v2788_v43 = vld [vmem:[#allocation11 + $0x90] sm:$0xff]  ;;  %v2793_v45 = vld [vmem:[#allocation11 + $0x68] sm:$0xff] }
  0x38   :  { %372 = vmatpush.msrb.mxu1 %v2650_v46  ;;  %392 = vmatpush.msrb.mxu2 %v2652_v47  ;;  %v137_v26 = vld [vmem:[#allocation8 + $0x100] sm:$0xff]  ;;  %4229 = vst [vmem:[#allocation28_spill] sm:$0xff] %v2767_v35  ;;  %v2801_v1 = vld [vmem:[#allocation11 + $0x230] sm:$0xff]  ;;  %v2807_v10 = vld [vmem:[#allocation11 + $0x208] sm:$0xff] }
  0x39   :  { %254 = vmatpush.msra.mxu3 %v108_v55  ;;  %183 = vmatpush.msra.mxu0 %v149_v14  ;;  %v133_v30 = vld [vmem:[#allocation8 + $0xe0] sm:$0xff]  ;;  %4230 = vst [vmem:[#allocation29_spill] sm:$0xff] %v2776_v39 }
  0x3a   :  { %373 = vmatpush.msrb.mxu1 %v2656_v50  ;;  %393 = vmatpush.msrb.mxu2 %v2658_v51  ;;  %v2758_v31 = vld [vmem:[#allocation11 + $0x58] sm:$0xff]  ;;  %v2760_v32 = vld [vmem:[#allocation11 + $0x60] sm:$0xff] }
  0x3b   :  { %412 = vmatpush.msrb.mxu3 %v2676_v58  ;;  %184 = vmatpush.msra.mxu0 %v145_v18  ;;  %4227 = vst [vmem:[#allocation26_spill] sm:$0xff] %v2758_v31  ;;  %v2765_v33 = vld [vmem:[#allocation11 + $0xe0] sm:$0xff]  ;;  %v2769_v36 = vld [vmem:[#allocation11 + $0x38] sm:$0xff] }
  0x3c   :  { %374 = vmatpush.msrb.mxu1 %v2662_v53  ;;  %394 = vmatpush.msrb.mxu2 %v2664_v54  ;;  %4228 = vst [vmem:[#allocation27_spill] sm:$0xff] %v2765_v33  ;;  %v129_v34 = vld [vmem:[#allocation8 + $0xc0] sm:$0xff] }
  0x3d   :  { %413 = vmatpush.msrb.mxu3 %v2684_v61  ;;  %185 = vmatpush.msra.mxu0 %v141_v22  ;;  %v2774_v37 = vld [vmem:[#allocation11 + $0xb8] sm:$0xff]  ;;  %v2799_v55 = vld [vmem:[#allocation11 + $0x40] sm:$0xff] }
  0x3e   :  { %375 = vmatpush.msrb.mxu1 %v2669_v56  ;;  %395 = vmatpush.msrb.mxu2 %v2671_v57  ;;  %v125_v38 = vld [vmem:[#allocation8 + $0xa0] sm:$0xff] }
  0x3f   :  { %414 = vmatpush.msrb.mxu3 %v2693_v0  ;;  %186 = vmatpush.msra.mxu0 %v137_v26  ;;  %v121_v42 = vld [vmem:[#allocation8 + $0x80] sm:$0xff]  ;;  %v2820_v26 = vld [vmem:[#allocation11 + $0x190] sm:$0xff] }
  0x40   :  { %376 = vmatpush.msrb.mxu1 %v2678_v59  ;;  %396 = vmatpush.msrb.mxu2 %v2680_v60  ;;  %v117_v44 = vld [vmem:[#allocation8 + $0x60] sm:$0xff] }
  0x41   :  { %415 = vmatpush.msrb.mxu3 %v2702_v5  ;;  %187 = vmatpush.msra.mxu0 %v133_v30  ;;  %v2795_v48 = vld [vmem:[#allocation11 + $0x258] sm:$0xff]  ;;  %v2811_v18 = vld [vmem:[#allocation11 + $0x1e0] sm:$0xff]  ;;  %v2826_v30 = vld [vmem:[#allocation11 + $0x168] sm:$0xff] }
  0x42   :  { %377 = vmatpush.msrb.mxu1 %v2686_v62  ;;  %397 = vmatpush.msrb.mxu2 %v2688_v63  ;;  %v113_v52 = vld [vmem:[#allocation8 + $0x40] sm:$0xff] }
  0x43   :  { %416 = vmatpush.msrb.mxu3 %v2711_v9  ;;  %188 = vmatpush.msra.mxu0 %v129_v34  ;;  %v109_v2 = vld [vmem:[#allocation8 + $0x20] sm:$0xff] }
  0x44   :  { %378 = vmatpush.msrb.mxu1 %v2695_v3  ;;  %398 = vmatpush.msrb.mxu2 %v2697_v4  ;;  %v2805_v6 = vld [vmem:[#allocation11 + $0x18] sm:$0xff]  ;;  %v2831_v34 = vld [vmem:[#allocation11 + $0x140] sm:$0xff] }
  0x45   :  { %417 = vmatpush.msrb.mxu3 %v2720_v13  ;;  %189 = vmatpush.msra.mxu0 %v125_v38  ;;  %v105_v14 = vld [vmem:[#allocation8] sm:$0xff]  ;;  %v2841_v38 = vld [vmem:[#allocation11 + $0xf0] sm:$0xff] }
  0x46   :  { %379 = vmatpush.msrb.mxu1 %v2704_v7  ;;  %399 = vmatpush.msrb.mxu2 %v2706_v8  ;;  %v2816_v22 = vld [vmem:[#allocation11 + $0x1b8] sm:$0xff]  ;;  %4231 = vst [vmem:[#allocation30_spill] sm:$0xff] %v2841_v38 }
  0x47   :  { %418 = vmatpush.msrb.mxu3 %v2729_v17  ;;  %190 = vmatpush.msra.mxu0 %v121_v42  ;;  %v2846_v42 = vld [vmem:[#allocation11 + $0xc8] sm:$0xff] }
  0x48   :  { %380 = vmatpush.msrb.mxu1 %v2713_v11  ;;  %400 = vmatpush.msrb.mxu2 %v2715_v12  ;;  %4232 = vst [vmem:[#allocation31_spill] sm:$0xff] %v2846_v42 }
  0x49   :  { %419 = vmatpush.msrb.mxu3 %v2738_v21  ;;  %191 = vmatpush.msra.mxu0 %v117_v44  ;;  %v2851_v44 = vld [vmem:[#allocation11 + $0xa0] sm:$0xff] }
  0x4a   :  { %381 = vmatpush.msrb.mxu1 %v2722_v15  ;;  %401 = vmatpush.msrb.mxu2 %v2724_v16  ;;  %4233 = vst [vmem:[#allocation32_spill] sm:$0xff] %v2851_v44 }
  0x4b   :  { %420 = vmatpush.msrb.mxu3 %v2747_v25  ;;  %192 = vmatpush.msra.mxu0 %v113_v52  ;;  %v2869_v52 = vld [vmem:[#allocation11 + $0x78] sm:$0xff] }
  0x4c   :  { %382 = vmatpush.msrb.mxu1 %v2731_v19  ;;  %402 = vmatpush.msrb.mxu2 %v2733_v20  ;;  %4234 = vst [vmem:[#allocation33_spill] sm:$0xff] %v2869_v52 }
  0x4d   :  { %421 = vmatpush.msrb.mxu3 %v2756_v29  ;;  %193 = vmatpush.msra.mxu0 %v109_v2  ;;  %v2871_v2 = vld [vmem:[#allocation11 + $0x50] sm:$0xff] }
  0x4e   :  { %383 = vmatpush.msrb.mxu1 %v2740_v23  ;;  %403 = vmatpush.msrb.mxu2 %v2742_v24  ;;  %4235 = vst [vmem:[#allocation34_spill] sm:$0xff] %v2871_v2 }
  0x4f   :  { %422 = vmatpush.msrb.mxu3 %v2765_v33  ;;  %194 = vmatpush.msra.mxu0 %v105_v14  ;;  %v2875_v14 = vld [vmem:[#allocation11 + $0x28] sm:$0xff] }
  0x50   :  { %384 = vmatpush.msrb.mxu1 %v2749_v27  ;;  %404 = vmatpush.msrb.mxu2 %v2751_v28  ;;  %4236 = vst [vmem:[#allocation35_spill] sm:$0xff] %v2875_v14 }
  0x51   :  { %423 = vmatpush.msrb.mxu3 %v2774_v37  ;;  %352 = vmatpush.msrb.mxu0 %v2795_v48 }
  0x52   :  { %385 = vmatpush.msrb.mxu1 %v2758_v31  ;;  %405 = vmatpush.msrb.mxu2 %v2760_v32 }
  0x53   :  { %255 = vmatmul.f32.vlgmr.msra.gmra.mxu3 %v2654_v49  ;;  %195 = vmatmul.f32.vlgmr.msra.gmra.mxu0 %v2654_v49  ;;  %v2836_v49 = vld [vmem:[#allocation11 + $0x118] sm:$0xff] }
  0x54   :  { %386 = vmatpush.msrb.mxu1 %v2767_v35  ;;  %406 = vmatpush.msrb.mxu2 %v2769_v36 }
  0x55   :  { %424 = vmatpush.msrb.mxu3 %v2788_v43  ;;  %353 = vmatpush.msrb.mxu0 %v2801_v1 }
  0x56   :  { %387 = vmatpush.msrb.mxu1 %v2776_v39  ;;  %407 = vmatpush.msrb.mxu2 %v2778_v40 }
  0x57   :  { %388 = vmatmul.f32.vlgmr.msrb.gmra.mxu1 %v2783_v41  ;;  %408 = vmatmul.f32.vlgmr.msrb.gmra.mxu2 %v2783_v41 }
  0x58   :  { %558 = vmatpush.msra.mxu2 %v2795_v48  ;;  %425 = vmatpush.msrb.mxu3 %v2793_v45 }
  0x59   :  { %354 = vmatpush.msrb.mxu0 %v2807_v10 }
  0x5a   :  { %559 = vmatpush.msra.mxu2 %v2801_v1  ;;  %426 = vmatpush.msrb.mxu3 %v2799_v55 }
  0x5b   :  { %355 = vmatpush.msrb.mxu0 %v2811_v18 }
  0x5c   :  { %560 = vmatpush.msra.mxu2 %v2807_v10  ;;  %427 = vmatpush.msrb.mxu3 %v2805_v6 }
  0x5d   :  { %428 = vmatmul.f32.vlgmr.msrb.gmra.mxu3 %v2783_v41  ;;  %356 = vmatpush.msrb.mxu0 %v2816_v22 }
  0x5e   :  { %561 = vmatpush.msra.mxu2 %v2811_v18  ;;  %578 = vmatpush.msra.mxu3 %v2650_v46 }
  0x5f   :  { %357 = vmatpush.msrb.mxu0 %v2820_v26 }
  0x60   :  { %562 = vmatpush.msra.mxu2 %v2816_v22  ;;  %579 = vmatpush.msra.mxu3 %v2656_v50 }
  0x61   :  { %358 = vmatpush.msrb.mxu0 %v2826_v30 }
  0x62   :  { %563 = vmatpush.msra.mxu2 %v2820_v26  ;;  %580 = vmatpush.msra.mxu3 %v2662_v53 }
  0x63   :  { %359 = vmatpush.msrb.mxu0 %v2831_v34 }
  0x64   :  { %564 = vmatpush.msra.mxu2 %v2826_v30  ;;  %581 = vmatpush.msra.mxu3 %v2669_v56 }
  0x65   :  { %360 = vmatpush.msrb.mxu0 %v2836_v49 }
  0x66   :  { %565 = vmatpush.msra.mxu2 %v2831_v34  ;;  %582 = vmatpush.msra.mxu3 %v2678_v59 }
  0x67   :  { %361 = vmatpush.msrb.mxu0 %v2841_v38 }
  0x68   :  { %566 = vmatpush.msra.mxu2 %v2836_v49  ;;  %583 = vmatpush.msra.mxu3 %v2686_v62 }
  0x69   :  { %362 = vmatpush.msrb.mxu0 %v2846_v42 }
  0x6a   :  { %567 = vmatpush.msra.mxu2 %v2841_v38  ;;  %584 = vmatpush.msra.mxu3 %v2695_v3  ;;  %v2997_v38 = vld [vmem:[#allocation13 + $0x10] sm:$0xff] }
  0x6b   :  { %363 = vmatpush.msrb.mxu0 %v2851_v44  ;;  %4266 = vst [vmem:[#allocation65_spill] sm:$0xff] %v2997_v38 }
  0x6c   :  { %568 = vmatpush.msra.mxu2 %v2846_v42  ;;  %585 = vmatpush.msra.mxu3 %v2704_v7  ;;  %v2971_v42 = vld [vmem:[#allocation13 + $0x28] sm:$0xff] }
  0x6d   :  { %364 = vmatpush.msrb.mxu0 %v2869_v52  ;;  %4260 = vst [vmem:[#allocation59_spill] sm:$0xff] %v2971_v42 }
  0x6e   :  { %569 = vmatpush.msra.mxu2 %v2851_v44  ;;  %586 = vmatpush.msra.mxu3 %v2713_v11  ;;  %v2953_v44 = vld [vmem:[#allocation13 + $0x38] sm:$0xff] }
  0x6f   :  { %365 = vmatpush.msrb.mxu0 %v2871_v2  ;;  %4255 = vst [vmem:[#allocation54_spill] sm:$0xff] %v2953_v44 }
  0x70   :  { %587 = vmatpush.msra.mxu3 %v2722_v15  ;;  %570 = vmatpush.msra.mxu2 %v2869_v52  ;;  %v2908_v52 = vld [vmem:[#allocation11 + $0x200] sm:$0xff]  ;;  %v2989_v15 = vld [vmem:[#allocation13 + $0x18] sm:$0xff] }
  0x71   :  { %366 = vmatpush.msrb.mxu0 %v2875_v14  ;;  %4244 = vst [vmem:[#allocation43_spill] sm:$0xff] %v2908_v52 }
  0x72   :  { %588 = vmatpush.msra.mxu3 %v2731_v19  ;;  %571 = vmatpush.msra.mxu2 %v2871_v2  ;;  %v2892_v2 = vld [vmem:[#allocation11 + $0x250] sm:$0xff]  ;;  %4264 = vst [vmem:[#allocation63_spill] sm:$0xff] %v2989_v15 }
  0x73   :  { %4240 = vst [vmem:[#allocation39_spill] sm:$0xff] %v2892_v2 }
  0x74   :  { %589 = vmatpush.msra.mxu3 %v2740_v23  ;;  %572 = vmatpush.msra.mxu2 %v2875_v14  ;;  %v2902_v14 = vld [vmem:[#allocation13 + $0x68] sm:$0xff] }
  0x75   :  { %4243 = vst [vmem:[#allocation42_spill] sm:$0xff] %v2902_v14 }
  0x76   :  { %590 = vmatpush.msra.mxu3 %v2749_v27  ;;  %v2894_v27 = vld [vmem:[#allocation13 + $0x70] sm:$0xff] }
  0x77   :  { %4241 = vst [vmem:[#allocation40_spill] sm:$0xff] %v2894_v27 }
  0x78   :  { %591 = vmatpush.msra.mxu3 %v2758_v31  ;;  %v2888_v31 = vld [vmem:[#allocation13 + $0x78] sm:$0xff] }
  0x79   :  { %4239 = vst [vmem:[#allocation38_spill] sm:$0xff] %v2888_v31  ;;  %533 = vmatpush.msra.mxu1 %v2888_v31 }
  0x7a   :  { %592 = vmatpush.msra.mxu3 %v2767_v35  ;;  %v2881_v35 = vld [vmem:[#allocation11] sm:$0xff] }
  0x7b   :  { %4237 = vst [vmem:[#allocation36_spill] sm:$0xff] %v2881_v35  ;;  %367 = vmatpush.msrb.mxu0 %v2881_v35  ;;  %573 = vmatpush.msra.mxu2 %v2881_v35  ;;  %v2900_v35 = vld [vmem:[#allocation11 + $0x228] sm:$0xff] }
  0x7c   :  { %593 = vmatpush.msra.mxu3 %v2776_v39  ;;  %368 = vmatmul.f32.vlgmr.msrb.gmra.mxu0 %v2783_v41  ;;  %v2886_v39 = vld [vmem:[#allocation11 + $0x278] sm:$0xff]  ;;  %4242 = vst [vmem:[#allocation41_spill] sm:$0xff] %v2900_v35 }
  0x7d   :  { %4238 = vst [vmem:[#allocation37_spill] sm:$0xff] %v2886_v39  ;;  %432 = vmatpush.msra.mxu0 %v2886_v39  ;;  %638 = vmatpush.msrb.mxu2 %v2886_v39  ;;  %v2910_v39 = vld [vmem:[#allocation13 + $0x60] sm:$0xff] }
  0x7e   :  { %741 = vmatpush.msrb.mxu3 %v2888_v31  ;;  %534 = vmatpush.msra.mxu1 %v2894_v27  ;;  %4245 = vst [vmem:[#allocation44_spill] sm:$0xff] %v2910_v39  ;;  %v2916_v31 = vld [vmem:[#allocation11 + $0x1d8] sm:$0xff] }
  0x7f   :  { %433 = vmatpush.msra.mxu0 %v2892_v2  ;;  %639 = vmatpush.msrb.mxu2 %v2892_v2  ;;  %4246 = vst [vmem:[#allocation45_spill] sm:$0xff] %v2916_v31  ;;  %v2918_v2 = vld [vmem:[#allocation13 + $0x58] sm:$0xff] }
  0x80   :  { %742 = vmatpush.msrb.mxu3 %v2894_v27  ;;  %535 = vmatpush.msra.mxu1 %v2902_v14  ;;  %4247 = vst [vmem:[#allocation46_spill] sm:$0xff] %v2918_v2  ;;  %v2924_v27 = vld [vmem:[#allocation11 + $0x1b0] sm:$0xff] }
  0x81   :  { %434 = vmatpush.msra.mxu0 %v2900_v35  ;;  %640 = vmatpush.msrb.mxu2 %v2900_v35  ;;  %4248 = vst [vmem:[#allocation47_spill] sm:$0xff] %v2924_v27  ;;  %v2926_v35 = vld [vmem:[#allocation13 + $0x50] sm:$0xff] }
  0x82   :  { %743 = vmatpush.msrb.mxu3 %v2902_v14  ;;  %536 = vmatpush.msra.mxu1 %v2910_v39  ;;  %4249 = vst [vmem:[#allocation48_spill] sm:$0xff] %v2926_v35  ;;  %v2932_v14 = vld [vmem:[#allocation11 + $0x188] sm:$0xff] }
  0x83   :  { %435 = vmatpush.msra.mxu0 %v2908_v52  ;;  %641 = vmatpush.msrb.mxu2 %v2908_v52  ;;  %4250 = vst [vmem:[#allocation49_spill] sm:$0xff] %v2932_v14  ;;  %v2934_v52 = vld [vmem:[#allocation13 + $0x48] sm:$0xff] }
  0x84   :  { %744 = vmatpush.msrb.mxu3 %v2910_v39  ;;  %537 = vmatpush.msra.mxu1 %v2918_v2  ;;  %4251 = vst [vmem:[#allocation50_spill] sm:$0xff] %v2934_v52  ;;  %v2938_v39 = vld [vmem:[#allocation10] sm:$0xf] }
  0x85   :  { %436 = vmatpush.msra.mxu0 %v2916_v31  ;;  %642 = vmatpush.msrb.mxu2 %v2916_v31  ;;  %v2944_v31 = vld [vmem:[#allocation13 + $0x40] sm:$0xff] }
  0x86   :  { %745 = vmatpush.msrb.mxu3 %v2918_v2  ;;  %538 = vmatpush.msra.mxu1 %v2926_v35  ;;  %v2942_v2 = vld [vmem:[#allocation11 + $0x160] sm:$0xff]  ;;  %4253 = vst [vmem:[#allocation52_spill] sm:$0xff] %v2944_v31 }
  0x87   :  { %437 = vmatpush.msra.mxu0 %v2924_v27  ;;  %643 = vmatpush.msrb.mxu2 %v2924_v27  ;;  %4252 = vst [vmem:[#allocation51_spill] sm:$0xff] %v2942_v2  ;;  %v2951_v27 = vld [vmem:[#allocation11 + $0x138] sm:$0xff] }
  0x88   :  { %746 = vmatpush.msrb.mxu3 %v2926_v35  ;;  %539 = vmatpush.msra.mxu1 %v2934_v52  ;;  %v172_v35 = vperm.slane %v2938_v39, 1  ;;  %4254 = vst [vmem:[#allocation53_spill] sm:$0xff] %v2951_v27 }
  0x89   :  { %438 = vmatpush.msra.mxu0 %v2932_v14  ;;  %644 = vmatpush.msrb.mxu2 %v2932_v14  ;;  %v2959_v14 = vld [vmem:[#allocation11 + $0x110] sm:$0xff] }
  0x8a   :  { %747 = vmatpush.msrb.mxu3 %v2934_v52  ;;  %540 = vmatpush.msra.mxu1 %v2944_v31  ;;  %4256 = vst [vmem:[#allocation55_spill] sm:$0xff] %v2959_v14  ;;  %v2961_v52 = vld [vmem:[#allocation13 + $0x30] sm:$0xff] }
  0x8b   :  { %439 = vmatpush.msra.mxu0 %v2942_v2  ;;  %645 = vmatpush.msrb.mxu2 %v2942_v2  ;;  %4257 = vst [vmem:[#allocation56_spill] sm:$0xff] %v2961_v52 }
  0x8c   :  { %748 = vmatpush.msrb.mxu3 %v2944_v31  ;;  %541 = vmatpush.msra.mxu1 %v2953_v44  ;;  %v2969_v31 = vld [vmem:[#allocation11 + $0xe8] sm:$0xff] }
  0x8d   :  { %440 = vmatpush.msra.mxu0 %v2951_v27  ;;  %646 = vmatpush.msrb.mxu2 %v2951_v27  ;;  %4259 = vst [vmem:[#allocation58_spill] sm:$0xff] %v2969_v31  ;;  %v2979_v27 = vld [vmem:[#allocation13 + $0x20] sm:$0xff] }
  0x8e   :  { %749 = vmatpush.msrb.mxu3 %v2953_v44  ;;  %542 = vmatpush.msra.mxu1 %v2961_v52  ;;  %v2977_v44 = vld [vmem:[#allocation11 + $0xc0] sm:$0xff]  ;;  %4262 = vst [vmem:[#allocation61_spill] sm:$0xff] %v2979_v27 }
  0x8f   :  { %441 = vmatpush.msra.mxu0 %v2959_v14  ;;  %647 = vmatpush.msrb.mxu2 %v2959_v14  ;;  %4261 = vst [vmem:[#allocation60_spill] sm:$0xff] %v2977_v44  ;;  %v2987_v14 = vld [vmem:[#allocation11 + $0x98] sm:$0xff] }
  0x90   :  { %750 = vmatpush.msrb.mxu3 %v2961_v52  ;;  %543 = vmatpush.msra.mxu1 %v2971_v42  ;;  %4263 = vst [vmem:[#allocation62_spill] sm:$0xff] %v2987_v14 }
  0x91   :  { %442 = vmatpush.msra.mxu0 %v2969_v31  ;;  %648 = vmatpush.msrb.mxu2 %v2969_v31  ;;  %v2995_v31 = vld [vmem:[#allocation11 + $0x70] sm:$0xff] }
  0x92   :  { %751 = vmatpush.msrb.mxu3 %v2971_v42  ;;  %544 = vmatpush.msra.mxu1 %v2979_v27  ;;  %4265 = vst [vmem:[#allocation64_spill] sm:$0xff] %v2995_v31 }
  0x93   :  { %443 = vmatpush.msra.mxu0 %v2977_v44  ;;  %649 = vmatpush.msrb.mxu2 %v2977_v44 }
  0x94   :  { %752 = vmatpush.msrb.mxu3 %v2979_v27  ;;  %545 = vmatpush.msra.mxu1 %v2989_v15  ;;  %v3007_v27 = vld [vmem:[#allocation13 + $0x8] sm:$0xff] }
  0x95   :  { %444 = vmatpush.msra.mxu0 %v2987_v14  ;;  %650 = vmatpush.msrb.mxu2 %v2987_v14  ;;  %4269 = vst [vmem:[#allocation68_spill] sm:$0xff] %v3007_v27 }
  0x96   :  { %753 = vmatpush.msrb.mxu3 %v2989_v15  ;;  %546 = vmatpush.msra.mxu1 %v2997_v38  ;;  %v3015_v15 = vld [vmem:[#allocation13] sm:$0xff] }
  0x97   :  { %445 = vmatpush.msra.mxu0 %v2995_v31  ;;  %651 = vmatpush.msrb.mxu2 %v2995_v31  ;;  %4271 = vst [vmem:[#allocation70_spill] sm:$0xff] %v3015_v15 }
  0x98   :  { %754 = vmatpush.msrb.mxu3 %v2997_v38  ;;  %547 = vmatpush.msra.mxu1 %v3007_v27 }
  0x9a   :  { %755 = vmatpush.msrb.mxu3 %v3007_v27  ;;  %548 = vmatpush.msra.mxu1 %v3015_v15 }
  0x9c   :  { %618 = vmatpush.msrb.mxu1 %v2676_v58  ;;  %756 = vmatpush.msrb.mxu3 %v3015_v15 }
  0x9e   :  { %619 = vmatpush.msrb.mxu1 %v2684_v61 }
  0xa0   :  { %620 = vmatpush.msrb.mxu1 %v2693_v0 }
  0xa2   :  { %621 = vmatpush.msrb.mxu1 %v2702_v5 }
  0xa4   :  { %622 = vmatpush.msrb.mxu1 %v2711_v9 }
  0xa6   :  { %623 = vmatpush.msrb.mxu1 %v2720_v13 }
  0xa8   :  { %624 = vmatpush.msrb.mxu1 %v2729_v17 }
  0xaa   :  { %625 = vmatpush.msrb.mxu1 %v2738_v21 }
  0xac   :  { %626 = vmatpush.msrb.mxu1 %v2747_v25 }
  0xae   :  { %627 = vmatpush.msrb.mxu1 %v2756_v29 }
  0xb0   :  { %628 = vmatpush.msrb.mxu1 %v2765_v33  ;;  %v264_v33 = vld [vmem:[#allocation3] sm:$0x1] }
  0xb2   :  { %629 = vmatpush.msrb.mxu1 %v2774_v37 }
  0xb4   :  { %v216_v23 = vpop.f32.mrf.mxu1  ;;  %630 = vmatpush.msrb.mxu1 %v2788_v43 }
  0xb5   :  { %v2967_v2 = vadd.f32 %v216_v23, %v172_v35  ;;  %v173_v35 = vperm.slane %v2938_v39, 2 }
  0xb6   :  { %631 = vmatpush.msrb.mxu1 %v2793_v45 }
  0xb7   :  { %4258 = vst [vmem:[#allocation57_spill] sm:$0xff] %v2967_v2 }
  0xb8   :  { %632 = vmatpush.msrb.mxu1 %v2799_v55 }
  0xba   :  { %v236_v19 = vpop.f32.mrf.mxu2  ;;  %633 = vmatpush.msrb.mxu1 %v2805_v6 }
  0xd4   :  { %v389_v23 = vpop.f32.mrf.mxu1 }
  0xd5   :  { %v453_v52 = vadd.f32 %v389_v23, %v2967_v2  ;;  %v3003_v23 = vadd.f32 %v236_v19, %v173_v35  ;;  %v3005_v2 = vld [vmem:[#allocation11 + $0x48] sm:$0xff] }
  0xd6   :  { %4268 = vst [vmem:[#allocation67_spill] sm:$0xff] %v3005_v2  ;;  %446 = vmatpush.msra.mxu0 %v3005_v2  ;;  %652 = vmatpush.msrb.mxu2 %v3005_v2 }
  0xd7   :  { %v2077_v42 = vmul.f32 -1.442695, %v453_v52  ;;  %4267 = vst [vmem:[#allocation66_spill] sm:$0xff] %v3003_v23  ;;  %v3009_v52 = vld [vmem:[#allocation11 + $0x20] sm:$0xff] }
  0xd8   :  { %4270 = vst [vmem:[#allocation69_spill] sm:$0xff] %v3009_v52  ;;  %447 = vmatpush.msra.mxu0 %v3009_v52  ;;  %653 = vmatpush.msrb.mxu2 %v3009_v52 }
  0xd9   :  { %2113 = vpow2.f32 %v2077_v42  ;;  %448 = vmatmul.f32.vlgmr.msra.gmra.mxu0 %v2783_v41 }
  0xda   :  { %v409_v14 = vpop.f32.mrf.mxu2  ;;  %598 = vmatpush.msrb.mxu0 %v2652_v47 }
  0xdb   :  { %v454_v19 = vadd.f32 %v409_v14, %v3003_v23  ;;  %v256_v23 = vpop.f32.mrf.mxu3 }
  0xdc   :  { %599 = vmatpush.msrb.mxu0 %v2658_v51 }
  0xdd   :  { %v2078_v42 = vmul.f32 -1.442695, %v454_v19 }
  0xde   :  { %600 = vmatpush.msrb.mxu0 %v2664_v54 }
  0xdf   :  { %v2114_v35 = vpop.eup %2113  ;;  %2115 = vpow2.f32 %v2078_v42  ;;  %v174_v42 = vperm.slane %v2938_v39, 3 }
  0xe0   :  { %v466_v14 = vadd.f32 1.0, %v2114_v35  ;;  %601 = vmatpush.msrb.mxu0 %v2671_v57 }
  0xe1   :  { %v3039_v52 = vadd.f32 %v256_v23, %v174_v42 }
  0xe2   :  { %2117 = vrcp.f32 %v466_v14  ;;  %602 = vmatpush.msrb.mxu0 %v2680_v60  ;;  %v494_v23 = vand.u32 2147483648, %v466_v14  ;;  %vm488_vm1 = vweird.f32 %v466_v14  ;;  %v492_v42 = vand.u32 2147483647, %v466_v14 }
  0xe3   :  { %4272 = vst [vmem:[#allocation71_spill] sm:$0xff] %v3039_v52  ;;  %v429_v2 = vpop.f32.mrf.mxu3 }
  0xe4   :  { %603 = vmatpush.msrb.mxu0 %v2688_v63  ;;  %v455_v31 = vadd.f32 %v429_v2, %v3039_v52  ;;  %vm493_vm5 = vcmp.eq.f32.partialorder %v492_v42, 8.507059e+37  ;;  %v4288_v42 = vld [vmem:[#allocation29_spill] sm:$0xff] }
  0xe5   :  { %v2116_v41 = vpop.eup %2115 }
  0xe6   :  { %v467_v19 = vadd.f32 1.0, %v2116_v41  ;;  %604 = vmatpush.msrb.mxu0 %v2697_v4 }
  0xe8   :  { %v2118_v35 = vpop.eup %2117  ;;  %2119 = vrcp.f32 %v467_v19  ;;  %605 = vmatpush.msrb.mxu0 %v2706_v8  ;;  %vm503_vm4 = vweird.f32 %v467_v19 }
  0xe9   :  { %v484_v15 = vmul.f32 %v2118_v35, %v466_v14  ;;  %vm489_vm0 = vweird.f32 %v2118_v35  ;;  %2121 = vtanh.f32 %v455_v31 }
  0xea   :  { %606 = vmatpush.msrb.mxu0 %v2715_v12  ;;  %vm3050_vm2 = vmor %vm488_vm1, %vm489_vm0 }
  0xeb   :  { %v485_v27 = vsub.f32 1.0, %v484_v15 }
  0xec   :  { %607 = vmatpush.msrb.mxu0 %v2724_v16 }
  0xed   :  { %v486_v41 = vmul.f32 %v2118_v35, %v485_v27  ;;  %v509_v27 = vand.u32 2147483648, %v467_v19 }
  0xee   :  { %v2120_v38 = vpop.eup %2119  ;;  %608 = vmatpush.msrb.mxu0 %v2733_v20 }
  0xef   :  { %v499_v44 = vmul.f32 %v2120_v38, %v467_v19  ;;  %v487_v17 = vadd.f32 %v2118_v35, %v486_v41  ;;  %vm504_vm3 = vweird.f32 %v2120_v38  ;;  %v507_v41 = vand.u32 2147483647, %v467_v19 }
  0xf0   :  { %609 = vmatpush.msrb.mxu0 %v2742_v24  ;;  %vm505_vm6 = vmor %vm503_vm4, %vm504_vm3  ;;  %v510_v31 = vor.u32 1.1754944e-38, %v509_v27  ;;  %v196_v27 = vpop.f32.mrf.mxu0 }
  0xf1   :  { %v500_v15 = vsub.f32 1.0, %v499_v44  ;;  %v491_v52 = vsel %vm3050_vm2, %v2118_v35, %v487_v17  ;;  %v495_v44 = vor.u32 1.1754944e-38, %v494_v23  ;;  %vm508_vm7 = vcmp.eq.f32.partialorder %v507_v41, 8.507059e+37  ;;  %v2122_v17 = vpop.eup %2121 }
  0xf2   :  { %610 = vmatpush.msrb.mxu0 %v2751_v28 }
  0xf3   :  { %v501_v2 = vmul.f32 %v2120_v38, %v500_v15  ;;  %v496_v20 = vsel %vm493_vm5, %v495_v44, %v491_v52  ;;  %v4287_v52 = vld [vmem:[#allocation36_spill] sm:$0xff] }
  0xf4   :  { %611 = vmatpush.msrb.mxu0 %v2760_v32  ;;  %v514_v23 = vmul.f32 %v496_v20, %v264_v33  ;;  %v4282_v20 = vld [vmem:[#allocation25_spill] sm:$0xff]  ;;  %v4284_v33 = vld [vmem:[#allocation26_spill] sm:$0xff] }
  0xf5   :  { %v502_v14 = vadd.f32 %v2120_v38, %v501_v2  ;;  %v171_v2 = vperm.slane %v2938_v39, 0  ;;  %v3109_v39 = vld [vmem:[%s3998_s5] sm:$0x1] }
  0xf6   :  { %612 = vmatpush.msrb.mxu0 %v2769_v36 }
  0xf7   :  { %v506_v15 = vsel %vm505_vm6, %v2120_v38, %v502_v14  ;;  %v4286_v38 = vld [vmem:[#allocation28_spill] sm:$0xff]  ;;  %v3103_v41 = vadd.f32 %v196_v27, %v171_v2 }
  0xf8   :  { %v511_v25 = vsel %vm508_vm7, %v510_v31, %v506_v15  ;;  %613 = vmatpush.msrb.mxu0 %v2778_v40 }
  0xf9   :  { %v515_v35 = vmul.f32 %v2122_v17, %v511_v25  ;;  %v369_v44 = vpop.f32.mrf.mxu0 }
  0xfa   :  { %771 = vmatpush.msra.mxu0 %v2795_v48  ;;  %v452_v14 = vadd.f32 %v369_v44, %v3103_v41 }
  0xfb   :  { %v3065_v19 = vadd.f32 %v515_v35, %v514_v23 }
  0xfc   :  { %772 = vmatpush.msra.mxu0 %v2801_v1  ;;  %v2076_v31 = vmul.f32 -1.442695, %v452_v14 }
  0xfd   :  { %549 = vmatmul.f32.vlgmr.msra.gmra.mxu1 %v3065_v19 }
  0xfe   :  { %791 = vmatpush.msra.mxu1 %v2650_v46  ;;  %773 = vmatpush.msra.mxu0 %v2807_v10  ;;  %v4275_v46 = vld [vmem:[#allocation30_spill] sm:$0xff]  ;;  %2123 = vpow2.f32 %v2076_v31 }
  0xff   :  { %4289 = vst [vmem:[#allocation30_spill] sm:$0xff] %v3103_v41 }
 0x100   :  { %792 = vmatpush.msra.mxu1 %v2656_v50  ;;  %774 = vmatpush.msra.mxu0 %v2811_v18  ;;  %v4276_v50 = vld [vmem:[#allocation19_spill] sm:$0xff] }
 0x102   :  { %793 = vmatpush.msra.mxu1 %v2662_v53  ;;  %775 = vmatpush.msra.mxu0 %v2816_v22  ;;  %v4277_v53 = vld [vmem:[#allocation31_spill] sm:$0xff] }
 0x104   :  { %794 = vmatpush.msra.mxu1 %v2669_v56  ;;  %776 = vmatpush.msra.mxu0 %v2820_v26  ;;  %v4278_v56 = vld [vmem:[#allocation21_spill] sm:$0xff]  ;;  %v2124_v15 = vpop.eup %2123 }
 0x105   :  { %v465_v17 = vadd.f32 1.0, %v2124_v15 }
 0x106   :  { %795 = vmatpush.msra.mxu1 %v2678_v59  ;;  %777 = vmatpush.msra.mxu0 %v2826_v30  ;;  %v4279_v59 = vld [vmem:[#allocation32_spill] sm:$0xff] }
 0x107   :  { %2125 = vrcp.f32 %v465_v17  ;;  %vm473_vm8 = vweird.f32 %v465_v17  ;;  %v477_v2 = vand.u32 2147483647, %v465_v17 }
 0x108   :  { %796 = vmatpush.msra.mxu1 %v2686_v62  ;;  %778 = vmatpush.msra.mxu0 %v2831_v34  ;;  %v4280_v62 = vld [vmem:[#allocation23_spill] sm:$0xff] }
 0x109   :  { %vm478_vm11 = vcmp.eq.f32.partialorder %v477_v2, 8.507059e+37  ;;  %v4319_v2 = vld [vmem:[#allocation62_spill] sm:$0xff] }
 0x10a   :  { %797 = vmatpush.msra.mxu1 %v2695_v3  ;;  %779 = vmatpush.msra.mxu0 %v2836_v49  ;;  %v4281_v3 = vld [vmem:[#allocation33_spill] sm:$0xff] }
 0x10c   :  { %798 = vmatpush.msra.mxu1 %v2704_v7  ;;  %780 = vmatpush.msra.mxu0 %v4275_v46  ;;  %v4283_v7 = vld [vmem:[#allocation34_spill] sm:$0xff] }
 0x10d   :  { %v2126_v25 = vpop.eup %2125 }
 0x10e   :  { %799 = vmatpush.msra.mxu1 %v2713_v11  ;;  %781 = vmatpush.msra.mxu0 %v4277_v53  ;;  %v4285_v11 = vld [vmem:[#allocation35_spill] sm:$0xff]  ;;  %v469_v35 = vmul.f32 %v2126_v25, %v465_v17  ;;  %vm474_vm9 = vweird.f32 %v2126_v25 }
 0x10f   :  { %vm475_vm10 = vmor %vm473_vm8, %vm474_vm9 }
 0x110   :  { %800 = vmatpush.msra.mxu1 %v4276_v50  ;;  %782 = vmatpush.msra.mxu0 %v4279_v59  ;;  %v470_v23 = vsub.f32 1.0, %v469_v35 }
 0x112   :  { %801 = vmatpush.msra.mxu1 %v4278_v56  ;;  %783 = vmatpush.msra.mxu0 %v4281_v3  ;;  %v471_v56 = vmul.f32 %v2126_v25, %v470_v23  ;;  %v4293_v23 = vld [vmem:[#allocation39_spill] sm:$0xff] }
 0x114   :  { %802 = vmatpush.msra.mxu1 %v4280_v62  ;;  %784 = vmatpush.msra.mxu0 %v4283_v7  ;;  %v472_v27 = vadd.f32 %v2126_v25, %v471_v56  ;;  %v4295_v56 = vld [vmem:[#allocation41_spill] sm:$0xff] }
 0x116   :  { %803 = vmatpush.msra.mxu1 %v4282_v20  ;;  %785 = vmatpush.msra.mxu0 %v4285_v11  ;;  %v476_v14 = vsel %vm475_vm10, %v2126_v25, %v472_v27  ;;  %v4292_v25 = vld [vmem:[#allocation38_spill] sm:$0xff] }
 0x117   :  { %v4315_v27 = vld [vmem:[#allocation58_spill] sm:$0xff] }
 0x118   :  { %804 = vmatpush.msra.mxu1 %v4284_v33  ;;  %786 = vmatpush.msra.mxu0 %v4287_v52  ;;  %v479_v33 = vand.u32 2147483648, %v465_v17  ;;  %v4291_v17 = vld [vmem:[#allocation37_spill] sm:$0xff] }
 0x11a   :  { %805 = vmatpush.msra.mxu1 %v4286_v38  ;;  %v480_v44 = vor.u32 1.1754944e-38, %v479_v33  ;;  %v4312_v33 = vld [vmem:[#allocation27_spill] sm:$0xff] }
 0x11c   :  { %806 = vmatpush.msra.mxu1 %v4288_v42  ;;  %v481_v15 = vsel %vm478_vm11, %v480_v44, %v476_v14  ;;  %v4320_v44 = vld [vmem:[#allocation63_spill] sm:$0xff]  ;;  %v4326_v14 = vld [vmem:[#allocation70_spill] sm:$0xff] }
 0x156   :  { %v449_v50 = vpop.f32.mrf.mxu0 }
 0x17a   :  { %v550_v62 = vpop.f32.mrf.mxu1 }
 0x17b   :  { %v553_v20 = vadd.f32 %v550_v62, %v449_v50  ;;  %v4294_v50 = vld [vmem:[#allocation40_spill] sm:$0xff] }
 0x17c   :  { %v4307_v62 = vld [vmem:[#allocation24_spill] sm:$0xff] }
 0x17d   :  { %v555_v38 = vadd.f32 %v3109_v39, %v553_v20  ;;  %v4309_v20 = vld [vmem:[#allocation53_spill] sm:$0xff] }
 0x17f   :  { %2127 = vtanh.f32 %v555_v38  ;;  %v4314_v38 = vld [vmem:[#allocation22_spill] sm:$0xff] }
 0x185   :  { %v2128_v31 = vpop.eup %2127 }
 0x186   :  { %v3112_v35 = vmul.f32 %v2128_v31, %v481_v15  ;;  %v4329_v31 = vld [vmem:[#allocation71_spill] sm:$0xff] }
 0x188   :  { %4290 = vst [vmem:[#allocation19_spill] sm:$0xff] %v3112_v35  ;;  %574 = vmatmul.f32.vlgmr.msra.gmra.mxu2 %v3112_v35  ;;  %594 = vmatmul.f32.vlgmr.msra.gmra.mxu3 %v3112_v35 }
 0x189   :  { %614 = vmatmul.f32.vlgmr.msrb.gmra.mxu0 %v3112_v35  ;;  %634 = vmatmul.f32.vlgmr.msrb.gmra.mxu1 %v3112_v35 }
 0x18a   :  { %811 = vmatpush.msra.mxu2 %v2652_v47  ;;  %831 = vmatpush.msra.mxu3 %v2676_v58  ;;  %v4296_v47 = vld [vmem:[#allocation42_spill] sm:$0xff]  ;;  %v4298_v58 = vld [vmem:[#allocation44_spill] sm:$0xff] }
 0x18b   :  { %851 = vmatpush.msrb.mxu0 %v4291_v17  ;;  %953 = vmatpush.msrb.mxu1 %v4292_v25 }
 0x18c   :  { %812 = vmatpush.msra.mxu2 %v2658_v51  ;;  %832 = vmatpush.msra.mxu3 %v2684_v61  ;;  %v4297_v51 = vld [vmem:[#allocation43_spill] sm:$0xff]  ;;  %v4300_v61 = vld [vmem:[#allocation46_spill] sm:$0xff] }
 0x18d   :  { %852 = vmatpush.msrb.mxu0 %v4293_v23  ;;  %954 = vmatpush.msrb.mxu1 %v4294_v50 }
 0x18e   :  { %813 = vmatpush.msra.mxu2 %v2664_v54  ;;  %833 = vmatpush.msra.mxu3 %v2693_v0  ;;  %v4299_v54 = vld [vmem:[#allocation45_spill] sm:$0xff]  ;;  %v4301_v0 = vld [vmem:[#allocation47_spill] sm:$0xff] }
 0x18f   :  { %853 = vmatpush.msrb.mxu0 %v4295_v56  ;;  %955 = vmatpush.msrb.mxu1 %v4296_v47 }
 0x190   :  { %654 = vmatmul.f32.vlgmr.msrb.gmra.mxu2 %v3112_v35  ;;  %834 = vmatpush.msra.mxu3 %v2702_v5  ;;  %v4302_v5 = vld [vmem:[#allocation20_spill] sm:$0xff] }
 0x191   :  { %814 = vmatpush.msra.mxu2 %v2671_v57  ;;  %854 = vmatpush.msrb.mxu0 %v4297_v51  ;;  %v4303_v57 = vld [vmem:[#allocation48_spill] sm:$0xff] }
 0x192   :  { %835 = vmatpush.msra.mxu3 %v2711_v9  ;;  %956 = vmatpush.msrb.mxu1 %v4298_v58  ;;  %v4304_v9 = vld [vmem:[#allocation49_spill] sm:$0xff] }
 0x193   :  { %815 = vmatpush.msra.mxu2 %v2680_v60  ;;  %855 = vmatpush.msrb.mxu0 %v4299_v54  ;;  %v4305_v60 = vld [vmem:[#allocation50_spill] sm:$0xff] }
 0x194   :  { %836 = vmatpush.msra.mxu3 %v2720_v13  ;;  %957 = vmatpush.msrb.mxu1 %v4300_v61  ;;  %v4306_v13 = vld [vmem:[#allocation51_spill] sm:$0xff] }
 0x195   :  { %816 = vmatpush.msra.mxu2 %v2688_v63  ;;  %856 = vmatpush.msrb.mxu0 %v4301_v0  ;;  %v4308_v63 = vld [vmem:[#allocation52_spill] sm:$0xff] }
 0x196   :  { %837 = vmatpush.msra.mxu3 %v4302_v5  ;;  %958 = vmatpush.msrb.mxu1 %v4303_v57 }
 0x197   :  { %817 = vmatpush.msra.mxu2 %v2697_v4  ;;  %857 = vmatpush.msrb.mxu0 %v4304_v9  ;;  %v4310_v4 = vld [vmem:[#allocation54_spill] sm:$0xff] }
 0x198   :  { %838 = vmatpush.msra.mxu3 %v2738_v21  ;;  %959 = vmatpush.msrb.mxu1 %v4305_v60  ;;  %v4311_v21 = vld [vmem:[#allocation55_spill] sm:$0xff] }
 0x199   :  { %818 = vmatpush.msra.mxu2 %v2706_v8  ;;  %858 = vmatpush.msrb.mxu0 %v4306_v13  ;;  %v4313_v8 = vld [vmem:[#allocation56_spill] sm:$0xff] }
 0x19a   :  { %839 = vmatpush.msra.mxu3 %v4307_v62  ;;  %960 = vmatpush.msrb.mxu1 %v4308_v63 }
 0x19b   :  { %819 = vmatpush.msra.mxu2 %v2715_v12  ;;  %859 = vmatpush.msrb.mxu0 %v4309_v20  ;;  %v4316_v12 = vld [vmem:[#allocation59_spill] sm:$0xff] }
 0x19c   :  { %840 = vmatpush.msra.mxu3 %v2756_v29  ;;  %961 = vmatpush.msrb.mxu1 %v4310_v4  ;;  %v4317_v29 = vld [vmem:[#allocation60_spill] sm:$0xff] }
 0x19d   :  { %820 = vmatpush.msra.mxu2 %v2724_v16  ;;  %860 = vmatpush.msrb.mxu0 %v4311_v21  ;;  %v4318_v16 = vld [vmem:[#allocation61_spill] sm:$0xff] }
 0x19e   :  { %841 = vmatpush.msra.mxu3 %v4312_v33  ;;  %962 = vmatpush.msrb.mxu1 %v4313_v8 }
 0x19f   :  { %821 = vmatpush.msra.mxu2 %v4314_v38  ;;  %861 = vmatpush.msrb.mxu0 %v4315_v27 }
 0x1a0   :  { %842 = vmatpush.msra.mxu3 %v2774_v37  ;;  %963 = vmatpush.msrb.mxu1 %v4316_v12  ;;  %v4321_v37 = vld [vmem:[#allocation64_spill] sm:$0xff] }
 0x1a1   :  { %822 = vmatpush.msra.mxu2 %v2742_v24  ;;  %862 = vmatpush.msrb.mxu0 %v4317_v29  ;;  %v4322_v24 = vld [vmem:[#allocation65_spill] sm:$0xff] }
 0x1a2   :  { %843 = vmatpush.msra.mxu3 %v2788_v43  ;;  %964 = vmatpush.msrb.mxu1 %v4318_v16  ;;  %v4323_v43 = vld [vmem:[#allocation67_spill] sm:$0xff] }
 0x1a3   :  { %823 = vmatpush.msra.mxu2 %v2751_v28  ;;  %863 = vmatpush.msrb.mxu0 %v4319_v2  ;;  %v4324_v28 = vld [vmem:[#allocation68_spill] sm:$0xff] }
 0x1a4   :  { %844 = vmatpush.msra.mxu3 %v2793_v45  ;;  %965 = vmatpush.msrb.mxu1 %v4320_v44  ;;  %v4325_v45 = vld [vmem:[#allocation69_spill] sm:$0xff] }
 0x1a5   :  { %824 = vmatpush.msra.mxu2 %v2760_v32  ;;  %864 = vmatpush.msrb.mxu0 %v4321_v37 }
 0x1a6   :  { %845 = vmatpush.msra.mxu3 %v2799_v55  ;;  %966 = vmatpush.msrb.mxu1 %v4322_v24 }
 0x1a7   :  { %825 = vmatpush.msra.mxu2 %v2769_v36  ;;  %865 = vmatpush.msrb.mxu0 %v4323_v43 }
 0x1a8   :  { %846 = vmatpush.msra.mxu3 %v2805_v6  ;;  %967 = vmatpush.msrb.mxu1 %v4324_v28 }
 0x1a9   :  { %826 = vmatpush.msra.mxu2 %v2778_v40  ;;  %866 = vmatpush.msrb.mxu0 %v4325_v45  ;;  %v4327_v40 = vld [vmem:[#allocation66_spill] sm:$0xff] }
 0x1aa   :  { %968 = vmatpush.msrb.mxu1 %v4326_v14 }
 0x1ab   :  { %983 = vmatpush.msrb.mxu2 %v2795_v48 }
 0x1ad   :  { %984 = vmatpush.msrb.mxu2 %v2801_v1 }
 0x1af   :  { %985 = vmatpush.msrb.mxu2 %v2807_v10  ;;  %v4328_v10 = vld [vmem:[#allocation57_spill] sm:$0xff] }
 0x1b1   :  { %986 = vmatpush.msrb.mxu2 %v2811_v18 }
 0x1b3   :  { %987 = vmatpush.msrb.mxu2 %v2816_v22 }
 0x1b5   :  { %988 = vmatpush.msrb.mxu2 %v2820_v26 }
 0x1b7   :  { %989 = vmatpush.msrb.mxu2 %v2826_v30 }
 0x1b9   :  { %990 = vmatpush.msrb.mxu2 %v2831_v34 }
 0x1bb   :  { %991 = vmatpush.msrb.mxu2 %v2836_v49 }
 0x1bd   :  { %992 = vmatpush.msrb.mxu2 %v4275_v46 }
 0x1bf   :  { %993 = vmatpush.msrb.mxu2 %v4277_v53 }
 0x1c1   :  { %994 = vmatpush.msrb.mxu2 %v4279_v59 }
 0x1c3   :  { %995 = vmatpush.msrb.mxu2 %v4281_v3 }
 0x1c5   :  { %996 = vmatpush.msrb.mxu2 %v4283_v7 }
 0x1c7   :  { %997 = vmatpush.msrb.mxu2 %v4285_v11 }
 0x1c9   :  { %998 = vmatpush.msrb.mxu2 %v4287_v52 }
 0x206   :  { %v615_v32 = vpop.f32.mrf.mxu0  ;;  %v635_v46 = vpop.f32.mrf.mxu1 }
 0x207   :  { %v664_v36 = vrot.slane %v615_v32, 7  ;;  %v665_v3 = vrot.slane %v635_v46, 7 }
 0x209   :  { %v672_v48 = vadd.f32 %v664_v36, %v4327_v40  ;;  %v673_v15 = vadd.f32 %v665_v3, %v4329_v31 }
 0x20b   :  { %v2081_v55 = vmul.f32 -1.442695, %v672_v48  ;;  %v595_v1 = vpop.f32.mrf.mxu3 }
 0x20c   :  { %v663_v6 = vrot.slane %v595_v1, 7 }
 0x20d   :  { %2129 = vpow2.f32 %v2081_v55 }
 0x20e   :  { %v671_v18 = vadd.f32 %v663_v6, %v4328_v10 }
 0x210   :  { %v2080_v22 = vmul.f32 -1.442695, %v671_v18 }
 0x212   :  { %2131 = vpow2.f32 %v2080_v22 }
 0x213   :  { %v2130_v26 = vpop.eup %2129 }
 0x214   :  { %v685_v30 = vadd.f32 1.0, %v2130_v26 }
 0x216   :  { %2133 = vrcp.f32 %v685_v30  ;;  %v727_v33 = vand.u32 2147483648, %v685_v30  ;;  %vm721_vm13 = vweird.f32 %v685_v30  ;;  %v725_v38 = vand.u32 2147483647, %v685_v30 }
 0x218   :  { %v2132_v34 = vpop.eup %2131  ;;  %v728_v6 = vor.u32 1.1754944e-38, %v727_v33  ;;  %vm726_vm0 = vcmp.eq.f32.partialorder %v725_v38, 8.507059e+37  ;;  %v3224_v33 = vld [vmem:[#allocation11 + $0x170] sm:$0xff]  ;;  %v3227_v38 = vld [vmem:[#allocation11 + $0x148] sm:$0xff] }
 0x219   :  { %v684_v49 = vadd.f32 1.0, %v2132_v34  ;;  %v733_v34 = vrot.slane %v3065_v19, 7  ;;  %v3212_v19 = vld [vmem:[#allocation11 + $0x210] sm:$0xff] }
 0x21b   :  { %2135 = vrcp.f32 %v684_v49  ;;  %v712_v36 = vand.u32 2147483648, %v684_v49  ;;  %v710_v1 = vand.u32 2147483647, %v684_v49  ;;  %vm706_vm1 = vweird.f32 %v684_v49 }
 0x21c   :  { %v2134_v53 = vpop.eup %2133  ;;  %2137 = vtanh.f32 %v673_v15  ;;  %v3206_v15 = vld [vmem:[#allocation11 + $0x260] sm:$0xff] }
 0x21d   :  { %v717_v59 = vmul.f32 %v2134_v53, %v685_v30  ;;  %vm722_vm12 = vweird.f32 %v2134_v53  ;;  %v713_v26 = vor.u32 1.1754944e-38, %v712_v36  ;;  %vm711_vm3 = vcmp.eq.f32.partialorder %v710_v1, 8.507059e+37  ;;  %v3233_v36 = vld [vmem:[#allocation11 + $0xf8] sm:$0xff]  ;;  %v3242_v1 = vld [vmem:[#allocation11 + $0x80] sm:$0xff] }
 0x21e   :  { %vm723_vm14 = vmor %vm721_vm13, %vm722_vm12  ;;  %4332 = vst [vmem:[#allocation32_spill] sm:$0xff] %v3242_v1 }
 0x21f   :  { %v718_v7 = vsub.f32 1.0, %v717_v59 }
 0x221   :  { %v719_v11 = vmul.f32 %v2134_v53, %v718_v7  ;;  %v2136_v52 = vpop.eup %2135 }
 0x222   :  { %v702_v62 = vmul.f32 %v2136_v52, %v684_v49  ;;  %vm707_vm15 = vweird.f32 %v2136_v52  ;;  %v2138_v30 = vpop.eup %2137  ;;  %v3209_v49 = vld [vmem:[#allocation11 + $0x238] sm:$0xff] }
 0x223   :  { %v720_v5 = vadd.f32 %v2134_v53, %v719_v11  ;;  %vm708_vm2 = vmor %vm706_vm1, %vm707_vm15 }
 0x224   :  { %v703_v32 = vsub.f32 1.0, %v702_v62  ;;  %v3221_v62 = vld [vmem:[#allocation11 + $0x198] sm:$0xff] }
 0x225   :  { %v724_v48 = vsel %vm723_vm14, %v2134_v53, %v720_v5  ;;  %v3218_v5 = vld [vmem:[#allocation11 + $0x1c0] sm:$0xff] }
 0x226   :  { %v704_v55 = vmul.f32 %v2136_v52, %v703_v32  ;;  %v729_v22 = vsel %vm726_vm0, %v728_v6, %v724_v48  ;;  %v3230_v32 = vld [vmem:[#allocation11 + $0x120] sm:$0xff]  ;;  %v3236_v48 = vld [vmem:[#allocation11 + $0xd0] sm:$0xff]  ;;  %v3245_v6 = vld [vmem:[#allocation11 + $0x58] sm:$0xff] }
 0x227   :  { %v736_v3 = vmul.f32 %v2138_v30, %v729_v22  ;;  %4330 = vst [vmem:[#allocation31_spill] sm:$0xff] %v3236_v48  ;;  %v575_v22 = vpop.f32.mrf.mxu2 }
 0x228   :  { %v705_v18 = vadd.f32 %v2136_v52, %v704_v55  ;;  %v3239_v55 = vld [vmem:[#allocation11 + $0xa8] sm:$0xff]  ;;  %4333 = vst [vmem:[#allocation23_spill] sm:$0xff] %v3245_v6 }
 0x229   :  { %4331 = vst [vmem:[#allocation21_spill] sm:$0xff] %v3239_v55 }
 0x22a   :  { %v709_v46 = vsel %vm708_vm2, %v2136_v52, %v705_v18  ;;  %v3215_v52 = vld [vmem:[#allocation11 + $0x1e8] sm:$0xff]  ;;  %v3248_v18 = vld [vmem:[#allocation11 + $0x30] sm:$0xff] }
 0x22b   :  { %v714_v59 = vsel %vm711_vm3, %v713_v26, %v709_v46  ;;  %4334 = vst [vmem:[#allocation33_spill] sm:$0xff] %v3248_v18  ;;  %v662_v26 = vrot.slane %v575_v22, 7  ;;  %vm2040_vm3 = vcmask 1040384  }
 0x22c   :  { %v735_v7 = vmul.f32 %v733_v34, %v714_v59 }
 0x22d   :  { %v670_v34 = vadd.f32 %v662_v26, %v3103_v41 }
 0x22e   :  { %v3203_v11 = vadd.f32 %v736_v3, %v735_v7 }
 0x22f   :  { %v2079_v46 = vmul.f32 -1.442695, %v670_v34  ;;  %v655_v35 = vpop.f32.mrf.mxu2 }
 0x230   :  { %v739_v53 = vrot.slane %v3203_v11, 1 }
 0x231   :  { %2139 = vpow2.f32 %v2079_v46 }
 0x232   :  { %757 = vmatmul.f32.vlgmr.msrb.gmra.mxu3 %v739_v53 }
 0x233   :  { %1003 = vmatpush.msrb.mxu3 %v3206_v15 }
 0x235   :  { %1004 = vmatpush.msrb.mxu3 %v3209_v49 }
 0x237   :  { %1005 = vmatpush.msrb.mxu3 %v3212_v19  ;;  %v2140_v30 = vpop.eup %2139 }
 0x238   :  { %v683_v59 = vadd.f32 1.0, %v2140_v30 }
 0x239   :  { %1006 = vmatpush.msrb.mxu3 %v3215_v52 }
 0x23a   :  { %2141 = vrcp.f32 %v683_v59  ;;  %v697_v22 = vand.u32 2147483648, %v683_v59  ;;  %vm691_vm5 = vweird.f32 %v683_v59  ;;  %v695_v26 = vand.u32 2147483647, %v683_v59 }
 0x23b   :  { %1007 = vmatpush.msrb.mxu3 %v3218_v5 }
 0x23c   :  { %v698_v30 = vor.u32 1.1754944e-38, %v697_v22  ;;  %vm696_vm7 = vcmp.eq.f32.partialorder %v695_v26, 8.507059e+37  ;;  %v3415_v22 = vld [vmem:[#allocation11 + $0xc8] sm:$0xff]  ;;  %v3418_v26 = vld [vmem:[#allocation11 + $0xa0] sm:$0xff] }
 0x23d   :  { %1008 = vmatpush.msrb.mxu3 %v3221_v62  ;;  %4364 = vst [vmem:[#allocation56_spill] sm:$0xff] %v3415_v22 }
 0x23e   :  { %4365 = vst [vmem:[#allocation22_spill] sm:$0xff] %v3418_v26 }
 0x23f   :  { %1009 = vmatpush.msrb.mxu3 %v3224_v33 }
 0x240   :  { %v2142_v3 = vpop.eup %2141 }
 0x241   :  { %1010 = vmatpush.msrb.mxu3 %v3227_v38  ;;  %v687_v7 = vmul.f32 %v2142_v3, %v683_v59  ;;  %vm692_vm4 = vweird.f32 %v2142_v3  ;;  %v3397_v59 = vld [vmem:[#allocation11 + $0x1b8] sm:$0xff] }
 0x242   :  { %vm693_vm6 = vmor %vm691_vm5, %vm692_vm4  ;;  %4358 = vst [vmem:[#allocation24_spill] sm:$0xff] %v3397_v59  ;;  %vm2042_vm5 = vcmask 1041408  }
 0x243   :  { %1011 = vmatpush.msrb.mxu3 %v3230_v32  ;;  %v688_v53 = vsub.f32 1.0, %v687_v7 }
 0x245   :  { %1012 = vmatpush.msrb.mxu3 %v3233_v36 }
 0x247   :  { %1013 = vmatpush.msrb.mxu3 %v3236_v48 }
 0x249   :  { %1014 = vmatpush.msrb.mxu3 %v3239_v55  ;;  %v689_v55 = vmul.f32 %v2142_v3, %v688_v53  ;;  %v3409_v53 = vld [vmem:[#allocation11 + $0x118] sm:$0xff] }
 0x24a   :  { %4362 = vst [vmem:[#allocation55_spill] sm:$0xff] %v3409_v53 }
 0x24b   :  { %1015 = vmatpush.msrb.mxu3 %v3242_v1 }
 0x24d   :  { %1016 = vmatpush.msrb.mxu3 %v3245_v6 }
 0x24f   :  { %1017 = vmatpush.msrb.mxu3 %v3248_v18 }
 0x251   :  { %1018 = vmatpush.msrb.mxu3 %v4288_v42  ;;  %v690_v42 = vadd.f32 %v2142_v3, %v689_v55  ;;  %v3257_v55 = vld [vmem:[#allocation11 + $0x268] sm:$0xff] }
 0x253   :  { %v694_v34 = vsel %vm693_vm6, %v2142_v3, %v690_v42  ;;  %v3406_v3 = vld [vmem:[#allocation11 + $0x140] sm:$0xff]  ;;  %v3412_v42 = vld [vmem:[#allocation11 + $0xf0] sm:$0xff] }
 0x254   :  { %v699_v48 = vsel %vm696_vm7, %v698_v30, %v694_v34  ;;  %4361 = vst [vmem:[#allocation54_spill] sm:$0xff] %v3406_v3  ;;  %v3421_v34 = vld [vmem:[#allocation11 + $0x78] sm:$0xff]  ;;  %v3427_v30 = vld [vmem:[#allocation11 + $0x28] sm:$0xff] }
 0x255   :  { %4363 = vst [vmem:[#allocation27_spill] sm:$0xff] %v3412_v42 }
 0x256   :  { %4366 = vst [vmem:[#allocation58_spill] sm:$0xff] %v3421_v34 }
 0x257   :  { %4368 = vst [vmem:[#allocation60_spill] sm:$0xff] %v3427_v30 }
 0x2b5   :  { %v758_v6 = vpop.f32.mrf.mxu3 }
 0x2b6   :  { %v761_v1 = vadd.f32 %v758_v6, %v655_v35  ;;  %v3273_v6 = vld [vmem:[#allocation11 + $0x218] sm:$0xff] }
 0x2b8   :  { %v762_v18 = vadd.f32 %v761_v1, %v3109_v39  ;;  %v3260_v1 = vld [vmem:[#allocation11 + $0x270] sm:$0xff] }
 0x2ba   :  { %2143 = vtanh.f32 %v762_v18  ;;  %v3276_v18 = vld [vmem:[#allocation11 + $0x220] sm:$0xff] }
 0x2c0   :  { %v2144_v46 = vpop.eup %2143 }
 0x2c1   :  { %v765_v41 = vrot.slane %v2144_v46, 7  ;;  %v3424_v46 = vld [vmem:[#allocation11 + $0x50] sm:$0xff] }
 0x2c2   :  { %4367 = vst [vmem:[#allocation59_spill] sm:$0xff] %v3424_v46 }
 0x2c3   :  { %v3254_v7 = vmul.f32 %v765_v41, %v699_v48  ;;  %v3265_v41 = vld [vmem:[#allocation11 + $0x240] sm:$0xff]  ;;  %v3268_v48 = vld [vmem:[#allocation11 + $0x248] sm:$0xff] }
 0x2c5   :  { %v769_v35 = vrot.slane %v3254_v7, 1 }
 0x2c7   :  { %787 = vmatmul.f32.vlgmr.msra.gmra.mxu0 %v769_v35  ;;  %807 = vmatmul.f32.vlgmr.msra.gmra.mxu1 %v769_v35 }
 0x2c8   :  { %827 = vmatmul.f32.vlgmr.msra.gmra.mxu2 %v769_v35  ;;  %847 = vmatmul.f32.vlgmr.msra.gmra.mxu3 %v769_v35 }
 0x2c9   :  { %1023 = vmatpush.msra.mxu0 %v3257_v55  ;;  %1043 = vmatpush.msra.mxu1 %v3260_v1 }
 0x2ca   :  { %1063 = vmatpush.msra.mxu2 %v4291_v17  ;;  %1165 = vmatpush.msra.mxu3 %v4292_v25  ;;  %v3281_v17 = vld [vmem:[#allocation11 + $0x1f8] sm:$0xff]  ;;  %v3284_v25 = vld [vmem:[#allocation11 + $0x1f0] sm:$0xff] }
 0x2cb   :  { %1024 = vmatpush.msra.mxu0 %v3265_v41  ;;  %1044 = vmatpush.msra.mxu1 %v3268_v48 }
 0x2cc   :  { %1064 = vmatpush.msra.mxu2 %v4293_v23  ;;  %1166 = vmatpush.msra.mxu3 %v4294_v50  ;;  %v3288_v23 = vld [vmem:[#allocation11 + $0x1d0] sm:$0xff]  ;;  %v3292_v50 = vld [vmem:[#allocation11 + $0x1c8] sm:$0xff] }
 0x2cd   :  { %1025 = vmatpush.msra.mxu0 %v3273_v6  ;;  %1045 = vmatpush.msra.mxu1 %v3276_v18 }
 0x2ce   :  { %1065 = vmatpush.msra.mxu2 %v4295_v56  ;;  %1167 = vmatpush.msra.mxu3 %v4296_v47  ;;  %v3296_v56 = vld [vmem:[#allocation11 + $0x1a8] sm:$0xff]  ;;  %v3300_v47 = vld [vmem:[#allocation11 + $0x1a0] sm:$0xff] }
 0x2cf   :  { %867 = vmatmul.f32.vlgmr.msrb.gmra.mxu0 %v769_v35  ;;  %1046 = vmatpush.msra.mxu1 %v3281_v17  ;;  %v3430_v35 = vld [vmem:[#allocation11] sm:$0xff] }
 0x2d0   :  { %1026 = vmatpush.msra.mxu0 %v3284_v25  ;;  %1066 = vmatpush.msra.mxu2 %v4297_v51  ;;  %v3304_v51 = vld [vmem:[#allocation11 + $0x180] sm:$0xff]  ;;  %4369 = vst [vmem:[#allocation61_spill] sm:$0xff] %v3430_v35 }
 0x2d1   :  { %1047 = vmatpush.msra.mxu1 %v3288_v23  ;;  %1168 = vmatpush.msra.mxu3 %v4298_v58  ;;  %v3308_v58 = vld [vmem:[#allocation11 + $0x178] sm:$0xff] }
 0x2d2   :  { %1027 = vmatpush.msra.mxu0 %v3292_v50  ;;  %1067 = vmatpush.msra.mxu2 %v4299_v54  ;;  %4335 = vst [vmem:[#allocation25_spill] sm:$0xff] %v3308_v58  ;;  %v3312_v54 = vld [vmem:[#allocation11 + $0x158] sm:$0xff] }
 0x2d3   :  { %1048 = vmatpush.msra.mxu1 %v3296_v56  ;;  %1169 = vmatpush.msra.mxu3 %v4300_v61  ;;  %4336 = vst [vmem:[#allocation34_spill] sm:$0xff] %v3312_v54  ;;  %v3316_v61 = vld [vmem:[#allocation11 + $0x150] sm:$0xff] }
 0x2d4   :  { %1028 = vmatpush.msra.mxu0 %v3300_v47  ;;  %1068 = vmatpush.msra.mxu2 %v4301_v0  ;;  %4337 = vst [vmem:[#allocation26_spill] sm:$0xff] %v3316_v61  ;;  %v3320_v0 = vld [vmem:[#allocation11 + $0x130] sm:$0xff] }
 0x2d5   :  { %1049 = vmatpush.msra.mxu1 %v3304_v51  ;;  %1170 = vmatpush.msra.mxu3 %v4303_v57  ;;  %4338 = vst [vmem:[#allocation35_spill] sm:$0xff] %v3320_v0  ;;  %v3324_v57 = vld [vmem:[#allocation11 + $0x128] sm:$0xff] }
 0x2d6   :  { %1029 = vmatpush.msra.mxu0 %v3308_v58  ;;  %1069 = vmatpush.msra.mxu2 %v4304_v9  ;;  %4339 = vst [vmem:[#allocation28_spill] sm:$0xff] %v3324_v57  ;;  %v3328_v9 = vld [vmem:[#allocation11 + $0x108] sm:$0xff] }
 0x2d7   :  { %1050 = vmatpush.msra.mxu1 %v3312_v54  ;;  %1171 = vmatpush.msra.mxu3 %v4305_v60  ;;  %4340 = vst [vmem:[#allocation36_spill] sm:$0xff] %v3328_v9  ;;  %v3332_v60 = vld [vmem:[#allocation11 + $0x100] sm:$0xff] }
 0x2d8   :  { %1030 = vmatpush.msra.mxu0 %v3316_v61  ;;  %1070 = vmatpush.msra.mxu2 %v4306_v13  ;;  %4341 = vst [vmem:[#allocation29_spill] sm:$0xff] %v3332_v60  ;;  %v3336_v13 = vld [vmem:[#allocation11 + $0xe0] sm:$0xff] }
 0x2d9   :  { %1051 = vmatpush.msra.mxu1 %v3320_v0  ;;  %1172 = vmatpush.msra.mxu3 %v4308_v63  ;;  %4342 = vst [vmem:[#allocation37_spill] sm:$0xff] %v3336_v13  ;;  %v3340_v63 = vld [vmem:[#allocation11 + $0xd8] sm:$0xff] }
 0x2da   :  { %1031 = vmatpush.msra.mxu0 %v3324_v57  ;;  %1071 = vmatpush.msra.mxu2 %v4309_v20  ;;  %4343 = vst [vmem:[#allocation38_spill] sm:$0xff] %v3340_v63  ;;  %v3344_v20 = vld [vmem:[#allocation11 + $0xb8] sm:$0xff] }
 0x2db   :  { %1052 = vmatpush.msra.mxu1 %v3328_v9  ;;  %1173 = vmatpush.msra.mxu3 %v4310_v4  ;;  %4344 = vst [vmem:[#allocation39_spill] sm:$0xff] %v3344_v20  ;;  %v3348_v4 = vld [vmem:[#allocation11 + $0xb0] sm:$0xff] }
 0x2dc   :  { %1032 = vmatpush.msra.mxu0 %v3332_v60  ;;  %1072 = vmatpush.msra.mxu2 %v4311_v21  ;;  %4345 = vst [vmem:[#allocation40_spill] sm:$0xff] %v3348_v4  ;;  %v3352_v21 = vld [vmem:[#allocation11 + $0x90] sm:$0xff] }
 0x2dd   :  { %1053 = vmatpush.msra.mxu1 %v3336_v13  ;;  %1174 = vmatpush.msra.mxu3 %v4313_v8  ;;  %4346 = vst [vmem:[#allocation41_spill] sm:$0xff] %v3352_v21  ;;  %v3356_v8 = vld [vmem:[#allocation11 + $0x88] sm:$0xff] }
 0x2de   :  { %1033 = vmatpush.msra.mxu0 %v3340_v63  ;;  %1073 = vmatpush.msra.mxu2 %v4315_v27  ;;  %4347 = vst [vmem:[#allocation42_spill] sm:$0xff] %v3356_v8  ;;  %v3360_v27 = vld [vmem:[#allocation11 + $0x68] sm:$0xff] }
 0x2df   :  { %1054 = vmatpush.msra.mxu1 %v3344_v20  ;;  %1175 = vmatpush.msra.mxu3 %v4316_v12  ;;  %4348 = vst [vmem:[#allocation43_spill] sm:$0xff] %v3360_v27  ;;  %v3364_v12 = vld [vmem:[#allocation11 + $0x60] sm:$0xff] }
 0x2e0   :  { %1034 = vmatpush.msra.mxu0 %v3348_v4  ;;  %1074 = vmatpush.msra.mxu2 %v4317_v29  ;;  %4349 = vst [vmem:[#allocation44_spill] sm:$0xff] %v3364_v12  ;;  %v3368_v29 = vld [vmem:[#allocation11 + $0x40] sm:$0xff] }
 0x2e1   :  { %1055 = vmatpush.msra.mxu1 %v3352_v21  ;;  %1176 = vmatpush.msra.mxu3 %v4318_v16  ;;  %4350 = vst [vmem:[#allocation45_spill] sm:$0xff] %v3368_v29  ;;  %v3372_v16 = vld [vmem:[#allocation11 + $0x38] sm:$0xff] }
 0x2e2   :  { %1035 = vmatpush.msra.mxu0 %v3356_v8  ;;  %1075 = vmatpush.msra.mxu2 %v4319_v2  ;;  %4351 = vst [vmem:[#allocation46_spill] sm:$0xff] %v3372_v16  ;;  %v3376_v2 = vld [vmem:[#allocation11 + $0x18] sm:$0xff] }
 0x2e3   :  { %1056 = vmatpush.msra.mxu1 %v3360_v27  ;;  %1177 = vmatpush.msra.mxu3 %v4320_v44  ;;  %4352 = vst [vmem:[#allocation47_spill] sm:$0xff] %v3376_v2  ;;  %v3380_v44 = vld [vmem:[#allocation11 + $0x10] sm:$0xff] }
 0x2e4   :  { %1036 = vmatpush.msra.mxu0 %v3364_v12  ;;  %1076 = vmatpush.msra.mxu2 %v4321_v37  ;;  %4353 = vst [vmem:[#allocation20_spill] sm:$0xff] %v3380_v44  ;;  %v3385_v37 = vld [vmem:[#allocation11 + $0x258] sm:$0xff] }
 0x2e5   :  { %1057 = vmatpush.msra.mxu1 %v3368_v29  ;;  %1178 = vmatpush.msra.mxu3 %v4322_v24  ;;  %4354 = vst [vmem:[#allocation48_spill] sm:$0xff] %v3385_v37  ;;  %v3388_v24 = vld [vmem:[#allocation11 + $0x230] sm:$0xff] }
 0x2e6   :  { %1037 = vmatpush.msra.mxu0 %v3372_v16  ;;  %1077 = vmatpush.msra.mxu2 %v4323_v43  ;;  %4355 = vst [vmem:[#allocation49_spill] sm:$0xff] %v3388_v24  ;;  %v3391_v43 = vld [vmem:[#allocation11 + $0x208] sm:$0xff] }
 0x2e7   :  { %1058 = vmatpush.msra.mxu1 %v3376_v2  ;;  %1179 = vmatpush.msra.mxu3 %v4324_v28  ;;  %4356 = vst [vmem:[#allocation50_spill] sm:$0xff] %v3391_v43  ;;  %v3394_v28 = vld [vmem:[#allocation11 + $0x1e0] sm:$0xff] }
 0x2e8   :  { %1038 = vmatpush.msra.mxu0 %v3380_v44  ;;  %1078 = vmatpush.msra.mxu2 %v4325_v45  ;;  %4357 = vst [vmem:[#allocation51_spill] sm:$0xff] %v3394_v28  ;;  %v3400_v45 = vld [vmem:[#allocation11 + $0x190] sm:$0xff] }
 0x2e9   :  { %1180 = vmatpush.msra.mxu3 %v4326_v14  ;;  %4359 = vst [vmem:[#allocation52_spill] sm:$0xff] %v3400_v45  ;;  %v3403_v14 = vld [vmem:[#allocation11 + $0x168] sm:$0xff] }
 0x2ea   :  { %1195 = vmatpush.msrb.mxu0 %v3385_v37  ;;  %4360 = vst [vmem:[#allocation53_spill] sm:$0xff] %v3403_v14 }
 0x2ec   :  { %1196 = vmatpush.msrb.mxu0 %v3388_v24 }
 0x2ee   :  { %1197 = vmatpush.msrb.mxu0 %v3391_v43 }
 0x2f0   :  { %1198 = vmatpush.msrb.mxu0 %v3394_v28 }
 0x2f2   :  { %1199 = vmatpush.msrb.mxu0 %v3397_v59 }
 0x2f4   :  { %1200 = vmatpush.msrb.mxu0 %v3400_v45 }
 0x2f6   :  { %1201 = vmatpush.msrb.mxu0 %v3403_v14 }
 0x2f8   :  { %1202 = vmatpush.msrb.mxu0 %v3406_v3 }
 0x2fa   :  { %1203 = vmatpush.msrb.mxu0 %v3409_v53 }
 0x2fc   :  { %1204 = vmatpush.msrb.mxu0 %v3412_v42 }
 0x2fe   :  { %1205 = vmatpush.msrb.mxu0 %v3415_v22 }
 0x300   :  { %1206 = vmatpush.msrb.mxu0 %v3418_v26 }
 0x302   :  { %1207 = vmatpush.msrb.mxu0 %v3421_v34 }
 0x304   :  { %1208 = vmatpush.msrb.mxu0 %v3424_v46 }
 0x306   :  { %1209 = vmatpush.msrb.mxu0 %v3427_v30 }
 0x308   :  { %1210 = vmatpush.msrb.mxu0 %v3430_v35 }
 0x344   :  { %v808_v22 = vpop.f32.mrf.mxu1 }
 0x345   :  { %v876_v42 = vrot.slane %v808_v22, 6 }
 0x347   :  { %v884_v26 = vadd.f32 %v876_v42, %v4328_v10 }
 0x349   :  { %v2083_v53 = vmul.f32 -1.442695, %v884_v26 }
 0x34b   :  { %v828_v3 = vpop.f32.mrf.mxu2  ;;  %2145 = vpow2.f32 %v2083_v53  ;;  %v848_v43 = vpop.f32.mrf.mxu3 }
 0x34c   :  { %v877_v34 = vrot.slane %v828_v3, 6  ;;  %v878_v22 = vrot.slane %v848_v43, 6 }
 0x34e   :  { %v885_v14 = vadd.f32 %v877_v34, %v4327_v40  ;;  %v886_v53 = vadd.f32 %v878_v22, %v4329_v31 }
 0x350   :  { %v2084_v45 = vmul.f32 -1.442695, %v885_v14 }
 0x351   :  { %v2146_v46 = vpop.eup %2145 }
 0x352   :  { %2147 = vpow2.f32 %v2084_v45  ;;  %v897_v59 = vadd.f32 1.0, %v2146_v46 }
 0x354   :  { %2149 = vrcp.f32 %v897_v59  ;;  %v925_v14 = vand.u32 2147483648, %v897_v59  ;;  %vm919_vm9 = vweird.f32 %v897_v59  ;;  %v923_v34 = vand.u32 2147483647, %v897_v59 }
 0x356   :  { %v926_v43 = vor.u32 1.1754944e-38, %v925_v14  ;;  %vm924_vm13 = vcmp.eq.f32.partialorder %v923_v34, 8.507059e+37 }
 0x358   :  { %v2148_v30 = vpop.eup %2147 }
 0x359   :  { %v898_v28 = vadd.f32 1.0, %v2148_v30 }
 0x35a   :  { %v2150_v24 = vpop.eup %2149 }
 0x35b   :  { %2151 = vrcp.f32 %v898_v28  ;;  %v915_v35 = vmul.f32 %v2150_v24, %v897_v59  ;;  %vm920_vm8 = vweird.f32 %v2150_v24  ;;  %v940_v46 = vand.u32 2147483648, %v898_v28 }
 0x35c   :  { %2153 = vtanh.f32 %v886_v53  ;;  %vm921_vm10 = vmor %vm919_vm9, %vm920_vm8  ;;  %v938_v40 = vand.u32 2147483647, %v898_v28  ;;  %vm934_vm12 = vweird.f32 %v898_v28 }
 0x35d   :  { %v916_v37 = vsub.f32 1.0, %v915_v35 }
 0x35e   :  { %vm939_vm15 = vcmp.eq.f32.partialorder %v938_v40, 8.507059e+37  ;;  %v4370_v40 = vld [vmem:[#allocation31_spill] sm:$0xff] }
 0x35f   :  { %v917_v42 = vmul.f32 %v2150_v24, %v916_v37  ;;  %v941_v37 = vor.u32 1.1754944e-38, %v940_v46 }
 0x361   :  { %v2152_v26 = vpop.eup %2151  ;;  %v918_v10 = vadd.f32 %v2150_v24, %v917_v42  ;;  %v945_v42 = vrot.slane %v3203_v11, 7  ;;  %v4373_v11 = vld [vmem:[#allocation23_spill] sm:$0xff] }
 0x362   :  { %v930_v3 = vmul.f32 %v2152_v26, %v898_v28  ;;  %vm935_vm11 = vweird.f32 %v2152_v26 }
 0x363   :  { %v922_v44 = vsel %vm921_vm10, %v2150_v24, %v918_v10  ;;  %vm936_vm14 = vmor %vm934_vm12, %vm935_vm11  ;;  %v4371_v10 = vld [vmem:[#allocation21_spill] sm:$0xff]  ;;  %v788_v24 = vpop.f32.mrf.mxu0 }
 0x364   :  { %v931_v45 = vsub.f32 1.0, %v930_v3  ;;  %v927_v22 = vsel %vm924_vm13, %v926_v43, %v922_v44  ;;  %v2154_v3 = vpop.eup %2153  ;;  %v3455_v44 = vld [vmem:[#allocation11 + $0x8] sm:$0xff]  ;;  %v875_v28 = vrot.slane %v788_v24, 6 }
 0x365   :  { %v947_v53 = vmul.f32 %v945_v42, %v927_v22  ;;  %4375 = vst [vmem:[#allocation62_spill] sm:$0xff] %v3455_v44 }
 0x366   :  { %v932_v30 = vmul.f32 %v2152_v26, %v931_v45 }
 0x368   :  { %v933_v35 = vadd.f32 %v2152_v26, %v932_v30 }
 0x36a   :  { %v937_v31 = vsel %vm936_vm14, %v2152_v26, %v933_v35  ;;  %v4376_v26 = vld [vmem:[#allocation30_spill] sm:$0xff] }
 0x36b   :  { %v942_v59 = vsel %vm939_vm15, %v941_v37, %v937_v31  ;;  %v4372_v31 = vld [vmem:[#allocation32_spill] sm:$0xff]  ;;  %v883_v14 = vadd.f32 %v875_v28, %v4376_v26  ;;  %v868_v22 = vpop.f32.mrf.mxu0 }
 0x36c   :  { %v948_v2 = vmul.f32 %v2154_v3, %v942_v59 }
 0x36d   :  { %v2082_v34 = vmul.f32 -1.442695, %v883_v14 }
 0x36e   :  { %v3437_v16 = vadd.f32 %v948_v2, %v947_v53  ;;  %v4374_v2 = vld [vmem:[#allocation33_spill] sm:$0xff] }
 0x36f   :  { %2155 = vpow2.f32 %v2082_v34 }
 0x370   :  { %v951_v45 = vrot.slane %v3437_v16, 2 }
 0x372   :  { %969 = vmatmul.f32.vlgmr.msrb.gmra.mxu1 %v951_v45 }
 0x373   :  { %1215 = vmatpush.msrb.mxu1 %v3206_v15 }
 0x375   :  { %1216 = vmatpush.msrb.mxu1 %v3209_v49  ;;  %v2156_v46 = vpop.eup %2155 }
 0x376   :  { %v896_v30 = vadd.f32 1.0, %v2156_v46 }
 0x377   :  { %1217 = vmatpush.msrb.mxu1 %v3212_v19 }
 0x378   :  { %2157 = vrcp.f32 %v896_v30  ;;  %v910_v24 = vand.u32 2147483648, %v896_v30  ;;  %vm904_vm1 = vweird.f32 %v896_v30  ;;  %v908_v28 = vand.u32 2147483647, %v896_v30 }
 0x379   :  { %1218 = vmatpush.msrb.mxu1 %v3215_v52 }
 0x37a   :  { %v911_v46 = vor.u32 1.1754944e-38, %v910_v24  ;;  %vm909_vm4 = vcmp.eq.f32.partialorder %v908_v28, 8.507059e+37  ;;  %v3502_v24 = vld [vmem:[#allocation13 + $0x58] sm:$0xff]  ;;  %v3506_v28 = vld [vmem:[#allocation11 + $0x1b0] sm:$0xff] }
 0x37b   :  { %1219 = vmatpush.msrb.mxu1 %v3218_v5 }
 0x37d   :  { %1220 = vmatpush.msrb.mxu1 %v3221_v62 }
 0x37e   :  { %v2158_v43 = vpop.eup %2157 }
 0x37f   :  { %1221 = vmatpush.msrb.mxu1 %v3224_v33  ;;  %v900_v35 = vmul.f32 %v2158_v43, %v896_v30  ;;  %vm905_vm0 = vweird.f32 %v2158_v43  ;;  %v3466_v30 = vld [vmem:[#allocation11 + $0x278] sm:$0xff] }
 0x380   :  { %vm906_vm2 = vmor %vm904_vm1, %vm905_vm0 }
 0x381   :  { %1222 = vmatpush.msrb.mxu1 %v3227_v38  ;;  %v901_v37 = vsub.f32 1.0, %v900_v35 }
 0x383   :  { %1223 = vmatpush.msrb.mxu1 %v3230_v32  ;;  %v902_v59 = vmul.f32 %v2158_v43, %v901_v37  ;;  %v4377_v37 = vld [vmem:[#allocation19_spill] sm:$0xff] }
 0x385   :  { %1224 = vmatpush.msrb.mxu1 %v3233_v36  ;;  %v903_v45 = vadd.f32 %v2158_v43, %v902_v59  ;;  %v3490_v59 = vld [vmem:[#allocation11 + $0x200] sm:$0xff] }
 0x387   :  { %1225 = vmatpush.msrb.mxu1 %v4370_v40  ;;  %v907_v14 = vsel %vm906_vm2, %v2158_v43, %v903_v45  ;;  %v3469_v43 = vld [vmem:[#allocation13 + $0x78] sm:$0xff]  ;;  %vm2044_vm2 = vcmask 1042432  }
 0x388   :  { %v912_v35 = vsel %vm909_vm4, %v911_v46, %v907_v14  ;;  %v3498_v45 = vld [vmem:[#allocation11 + $0x1d8] sm:$0xff]  ;;  %v3510_v14 = vld [vmem:[#allocation13 + $0x50] sm:$0xff]  ;;  %v3518_v46 = vld [vmem:[#allocation13 + $0x48] sm:$0xff] }
 0x389   :  { %1226 = vmatpush.msrb.mxu1 %v4371_v10  ;;  %4379 = vst [vmem:[#allocation64_spill] sm:$0xff] %v3518_v46 }
 0x38b   :  { %1227 = vmatpush.msrb.mxu1 %v4372_v31 }
 0x38d   :  { %1228 = vmatpush.msrb.mxu1 %v4373_v11 }
 0x38f   :  { %1229 = vmatpush.msrb.mxu1 %v4374_v2 }
 0x391   :  { %1230 = vmatpush.msrb.mxu1 %v3455_v44 }
 0x3ef   :  { %v970_v42 = vpop.f32.mrf.mxu1 }
 0x3f0   :  { %v973_v3 = vadd.f32 %v970_v42, %v868_v22  ;;  %v2041_v22 = vsel %vm2040_vm3, %v4377_v37, %v3254_v7  ;;  %v3474_v7 = vld [vmem:[#allocation11 + $0x250] sm:$0xff]  ;;  %v3526_v37 = vld [vmem:[#allocation13 + $0x40] sm:$0xff] }
 0x3f1   :  { %4381 = vst [vmem:[#allocation67_spill] sm:$0xff] %v3526_v37 }
 0x3f2   :  { %v974_v53 = vadd.f32 %v973_v3, %v3109_v39  ;;  %v3485_v3 = vld [vmem:[#allocation13 + $0x68] sm:$0xff] }
 0x3f4   :  { %2159 = vtanh.f32 %v974_v53  ;;  %v3494_v53 = vld [vmem:[#allocation13 + $0x60] sm:$0xff] }
 0x3fa   :  { %v2160_v34 = vpop.eup %2159 }
 0x3fb   :  { %v977_v26 = vrot.slane %v2160_v34, 6  ;;  %v3514_v34 = vld [vmem:[#allocation11 + $0x188] sm:$0xff] }
 0x3fc   :  { %4378 = vst [vmem:[#allocation63_spill] sm:$0xff] %v3514_v34 }
 0x3fd   :  { %v979_v44 = vmul.f32 %v977_v26, %v912_v35  ;;  %v3482_v26 = vld [vmem:[#allocation11 + $0x228] sm:$0xff]  ;;  %v3522_v35 = vld [vmem:[#allocation11 + $0x160] sm:$0xff] }
 0x3fe   :  { %4380 = vst [vmem:[#allocation65_spill] sm:$0xff] %v3522_v35 }
 0x3ff   :  { %v981_v39 = vrot.slane %v979_v44, 2  ;;  %v3462_v42 = vsel %vm2042_vm5, %v2041_v22, %v979_v44  ;;  %v3477_v44 = vld [vmem:[#allocation13 + $0x70] sm:$0xff]  ;;  %v3530_v22 = vld [vmem:[#allocation11 + $0x138] sm:$0xff] }
 0x400   :  { %4382 = vst [vmem:[#allocation68_spill] sm:$0xff] %v3530_v22 }
 0x401   :  { %999 = vmatmul.f32.vlgmr.msrb.gmra.mxu2 %v981_v39  ;;  %1019 = vmatmul.f32.vlgmr.msrb.gmra.mxu3 %v981_v39 }
 0x402   :  { %1039 = vmatmul.f32.vlgmr.msra.gmra.mxu0 %v981_v39  ;;  %1059 = vmatmul.f32.vlgmr.msra.gmra.mxu1 %v981_v39 }
 0x403   :  { %1235 = vmatpush.msrb.mxu2 %v3257_v55  ;;  %1255 = vmatpush.msrb.mxu3 %v3260_v1 }
 0x404   :  { %1275 = vmatpush.msra.mxu0 %v3466_v30  ;;  %1377 = vmatpush.msra.mxu1 %v3469_v43 }
 0x405   :  { %1236 = vmatpush.msrb.mxu2 %v3265_v41  ;;  %1256 = vmatpush.msrb.mxu3 %v3268_v48 }
 0x406   :  { %1276 = vmatpush.msra.mxu0 %v3474_v7  ;;  %1378 = vmatpush.msra.mxu1 %v3477_v44 }
 0x407   :  { %1237 = vmatpush.msrb.mxu2 %v3273_v6  ;;  %1257 = vmatpush.msrb.mxu3 %v3276_v18 }
 0x408   :  { %1277 = vmatpush.msra.mxu0 %v3482_v26  ;;  %1379 = vmatpush.msra.mxu1 %v3485_v3 }
 0x409   :  { %1079 = vmatmul.f32.vlgmr.msra.gmra.mxu2 %v981_v39  ;;  %1258 = vmatpush.msrb.mxu3 %v3281_v17  ;;  %v3534_v39 = vld [vmem:[#allocation13 + $0x38] sm:$0xff] }
 0x40a   :  { %1238 = vmatpush.msrb.mxu2 %v3284_v25  ;;  %1278 = vmatpush.msra.mxu0 %v3490_v59  ;;  %4383 = vst [vmem:[#allocation69_spill] sm:$0xff] %v3534_v39 }
 0x40b   :  { %1259 = vmatpush.msrb.mxu3 %v3288_v23  ;;  %1380 = vmatpush.msra.mxu1 %v3494_v53 }
 0x40c   :  { %1239 = vmatpush.msrb.mxu2 %v3292_v50  ;;  %1279 = vmatpush.msra.mxu0 %v3498_v45 }
 0x40d   :  { %1260 = vmatpush.msrb.mxu3 %v3296_v56  ;;  %1381 = vmatpush.msra.mxu1 %v3502_v24 }
 0x40e   :  { %1240 = vmatpush.msrb.mxu2 %v3300_v47  ;;  %1280 = vmatpush.msra.mxu0 %v3506_v28 }
 0x40f   :  { %1261 = vmatpush.msrb.mxu3 %v3304_v51  ;;  %1382 = vmatpush.msra.mxu1 %v3510_v14 }
 0x410   :  { %1241 = vmatpush.msrb.mxu2 %v3308_v58  ;;  %1281 = vmatpush.msra.mxu0 %v3514_v34 }
 0x411   :  { %1262 = vmatpush.msrb.mxu3 %v3312_v54  ;;  %1383 = vmatpush.msra.mxu1 %v3518_v46 }
 0x412   :  { %1242 = vmatpush.msrb.mxu2 %v3316_v61  ;;  %1282 = vmatpush.msra.mxu0 %v3522_v35  ;;  %v3538_v35 = vld [vmem:[#allocation11 + $0x110] sm:$0xff] }
 0x413   :  { %1263 = vmatpush.msrb.mxu3 %v3320_v0  ;;  %1384 = vmatpush.msra.mxu1 %v3526_v37  ;;  %4384 = vst [vmem:[#allocation70_spill] sm:$0xff] %v3538_v35  ;;  %v3542_v37 = vld [vmem:[#allocation13 + $0x30] sm:$0xff] }
 0x414   :  { %1243 = vmatpush.msrb.mxu2 %v3324_v57  ;;  %1283 = vmatpush.msra.mxu0 %v3530_v22  ;;  %4385 = vst [vmem:[#allocation31_spill] sm:$0xff] %v3542_v37  ;;  %v3546_v22 = vld [vmem:[#allocation11 + $0xe8] sm:$0xff] }
 0x415   :  { %1264 = vmatpush.msrb.mxu3 %v3328_v9  ;;  %1385 = vmatpush.msra.mxu1 %v3534_v39  ;;  %4386 = vst [vmem:[#allocation21_spill] sm:$0xff] %v3546_v22  ;;  %v3550_v39 = vld [vmem:[#allocation13 + $0x28] sm:$0xff] }
 0x416   :  { %1244 = vmatpush.msrb.mxu2 %v3332_v60  ;;  %1284 = vmatpush.msra.mxu0 %v3538_v35  ;;  %4387 = vst [vmem:[#allocation32_spill] sm:$0xff] %v3550_v39  ;;  %v3554_v35 = vld [vmem:[#allocation11 + $0xc0] sm:$0xff] }
 0x417   :  { %1265 = vmatpush.msrb.mxu3 %v3336_v13  ;;  %1386 = vmatpush.msra.mxu1 %v3542_v37  ;;  %4388 = vst [vmem:[#allocation23_spill] sm:$0xff] %v3554_v35  ;;  %v3558_v37 = vld [vmem:[#allocation13 + $0x20] sm:$0xff] }
 0x418   :  { %1245 = vmatpush.msrb.mxu2 %v3340_v63  ;;  %1285 = vmatpush.msra.mxu0 %v3546_v22  ;;  %4389 = vst [vmem:[#allocation33_spill] sm:$0xff] %v3558_v37  ;;  %v3562_v22 = vld [vmem:[#allocation11 + $0x98] sm:$0xff]  ;;  %v4417_v63 = vld [vmem:[#allocation66_spill] sm:$0xff] }
 0x419   :  { %1266 = vmatpush.msrb.mxu3 %v3344_v20  ;;  %1387 = vmatpush.msra.mxu1 %v3550_v39  ;;  %4390 = vst [vmem:[#allocation19_spill] sm:$0xff] %v3562_v22  ;;  %v3566_v39 = vld [vmem:[#allocation13 + $0x18] sm:$0xff]  ;;  %v4410_v20 = vld [vmem:[#allocation27_spill] sm:$0xff] }
 0x41a   :  { %1246 = vmatpush.msrb.mxu2 %v3348_v4  ;;  %1286 = vmatpush.msra.mxu0 %v3554_v35  ;;  %4391 = vst [vmem:[#allocation72_spill] sm:$0xff] %v3566_v39  ;;  %v3570_v35 = vld [vmem:[#allocation11 + $0x70] sm:$0xff]  ;;  %v4408_v4 = vld [vmem:[#allocation54_spill] sm:$0xff] }
 0x41b   :  { %1267 = vmatpush.msrb.mxu3 %v3352_v21  ;;  %1388 = vmatpush.msra.mxu1 %v3558_v37  ;;  %4392 = vst [vmem:[#allocation73_spill] sm:$0xff] %v3570_v35  ;;  %v3574_v37 = vld [vmem:[#allocation13 + $0x10] sm:$0xff] }
 0x41c   :  { %1247 = vmatpush.msrb.mxu2 %v3356_v8  ;;  %1287 = vmatpush.msra.mxu0 %v3562_v22  ;;  %4393 = vst [vmem:[#allocation74_spill] sm:$0xff] %v3574_v37  ;;  %v4394_v8 = vld [vmem:[#allocation46_spill] sm:$0xff]  ;;  %v3578_v22 = vld [vmem:[#allocation11 + $0x48] sm:$0xff]  ;;  %v4405_v21 = vld [vmem:[#allocation24_spill] sm:$0xff] }
 0x41d   :  { %1268 = vmatpush.msrb.mxu3 %v3360_v27  ;;  %1389 = vmatpush.msra.mxu1 %v3566_v39  ;;  %4395 = vst [vmem:[#allocation75_spill] sm:$0xff] %v3578_v22  ;;  %v4396_v27 = vld [vmem:[#allocation47_spill] sm:$0xff] }
 0x41e   :  { %1248 = vmatpush.msrb.mxu2 %v3364_v12  ;;  %1288 = vmatpush.msra.mxu0 %v3570_v35  ;;  %v3582_v39 = vld [vmem:[#allocation13 + $0x8] sm:$0xff]  ;;  %v4398_v12 = vld [vmem:[#allocation20_spill] sm:$0xff]  ;;  %v3586_v35 = vld [vmem:[#allocation11 + $0x20] sm:$0xff] }
 0x41f   :  { %1269 = vmatpush.msrb.mxu3 %v3368_v29  ;;  %1390 = vmatpush.msra.mxu1 %v3574_v37  ;;  %4397 = vst [vmem:[#allocation76_spill] sm:$0xff] %v3582_v39  ;;  %v3589_v29 = vld [vmem:[#allocation13] sm:$0xff]  ;;  %v4402_v37 = vld [vmem:[#allocation49_spill] sm:$0xff] }
 0x420   :  { %1249 = vmatpush.msrb.mxu2 %v4394_v8  ;;  %1289 = vmatpush.msra.mxu0 %v3578_v22  ;;  %4399 = vst [vmem:[#allocation77_spill] sm:$0xff] %v3586_v35  ;;  %v4401_v8 = vld [vmem:[#allocation48_spill] sm:$0xff]  ;;  %v4403_v22 = vld [vmem:[#allocation50_spill] sm:$0xff] }
 0x421   :  { %1270 = vmatpush.msrb.mxu3 %v4396_v27  ;;  %1391 = vmatpush.msra.mxu1 %v3582_v39  ;;  %4400 = vst [vmem:[#allocation78_spill] sm:$0xff] %v3589_v29  ;;  %v4404_v27 = vld [vmem:[#allocation51_spill] sm:$0xff]  ;;  %v4406_v39 = vld [vmem:[#allocation52_spill] sm:$0xff] }
 0x422   :  { %1250 = vmatpush.msrb.mxu2 %v4398_v12  ;;  %1290 = vmatpush.msra.mxu0 %v3586_v35  ;;  %v4407_v12 = vld [vmem:[#allocation53_spill] sm:$0xff]  ;;  %v4409_v35 = vld [vmem:[#allocation55_spill] sm:$0xff] }
 0x423   :  { %1392 = vmatpush.msra.mxu1 %v3589_v29  ;;  %v4411_v29 = vld [vmem:[#allocation56_spill] sm:$0xff] }
 0x424   :  { %1407 = vmatpush.msra.mxu2 %v4401_v8  ;;  %v4412_v8 = vld [vmem:[#allocation22_spill] sm:$0xff] }
 0x426   :  { %1408 = vmatpush.msra.mxu2 %v4402_v37  ;;  %v4413_v37 = vld [vmem:[#allocation58_spill] sm:$0xff] }
 0x428   :  { %1409 = vmatpush.msra.mxu2 %v4403_v22  ;;  %v4414_v22 = vld [vmem:[#allocation59_spill] sm:$0xff] }
 0x42a   :  { %1410 = vmatpush.msra.mxu2 %v4404_v27  ;;  %v4415_v27 = vld [vmem:[#allocation60_spill] sm:$0xff] }
 0x42c   :  { %1411 = vmatpush.msra.mxu2 %v4405_v21  ;;  %v4416_v21 = vld [vmem:[#allocation61_spill] sm:$0xff] }
 0x42e   :  { %1412 = vmatpush.msra.mxu2 %v4406_v39 }
 0x430   :  { %1413 = vmatpush.msra.mxu2 %v4407_v12 }
 0x432   :  { %1414 = vmatpush.msra.mxu2 %v4408_v4 }
 0x434   :  { %1415 = vmatpush.msra.mxu2 %v4409_v35 }
 0x436   :  { %1416 = vmatpush.msra.mxu2 %v4410_v20  ;;  %v4418_v20 = vld [vmem:[#allocation57_spill] sm:$0xff] }
 0x438   :  { %1417 = vmatpush.msra.mxu2 %v4411_v29 }
 0x43a   :  { %1418 = vmatpush.msra.mxu2 %v4412_v8 }
 0x43c   :  { %1419 = vmatpush.msra.mxu2 %v4413_v37 }
 0x43e   :  { %1420 = vmatpush.msra.mxu2 %v4414_v22 }
 0x440   :  { %1421 = vmatpush.msra.mxu2 %v4415_v27 }
 0x442   :  { %1422 = vmatpush.msra.mxu2 %v4416_v21 }
 0x47f   :  { %v1040_v39 = vpop.f32.mrf.mxu0  ;;  %v1060_v27 = vpop.f32.mrf.mxu1 }
 0x480   :  { %v1089_v12 = vrot.slane %v1040_v39, 5  ;;  %v1090_v39 = vrot.slane %v1060_v27, 5 }
 0x482   :  { %v1097_v4 = vadd.f32 %v1089_v12, %v4417_v63  ;;  %v4419_v63 = vld [vmem:[#allocation71_spill] sm:$0xff] }
 0x484   :  { %v2087_v13 = vmul.f32 -1.442695, %v1097_v4  ;;  %v1020_v35 = vpop.f32.mrf.mxu3 }
 0x485   :  { %v1088_v60 = vrot.slane %v1020_v35, 5  ;;  %v1098_v35 = vadd.f32 %v1090_v39, %v4419_v63 }
 0x486   :  { %2161 = vpow2.f32 %v2087_v13 }
 0x487   :  { %v1096_v29 = vadd.f32 %v1088_v60, %v4418_v20 }
 0x489   :  { %v2086_v9 = vmul.f32 -1.442695, %v1096_v29 }
 0x48b   :  { %2163 = vpow2.f32 %v2086_v9 }
 0x48c   :  { %v2162_v8 = vpop.eup %2161 }
 0x48d   :  { %v1110_v37 = vadd.f32 1.0, %v2162_v8 }
 0x48f   :  { %2165 = vrcp.f32 %v1110_v37  ;;  %v1152_v29 = vand.u32 2147483648, %v1110_v37  ;;  %vm1146_vm7 = vweird.f32 %v1110_v37  ;;  %v1150_v9 = vand.u32 2147483647, %v1110_v37 }
 0x491   :  { %v2164_v22 = vpop.eup %2163  ;;  %v1153_v27 = vor.u32 1.1754944e-38, %v1152_v29  ;;  %vm1151_vm10 = vcmp.eq.f32.partialorder %v1150_v9, 8.507059e+37 }
 0x492   :  { %v1109_v57 = vadd.f32 1.0, %v2164_v22 }
 0x494   :  { %2167 = vrcp.f32 %v1109_v57  ;;  %v1137_v22 = vand.u32 2147483648, %v1109_v57  ;;  %v1135_v54 = vand.u32 2147483647, %v1109_v57  ;;  %vm1131_vm11 = vweird.f32 %v1109_v57 }
 0x495   :  { %v2166_v0 = vpop.eup %2165  ;;  %2169 = vtanh.f32 %v1098_v35 }
 0x496   :  { %v1142_v21 = vmul.f32 %v2166_v0, %v1110_v37  ;;  %vm1147_vm6 = vweird.f32 %v2166_v0  ;;  %v1138_v39 = vor.u32 1.1754944e-38, %v1137_v22  ;;  %vm1136_vm13 = vcmp.eq.f32.partialorder %v1135_v54, 8.507059e+37 }
 0x497   :  { %vm1148_vm8 = vmor %vm1146_vm7, %vm1147_vm6 }
 0x498   :  { %v1143_v61 = vsub.f32 1.0, %v1142_v21 }
 0x49a   :  { %v1144_v12 = vmul.f32 %v2166_v0, %v1143_v61  ;;  %v2168_v4 = vpop.eup %2167 }
 0x49b   :  { %v1127_v60 = vmul.f32 %v2168_v4, %v1109_v57  ;;  %vm1132_vm9 = vweird.f32 %v2168_v4  ;;  %v2170_v37 = vpop.eup %2169 }
 0x49c   :  { %v1145_v13 = vadd.f32 %v2166_v0, %v1144_v12  ;;  %vm1133_vm12 = vmor %vm1131_vm11, %vm1132_vm9  ;;  %v1157_v12 = vrot.slane %v3437_v16, 7 }
 0x49d   :  { %v1128_v8 = vsub.f32 1.0, %v1127_v60 }
 0x49e   :  { %v1149_v20 = vsel %vm1148_vm8, %v2166_v0, %v1145_v13 }
 0x49f   :  { %v1129_v46 = vmul.f32 %v2168_v4, %v1128_v8  ;;  %v1154_v21 = vsel %vm1151_vm10, %v1153_v27, %v1149_v20  ;;  %v4436_v27 = vld [vmem:[#allocation37_spill] sm:$0xff] }
 0x4a0   :  { %v1160_v34 = vmul.f32 %v2170_v37, %v1154_v21  ;;  %v4438_v21 = vld [vmem:[#allocation38_spill] sm:$0xff]  ;;  %v4441_v37 = vld [vmem:[#allocation32_spill] sm:$0xff] }
 0x4a1   :  { %v1130_v61 = vadd.f32 %v2168_v4, %v1129_v46 }
 0x4a3   :  { %v1134_v63 = vsel %vm1133_vm12, %v2168_v4, %v1130_v61  ;;  %v4437_v61 = vld [vmem:[#allocation31_spill] sm:$0xff] }
 0x4a4   :  { %v1139_v60 = vsel %vm1136_vm13, %v1138_v39, %v1134_v63  ;;  %v4439_v39 = vld [vmem:[#allocation21_spill] sm:$0xff] }
 0x4a5   :  { %v1159_v35 = vmul.f32 %v1157_v12, %v1139_v60  ;;  %v4440_v12 = vld [vmem:[#allocation39_spill] sm:$0xff]  ;;  %v4442_v60 = vld [vmem:[#allocation40_spill] sm:$0xff] }
 0x4a7   :  { %v3612_v58 = vadd.f32 %v1160_v34, %v1159_v35  ;;  %v4443_v35 = vld [vmem:[#allocation23_spill] sm:$0xff] }
 0x4a9   :  { %v1163_v0 = vrot.slane %v3612_v58, 3 }
 0x4ab   :  { %1181 = vmatmul.f32.vlgmr.msra.gmra.mxu3 %v1163_v0  ;;  %v4444_v0 = vld [vmem:[#allocation41_spill] sm:$0xff] }
 0x4ac   :  { %1427 = vmatpush.msra.mxu3 %v3206_v15  ;;  %v4420_v15 = vld [vmem:[#allocation62_spill] sm:$0xff] }
 0x4ae   :  { %1428 = vmatpush.msra.mxu3 %v3209_v49  ;;  %v1000_v49 = vpop.f32.mrf.mxu2 }
 0x4b0   :  { %1429 = vmatpush.msra.mxu3 %v3212_v19  ;;  %v1087_v19 = vrot.slane %v1000_v49, 5  ;;  %v4445_v49 = vld [vmem:[#allocation33_spill] sm:$0xff] }
 0x4b2   :  { %1430 = vmatpush.msra.mxu3 %v3215_v52  ;;  %v4421_v52 = vld [vmem:[#allocation30_spill] sm:$0xff] }
 0x4b4   :  { %1431 = vmatpush.msra.mxu3 %v3218_v5  ;;  %v1095_v5 = vadd.f32 %v1087_v19, %v4421_v52  ;;  %v4446_v19 = vld [vmem:[#allocation42_spill] sm:$0xff] }
 0x4b6   :  { %1432 = vmatpush.msra.mxu3 %v3221_v62  ;;  %v2085_v62 = vmul.f32 -1.442695, %v1095_v5  ;;  %v1080_v57 = vpop.f32.mrf.mxu2  ;;  %v4447_v5 = vld [vmem:[#allocation19_spill] sm:$0xff] }
 0x4b8   :  { %1433 = vmatpush.msra.mxu3 %v3224_v33  ;;  %2171 = vpow2.f32 %v2085_v62  ;;  %v4448_v62 = vld [vmem:[#allocation43_spill] sm:$0xff] }
 0x4ba   :  { %1434 = vmatpush.msra.mxu3 %v3227_v38 }
 0x4bc   :  { %1435 = vmatpush.msra.mxu3 %v3230_v32 }
 0x4be   :  { %1436 = vmatpush.msra.mxu3 %v3233_v36  ;;  %v2172_v33 = vpop.eup %2171 }
 0x4bf   :  { %v1108_v38 = vadd.f32 1.0, %v2172_v33  ;;  %v4449_v33 = vld [vmem:[#allocation72_spill] sm:$0xff] }
 0x4c0   :  { %1437 = vmatpush.msra.mxu3 %v4370_v40  ;;  %v3635_v40 = vld [vmem:[%s3998_s5] sm:$0x1] }
 0x4c1   :  { %2173 = vrcp.f32 %v1108_v38  ;;  %vm1116_vm15 = vweird.f32 %v1108_v38 }
 0x4c2   :  { %1438 = vmatpush.msra.mxu3 %v4371_v10 }
 0x4c4   :  { %1439 = vmatpush.msra.mxu3 %v4372_v31 }
 0x4c6   :  { %1440 = vmatpush.msra.mxu3 %v4373_v11  ;;  %v1122_v11 = vand.u32 2147483648, %v1108_v38 }
 0x4c7   :  { %v2174_v32 = vpop.eup %2173 }
 0x4c8   :  { %1441 = vmatpush.msra.mxu3 %v4374_v2  ;;  %v1112_v36 = vmul.f32 %v2174_v32, %v1108_v38  ;;  %vm1117_vm14 = vweird.f32 %v2174_v32  ;;  %v1120_v2 = vand.u32 2147483647, %v1108_v38  ;;  %v1123_v4 = vor.u32 1.1754944e-38, %v1122_v11  ;;  %v4450_v38 = vld [vmem:[#allocation44_spill] sm:$0xff]  ;;  %v4460_v11 = vld [vmem:[#allocation78_spill] sm:$0xff] }
 0x4c9   :  { %vm1118_vm0 = vmor %vm1116_vm15, %vm1117_vm14  ;;  %vm2046_vm15 = vcmask 1043456  }
 0x4ca   :  { %1442 = vmatpush.msra.mxu3 %v4420_v15  ;;  %v1113_v54 = vsub.f32 1.0, %v1112_v36  ;;  %vm1121_vm1 = vcmp.eq.f32.partialorder %v1120_v2, 8.507059e+37  ;;  %v4452_v36 = vld [vmem:[#allocation45_spill] sm:$0xff]  ;;  %v4461_v2 = vld [vmem:[#allocation48_spill] sm:$0xff] }
 0x4cc   :  { %v1114_v16 = vmul.f32 %v2174_v32, %v1113_v54  ;;  %v4453_v54 = vld [vmem:[#allocation74_spill] sm:$0xff] }
 0x4ce   :  { %v1115_v31 = vadd.f32 %v2174_v32, %v1114_v16  ;;  %v4457_v16 = vld [vmem:[#allocation76_spill] sm:$0xff] }
 0x4d0   :  { %v1119_v34 = vsel %vm1118_vm0, %v2174_v32, %v1115_v31  ;;  %v4451_v32 = vld [vmem:[#allocation73_spill] sm:$0xff] }
 0x4d1   :  { %v1124_v29 = vsel %vm1121_vm1, %v1123_v4, %v1119_v34  ;;  %v4459_v31 = vld [vmem:[#allocation77_spill] sm:$0xff]  ;;  %v4464_v4 = vld [vmem:[#allocation51_spill] sm:$0xff] }
 0x4d2   :  { %v4462_v34 = vld [vmem:[#allocation49_spill] sm:$0xff] }
 0x52e   :  { %v1182_v63 = vpop.f32.mrf.mxu3 }
 0x52f   :  { %v1185_v20 = vadd.f32 %v1182_v63, %v1080_v57  ;;  %v4454_v57 = vld [vmem:[#allocation46_spill] sm:$0xff]  ;;  %v4455_v63 = vld [vmem:[#allocation75_spill] sm:$0xff] }
 0x531   :  { %v1186_v10 = vadd.f32 %v3635_v40, %v1185_v20  ;;  %v4456_v20 = vld [vmem:[#allocation47_spill] sm:$0xff] }
 0x533   :  { %2175 = vtanh.f32 %v1186_v10  ;;  %v4458_v10 = vld [vmem:[#allocation20_spill] sm:$0xff] }
 0x539   :  { %v2176_v46 = vpop.eup %2175 }
 0x53a   :  { %v1189_v13 = vrot.slane %v2176_v46, 5  ;;  %v4463_v46 = vld [vmem:[#allocation50_spill] sm:$0xff] }
 0x53c   :  { %v1191_v9 = vmul.f32 %v1189_v13, %v1124_v29  ;;  %v4465_v13 = vld [vmem:[#allocation24_spill] sm:$0xff] }
 0x53d   :  { %v4466_v29 = vld [vmem:[#allocation52_spill] sm:$0xff] }
 0x53e   :  { %v1193_v8 = vrot.slane %v1191_v9, 3  ;;  %v3639_v22 = vsel %vm2044_vm2, %v3462_v42, %v1191_v9  ;;  %v4435_v42 = vld [vmem:[#allocation70_spill] sm:$0xff]  ;;  %v4467_v9 = vld [vmem:[#allocation53_spill] sm:$0xff] }
 0x540   :  { %1211 = vmatmul.f32.vlgmr.msrb.gmra.mxu0 %v1193_v8  ;;  %1231 = vmatmul.f32.vlgmr.msrb.gmra.mxu1 %v1193_v8 }
 0x541   :  { %1251 = vmatmul.f32.vlgmr.msrb.gmra.mxu2 %v1193_v8  ;;  %1271 = vmatmul.f32.vlgmr.msrb.gmra.mxu3 %v1193_v8 }
 0x542   :  { %1447 = vmatpush.msrb.mxu0 %v3257_v55  ;;  %1467 = vmatpush.msrb.mxu1 %v3260_v1  ;;  %v4422_v55 = vld [vmem:[#allocation25_spill] sm:$0xff]  ;;  %v4423_v1 = vld [vmem:[#allocation63_spill] sm:$0xff] }
 0x543   :  { %1487 = vmatpush.msrb.mxu2 %v3466_v30  ;;  %1589 = vmatpush.msrb.mxu3 %v3469_v43 }
 0x544   :  { %1448 = vmatpush.msrb.mxu0 %v3265_v41  ;;  %1468 = vmatpush.msrb.mxu1 %v3268_v48  ;;  %v4424_v41 = vld [vmem:[#allocation34_spill] sm:$0xff]  ;;  %v4425_v48 = vld [vmem:[#allocation64_spill] sm:$0xff] }
 0x545   :  { %1488 = vmatpush.msrb.mxu2 %v3474_v7  ;;  %1590 = vmatpush.msrb.mxu3 %v3477_v44 }
 0x546   :  { %1449 = vmatpush.msrb.mxu0 %v3273_v6  ;;  %1469 = vmatpush.msrb.mxu1 %v3276_v18  ;;  %v4426_v6 = vld [vmem:[#allocation26_spill] sm:$0xff]  ;;  %v4427_v18 = vld [vmem:[#allocation65_spill] sm:$0xff] }
 0x547   :  { %1489 = vmatpush.msrb.mxu2 %v3482_v26  ;;  %1591 = vmatpush.msrb.mxu3 %v3485_v3 }
 0x548   :  { %1291 = vmatmul.f32.vlgmr.msra.gmra.mxu0 %v1193_v8  ;;  %1470 = vmatpush.msrb.mxu1 %v3281_v17  ;;  %v4428_v17 = vld [vmem:[#allocation35_spill] sm:$0xff]  ;;  %v4468_v8 = vld [vmem:[#allocation54_spill] sm:$0xff] }
 0x549   :  { %1450 = vmatpush.msrb.mxu0 %v3284_v25  ;;  %1490 = vmatpush.msrb.mxu2 %v3490_v59  ;;  %v4429_v25 = vld [vmem:[#allocation67_spill] sm:$0xff] }
 0x54a   :  { %1471 = vmatpush.msrb.mxu1 %v3288_v23  ;;  %1592 = vmatpush.msrb.mxu3 %v3494_v53  ;;  %v4430_v23 = vld [vmem:[#allocation28_spill] sm:$0xff] }
 0x54b   :  { %1451 = vmatpush.msrb.mxu0 %v3292_v50  ;;  %1491 = vmatpush.msrb.mxu2 %v3498_v45  ;;  %v4431_v50 = vld [vmem:[#allocation68_spill] sm:$0xff] }
 0x54c   :  { %1472 = vmatpush.msrb.mxu1 %v3296_v56  ;;  %1593 = vmatpush.msrb.mxu3 %v3502_v24  ;;  %v4432_v56 = vld [vmem:[#allocation36_spill] sm:$0xff] }
 0x54d   :  { %1452 = vmatpush.msrb.mxu0 %v3300_v47  ;;  %1492 = vmatpush.msrb.mxu2 %v3506_v28  ;;  %v4433_v47 = vld [vmem:[#allocation69_spill] sm:$0xff] }
 0x54e   :  { %1473 = vmatpush.msrb.mxu1 %v3304_v51  ;;  %1594 = vmatpush.msrb.mxu3 %v3510_v14  ;;  %v4434_v51 = vld [vmem:[#allocation29_spill] sm:$0xff] }
 0x54f   :  { %1453 = vmatpush.msrb.mxu0 %v4422_v55  ;;  %1493 = vmatpush.msrb.mxu2 %v4423_v1  ;;  %v4469_v55 = vld [vmem:[#allocation55_spill] sm:$0xff] }
 0x550   :  { %1474 = vmatpush.msrb.mxu1 %v4424_v41  ;;  %1595 = vmatpush.msrb.mxu3 %v4425_v48  ;;  %v4470_v41 = vld [vmem:[#allocation27_spill] sm:$0xff] }
 0x551   :  { %1454 = vmatpush.msrb.mxu0 %v4426_v6  ;;  %1494 = vmatpush.msrb.mxu2 %v4427_v18  ;;  %v4471_v6 = vld [vmem:[#allocation56_spill] sm:$0xff] }
 0x552   :  { %1475 = vmatpush.msrb.mxu1 %v4428_v17  ;;  %1596 = vmatpush.msrb.mxu3 %v4429_v25  ;;  %v4472_v17 = vld [vmem:[#allocation22_spill] sm:$0xff] }
 0x553   :  { %1455 = vmatpush.msrb.mxu0 %v4430_v23  ;;  %1495 = vmatpush.msrb.mxu2 %v4431_v50  ;;  %v4473_v23 = vld [vmem:[#allocation58_spill] sm:$0xff] }
 0x554   :  { %1476 = vmatpush.msrb.mxu1 %v4432_v56  ;;  %1597 = vmatpush.msrb.mxu3 %v4433_v47  ;;  %v4474_v56 = vld [vmem:[#allocation59_spill] sm:$0xff] }
 0x555   :  { %1456 = vmatpush.msrb.mxu0 %v4434_v51  ;;  %1496 = vmatpush.msrb.mxu2 %v4435_v42  ;;  %v4475_v51 = vld [vmem:[#allocation60_spill] sm:$0xff] }
 0x556   :  { %1477 = vmatpush.msrb.mxu1 %v4436_v27  ;;  %1598 = vmatpush.msrb.mxu3 %v4437_v61  ;;  %v4476_v27 = vld [vmem:[#allocation61_spill] sm:$0xff] }
 0x557   :  { %1457 = vmatpush.msrb.mxu0 %v4438_v21  ;;  %1497 = vmatpush.msrb.mxu2 %v4439_v39 }
 0x558   :  { %1478 = vmatpush.msrb.mxu1 %v4440_v12  ;;  %1599 = vmatpush.msrb.mxu3 %v4441_v37 }
 0x559   :  { %1458 = vmatpush.msrb.mxu0 %v4442_v60  ;;  %1498 = vmatpush.msrb.mxu2 %v4443_v35  ;;  %v4477_v60 = vld [vmem:[#allocation57_spill] sm:$0xff] }
 0x55a   :  { %1479 = vmatpush.msrb.mxu1 %v4444_v0  ;;  %1600 = vmatpush.msrb.mxu3 %v4445_v49 }
 0x55b   :  { %1459 = vmatpush.msrb.mxu0 %v4446_v19  ;;  %1499 = vmatpush.msrb.mxu2 %v4447_v5 }
 0x55c   :  { %1480 = vmatpush.msrb.mxu1 %v4448_v62  ;;  %1601 = vmatpush.msrb.mxu3 %v4449_v33 }
 0x55d   :  { %1460 = vmatpush.msrb.mxu0 %v4450_v38  ;;  %1500 = vmatpush.msrb.mxu2 %v4451_v32 }
 0x55e   :  { %1481 = vmatpush.msrb.mxu1 %v4452_v36  ;;  %1602 = vmatpush.msrb.mxu3 %v4453_v54  ;;  %v4478_v36 = vld [vmem:[#allocation66_spill] sm:$0xff] }
 0x55f   :  { %1461 = vmatpush.msrb.mxu0 %v4454_v57  ;;  %1501 = vmatpush.msrb.mxu2 %v4455_v63 }
 0x560   :  { %1482 = vmatpush.msrb.mxu1 %v4456_v20  ;;  %1603 = vmatpush.msrb.mxu3 %v4457_v16 }
 0x561   :  { %1462 = vmatpush.msrb.mxu0 %v4458_v10  ;;  %1502 = vmatpush.msrb.mxu2 %v4459_v31 }
 0x562   :  { %1604 = vmatpush.msrb.mxu3 %v4460_v11 }
 0x563   :  { %1619 = vmatpush.msra.mxu0 %v4461_v2 }
 0x565   :  { %1620 = vmatpush.msra.mxu0 %v4462_v34 }
 0x567   :  { %1621 = vmatpush.msra.mxu0 %v4463_v46 }
 0x569   :  { %1622 = vmatpush.msra.mxu0 %v4464_v4 }
 0x56b   :  { %1623 = vmatpush.msra.mxu0 %v4465_v13 }
 0x56d   :  { %1624 = vmatpush.msra.mxu0 %v4466_v29 }
 0x56f   :  { %1625 = vmatpush.msra.mxu0 %v4467_v9 }
 0x571   :  { %1626 = vmatpush.msra.mxu0 %v4468_v8 }
 0x573   :  { %1627 = vmatpush.msra.mxu0 %v4469_v55 }
 0x575   :  { %1628 = vmatpush.msra.mxu0 %v4470_v41 }
 0x577   :  { %1629 = vmatpush.msra.mxu0 %v4471_v6  ;;  %v4479_v6 = vld [vmem:[#allocation71_spill] sm:$0xff] }
 0x579   :  { %1630 = vmatpush.msra.mxu0 %v4472_v17 }
 0x57b   :  { %1631 = vmatpush.msra.mxu0 %v4473_v23 }
 0x57d   :  { %1632 = vmatpush.msra.mxu0 %v4474_v56 }
 0x57f   :  { %1633 = vmatpush.msra.mxu0 %v4475_v51 }
 0x581   :  { %1634 = vmatpush.msra.mxu0 %v4476_v27 }
 0x5bd   :  { %v1232_v21 = vpop.f32.mrf.mxu1 }
 0x5be   :  { %v1300_v12 = vrot.slane %v1232_v21, 4 }
 0x5c0   :  { %v1308_v0 = vadd.f32 %v1300_v12, %v4477_v60 }
 0x5c2   :  { %v2089_v19 = vmul.f32 -1.442695, %v1308_v0 }
 0x5c4   :  { %v1252_v62 = vpop.f32.mrf.mxu2  ;;  %2177 = vpow2.f32 %v2089_v19  ;;  %v1272_v4 = vpop.f32.mrf.mxu3 }
 0x5c5   :  { %v1301_v38 = vrot.slane %v1252_v62, 4  ;;  %v1302_v9 = vrot.slane %v1272_v4, 4 }
 0x5c7   :  { %v1309_v57 = vadd.f32 %v1301_v38, %v4478_v36  ;;  %v1310_v17 = vadd.f32 %v1302_v9, %v4479_v6 }
 0x5c9   :  { %v2090_v20 = vmul.f32 -1.442695, %v1309_v57 }
 0x5ca   :  { %v2178_v10 = vpop.eup %2177 }
 0x5cb   :  { %2179 = vpow2.f32 %v2090_v20  ;;  %v1321_v2 = vadd.f32 1.0, %v2178_v10 }
 0x5cd   :  { %2181 = vrcp.f32 %v1321_v2  ;;  %v1349_v51 = vand.u32 2147483648, %v1321_v2  ;;  %vm1343_vm4 = vweird.f32 %v1321_v2  ;;  %v1347_v21 = vand.u32 2147483647, %v1321_v2 }
 0x5cf   :  { %v1350_v38 = vor.u32 1.1754944e-38, %v1349_v51  ;;  %vm1348_vm8 = vcmp.eq.f32.partialorder %v1347_v21, 8.507059e+37  ;;  %v3746_v51 = vld [vmem:[#allocation11 + $0x170] sm:$0xff]  ;;  %v3752_v21 = vld [vmem:[#allocation11 + $0x120] sm:$0xff] }
 0x5d0   :  { %4480 = vst [vmem:[#allocation62_spill] sm:$0xff] %v3752_v21 }
 0x5d1   :  { %v2180_v34 = vpop.eup %2179 }
 0x5d2   :  { %v1322_v46 = vadd.f32 1.0, %v2180_v34  ;;  %v1369_v34 = vrot.slane %v3612_v58, 7  ;;  %v3734_v58 = vld [vmem:[#allocation11 + $0x210] sm:$0xff] }
 0x5d3   :  { %v2182_v13 = vpop.eup %2181 }
 0x5d4   :  { %2183 = vrcp.f32 %v1322_v46  ;;  %v1339_v29 = vmul.f32 %v2182_v13, %v1321_v2  ;;  %vm1344_vm3 = vweird.f32 %v2182_v13  ;;  %v1364_v12 = vand.u32 2147483648, %v1322_v46 }
 0x5d5   :  { %2185 = vtanh.f32 %v1310_v17  ;;  %vm1345_vm5 = vmor %vm1343_vm4, %vm1344_vm3  ;;  %v1362_v19 = vand.u32 2147483647, %v1322_v46  ;;  %vm1358_vm7 = vweird.f32 %v1322_v46 }
 0x5d6   :  { %v1340_v8 = vsub.f32 1.0, %v1339_v29  ;;  %v1365_v20 = vor.u32 1.1754944e-38, %v1364_v12  ;;  %v3755_v12 = vld [vmem:[#allocation11 + $0xf8] sm:$0xff] }
 0x5d7   :  { %vm1363_vm10 = vcmp.eq.f32.partialorder %v1362_v19, 8.507059e+37  ;;  %4481 = vst [vmem:[#allocation25_spill] sm:$0xff] %v3755_v12  ;;  %v3761_v19 = vld [vmem:[#allocation11 + $0xa8] sm:$0xff] }
 0x5d8   :  { %v1341_v55 = vmul.f32 %v2182_v13, %v1340_v8  ;;  %4483 = vst [vmem:[#allocation34_spill] sm:$0xff] %v3761_v19 }
 0x5da   :  { %v2184_v41 = vpop.eup %2183  ;;  %v1342_v56 = vadd.f32 %v2182_v13, %v1341_v55 }
 0x5db   :  { %v1354_v23 = vmul.f32 %v2184_v41, %v1322_v46  ;;  %vm1359_vm6 = vweird.f32 %v2184_v41  ;;  %v2186_v29 = vpop.eup %2185  ;;  %v3731_v46 = vld [vmem:[#allocation11 + $0x238] sm:$0xff] }
 0x5dc   :  { %v1346_v62 = vsel %vm1345_vm5, %v2182_v13, %v1342_v56  ;;  %vm1360_vm9 = vmor %vm1358_vm7, %vm1359_vm6  ;;  %v3728_v13 = vld [vmem:[#allocation11 + $0x260] sm:$0xff]  ;;  %v3743_v56 = vld [vmem:[#allocation11 + $0x198] sm:$0xff] }
 0x5dd   :  { %v1355_v27 = vsub.f32 1.0, %v1354_v23  ;;  %v1351_v10 = vsel %vm1348_vm8, %v1350_v38, %v1346_v62  ;;  %v3740_v23 = vld [vmem:[#allocation11 + $0x1c0] sm:$0xff]  ;;  %v3767_v38 = vld [vmem:[#allocation11 + $0x58] sm:$0xff] }
 0x5de   :  { %v1371_v8 = vmul.f32 %v1369_v34, %v1351_v10  ;;  %v3764_v62 = vld [vmem:[#allocation11 + $0x80] sm:$0xff]  ;;  %4485 = vst [vmem:[#allocation26_spill] sm:$0xff] %v3767_v38 }
 0x5df   :  { %v1356_v0 = vmul.f32 %v2184_v41, %v1355_v27  ;;  %v3749_v27 = vld [vmem:[#allocation11 + $0x148] sm:$0xff]  ;;  %4484 = vst [vmem:[#allocation64_spill] sm:$0xff] %v3764_v62 }
 0x5e1   :  { %v1357_v57 = vadd.f32 %v2184_v41, %v1356_v0  ;;  %v3758_v0 = vld [vmem:[#allocation11 + $0xd0] sm:$0xff] }
 0x5e2   :  { %4482 = vst [vmem:[#allocation63_spill] sm:$0xff] %v3758_v0 }
 0x5e3   :  { %v1361_v4 = vsel %vm1360_vm9, %v2184_v41, %v1357_v57  ;;  %v3737_v41 = vld [vmem:[#allocation11 + $0x1e8] sm:$0xff]  ;;  %v3770_v57 = vld [vmem:[#allocation11 + $0x30] sm:$0xff] }
 0x5e4   :  { %v1366_v2 = vsel %vm1363_vm10, %v1365_v20, %v1361_v4  ;;  %4486 = vst [vmem:[#allocation65_spill] sm:$0xff] %v3770_v57  ;;  %v1212_v20 = vpop.f32.mrf.mxu0 }
 0x5e5   :  { %v1372_v9 = vmul.f32 %v2186_v29, %v1366_v2  ;;  %v1299_v10 = vrot.slane %v1212_v20, 4 }
 0x5e7   :  { %v3725_v55 = vadd.f32 %v1372_v9, %v1371_v8  ;;  %v1307_v34 = vadd.f32 %v1299_v10, %v4421_v52 }
 0x5e9   :  { %v1375_v17 = vrot.slane %v3725_v55, 4  ;;  %v2088_v4 = vmul.f32 -1.442695, %v1307_v34 }
 0x5eb   :  { %1393 = vmatmul.f32.vlgmr.msra.gmra.mxu1 %v1375_v17  ;;  %2187 = vpow2.f32 %v2088_v4 }
 0x5ec   :  { %1639 = vmatpush.msra.mxu1 %v3728_v13 }
 0x5ee   :  { %1640 = vmatpush.msra.mxu1 %v3731_v46 }
 0x5f0   :  { %1641 = vmatpush.msra.mxu1 %v3734_v58 }
 0x5f1   :  { %v2188_v29 = vpop.eup %2187 }
 0x5f2   :  { %1642 = vmatpush.msra.mxu1 %v3737_v41  ;;  %v1320_v2 = vadd.f32 1.0, %v2188_v29 }
 0x5f4   :  { %1643 = vmatpush.msra.mxu1 %v3740_v23  ;;  %2189 = vrcp.f32 %v1320_v2  ;;  %v1334_v20 = vand.u32 2147483648, %v1320_v2  ;;  %vm1328_vm12 = vweird.f32 %v1320_v2  ;;  %v1332_v10 = vand.u32 2147483647, %v1320_v2 }
 0x5f6   :  { %1644 = vmatpush.msra.mxu1 %v3743_v56  ;;  %v1335_v29 = vor.u32 1.1754944e-38, %v1334_v20  ;;  %vm1333_vm14 = vcmp.eq.f32.partialorder %v1332_v10, 8.507059e+37  ;;  %v2397_v20 = vld [vmem:[#allocation11 + $0x78] sm:$0xff]  ;;  %v2398_v10 = vld [vmem:[#allocation11 + $0x50] sm:$0xff] }
 0x5f8   :  { %1645 = vmatpush.msra.mxu1 %v3746_v51 }
 0x5fa   :  { %1646 = vmatpush.msra.mxu1 %v3749_v27  ;;  %v2190_v9 = vpop.eup %2189 }
 0x5fb   :  { %v1324_v8 = vmul.f32 %v2190_v9, %v1320_v2  ;;  %vm1329_vm11 = vweird.f32 %v2190_v9  ;;  %v2390_v2 = vld [vmem:[#allocation11 + $0x190] sm:$0xff] }
 0x5fc   :  { %1647 = vmatpush.msra.mxu1 %v3752_v21  ;;  %vm1330_vm13 = vmor %vm1328_vm12, %vm1329_vm11  ;;  %vm2048_vm12 = vcmask 1044480  }
 0x5fd   :  { %v1325_v17 = vsub.f32 1.0, %v1324_v8 }
 0x5fe   :  { %1648 = vmatpush.msra.mxu1 %v3755_v12 }
 0x600   :  { %1649 = vmatpush.msra.mxu1 %v3758_v0  ;;  %v1326_v0 = vmul.f32 %v2190_v9, %v1325_v17  ;;  %v2393_v17 = vld [vmem:[#allocation11 + $0x118] sm:$0xff] }
 0x602   :  { %1650 = vmatpush.msra.mxu1 %v3761_v19 }
 0x604   :  { %1651 = vmatpush.msra.mxu1 %v3764_v62  ;;  %v1292_v62 = vpop.f32.mrf.mxu0 }
 0x606   :  { %1652 = vmatpush.msra.mxu1 %v3767_v38 }
 0x608   :  { %1653 = vmatpush.msra.mxu1 %v3770_v57 }
 0x60a   :  { %1654 = vmatpush.msra.mxu1 %v4420_v15  ;;  %v1327_v15 = vadd.f32 %v2190_v9, %v1326_v0  ;;  %v3779_v0 = vld [vmem:[#allocation11 + $0x268] sm:$0xff] }
 0x60c   :  { %v1331_v34 = vsel %vm1330_vm13, %v2190_v9, %v1327_v15  ;;  %v2392_v9 = vld [vmem:[#allocation11 + $0x140] sm:$0xff] }
 0x60d   :  { %v1336_v12 = vsel %vm1333_vm14, %v1335_v29, %v1331_v34  ;;  %v2396_v15 = vld [vmem:[#allocation11 + $0xa0] sm:$0xff]  ;;  %v2399_v34 = vld [vmem:[#allocation11 + $0x28] sm:$0xff] }
 0x668   :  { %v1394_v38 = vpop.f32.mrf.mxu1 }
 0x669   :  { %v1397_v19 = vadd.f32 %v1394_v38, %v1292_v62  ;;  %v3798_v38 = vld [vmem:[#allocation11 + $0x220] sm:$0xff] }
 0x66b   :  { %v1398_v57 = vadd.f32 %v3635_v40, %v1397_v19  ;;  %v3782_v19 = vld [vmem:[#allocation11 + $0x270] sm:$0xff] }
 0x66d   :  { %2191 = vtanh.f32 %v1398_v57  ;;  %v2389_v57 = vld [vmem:[#allocation11 + $0x1b8] sm:$0xff] }
 0x673   :  { %v2192_v4 = vpop.eup %2191 }
 0x674   :  { %v1401_v52 = vrot.slane %v2192_v4, 4  ;;  %v2400_v4 = vld [vmem:[#allocation11] sm:$0xff] }
 0x676   :  { %v1403_v8 = vmul.f32 %v1401_v52, %v1336_v12  ;;  %v3787_v52 = vld [vmem:[#allocation11 + $0x240] sm:$0xff]  ;;  %v3795_v12 = vld [vmem:[#allocation11 + $0x218] sm:$0xff] }
 0x678   :  { %v1405_v21 = vrot.slane %v1403_v8, 4  ;;  %v3777_v62 = vsel %vm2046_vm15, %v3639_v22, %v1403_v8  ;;  %v3790_v22 = vld [vmem:[#allocation11 + $0x248] sm:$0xff] }
 0x67a   :  { %1423 = vmatmul.f32.vlgmr.msra.gmra.mxu2 %v1405_v21  ;;  %1443 = vmatmul.f32.vlgmr.msra.gmra.mxu3 %v1405_v21 }
 0x67b   :  { %1463 = vmatmul.f32.vlgmr.msrb.gmra.mxu0 %v1405_v21  ;;  %1483 = vmatmul.f32.vlgmr.msrb.gmra.mxu1 %v1405_v21 }
 0x67c   :  { %1659 = vmatpush.msra.mxu2 %v3779_v0  ;;  %1679 = vmatpush.msra.mxu3 %v3782_v19 }
 0x67d   :  { %1699 = vmatpush.msrb.mxu0 %v3466_v30  ;;  %1801 = vmatpush.msrb.mxu1 %v3469_v43  ;;  %v3803_v30 = vld [vmem:[#allocation11 + $0x1f8] sm:$0xff]  ;;  %v3806_v43 = vld [vmem:[#allocation11 + $0x1f0] sm:$0xff] }
 0x67e   :  { %1660 = vmatpush.msra.mxu2 %v3787_v52  ;;  %1680 = vmatpush.msra.mxu3 %v3790_v22 }
 0x67f   :  { %1700 = vmatpush.msrb.mxu0 %v3474_v7  ;;  %1802 = vmatpush.msrb.mxu1 %v3477_v44  ;;  %v3810_v7 = vld [vmem:[#allocation11 + $0x1d0] sm:$0xff]  ;;  %v3814_v44 = vld [vmem:[#allocation11 + $0x1c8] sm:$0xff] }
 0x680   :  { %1661 = vmatpush.msra.mxu2 %v3795_v12  ;;  %1681 = vmatpush.msra.mxu3 %v3798_v38 }
 0x681   :  { %1701 = vmatpush.msrb.mxu0 %v3482_v26  ;;  %1803 = vmatpush.msrb.mxu1 %v3485_v3  ;;  %v3818_v26 = vld [vmem:[#allocation11 + $0x1a8] sm:$0xff]  ;;  %v3822_v3 = vld [vmem:[#allocation11 + $0x1a0] sm:$0xff] }
 0x682   :  { %1503 = vmatmul.f32.vlgmr.msrb.gmra.mxu2 %v1405_v21  ;;  %1682 = vmatpush.msra.mxu3 %v3803_v30  ;;  %v2387_v21 = vld [vmem:[#allocation11 + $0x208] sm:$0xff] }
 0x683   :  { %1662 = vmatpush.msra.mxu2 %v3806_v43  ;;  %1702 = vmatpush.msrb.mxu0 %v3490_v59  ;;  %v3826_v59 = vld [vmem:[#allocation11 + $0x180] sm:$0xff] }
 0x684   :  { %1683 = vmatpush.msra.mxu3 %v3810_v7  ;;  %1804 = vmatpush.msrb.mxu1 %v3494_v53  ;;  %v3830_v53 = vld [vmem:[#allocation11 + $0x178] sm:$0xff] }
 0x685   :  { %1663 = vmatpush.msra.mxu2 %v3814_v44  ;;  %1703 = vmatpush.msrb.mxu0 %v3498_v45  ;;  %v3834_v45 = vld [vmem:[#allocation11 + $0x158] sm:$0xff] }
 0x686   :  { %1684 = vmatpush.msra.mxu3 %v3818_v26  ;;  %1805 = vmatpush.msrb.mxu1 %v3502_v24  ;;  %v3838_v24 = vld [vmem:[#allocation11 + $0x150] sm:$0xff] }
 0x687   :  { %1664 = vmatpush.msra.mxu2 %v3822_v3  ;;  %1704 = vmatpush.msrb.mxu0 %v3506_v28  ;;  %v3842_v28 = vld [vmem:[#allocation11 + $0x130] sm:$0xff] }
 0x688   :  { %1685 = vmatpush.msra.mxu3 %v3826_v59  ;;  %1806 = vmatpush.msrb.mxu1 %v3510_v14  ;;  %v3846_v14 = vld [vmem:[#allocation11 + $0x128] sm:$0xff] }
 0x689   :  { %1665 = vmatpush.msra.mxu2 %v3830_v53  ;;  %1705 = vmatpush.msrb.mxu0 %v4423_v1  ;;  %v3850_v1 = vld [vmem:[#allocation11 + $0x108] sm:$0xff] }
 0x68a   :  { %1686 = vmatpush.msra.mxu3 %v3834_v45  ;;  %1807 = vmatpush.msrb.mxu1 %v4425_v48  ;;  %v3854_v48 = vld [vmem:[#allocation11 + $0x100] sm:$0xff] }
 0x68b   :  { %1666 = vmatpush.msra.mxu2 %v3838_v24  ;;  %1706 = vmatpush.msrb.mxu0 %v4427_v18  ;;  %v3858_v18 = vld [vmem:[#allocation11 + $0xe0] sm:$0xff] }
 0x68c   :  { %1687 = vmatpush.msra.mxu3 %v3842_v28  ;;  %1808 = vmatpush.msrb.mxu1 %v4429_v25  ;;  %v3862_v25 = vld [vmem:[#allocation11 + $0xd8] sm:$0xff] }
 0x68d   :  { %1667 = vmatpush.msra.mxu2 %v3846_v14  ;;  %1707 = vmatpush.msrb.mxu0 %v4431_v50  ;;  %v3866_v50 = vld [vmem:[#allocation11 + $0xb8] sm:$0xff] }
 0x68e   :  { %1688 = vmatpush.msra.mxu3 %v3850_v1  ;;  %1809 = vmatpush.msrb.mxu1 %v4433_v47  ;;  %v3870_v47 = vld [vmem:[#allocation11 + $0xb0] sm:$0xff] }
 0x68f   :  { %1668 = vmatpush.msra.mxu2 %v3854_v48  ;;  %1708 = vmatpush.msrb.mxu0 %v4435_v42  ;;  %v3874_v42 = vld [vmem:[#allocation11 + $0x90] sm:$0xff] }
 0x690   :  { %1689 = vmatpush.msra.mxu3 %v3858_v18  ;;  %1810 = vmatpush.msrb.mxu1 %v4437_v61  ;;  %v3878_v61 = vld [vmem:[#allocation11 + $0x88] sm:$0xff] }
 0x691   :  { %1669 = vmatpush.msra.mxu2 %v3862_v25  ;;  %1709 = vmatpush.msrb.mxu0 %v4439_v39  ;;  %v3882_v39 = vld [vmem:[#allocation11 + $0x68] sm:$0xff] }
 0x692   :  { %1690 = vmatpush.msra.mxu3 %v3866_v50  ;;  %1811 = vmatpush.msrb.mxu1 %v4441_v37  ;;  %v3886_v37 = vld [vmem:[#allocation11 + $0x60] sm:$0xff] }
 0x693   :  { %1670 = vmatpush.msra.mxu2 %v3870_v47  ;;  %1710 = vmatpush.msrb.mxu0 %v4443_v35  ;;  %v3890_v35 = vld [vmem:[#allocation11 + $0x40] sm:$0xff] }
 0x694   :  { %1691 = vmatpush.msra.mxu3 %v3874_v42  ;;  %1812 = vmatpush.msrb.mxu1 %v4445_v49  ;;  %v3894_v49 = vld [vmem:[#allocation11 + $0x38] sm:$0xff] }
 0x695   :  { %1671 = vmatpush.msra.mxu2 %v3878_v61  ;;  %1711 = vmatpush.msrb.mxu0 %v4447_v5  ;;  %v3898_v5 = vld [vmem:[#allocation11 + $0x18] sm:$0xff] }
 0x696   :  { %1692 = vmatpush.msra.mxu3 %v3882_v39  ;;  %1813 = vmatpush.msrb.mxu1 %v4449_v33  ;;  %v3902_v33 = vld [vmem:[#allocation11 + $0x10] sm:$0xff] }
 0x697   :  { %1672 = vmatpush.msra.mxu2 %v3886_v37  ;;  %1712 = vmatpush.msrb.mxu0 %v4451_v32  ;;  %4487 = vst [vmem:[#allocation35_spill] sm:$0xff] %v3902_v33  ;;  %v2385_v32 = vld [vmem:[#allocation11 + $0x258] sm:$0xff] }
 0x698   :  { %1693 = vmatpush.msra.mxu3 %v3890_v35  ;;  %1814 = vmatpush.msrb.mxu1 %v4453_v54  ;;  %v2386_v54 = vld [vmem:[#allocation11 + $0x230] sm:$0xff] }
 0x699   :  { %1673 = vmatpush.msra.mxu2 %v3894_v49  ;;  %1713 = vmatpush.msrb.mxu0 %v4455_v63  ;;  %v2388_v63 = vld [vmem:[#allocation11 + $0x1e0] sm:$0xff] }
 0x69a   :  { %1694 = vmatpush.msra.mxu3 %v3898_v5  ;;  %1815 = vmatpush.msrb.mxu1 %v4457_v16  ;;  %v2391_v16 = vld [vmem:[#allocation11 + $0x168] sm:$0xff] }
 0x69b   :  { %1674 = vmatpush.msra.mxu2 %v3902_v33  ;;  %1714 = vmatpush.msrb.mxu0 %v4459_v31  ;;  %v2394_v31 = vld [vmem:[#allocation11 + $0xf0] sm:$0xff] }
 0x69c   :  { %1816 = vmatpush.msrb.mxu1 %v4460_v11  ;;  %v2395_v11 = vld [vmem:[#allocation11 + $0xc8] sm:$0xff] }
 0x69d   :  { %1831 = vmatpush.msrb.mxu2 %v2385_v32 }
 0x69f   :  { %1832 = vmatpush.msrb.mxu2 %v2386_v54 }
 0x6a1   :  { %1833 = vmatpush.msrb.mxu2 %v2387_v21 }
 0x6a3   :  { %1834 = vmatpush.msrb.mxu2 %v2388_v63 }
 0x6a5   :  { %1835 = vmatpush.msrb.mxu2 %v2389_v57 }
 0x6a7   :  { %1836 = vmatpush.msrb.mxu2 %v2390_v2 }
 0x6a9   :  { %1837 = vmatpush.msrb.mxu2 %v2391_v16 }
 0x6ab   :  { %1838 = vmatpush.msrb.mxu2 %v2392_v9 }
 0x6ad   :  { %1839 = vmatpush.msrb.mxu2 %v2393_v17 }
 0x6af   :  { %1840 = vmatpush.msrb.mxu2 %v2394_v31 }
 0x6b1   :  { %1841 = vmatpush.msrb.mxu2 %v2395_v11 }
 0x6b3   :  { %1842 = vmatpush.msrb.mxu2 %v2396_v15 }
 0x6b5   :  { %1843 = vmatpush.msrb.mxu2 %v2397_v20 }
 0x6b7   :  { %1844 = vmatpush.msrb.mxu2 %v2398_v10 }
 0x6b9   :  { %1845 = vmatpush.msrb.mxu2 %v2399_v34 }
 0x6bb   :  { %1846 = vmatpush.msrb.mxu2 %v2400_v4 }
 0x6f8   :  { %v1464_v29 = vpop.f32.mrf.mxu0  ;;  %v1484_v11 = vpop.f32.mrf.mxu1 }
 0x6f9   :  { %v1513_v8 = vrot.slane %v1464_v29, 3  ;;  %v1514_v10 = vrot.slane %v1484_v11, 3 }
 0x6fb   :  { %v1521_v32 = vadd.f32 %v1513_v8, %v4478_v36  ;;  %v1522_v8 = vadd.f32 %v1514_v10, %v4479_v6 }
 0x6fd   :  { %v2093_v54 = vmul.f32 -1.442695, %v1521_v32  ;;  %v1444_v21 = vpop.f32.mrf.mxu3 }
 0x6fe   :  { %v1512_v63 = vrot.slane %v1444_v21, 3 }
 0x6ff   :  { %2193 = vpow2.f32 %v2093_v54 }
 0x700   :  { %v1520_v57 = vadd.f32 %v1512_v63, %v4477_v60 }
 0x702   :  { %v2092_v2 = vmul.f32 -1.442695, %v1520_v57 }
 0x704   :  { %2195 = vpow2.f32 %v2092_v2 }
 0x705   :  { %v2194_v16 = vpop.eup %2193 }
 0x706   :  { %v1534_v9 = vadd.f32 1.0, %v2194_v16 }
 0x708   :  { %2197 = vrcp.f32 %v1534_v9  ;;  %v1576_v21 = vand.u32 2147483648, %v1534_v9  ;;  %vm1570_vm1 = vweird.f32 %v1534_v9  ;;  %v1574_v63 = vand.u32 2147483647, %v1534_v9 }
 0x70a   :  { %v2196_v17 = vpop.eup %2195  ;;  %v1577_v11 = vor.u32 1.1754944e-38, %v1576_v21  ;;  %vm1575_vm4 = vcmp.eq.f32.partialorder %v1574_v63, 8.507059e+37 }
 0x70b   :  { %v1533_v31 = vadd.f32 1.0, %v2196_v17 }
 0x70d   :  { %2199 = vrcp.f32 %v1533_v31  ;;  %v1561_v2 = vand.u32 2147483648, %v1533_v31  ;;  %v1559_v36 = vand.u32 2147483647, %v1533_v31  ;;  %vm1555_vm5 = vweird.f32 %v1533_v31 }
 0x70e   :  { %v2198_v15 = vpop.eup %2197  ;;  %2201 = vtanh.f32 %v1522_v8 }
 0x70f   :  { %v1566_v20 = vmul.f32 %v2198_v15, %v1534_v9  ;;  %vm1571_vm0 = vweird.f32 %v2198_v15  ;;  %v1562_v10 = vor.u32 1.1754944e-38, %v1561_v2  ;;  %vm1560_vm7 = vcmp.eq.f32.partialorder %v1559_v36, 8.507059e+37  ;;  %v4489_v36 = vld [vmem:[#allocation25_spill] sm:$0xff] }
 0x710   :  { %vm1572_vm2 = vmor %vm1570_vm1, %vm1571_vm0 }
 0x711   :  { %v1567_v34 = vsub.f32 1.0, %v1566_v20 }
 0x713   :  { %v1568_v4 = vmul.f32 %v2198_v15, %v1567_v34  ;;  %v2200_v29 = vpop.eup %2199 }
 0x714   :  { %v1551_v54 = vmul.f32 %v2200_v29, %v1533_v31  ;;  %vm1556_vm3 = vweird.f32 %v2200_v29  ;;  %v2202_v9 = vpop.eup %2201 }
 0x715   :  { %v1569_v32 = vadd.f32 %v2198_v15, %v1568_v4  ;;  %vm1557_vm6 = vmor %vm1555_vm5, %vm1556_vm3  ;;  %v1581_v4 = vrot.slane %v3725_v55, 7  ;;  %v4491_v55 = vld [vmem:[#allocation34_spill] sm:$0xff] }
 0x716   :  { %v1552_v57 = vsub.f32 1.0, %v1551_v54 }
 0x717   :  { %v1573_v16 = vsel %vm1572_vm2, %v2198_v15, %v1569_v32 }
 0x718   :  { %v1553_v17 = vmul.f32 %v2200_v29, %v1552_v57  ;;  %v1578_v34 = vsel %vm1575_vm4, %v1577_v11, %v1573_v16 }
 0x719   :  { %v1584_v60 = vmul.f32 %v2202_v9, %v1578_v34 }
 0x71a   :  { %v1554_v20 = vadd.f32 %v2200_v29, %v1553_v17 }
 0x71c   :  { %v1558_v6 = vsel %vm1557_vm6, %v2200_v29, %v1554_v20 }
 0x71d   :  { %v1563_v54 = vsel %vm1560_vm7, %v1562_v10, %v1558_v6  ;;  %v4490_v6 = vld [vmem:[#allocation63_spill] sm:$0xff] }
 0x71e   :  { %v1583_v8 = vmul.f32 %v1581_v4, %v1563_v54 }
 0x720   :  { %v3911_v33 = vadd.f32 %v1584_v60, %v1583_v8  ;;  %v4488_v60 = vld [vmem:[#allocation62_spill] sm:$0xff] }
 0x722   :  { %v1587_v15 = vrot.slane %v3911_v33, 5 }
 0x724   :  { %1605 = vmatmul.f32.vlgmr.msrb.gmra.mxu3 %v1587_v15 }
 0x725   :  { %1851 = vmatpush.msrb.mxu3 %v3728_v13  ;;  %v4492_v13 = vld [vmem:[#allocation64_spill] sm:$0xff] }
 0x727   :  { %1852 = vmatpush.msrb.mxu3 %v3731_v46  ;;  %v4493_v46 = vld [vmem:[#allocation26_spill] sm:$0xff] }
 0x729   :  { %1853 = vmatpush.msrb.mxu3 %v3734_v58  ;;  %v4494_v58 = vld [vmem:[#allocation65_spill] sm:$0xff] }
 0x72b   :  { %1854 = vmatpush.msrb.mxu3 %v3737_v41  ;;  %v2401_v41 = vld [vmem:[#allocation11 + $0x8] sm:$0xff] }
 0x72d   :  { %1855 = vmatpush.msrb.mxu3 %v3740_v23  ;;  %v1424_v23 = vpop.f32.mrf.mxu2 }
 0x72f   :  { %1856 = vmatpush.msrb.mxu3 %v3743_v56  ;;  %v1511_v56 = vrot.slane %v1424_v23, 3 }
 0x731   :  { %1857 = vmatpush.msrb.mxu3 %v3746_v51  ;;  %v4495_v51 = vld [vmem:[#allocation30_spill] sm:$0xff] }
 0x733   :  { %1858 = vmatpush.msrb.mxu3 %v3749_v27  ;;  %v1519_v27 = vadd.f32 %v1511_v56, %v4495_v51  ;;  %v4497_v56 = vld [vmem:[#allocation57_spill] sm:$0xff] }
 0x735   :  { %1859 = vmatpush.msrb.mxu3 %v4488_v60  ;;  %v2091_v31 = vmul.f32 -1.442695, %v1519_v27  ;;  %v1504_v2 = vpop.f32.mrf.mxu2 }
 0x737   :  { %1860 = vmatpush.msrb.mxu3 %v4489_v36  ;;  %2203 = vpow2.f32 %v2091_v31 }
 0x739   :  { %1861 = vmatpush.msrb.mxu3 %v4490_v6 }
 0x73b   :  { %1862 = vmatpush.msrb.mxu3 %v4491_v55 }
 0x73d   :  { %1863 = vmatpush.msrb.mxu3 %v4492_v13  ;;  %v2204_v29 = vpop.eup %2203  ;;  %v2403_v13 = vld [vmem:[#allocation13 + $0x78] sm:$0xff] }
 0x73e   :  { %v1532_v32 = vadd.f32 1.0, %v2204_v29  ;;  %v4498_v29 = vld [vmem:[#allocation66_spill] sm:$0xff] }
 0x73f   :  { %1864 = vmatpush.msrb.mxu3 %v4493_v46  ;;  %v2404_v46 = vld [vmem:[#allocation11 + $0x250] sm:$0xff] }
 0x740   :  { %2205 = vrcp.f32 %v1532_v32  ;;  %v1546_v10 = vand.u32 2147483648, %v1532_v32  ;;  %vm1540_vm9 = vweird.f32 %v1532_v32  ;;  %v1544_v4 = vand.u32 2147483647, %v1532_v32 }
 0x741   :  { %1865 = vmatpush.msrb.mxu3 %v4494_v58  ;;  %v2406_v58 = vld [vmem:[#allocation11 + $0x228] sm:$0xff] }
 0x742   :  { %v1547_v8 = vor.u32 1.1754944e-38, %v1546_v10  ;;  %vm1545_vm11 = vcmp.eq.f32.partialorder %v1544_v4, 8.507059e+37 }
 0x743   :  { %1866 = vmatpush.msrb.mxu3 %v2401_v41  ;;  %v2433_v41 = vld [vmem:[#allocation13] sm:$0xff] }
 0x746   :  { %v2206_v21 = vpop.eup %2205 }
 0x747   :  { %v1536_v63 = vmul.f32 %v2206_v21, %v1532_v32  ;;  %vm1541_vm8 = vweird.f32 %v2206_v21 }
 0x748   :  { %vm1542_vm10 = vmor %vm1540_vm9, %vm1541_vm8  ;;  %vm2050_vm9 = vcmask 1045504  }
 0x749   :  { %v1537_v57 = vsub.f32 1.0, %v1536_v63 }
 0x74b   :  { %v1538_v11 = vmul.f32 %v2206_v21, %v1537_v57 }
 0x74d   :  { %v1539_v34 = vadd.f32 %v2206_v21, %v1538_v11 }
 0x74f   :  { %v1543_v9 = vsel %vm1542_vm10, %v2206_v21, %v1539_v34 }
 0x750   :  { %v1548_v60 = vsel %vm1545_vm11, %v1547_v8, %v1543_v9  ;;  %v4499_v9 = vld [vmem:[#allocation71_spill] sm:$0xff] }
 0x7a7   :  { %v1606_v16 = vpop.f32.mrf.mxu3 }
 0x7a8   :  { %v1609_v17 = vadd.f32 %v1606_v16, %v1504_v2 }
 0x7aa   :  { %v1610_v20 = vadd.f32 %v3635_v40, %v1609_v17  ;;  %v2402_v40 = vld [vmem:[#allocation11 + $0x278] sm:$0xff] }
 0x7ac   :  { %2207 = vtanh.f32 %v1610_v20 }
 0x7b2   :  { %v2208_v54 = vpop.eup %2207 }
 0x7b3   :  { %v1613_v15 = vrot.slane %v2208_v54, 3 }
 0x7b5   :  { %v1615_v36 = vmul.f32 %v1613_v15, %v1548_v60 }
 0x7b7   :  { %v1617_v6 = vrot.slane %v1615_v36, 5  ;;  %v3932_v55 = vsel %vm2048_vm12, %v3777_v62, %v1615_v36  ;;  %v2405_v62 = vld [vmem:[#allocation13 + $0x70] sm:$0xff] }
 0x7b9   :  { %1635 = vmatmul.f32.vlgmr.msra.gmra.mxu0 %v1617_v6  ;;  %1655 = vmatmul.f32.vlgmr.msra.gmra.mxu1 %v1617_v6 }
 0x7ba   :  { %1675 = vmatmul.f32.vlgmr.msra.gmra.mxu2 %v1617_v6  ;;  %1695 = vmatmul.f32.vlgmr.msra.gmra.mxu3 %v1617_v6 }
 0x7bb   :  { %1871 = vmatpush.msra.mxu0 %v3779_v0  ;;  %1891 = vmatpush.msra.mxu1 %v3782_v19  ;;  %v2407_v0 = vld [vmem:[#allocation13 + $0x68] sm:$0xff]  ;;  %v2408_v19 = vld [vmem:[#allocation11 + $0x200] sm:$0xff] }
 0x7bc   :  { %1911 = vmatpush.msra.mxu2 %v2402_v40  ;;  %2013 = vmatpush.msra.mxu3 %v2403_v13 }
 0x7bd   :  { %1872 = vmatpush.msra.mxu0 %v3787_v52  ;;  %1892 = vmatpush.msra.mxu1 %v3790_v22  ;;  %v2409_v52 = vld [vmem:[#allocation13 + $0x60] sm:$0xff]  ;;  %v2410_v22 = vld [vmem:[#allocation11 + $0x1d8] sm:$0xff] }
 0x7be   :  { %1912 = vmatpush.msra.mxu2 %v2404_v46  ;;  %2014 = vmatpush.msra.mxu3 %v2405_v62 }
 0x7bf   :  { %1873 = vmatpush.msra.mxu0 %v3795_v12  ;;  %1893 = vmatpush.msra.mxu1 %v3798_v38  ;;  %v2411_v12 = vld [vmem:[#allocation13 + $0x58] sm:$0xff]  ;;  %v2412_v38 = vld [vmem:[#allocation11 + $0x1b0] sm:$0xff] }
 0x7c0   :  { %1913 = vmatpush.msra.mxu2 %v2406_v58  ;;  %2015 = vmatpush.msra.mxu3 %v2407_v0 }
 0x7c1   :  { %1715 = vmatmul.f32.vlgmr.msrb.gmra.mxu0 %v1617_v6  ;;  %1894 = vmatpush.msra.mxu1 %v3803_v30  ;;  %v2413_v30 = vld [vmem:[#allocation13 + $0x50] sm:$0xff] }
 0x7c2   :  { %1874 = vmatpush.msra.mxu0 %v3806_v43  ;;  %1914 = vmatpush.msra.mxu2 %v2408_v19  ;;  %v2414_v43 = vld [vmem:[#allocation11 + $0x188] sm:$0xff] }
 0x7c3   :  { %1895 = vmatpush.msra.mxu1 %v3810_v7  ;;  %2016 = vmatpush.msra.mxu3 %v2409_v52  ;;  %v2415_v7 = vld [vmem:[#allocation13 + $0x48] sm:$0xff] }
 0x7c4   :  { %1875 = vmatpush.msra.mxu0 %v3814_v44  ;;  %1915 = vmatpush.msra.mxu2 %v2410_v22  ;;  %v2416_v44 = vld [vmem:[#allocation11 + $0x160] sm:$0xff]  ;;  %v1793_v22 = vrot.slane %v3911_v33, 7 }
 0x7c5   :  { %1896 = vmatpush.msra.mxu1 %v3818_v26  ;;  %2017 = vmatpush.msra.mxu3 %v2411_v12  ;;  %v2417_v26 = vld [vmem:[#allocation13 + $0x40] sm:$0xff] }
 0x7c6   :  { %1876 = vmatpush.msra.mxu0 %v3822_v3  ;;  %1916 = vmatpush.msra.mxu2 %v2412_v38  ;;  %v2418_v3 = vld [vmem:[#allocation11 + $0x138] sm:$0xff] }
 0x7c7   :  { %1897 = vmatpush.msra.mxu1 %v3826_v59  ;;  %2018 = vmatpush.msra.mxu3 %v2413_v30  ;;  %v2419_v59 = vld [vmem:[#allocation13 + $0x38] sm:$0xff] }
 0x7c8   :  { %1877 = vmatpush.msra.mxu0 %v3830_v53  ;;  %1917 = vmatpush.msra.mxu2 %v2414_v43  ;;  %v2420_v53 = vld [vmem:[#allocation11 + $0x110] sm:$0xff] }
 0x7c9   :  { %1898 = vmatpush.msra.mxu1 %v3834_v45  ;;  %2019 = vmatpush.msra.mxu3 %v2415_v7  ;;  %v2421_v45 = vld [vmem:[#allocation13 + $0x30] sm:$0xff] }
 0x7ca   :  { %1878 = vmatpush.msra.mxu0 %v3838_v24  ;;  %1918 = vmatpush.msra.mxu2 %v2416_v44  ;;  %v2422_v24 = vld [vmem:[#allocation11 + $0xe8] sm:$0xff] }
 0x7cb   :  { %1899 = vmatpush.msra.mxu1 %v3842_v28  ;;  %2020 = vmatpush.msra.mxu3 %v2417_v26  ;;  %v2423_v28 = vld [vmem:[#allocation13 + $0x28] sm:$0xff] }
 0x7cc   :  { %1879 = vmatpush.msra.mxu0 %v3846_v14  ;;  %1919 = vmatpush.msra.mxu2 %v2418_v3  ;;  %v2424_v14 = vld [vmem:[#allocation11 + $0xc0] sm:$0xff] }
 0x7cd   :  { %1900 = vmatpush.msra.mxu1 %v3850_v1  ;;  %2021 = vmatpush.msra.mxu3 %v2419_v59  ;;  %v2425_v1 = vld [vmem:[#allocation13 + $0x20] sm:$0xff] }
 0x7ce   :  { %1880 = vmatpush.msra.mxu0 %v3854_v48  ;;  %1920 = vmatpush.msra.mxu2 %v2420_v53  ;;  %v2426_v48 = vld [vmem:[#allocation11 + $0x98] sm:$0xff] }
 0x7cf   :  { %1901 = vmatpush.msra.mxu1 %v3858_v18  ;;  %2022 = vmatpush.msra.mxu3 %v2421_v45  ;;  %v2427_v18 = vld [vmem:[#allocation13 + $0x18] sm:$0xff] }
 0x7d0   :  { %1881 = vmatpush.msra.mxu0 %v3862_v25  ;;  %1921 = vmatpush.msra.mxu2 %v2422_v24  ;;  %v2428_v25 = vld [vmem:[#allocation11 + $0x70] sm:$0xff] }
 0x7d1   :  { %1902 = vmatpush.msra.mxu1 %v3866_v50  ;;  %2023 = vmatpush.msra.mxu3 %v2423_v28  ;;  %v2429_v50 = vld [vmem:[#allocation13 + $0x10] sm:$0xff] }
 0x7d2   :  { %1882 = vmatpush.msra.mxu0 %v3870_v47  ;;  %1922 = vmatpush.msra.mxu2 %v2424_v14  ;;  %v2430_v47 = vld [vmem:[#allocation11 + $0x48] sm:$0xff] }
 0x7d3   :  { %1903 = vmatpush.msra.mxu1 %v3874_v42  ;;  %2024 = vmatpush.msra.mxu3 %v2425_v1  ;;  %v2431_v42 = vld [vmem:[#allocation13 + $0x8] sm:$0xff] }
 0x7d4   :  { %1883 = vmatpush.msra.mxu0 %v3878_v61  ;;  %1923 = vmatpush.msra.mxu2 %v2426_v48  ;;  %v4496_v61 = vld [vmem:[#allocation35_spill] sm:$0xff] }
 0x7d5   :  { %1904 = vmatpush.msra.mxu1 %v3882_v39  ;;  %2025 = vmatpush.msra.mxu3 %v2427_v18  ;;  %v2432_v39 = vld [vmem:[#allocation11 + $0x20] sm:$0xff] }
 0x7d6   :  { %1884 = vmatpush.msra.mxu0 %v3886_v37  ;;  %1924 = vmatpush.msra.mxu2 %v2428_v25 }
 0x7d7   :  { %1905 = vmatpush.msra.mxu1 %v3890_v35  ;;  %2026 = vmatpush.msra.mxu3 %v2429_v50 }
 0x7d8   :  { %1885 = vmatpush.msra.mxu0 %v3894_v49  ;;  %1925 = vmatpush.msra.mxu2 %v2430_v47  ;;  %v3977_v47 = vld [vmem:[%s3998_s5] sm:$0x1]  ;;  %s2599_s5 = smov [#allocation14]  }
 0x7d9   :  { %1906 = vmatpush.msra.mxu1 %v3898_v5  ;;  %2027 = vmatpush.msra.mxu3 %v2431_v42  ;;  %s2062_s29 = sshll.u32 %s2599_s5, 4  ;;  %s2063_s29 = int_to_ptr.vmem [resolvable:$true] %s2062_s29 }
 0x7da   :  { %1886 = vmatpush.msra.mxu0 %v4496_v61  ;;  %1926 = vmatpush.msra.mxu2 %v2432_v39 }
 0x7db   :  { %2028 = vmatpush.msra.mxu3 %v2433_v41 }
 0x836   :  { %v1656_v37 = vpop.f32.mrf.mxu1  ;;  %v1636_v3 = vpop.f32.mrf.mxu0 }
 0x837   :  { %v1724_v23 = vrot.slane %v1656_v37, 2  ;;  %v1723_v59 = vrot.slane %v1636_v3, 2 }
 0x839   :  { %v1732_v35 = vadd.f32 %v1724_v23, %v4497_v56  ;;  %v1731_v53 = vadd.f32 %v1723_v59, %v4495_v51 }
 0x83b   :  { %v2095_v27 = vmul.f32 -1.442695, %v1732_v35  ;;  %v2094_v45 = vmul.f32 -1.442695, %v1731_v53 }
 0x83d   :  { %v1676_v31 = vpop.f32.mrf.mxu2  ;;  %2209 = vpow2.f32 %v2095_v27  ;;  %v1696_v16 = vpop.f32.mrf.mxu3 }
 0x83e   :  { %v1725_v49 = vrot.slane %v1676_v31, 2  ;;  %v1726_v20 = vrot.slane %v1696_v16, 2  ;;  %v1716_v48 = vpop.f32.mrf.mxu0 }
 0x840   :  { %v1733_v32 = vadd.f32 %v1725_v49, %v4498_v29  ;;  %v1734_v54 = vadd.f32 %v1726_v20, %v4499_v9 }
 0x842   :  { %v2096_v21 = vmul.f32 -1.442695, %v1733_v32 }
 0x843   :  { %v2210_v5 = vpop.eup %2209 }
 0x844   :  { %2211 = vpow2.f32 %v2096_v21  ;;  %v1745_v63 = vadd.f32 1.0, %v2210_v5 }
 0x846   :  { %2213 = vrcp.f32 %v1745_v63  ;;  %v1773_v60 = vand.u32 2147483648, %v1745_v63  ;;  %vm1767_vm14 = vweird.f32 %v1745_v63  ;;  %v1771_v6 = vand.u32 2147483647, %v1745_v63 }
 0x848   :  { %v1774_v58 = vor.u32 1.1754944e-38, %v1773_v60  ;;  %vm1772_vm2 = vcmp.eq.f32.partialorder %v1771_v6, 8.507059e+37 }
 0x84a   :  { %v2212_v57 = vpop.eup %2211 }
 0x84b   :  { %v1746_v2 = vadd.f32 1.0, %v2212_v57 }
 0x84c   :  { %v2214_v17 = vpop.eup %2213 }
 0x84d   :  { %2215 = vrcp.f32 %v1746_v2  ;;  %v1763_v11 = vmul.f32 %v2214_v17, %v1745_v63  ;;  %vm1768_vm13 = vweird.f32 %v2214_v17  ;;  %v1788_v40 = vand.u32 2147483648, %v1746_v2 }
 0x84e   :  { %2217 = vtanh.f32 %v1734_v54  ;;  %vm1769_vm15 = vmor %vm1767_vm14, %vm1768_vm13  ;;  %v1786_v46 = vand.u32 2147483647, %v1746_v2  ;;  %vm1782_vm1 = vweird.f32 %v1746_v2 }
 0x84f   :  { %v1764_v34 = vsub.f32 1.0, %v1763_v11  ;;  %v1789_v19 = vor.u32 1.1754944e-38, %v1788_v40  ;;  %2219 = vpow2.f32 %v2094_v45 }
 0x850   :  { %vm1787_vm4 = vcmp.eq.f32.partialorder %v1786_v46, 8.507059e+37 }
 0x851   :  { %v1765_v10 = vmul.f32 %v2214_v17, %v1764_v34 }
 0x853   :  { %v2216_v4 = vpop.eup %2215  ;;  %v1766_v15 = vadd.f32 %v2214_v17, %v1765_v10 }
 0x854   :  { %v1778_v8 = vmul.f32 %v2216_v4, %v1746_v2  ;;  %vm1783_vm0 = vweird.f32 %v2216_v4  ;;  %v2218_v38 = vpop.eup %2217 }
 0x855   :  { %v1770_v62 = vsel %vm1769_vm15, %v2214_v17, %v1766_v15  ;;  %vm1784_vm3 = vmor %vm1782_vm1, %vm1783_vm0  ;;  %v2220_v24 = vpop.eup %2219 }
 0x856   :  { %v1779_v36 = vsub.f32 1.0, %v1778_v8  ;;  %v1775_v52 = vsel %vm1772_vm2, %v1774_v58, %v1770_v62  ;;  %v1744_v28 = vadd.f32 1.0, %v2220_v24 }
 0x857   :  { %v1795_v7 = vmul.f32 %v1793_v22, %v1775_v52 }
 0x858   :  { %v1780_v13 = vmul.f32 %v2216_v4, %v1779_v36  ;;  %2221 = vrcp.f32 %v1744_v28  ;;  %v1758_v39 = vand.u32 2147483648, %v1744_v28  ;;  %vm1752_vm6 = vweird.f32 %v1744_v28 }
 0x859   :  { %v1756_v41 = vand.u32 2147483647, %v1744_v28 }
 0x85a   :  { %v1781_v0 = vadd.f32 %v2216_v4, %v1780_v13  ;;  %v1759_v35 = vor.u32 1.1754944e-38, %v1758_v39 }
 0x85b   :  { %vm1757_vm8 = vcmp.eq.f32.partialorder %v1756_v41, 8.507059e+37 }
 0x85c   :  { %v1785_v12 = vsel %vm1784_vm3, %v2216_v4, %v1781_v0 }
 0x85d   :  { %v1790_v30 = vsel %vm1787_vm4, %v1789_v19, %v1785_v12 }
 0x85e   :  { %v1796_v43 = vmul.f32 %v2218_v38, %v1790_v30  ;;  %v2222_v33 = vpop.eup %2221 }
 0x85f   :  { %v1748_v14 = vmul.f32 %v2222_v33, %v1744_v28  ;;  %vm1753_vm5 = vweird.f32 %v2222_v33 }
 0x860   :  { %v3970_v44 = vadd.f32 %v1796_v43, %v1795_v7  ;;  %vm1754_vm7 = vmor %vm1752_vm6, %vm1753_vm5  ;;  %vm2052_vm6 = vcmask 1046528  }
 0x861   :  { %v1749_v1 = vsub.f32 1.0, %v1748_v14 }
 0x862   :  { %v1799_v26 = vrot.slane %v3970_v44, 6  ;;  %v2005_v43 = vrot.slane %v3970_v44, 7 }
 0x863   :  { %v1750_v50 = vmul.f32 %v2222_v33, %v1749_v1 }
 0x864   :  { %1817 = vmatmul.f32.vlgmr.msrb.gmra.mxu1 %v1799_v26 }
 0x865   :  { %v1751_v61 = vadd.f32 %v2222_v33, %v1750_v50 }
 0x867   :  { %v1755_v37 = vsel %vm1754_vm7, %v2222_v33, %v1751_v61 }
 0x868   :  { %v1760_v31 = vsel %vm1757_vm8, %v1759_v35, %v1755_v37 }
 0x8e1   :  { %v1818_v18 = vpop.f32.mrf.mxu1 }
 0x8e2   :  { %v1821_v25 = vadd.f32 %v1818_v18, %v1716_v48 }
 0x8e4   :  { %v1822_v42 = vadd.f32 %v3977_v47, %v1821_v25 }
 0x8e6   :  { %2223 = vtanh.f32 %v1822_v42 }
 0x8ec   :  { %v2224_v23 = vpop.eup %2223 }
 0x8ed   :  { %v1825_v27 = vrot.slane %v2224_v23, 2 }
 0x8ef   :  { %v1827_v49 = vmul.f32 %v1825_v27, %v1760_v31 }
 0x8f1   :  { %v1829_v32 = vrot.slane %v1827_v49, 6  ;;  %v3981_v21 = vsel %vm2050_vm9, %v3932_v55, %v1827_v49 }
 0x8f3   :  { %1847 = vmatmul.f32.vlgmr.msrb.gmra.mxu2 %v1829_v32  ;;  %1867 = vmatmul.f32.vlgmr.msrb.gmra.mxu3 %v1829_v32 }
 0x8f4   :  { %1887 = vmatmul.f32.vlgmr.msra.gmra.mxu0 %v1829_v32  ;;  %1907 = vmatmul.f32.vlgmr.msra.gmra.mxu1 %v1829_v32 }
 0x8fb   :  { %1927 = vmatmul.f32.vlgmr.msra.gmra.mxu2 %v1829_v32 }
 0x971   :  { %v1888_v5 = vpop.f32.mrf.mxu0  ;;  %v1908_v54 = vpop.f32.mrf.mxu1 }
 0x972   :  { %v1937_v63 = vrot.slane %v1888_v5, 1  ;;  %v1938_v60 = vrot.slane %v1908_v54, 1 }
 0x974   :  { %v1945_v57 = vadd.f32 %v1937_v63, %v4498_v29  ;;  %v1946_v40 = vadd.f32 %v1938_v60, %v4499_v9 }
 0x976   :  { %v2099_v2 = vmul.f32 -1.442695, %v1945_v57  ;;  %v1868_v16 = vpop.f32.mrf.mxu3  ;;  %v1848_v28 = vpop.f32.mrf.mxu2 }
 0x977   :  { %v1936_v17 = vrot.slane %v1868_v16, 1  ;;  %v1935_v33 = vrot.slane %v1848_v28, 1 }
 0x978   :  { %2225 = vpow2.f32 %v2099_v2 }
 0x979   :  { %v1944_v11 = vadd.f32 %v1936_v17, %v4497_v56  ;;  %v1943_v14 = vadd.f32 %v1935_v33, %v4495_v51 }
 0x97b   :  { %v2098_v20 = vmul.f32 -1.442695, %v1944_v11  ;;  %v2097_v1 = vmul.f32 -1.442695, %v1943_v14 }
 0x97d   :  { %2227 = vpow2.f32 %v2098_v20 }
 0x97e   :  { %v2226_v34 = vpop.eup %2225  ;;  %v1928_v42 = vpop.f32.mrf.mxu2 }
 0x97f   :  { %v1958_v55 = vadd.f32 1.0, %v2226_v34 }
 0x981   :  { %2229 = vrcp.f32 %v1958_v55  ;;  %v2000_v46 = vand.u32 2147483648, %v1958_v55  ;;  %vm1994_vm11 = vweird.f32 %v1958_v55  ;;  %v1998_v62 = vand.u32 2147483647, %v1958_v55 }
 0x983   :  { %v2228_v10 = vpop.eup %2227  ;;  %v2001_v12 = vor.u32 1.1754944e-38, %v2000_v46  ;;  %vm1999_vm14 = vcmp.eq.f32.partialorder %v1998_v62, 8.507059e+37 }
 0x984   :  { %v1957_v4 = vadd.f32 1.0, %v2228_v10 }
 0x986   :  { %2231 = vrcp.f32 %v1957_v4  ;;  %v1985_v0 = vand.u32 2147483648, %v1957_v4  ;;  %v1983_v22 = vand.u32 2147483647, %v1957_v4  ;;  %vm1979_vm15 = vweird.f32 %v1957_v4 }
 0x987   :  { %v2230_v8 = vpop.eup %2229  ;;  %2233 = vtanh.f32 %v1946_v40 }
 0x988   :  { %v1990_v15 = vmul.f32 %v2230_v8, %v1958_v55  ;;  %vm1995_vm10 = vweird.f32 %v2230_v8  ;;  %v1986_v9 = vor.u32 1.1754944e-38, %v1985_v0  ;;  %vm1984_vm1 = vcmp.eq.f32.partialorder %v1983_v22, 8.507059e+37 }
 0x989   :  { %vm1996_vm12 = vmor %vm1994_vm11, %vm1995_vm10  ;;  %2235 = vpow2.f32 %v2097_v1 }
 0x98a   :  { %v1991_v36 = vsub.f32 1.0, %v1990_v15 }
 0x98c   :  { %v1992_v29 = vmul.f32 %v2230_v8, %v1991_v36  ;;  %v2232_v6 = vpop.eup %2231 }
 0x98d   :  { %v1975_v56 = vmul.f32 %v2232_v6, %v1957_v4  ;;  %vm1980_vm13 = vweird.f32 %v2232_v6  ;;  %v2234_v26 = vpop.eup %2233 }
 0x98e   :  { %v1993_v13 = vadd.f32 %v2230_v8, %v1992_v29  ;;  %vm1981_vm0 = vmor %vm1979_vm15, %vm1980_vm13 }
 0x98f   :  { %v1976_v58 = vsub.f32 1.0, %v1975_v56  ;;  %v2236_v48 = vpop.eup %2235 }
 0x990   :  { %v1997_v19 = vsel %vm1996_vm12, %v2230_v8, %v1993_v13  ;;  %v1956_v18 = vadd.f32 1.0, %v2236_v48 }
 0x991   :  { %v1977_v52 = vmul.f32 %v2232_v6, %v1976_v58  ;;  %v2002_v30 = vsel %vm1999_vm14, %v2001_v12, %v1997_v19 }
 0x992   :  { %v2008_v59 = vmul.f32 %v2234_v26, %v2002_v30  ;;  %2237 = vrcp.f32 %v1956_v18  ;;  %v1970_v35 = vand.u32 2147483648, %v1956_v18  ;;  %vm1964_vm3 = vweird.f32 %v1956_v18 }
 0x993   :  { %v1978_v38 = vadd.f32 %v2232_v6, %v1977_v52  ;;  %v1968_v51 = vand.u32 2147483647, %v1956_v18 }
 0x994   :  { %v1971_v49 = vor.u32 1.1754944e-38, %v1970_v35 }
 0x995   :  { %v1982_v7 = vsel %vm1981_vm0, %v2232_v6, %v1978_v38  ;;  %vm1969_vm5 = vcmp.eq.f32.partialorder %v1968_v51, 8.507059e+37 }
 0x996   :  { %v1987_v3 = vsel %vm1984_vm1, %v1986_v9, %v1982_v7 }
 0x997   :  { %v2007_v53 = vmul.f32 %v2005_v43, %v1987_v3 }
 0x998   :  { %v2238_v44 = vpop.eup %2237 }
 0x999   :  { %v2009_v45 = vadd.f32 %v2008_v59, %v2007_v53  ;;  %v1960_v25 = vmul.f32 %v2238_v44, %v1956_v18  ;;  %vm1965_vm2 = vweird.f32 %v2238_v44 }
 0x99a   :  { %vm1966_vm4 = vmor %vm1964_vm3, %vm1965_vm2 }
 0x99b   :  { %v2011_v24 = vrot.slane %v2009_v45, 7  ;;  %2056 = vst [vmem:[#allocation3 - $0x7] sm:$0x80] %v2009_v45  ;;  %v1961_v50 = vsub.f32 1.0, %v1960_v25 }
 0x99d   :  { %2029 = vmatmul.f32.vlgmr.msra.gmra.mxu3 %v2011_v24  ;;  %v1962_v41 = vmul.f32 %v2238_v44, %v1961_v50 }
 0x99f   :  { %v1963_v23 = vadd.f32 %v2238_v44, %v1962_v41 }
 0x9a1   :  { %v1967_v27 = vsel %vm1966_vm4, %v2238_v44, %v1963_v23 }
 0x9a2   :  { %v1972_v5 = vsel %vm1969_vm5, %v1971_v49, %v1967_v27 }
 0xa20   :  { %v2030_v61 = vpop.f32.mrf.mxu3 }
 0xa21   :  { %v2033_v39 = vadd.f32 %v2030_v61, %v1928_v42 }
 0xa23   :  { %v2034_v37 = vadd.f32 %v3977_v47, %v2033_v39 }
 0xa25   :  { %2239 = vtanh.f32 %v2034_v37 }
 0xa2b   :  { %v2240_v31 = vpop.eup %2239 }
 0xa2c   :  { %v2037_v32 = vrot.slane %v2240_v31, 1 }
 0xa2e   :  { %v2039_v47 = vmul.f32 %v2037_v32, %v1972_v5 }
 0xa30   :  { %2055 = vst [vmem:[#allocation2 - $0x7] sm:$0x80] %v2039_v47  ;;  %v2053_v63 = vsel %vm2052_vm6, %v3981_v21, %v2039_v47 }
 0xa31   :  { %2054 = vst [vmem:[#allocation14] sm:$0xff] %v2053_v63 }
 0xa32   :  { %2067 = dma.vmem_to_hbm [thread:$0]  %s2063_s29, 128, %s2065_s8, [#allocation7]  }
 0xa33   :  { %2585 = dma.done.wait [#allocation7], 128  }
 0xa34   :  { %2586 = vsyncadd [#allocation7], 4294967168 }
 0xa35   :  { %2072 = vsyncpa [#allocation6], 1 }
 0xa36   :  { %2073 = vsyncpa [#allocation9], 1 }
 0xa37   :  { %2074 = vsyncpa [#allocation12], 1 }
 0xa38   :  { %2075 = vsyncpa [#allocation7], 1 }

// kernel: tpu_custom_call.1
= control target key start
LH: loop header
LB: loop body
LE: loop exit
PB: predicated region body
PF: predicated region fallthrough
CT: control target
= control target key end

     0   :  { %11 = vsyncpa [#allocation6], 0  ;;  %s3993_s0 = inlined_call_operand.hbm [shape: f32[8,128], index: 0, kind: input, shape index: {}]   ;;  %s3994_s1 = inlined_call_operand.hbm [shape: f32[128,512], index: 1, kind: input, shape index: {}]   ;;  %s3995_s2 = inlined_call_operand.hbm [shape: f32[1,512], index: 2, kind: input, shape index: {}]   ;;  %s3996_s3 = inlined_call_operand.hbm [shape: f32[128,640], index: 3, kind: input, shape index: {}]   ;;  %s3997_s4 = inlined_call_operand.hbm [shape: f32[128,128], index: 4, kind: input, shape index: {}]   ;;  %s3998_s5 = inlined_call_operand.vmem [shape: f32[1,128], index: 5, kind: input, shape index: {}]   ;;  %s3999_s6 = inlined_call_operand.hbm [shape: f32[8,128], index: 6, kind: output, shape index: {}]  }
   0x1   :  { %12 = vsyncpa [#allocation9], 0 }
   0x2   :  { %13 = vsyncpa [#allocation12], 0  ;;  %s30_s23 = sshll.u32 %s3994_s1, 4  ;;  %s31_s23 = int_to_ptr.hbm [resolvable:$true] %s30_s23 }
   0x3   :  { %14 = vsyncpa [#allocation7], 0  ;;  %s2587_s24 = smov [#allocation8]   ;;  %s54_s28 = sshll.u32 %s3996_s3, 4  ;;  %s55_s28 = int_to_ptr.hbm [resolvable:$true] %s54_s28 }
   0x4   :  { %s32_s25 = sshll.u32 %s2587_s24, 4  ;;  %s2588_s29 = smov 512   ;;  %s33_s25 = int_to_ptr.vmem [resolvable:$true] %s32_s25 }
   0x5   :  { %s2589_s30 = smov 32   ;;  %s2590_s7 = smov [#allocation11]  }
   0x6   :  { %38 = dma.hbm_to_vmem [thread:$0]  %s31_s23, 8192, %s33_s25, [#allocation9], %s2588_s29, %s2588_s29, %s2589_s30  }
   0x7   :  { %s56_s8 = sshll.u32 %s2590_s7, 4  ;;  %s2591_s9 = smov 640   ;;  %s57_s8 = int_to_ptr.vmem [resolvable:$true] %s56_s8 }
   0x8   :  { %s2592_s10 = smov 40   ;;  %s20_s12 = sshll.u32 %s3993_s0, 4  ;;  %s21_s12 = int_to_ptr.hbm [resolvable:$true] %s20_s12 }
   0x9   :  { %62 = dma.hbm_to_vmem [thread:$0]  %s55_s28, 10240, %s57_s8, [#allocation12], %s2591_s9, %s2591_s9, %s2592_s10  }
   0xa   :  { %s2593_s13 = smov [#allocation5]   ;;  %s44_s16 = sshll.u32 %s3995_s2, 4  ;;  %s45_s16 = int_to_ptr.hbm [resolvable:$true] %s44_s16 }
   0xb   :  { %s22_s14 = sshll.u32 %s2593_s13, 4  ;;  %s2594_s17 = smov [#allocation10]   ;;  %s23_s14 = int_to_ptr.vmem [resolvable:$true] %s22_s14 }
   0xc   :  { %25 = dma.hbm_to_vmem [thread:$0]  %s21_s12, 128, %s23_s14, [#allocation6]  }
   0xd   :  { %s46_s18 = sshll.u32 %s2594_s17, 4  ;;  %s67_s21 = sshll.u32 %s3997_s4, 4  ;;  %s47_s18 = int_to_ptr.vmem [resolvable:$true] %s46_s18  ;;  %s68_s21 = int_to_ptr.hbm [resolvable:$true] %s67_s21 }
   0xe   :  { %49 = dma.hbm_to_vmem [thread:$0]  %s45_s16, 64, %s47_s18, [#allocation9]  }
   0xf   :  { %s2595_s0 = smov [#allocation13]   ;;  %s2596_s23 = smov 128  }
  0x10   :  { %s69_s22 = sshll.u32 %s2595_s0, 4  ;;  %s2597_s24 = smov 8   ;;  %s70_s22 = int_to_ptr.vmem [resolvable:$true] %s69_s22 }
  0x11   :  { %75 = dma.hbm_to_vmem [thread:$0]  %s68_s21, 2048, %s70_s22, [#allocation12], %s2596_s23, %s2596_s23, %s2597_s24  }
  0x12   :  { %2579 = dma.done.wait [#allocation6], 128  }
  0x13   :  { %2580 = vsyncadd [#allocation6], 4294967168 }
  0x14   :  { %2581 = dma.done.wait [#allocation9], 8256  }
  0x15   :  { %2582 = vsyncadd [#allocation9], 4294959040 }
  0x16   :  { %2583 = dma.done.wait [#allocation12], 12288  }
  0x17   :  { %2584 = vsyncadd [#allocation12], 4294955008  ;;  %v166_v0 = vld [vmem:[#allocation8 + $0x1e8] sm:$0xff]  ;;  %v167_v1 = vld [vmem:[#allocation8 + $0x1f0] sm:$0xff]  ;;  %v2598_v37 = vmov 0.0   ;;  %s2064_s8 = sshll.u32 %s3999_s6, 4  ;;  %s2065_s8 = int_to_ptr.hbm [resolvable:$true] %s2064_s8 }
  0x18   :  { %v162_v2 = vld [vmem:[#allocation8 + $0x1c8] sm:$0xff]  ;;  %199 = vmatpush.msra.mxu1 %v166_v0  ;;  %219 = vmatpush.msra.mxu2 %v167_v1  ;;  %v163_v3 = vld [vmem:[#allocation8 + $0x1d0] sm:$0xff]  ;;  %v168_v8 = vld [vmem:[#allocation8 + $0x1f8] sm:$0xff]  ;;  %102 = vst [vmem:[#allocation2] sm:$0x1] %v2598_v37 }
  0x19   :  { %v158_v4 = vld [vmem:[#allocation8 + $0x1a8] sm:$0xff]  ;;  %v159_v5 = vld [vmem:[#allocation8 + $0x1b0] sm:$0xff]  ;;  %239 = vmatpush.msra.mxu3 %v168_v8  ;;  %v164_v11 = vld [vmem:[#allocation8 + $0x1d8] sm:$0xff]  ;;  %103 = vst [vmem:[#allocation3] sm:$0x1] %v2598_v37 }
  0x1a   :  { %200 = vmatpush.msra.mxu1 %v162_v2  ;;  %220 = vmatpush.msra.mxu2 %v163_v3  ;;  %v154_v6 = vld [vmem:[#allocation8 + $0x188] sm:$0xff]  ;;  %v155_v7 = vld [vmem:[#allocation8 + $0x190] sm:$0xff]  ;;  %v160_v12 = vld [vmem:[#allocation8 + $0x1b8] sm:$0xff] }
  0x1b   :  { %v150_v9 = vld [vmem:[#allocation8 + $0x168] sm:$0xff]  ;;  %v151_v10 = vld [vmem:[#allocation8 + $0x170] sm:$0xff]  ;;  %240 = vmatpush.msra.mxu3 %v164_v11  ;;  %v156_v15 = vld [vmem:[#allocation8 + $0x198] sm:$0xff] }
  0x1c   :  { %201 = vmatpush.msra.mxu1 %v158_v4  ;;  %221 = vmatpush.msra.mxu2 %v159_v5  ;;  %v146_v13 = vld [vmem:[#allocation8 + $0x148] sm:$0xff]  ;;  %v147_v14 = vld [vmem:[#allocation8 + $0x150] sm:$0xff]  ;;  %v152_v18 = vld [vmem:[#allocation8 + $0x178] sm:$0xff] }
  0x1d   :  { %v142_v16 = vld [vmem:[#allocation8 + $0x128] sm:$0xff]  ;;  %v143_v17 = vld [vmem:[#allocation8 + $0x130] sm:$0xff]  ;;  %241 = vmatpush.msra.mxu3 %v160_v12  ;;  %v148_v21 = vld [vmem:[#allocation8 + $0x158] sm:$0xff] }
  0x1e   :  { %202 = vmatpush.msra.mxu1 %v154_v6  ;;  %222 = vmatpush.msra.mxu2 %v155_v7  ;;  %v138_v19 = vld [vmem:[#allocation8 + $0x108] sm:$0xff]  ;;  %v139_v20 = vld [vmem:[#allocation8 + $0x110] sm:$0xff]  ;;  %v144_v24 = vld [vmem:[#allocation8 + $0x138] sm:$0xff] }
  0x1f   :  { %242 = vmatpush.msra.mxu3 %v156_v15  ;;  %v134_v22 = vld [vmem:[#allocation8 + $0xe8] sm:$0xff]  ;;  %v135_v23 = vld [vmem:[#allocation8 + $0xf0] sm:$0xff]  ;;  %v140_v27 = vld [vmem:[#allocation8 + $0x118] sm:$0xff] }
  0x20   :  { %203 = vmatpush.msra.mxu1 %v150_v9  ;;  %223 = vmatpush.msra.mxu2 %v151_v10  ;;  %v130_v25 = vld [vmem:[#allocation8 + $0xc8] sm:$0xff]  ;;  %v131_v26 = vld [vmem:[#allocation8 + $0xd0] sm:$0xff]  ;;  %v136_v30 = vld [vmem:[#allocation8 + $0xf8] sm:$0xff] }
  0x21   :  { %243 = vmatpush.msra.mxu3 %v152_v18  ;;  %v126_v28 = vld [vmem:[#allocation8 + $0xa8] sm:$0xff]  ;;  %v127_v29 = vld [vmem:[#allocation8 + $0xb0] sm:$0xff]  ;;  %v132_v33 = vld [vmem:[#allocation8 + $0xd8] sm:$0xff] }
  0x22   :  { %204 = vmatpush.msra.mxu1 %v146_v13  ;;  %224 = vmatpush.msra.mxu2 %v147_v14  ;;  %v122_v31 = vld [vmem:[#allocation8 + $0x88] sm:$0xff]  ;;  %v123_v32 = vld [vmem:[#allocation8 + $0x90] sm:$0xff]  ;;  %v128_v36 = vld [vmem:[#allocation8 + $0xb8] sm:$0xff] }
  0x23   :  { %244 = vmatpush.msra.mxu3 %v148_v21  ;;  %v118_v34 = vld [vmem:[#allocation8 + $0x68] sm:$0xff]  ;;  %v119_v35 = vld [vmem:[#allocation8 + $0x70] sm:$0xff]  ;;  %v124_v40 = vld [vmem:[#allocation8 + $0x98] sm:$0xff] }
  0x24   :  { %205 = vmatpush.msra.mxu1 %v142_v16  ;;  %225 = vmatpush.msra.mxu2 %v143_v17  ;;  %v114_v38 = vld [vmem:[#allocation8 + $0x48] sm:$0xff]  ;;  %v115_v39 = vld [vmem:[#allocation8 + $0x50] sm:$0xff]  ;;  %v120_v43 = vld [vmem:[#allocation8 + $0x78] sm:$0xff] }
  0x25   :  { %245 = vmatpush.msra.mxu3 %v144_v24  ;;  %v110_v41 = vld [vmem:[#allocation8 + $0x28] sm:$0xff]  ;;  %v111_v42 = vld [vmem:[#allocation8 + $0x30] sm:$0xff]  ;;  %v116_v48 = vld [vmem:[#allocation8 + $0x58] sm:$0xff] }
  0x26   :  { %206 = vmatpush.msra.mxu1 %v138_v19  ;;  %226 = vmatpush.msra.mxu2 %v139_v20  ;;  %v106_v44 = vld [vmem:[#allocation8 + $0x8] sm:$0xff]  ;;  %v107_v45 = vld [vmem:[#allocation8 + $0x10] sm:$0xff]  ;;  %v2654_v49 = vld [vmem:[#allocation5] sm:$0xff] }
  0x27   :  { %246 = vmatpush.msra.mxu3 %v140_v27  ;;  %v2650_v46 = vld [vmem:[#allocation11 + $0x260] sm:$0xff]  ;;  %v2652_v47 = vld [vmem:[#allocation11 + $0x268] sm:$0xff]  ;;  %v2656_v50 = vld [vmem:[#allocation11 + $0x238] sm:$0xff] }
  0x28   :  { %207 = vmatpush.msra.mxu1 %v134_v22  ;;  %227 = vmatpush.msra.mxu2 %v135_v23  ;;  %v2658_v51 = vld [vmem:[#allocation11 + $0x240] sm:$0xff]  ;;  %v112_v52 = vld [vmem:[#allocation8 + $0x38] sm:$0xff]  ;;  %v2669_v56 = vld [vmem:[#allocation11 + $0x1e8] sm:$0xff] }
  0x29   :  { %247 = vmatpush.msra.mxu3 %v136_v30  ;;  %v2662_v53 = vld [vmem:[#allocation11 + $0x210] sm:$0xff]  ;;  %v2664_v54 = vld [vmem:[#allocation11 + $0x218] sm:$0xff]  ;;  %v2678_v59 = vld [vmem:[#allocation11 + $0x1c0] sm:$0xff] }
  0x2a   :  { %208 = vmatpush.msra.mxu1 %v130_v25  ;;  %228 = vmatpush.msra.mxu2 %v131_v26  ;;  %v108_v55 = vld [vmem:[#allocation8 + $0x18] sm:$0xff]  ;;  %v2680_v60 = vld [vmem:[#allocation11 + $0x1c8] sm:$0xff]  ;;  %v2688_v63 = vld [vmem:[#allocation11 + $0x1a0] sm:$0xff] }
  0x2b   :  { %248 = vmatpush.msra.mxu3 %v132_v33  ;;  %v2671_v57 = vld [vmem:[#allocation11 + $0x1f0] sm:$0xff]  ;;  %v2684_v61 = vld [vmem:[#allocation11 + $0x248] sm:$0xff]  ;;  %v2686_v62 = vld [vmem:[#allocation11 + $0x198] sm:$0xff] }
  0x2c   :  { %209 = vmatpush.msra.mxu1 %v126_v28  ;;  %229 = vmatpush.msra.mxu2 %v127_v29  ;;  %v2676_v58 = vld [vmem:[#allocation11 + $0x270] sm:$0xff]  ;;  %v2693_v0 = vld [vmem:[#allocation11 + $0x220] sm:$0xff]  ;;  %v2697_v4 = vld [vmem:[#allocation11 + $0x178] sm:$0xff] }
  0x2d   :  { %249 = vmatpush.msra.mxu3 %v128_v36  ;;  %v165_v1 = vld [vmem:[#allocation8 + $0x1e0] sm:$0xff]  ;;  %v2695_v3 = vld [vmem:[#allocation11 + $0x170] sm:$0xff]  ;;  %v2704_v7 = vld [vmem:[#allocation11 + $0x148] sm:$0xff] }
  0x2e   :  { %210 = vmatpush.msra.mxu1 %v122_v31  ;;  %230 = vmatpush.msra.mxu2 %v123_v32  ;;  %v161_v2 = vld [vmem:[#allocation8 + $0x1c0] sm:$0xff]  ;;  %v2706_v8 = vld [vmem:[#allocation11 + $0x150] sm:$0xff]  ;;  %v2715_v12 = vld [vmem:[#allocation11 + $0x128] sm:$0xff] }
  0x2f   :  { %250 = vmatpush.msra.mxu3 %v124_v40  ;;  %179 = vmatpush.msra.mxu0 %v165_v1  ;;  %v2702_v5 = vld [vmem:[#allocation11 + $0x1f8] sm:$0xff]  ;;  %v2711_v9 = vld [vmem:[#allocation11 + $0x1d0] sm:$0xff]  ;;  %v2713_v11 = vld [vmem:[#allocation11 + $0x120] sm:$0xff] }
  0x30   :  { %211 = vmatpush.msra.mxu1 %v118_v34  ;;  %231 = vmatpush.msra.mxu2 %v119_v35  ;;  %v157_v6 = vld [vmem:[#allocation8 + $0x1a0] sm:$0xff]  ;;  %v2720_v13 = vld [vmem:[#allocation11 + $0x1a8] sm:$0xff]  ;;  %v2731_v19 = vld [vmem:[#allocation11 + $0xd0] sm:$0xff] }
  0x31   :  { %251 = vmatpush.msra.mxu3 %v120_v43  ;;  %180 = vmatpush.msra.mxu0 %v161_v2  ;;  %v153_v10 = vld [vmem:[#allocation8 + $0x180] sm:$0xff]  ;;  %4222 = vst [vmem:[#allocation21_spill] sm:$0xff] %v2731_v19  ;;  %v2740_v23 = vld [vmem:[#allocation11 + $0xa8] sm:$0xff]  ;;  %v2742_v24 = vld [vmem:[#allocation11 + $0xb0] sm:$0xff] }
  0x32   :  { %212 = vmatpush.msra.mxu1 %v114_v38  ;;  %232 = vmatpush.msra.mxu2 %v115_v39  ;;  %v149_v14 = vld [vmem:[#allocation8 + $0x160] sm:$0xff]  ;;  %4224 = vst [vmem:[#allocation23_spill] sm:$0xff] %v2740_v23  ;;  %v2747_v25 = vld [vmem:[#allocation11 + $0x130] sm:$0xff]  ;;  %v2751_v28 = vld [vmem:[#allocation11 + $0x88] sm:$0xff] }
  0x33   :  { %252 = vmatpush.msra.mxu3 %v116_v48  ;;  %181 = vmatpush.msra.mxu0 %v157_v6  ;;  %v2722_v15 = vld [vmem:[#allocation11 + $0xf8] sm:$0xff]  ;;  %v2724_v16 = vld [vmem:[#allocation11 + $0x100] sm:$0xff]  ;;  %4225 = vst [vmem:[#allocation24_spill] sm:$0xff] %v2747_v25  ;;  %v2756_v29 = vld [vmem:[#allocation11 + $0x108] sm:$0xff] }
  0x34   :  { %213 = vmatpush.msra.mxu1 %v110_v41  ;;  %233 = vmatpush.msra.mxu2 %v111_v42  ;;  %4220 = vst [vmem:[#allocation19_spill] sm:$0xff] %v2722_v15  ;;  %v2729_v17 = vld [vmem:[#allocation11 + $0x180] sm:$0xff]  ;;  %v2733_v20 = vld [vmem:[#allocation11 + $0xd8] sm:$0xff]  ;;  %v2767_v35 = vld [vmem:[#allocation11 + $0x30] sm:$0xff] }
  0x35   :  { %253 = vmatpush.msra.mxu3 %v112_v52  ;;  %182 = vmatpush.msra.mxu0 %v153_v10  ;;  %4221 = vst [vmem:[#allocation20_spill] sm:$0xff] %v2729_v17  ;;  %v145_v18 = vld [vmem:[#allocation8 + $0x140] sm:$0xff]  ;;  %v2776_v39 = vld [vmem:[#allocation11 + $0x8] sm:$0xff]  ;;  %v2778_v40 = vld [vmem:[#allocation11 + $0x10] sm:$0xff] }
  0x36   :  { %214 = vmatpush.msra.mxu1 %v106_v44  ;;  %234 = vmatpush.msra.mxu2 %v107_v45  ;;  %4223 = vst [vmem:[#allocation22_spill] sm:$0xff] %v2733_v20  ;;  %v2738_v21 = vld [vmem:[#allocation11 + $0x158] sm:$0xff]  ;;  %v2749_v27 = vld [vmem:[#allocation11 + $0x80] sm:$0xff]  ;;  %v2783_v41 = vld [vmem:[#allocation2] sm:$0x1] }
  0x37   :  { %215 = vmatmul.f32.vlgmr.msra.gmra.mxu1 %v2654_v49  ;;  %235 = vmatmul.f32.vlgmr.msra.gmra.mxu2 %v2654_v49  ;;  %v141_v22 = vld [vmem:[#allocation8 + $0x120] sm:$0xff]  ;;  %4226 = vst [vmem:[#allocation25_spill] sm:$0xff] %v2749_v27  ;;  %v2788_v43 = vld [vmem:[#allocation11 + $0x90] sm:$0xff]  ;;  %v2793_v45 = vld [vmem:[#allocation11 + $0x68] sm:$0xff] }
  0x38   :  { %372 = vmatpush.msrb.mxu1 %v2650_v46  ;;  %392 = vmatpush.msrb.mxu2 %v2652_v47  ;;  %v137_v26 = vld [vmem:[#allocation8 + $0x100] sm:$0xff]  ;;  %4229 = vst [vmem:[#allocation28_spill] sm:$0xff] %v2767_v35  ;;  %v2801_v1 = vld [vmem:[#allocation11 + $0x230] sm:$0xff]  ;;  %v2807_v10 = vld [vmem:[#allocation11 + $0x208] sm:$0xff] }
  0x39   :  { %254 = vmatpush.msra.mxu3 %v108_v55  ;;  %183 = vmatpush.msra.mxu0 %v149_v14  ;;  %v133_v30 = vld [vmem:[#allocation8 + $0xe0] sm:$0xff]  ;;  %4230 = vst [vmem:[#allocation29_spill] sm:$0xff] %v2776_v39 }
  0x3a   :  { %373 = vmatpush.msrb.mxu1 %v2656_v50  ;;  %393 = vmatpush.msrb.mxu2 %v2658_v51  ;;  %v2758_v31 = vld [vmem:[#allocation11 + $0x58] sm:$0xff]  ;;  %v2760_v32 = vld [vmem:[#allocation11 + $0x60] sm:$0xff] }
  0x3b   :  { %412 = vmatpush.msrb.mxu3 %v2676_v58  ;;  %184 = vmatpush.msra.mxu0 %v145_v18  ;;  %4227 = vst [vmem:[#allocation26_spill] sm:$0xff] %v2758_v31  ;;  %v2765_v33 = vld [vmem:[#allocation11 + $0xe0] sm:$0xff]  ;;  %v2769_v36 = vld [vmem:[#allocation11 + $0x38] sm:$0xff] }
  0x3c   :  { %374 = vmatpush.msrb.mxu1 %v2662_v53  ;;  %394 = vmatpush.msrb.mxu2 %v2664_v54  ;;  %4228 = vst [vmem:[#allocation27_spill] sm:$0xff] %v2765_v33  ;;  %v129_v34 = vld [vmem:[#allocation8 + $0xc0] sm:$0xff] }
  0x3d   :  { %413 = vmatpush.msrb.mxu3 %v2684_v61  ;;  %185 = vmatpush.msra.mxu0 %v141_v22  ;;  %v2774_v37 = vld [vmem:[#allocation11 + $0xb8] sm:$0xff]  ;;  %v2799_v55 = vld [vmem:[#allocation11 + $0x40] sm:$0xff] }
  0x3e   :  { %375 = vmatpush.msrb.mxu1 %v2669_v56  ;;  %395 = vmatpush.msrb.mxu2 %v2671_v57  ;;  %v125_v38 = vld [vmem:[#allocation8 + $0xa0] sm:$0xff] }
  0x3f   :  { %414 = vmatpush.msrb.mxu3 %v2693_v0  ;;  %186 = vmatpush.msra.mxu0 %v137_v26  ;;  %v121_v42 = vld [vmem:[#allocation8 + $0x80] sm:$0xff]  ;;  %v2820_v26 = vld [vmem:[#allocation11 + $0x190] sm:$0xff] }
  0x40   :  { %376 = vmatpush.msrb.mxu1 %v2678_v59  ;;  %396 = vmatpush.msrb.mxu2 %v2680_v60  ;;  %v117_v44 = vld [vmem:[#allocation8 + $0x60] sm:$0xff] }
  0x41   :  { %415 = vmatpush.msrb.mxu3 %v2702_v5  ;;  %187 = vmatpush.msra.mxu0 %v133_v30  ;;  %v2795_v48 = vld [vmem:[#allocation11 + $0x258] sm:$0xff]  ;;  %v2811_v18 = vld [vmem:[#allocation11 + $0x1e0] sm:$0xff]  ;;  %v2826_v30 = vld [vmem:[#allocation11 + $0x168] sm:$0xff] }
  0x42   :  { %377 = vmatpush.msrb.mxu1 %v2686_v62  ;;  %397 = vmatpush.msrb.mxu2 %v2688_v63  ;;  %v113_v52 = vld [vmem:[#allocation8 + $0x40] sm:$0xff] }
  0x43   :  { %416 = vmatpush.msrb.mxu3 %v2711_v9  ;;  %188 = vmatpush.msra.mxu0 %v129_v34  ;;  %v109_v2 = vld [vmem:[#allocation8 + $0x20] sm:$0xff] }
  0x44   :  { %378 = vmatpush.msrb.mxu1 %v2695_v3  ;;  %398 = vmatpush.msrb.mxu2 %v2697_v4  ;;  %v2805_v6 = vld [vmem:[#allocation11 + $0x18] sm:$0xff]  ;;  %v2831_v34 = vld [vmem:[#allocation11 + $0x140] sm:$0xff] }
  0x45   :  { %417 = vmatpush.msrb.mxu3 %v2720_v13  ;;  %189 = vmatpush.msra.mxu0 %v125_v38  ;;  %v105_v14 = vld [vmem:[#allocation8] sm:$0xff]  ;;  %v2841_v38 = vld [vmem:[#allocation11 + $0xf0] sm:$0xff] }
  0x46   :  { %379 = vmatpush.msrb.mxu1 %v2704_v7  ;;  %399 = vmatpush.msrb.mxu2 %v2706_v8  ;;  %v2816_v22 = vld [vmem:[#allocation11 + $0x1b8] sm:$0xff]  ;;  %4231 = vst [vmem:[#allocation30_spill] sm:$0xff] %v2841_v38 }
  0x47   :  { %418 = vmatpush.msrb.mxu3 %v2729_v17  ;;  %190 = vmatpush.msra.mxu0 %v121_v42  ;;  %v2846_v42 = vld [vmem:[#allocation11 + $0xc8] sm:$0xff] }
  0x48   :  { %380 = vmatpush.msrb.mxu1 %v2713_v11  ;;  %400 = vmatpush.msrb.mxu2 %v2715_v12  ;;  %4232 = vst [vmem:[#allocation31_spill] sm:$0xff] %v2846_v42 }
  0x49   :  { %419 = vmatpush.msrb.mxu3 %v2738_v21  ;;  %191 = vmatpush.msra.mxu0 %v117_v44  ;;  %v2851_v44 = vld [vmem:[#allocation11 + $0xa0] sm:$0xff] }
  0x4a   :  { %381 = vmatpush.msrb.mxu1 %v2722_v15  ;;  %401 = vmatpush.msrb.mxu2 %v2724_v16  ;;  %4233 = vst [vmem:[#allocation32_spill] sm:$0xff] %v2851_v44 }
  0x4b   :  { %420 = vmatpush.msrb.mxu3 %v2747_v25  ;;  %192 = vmatpush.msra.mxu0 %v113_v52  ;;  %v2869_v52 = vld [vmem:[#allocation11 + $0x78] sm:$0xff] }
  0x4c   :  { %382 = vmatpush.msrb.mxu1 %v2731_v19  ;;  %402 = vmatpush.msrb.mxu2 %v2733_v20  ;;  %4234 = vst [vmem:[#allocation33_spill] sm:$0xff] %v2869_v52 }
  0x4d   :  { %421 = vmatpush.msrb.mxu3 %v2756_v29  ;;  %193 = vmatpush.msra.mxu0 %v109_v2  ;;  %v2871_v2 = vld [vmem:[#allocation11 + $0x50] sm:$0xff] }
  0x4e   :  { %383 = vmatpush.msrb.mxu1 %v2740_v23  ;;  %403 = vmatpush.msrb.mxu2 %v2742_v24  ;;  %4235 = vst [vmem:[#allocation34_spill] sm:$0xff] %v2871_v2 }
  0x4f   :  { %422 = vmatpush.msrb.mxu3 %v2765_v33  ;;  %194 = vmatpush.msra.mxu0 %v105_v14  ;;  %v2875_v14 = vld [vmem:[#allocation11 + $0x28] sm:$0xff] }
  0x50   :  { %384 = vmatpush.msrb.mxu1 %v2749_v27  ;;  %404 = vmatpush.msrb.mxu2 %v2751_v28  ;;  %4236 = vst [vmem:[#allocation35_spill] sm:$0xff] %v2875_v14 }
  0x51   :  { %423 = vmatpush.msrb.mxu3 %v2774_v37  ;;  %352 = vmatpush.msrb.mxu0 %v2795_v48 }
  0x52   :  { %385 = vmatpush.msrb.mxu1 %v2758_v31  ;;  %405 = vmatpush.msrb.mxu2 %v2760_v32 }
  0x53   :  { %255 = vmatmul.f32.vlgmr.msra.gmra.mxu3 %v2654_v49  ;;  %195 = vmatmul.f32.vlgmr.msra.gmra.mxu0 %v2654_v49  ;;  %v2836_v49 = vld [vmem:[#allocation11 + $0x118] sm:$0xff] }
  0x54   :  { %386 = vmatpush.msrb.mxu1 %v2767_v35  ;;  %406 = vmatpush.msrb.mxu2 %v2769_v36 }
  0x55   :  { %424 = vmatpush.msrb.mxu3 %v2788_v43  ;;  %353 = vmatpush.msrb.mxu0 %v2801_v1 }
  0x56   :  { %387 = vmatpush.msrb.mxu1 %v2776_v39  ;;  %407 = vmatpush.msrb.mxu2 %v2778_v40 }
  0x57   :  { %388 = vmatmul.f32.vlgmr.msrb.gmra.mxu1 %v2783_v41  ;;  %408 = vmatmul.f32.vlgmr.msrb.gmra.mxu2 %v2783_v41 }
  0x58   :  { %558 = vmatpush.msra.mxu2 %v2795_v48  ;;  %425 = vmatpush.msrb.mxu3 %v2793_v45 }
  0x59   :  { %354 = vmatpush.msrb.mxu0 %v2807_v10 }
  0x5a   :  { %559 = vmatpush.msra.mxu2 %v2801_v1  ;;  %426 = vmatpush.msrb.mxu3 %v2799_v55 }
  0x5b   :  { %355 = vmatpush.msrb.mxu0 %v2811_v18 }
  0x5c   :  { %560 = vmatpush.msra.mxu2 %v2807_v10  ;;  %427 = vmatpush.msrb.mxu3 %v2805_v6 }
  0x5d   :  { %428 = vmatmul.f32.vlgmr.msrb.gmra.mxu3 %v2783_v41  ;;  %356 = vmatpush.msrb.mxu0 %v2816_v22 }
  0x5e   :  { %561 = vmatpush.msra.mxu2 %v2811_v18  ;;  %578 = vmatpush.msra.mxu3 %v2650_v46 }
  0x5f   :  { %357 = vmatpush.msrb.mxu0 %v2820_v26 }
  0x60   :  { %562 = vmatpush.msra.mxu2 %v2816_v22  ;;  %579 = vmatpush.msra.mxu3 %v2656_v50 }
  0x61   :  { %358 = vmatpush.msrb.mxu0 %v2826_v30 }
  0x62   :  { %563 = vmatpush.msra.mxu2 %v2820_v26  ;;  %580 = vmatpush.msra.mxu3 %v2662_v53 }
  0x63   :  { %359 = vmatpush.msrb.mxu0 %v2831_v34 }
  0x64   :  { %564 = vmatpush.msra.mxu2 %v2826_v30  ;;  %581 = vmatpush.msra.mxu3 %v2669_v56 }
  0x65   :  { %360 = vmatpush.msrb.mxu0 %v2836_v49 }
  0x66   :  { %565 = vmatpush.msra.mxu2 %v2831_v34  ;;  %582 = vmatpush.msra.mxu3 %v2678_v59 }
  0x67   :  { %361 = vmatpush.msrb.mxu0 %v2841_v38 }
  0x68   :  { %566 = vmatpush.msra.mxu2 %v2836_v49  ;;  %583 = vmatpush.msra.mxu3 %v2686_v62 }
  0x69   :  { %362 = vmatpush.msrb.mxu0 %v2846_v42 }
  0x6a   :  { %567 = vmatpush.msra.mxu2 %v2841_v38  ;;  %584 = vmatpush.msra.mxu3 %v2695_v3  ;;  %v2997_v38 = vld [vmem:[#allocation13 + $0x10] sm:$0xff] }
  0x6b   :  { %363 = vmatpush.msrb.mxu0 %v2851_v44  ;;  %4266 = vst [vmem:[#allocation65_spill] sm:$0xff] %v2997_v38 }
  0x6c   :  { %568 = vmatpush.msra.mxu2 %v2846_v42  ;;  %585 = vmatpush.msra.mxu3 %v2704_v7  ;;  %v2971_v42 = vld [vmem:[#allocation13 + $0x28] sm:$0xff] }
  0x6d   :  { %364 = vmatpush.msrb.mxu0 %v2869_v52  ;;  %4260 = vst [vmem:[#allocation59_spill] sm:$0xff] %v2971_v42 }
  0x6e   :  { %569 = vmatpush.msra.mxu2 %v2851_v44  ;;  %586 = vmatpush.msra.mxu3 %v2713_v11  ;;  %v2953_v44 = vld [vmem:[#allocation13 + $0x38] sm:$0xff] }
  0x6f   :  { %365 = vmatpush.msrb.mxu0 %v2871_v2  ;;  %4255 = vst [vmem:[#allocation54_spill] sm:$0xff] %v2953_v44 }
  0x70   :  { %587 = vmatpush.msra.mxu3 %v2722_v15  ;;  %570 = vmatpush.msra.mxu2 %v2869_v52  ;;  %v2908_v52 = vld [vmem:[#allocation11 + $0x200] sm:$0xff]  ;;  %v2989_v15 = vld [vmem:[#allocation13 + $0x18] sm:$0xff] }
  0x71   :  { %366 = vmatpush.msrb.mxu0 %v2875_v14  ;;  %4244 = vst [vmem:[#allocation43_spill] sm:$0xff] %v2908_v52 }
  0x72   :  { %588 = vmatpush.msra.mxu3 %v2731_v19  ;;  %571 = vmatpush.msra.mxu2 %v2871_v2  ;;  %v2892_v2 = vld [vmem:[#allocation11 + $0x250] sm:$0xff]  ;;  %4264 = vst [vmem:[#allocation63_spill] sm:$0xff] %v2989_v15 }
  0x73   :  { %4240 = vst [vmem:[#allocation39_spill] sm:$0xff] %v2892_v2 }
  0x74   :  { %589 = vmatpush.msra.mxu3 %v2740_v23  ;;  %572 = vmatpush.msra.mxu2 %v2875_v14  ;;  %v2902_v14 = vld [vmem:[#allocation13 + $0x68] sm:$0xff] }
  0x75   :  { %4243 = vst [vmem:[#allocation42_spill] sm:$0xff] %v2902_v14 }
  0x76   :  { %590 = vmatpush.msra.mxu3 %v2749_v27  ;;  %v2894_v27 = vld [vmem:[#allocation13 + $0x70] sm:$0xff] }
  0x77   :  { %4241 = vst [vmem:[#allocation40_spill] sm:$0xff] %v2894_v27 }
  0x78   :  { %591 = vmatpush.msra.mxu3 %v2758_v31  ;;  %v2888_v31 = vld [vmem:[#allocation13 + $0x78] sm:$0xff] }
  0x79   :  { %4239 = vst [vmem:[#allocation38_spill] sm:$0xff] %v2888_v31  ;;  %533 = vmatpush.msra.mxu1 %v2888_v31 }
  0x7a   :  { %592 = vmatpush.msra.mxu3 %v2767_v35  ;;  %v2881_v35 = vld [vmem:[#allocation11] sm:$0xff] }
  0x7b   :  { %4237 = vst [vmem:[#allocation36_spill] sm:$0xff] %v2881_v35  ;;  %367 = vmatpush.msrb.mxu0 %v2881_v35  ;;  %573 = vmatpush.msra.mxu2 %v2881_v35  ;;  %v2900_v35 = vld [vmem:[#allocation11 + $0x228] sm:$0xff] }
  0x7c   :  { %593 = vmatpush.msra.mxu3 %v2776_v39  ;;  %368 = vmatmul.f32.vlgmr.msrb.gmra.mxu0 %v2783_v41  ;;  %v2886_v39 = vld [vmem:[#allocation11 + $0x278] sm:$0xff]  ;;  %4242 = vst [vmem:[#allocation41_spill] sm:$0xff] %v2900_v35 }
  0x7d   :  { %4238 = vst [vmem:[#allocation37_spill] sm:$0xff] %v2886_v39  ;;  %432 = vmatpush.msra.mxu0 %v2886_v39  ;;  %638 = vmatpush.msrb.mxu2 %v2886_v39  ;;  %v2910_v39 = vld [vmem:[#allocation13 + $0x60] sm:$0xff] }
  0x7e   :  { %741 = vmatpush.msrb.mxu3 %v2888_v31  ;;  %534 = vmatpush.msra.mxu1 %v2894_v27  ;;  %4245 = vst [vmem:[#allocation44_spill] sm:$0xff] %v2910_v39  ;;  %v2916_v31 = vld [vmem:[#allocation11 + $0x1d8] sm:$0xff] }
  0x7f   :  { %433 = vmatpush.msra.mxu0 %v2892_v2  ;;  %639 = vmatpush.msrb.mxu2 %v2892_v2  ;;  %4246 = vst [vmem:[#allocation45_spill] sm:$0xff] %v2916_v31  ;;  %v2918_v2 = vld [vmem:[#allocation13 + $0x58] sm:$0xff] }
  0x80   :  { %742 = vmatpush.msrb.mxu3 %v2894_v27  ;;  %535 = vmatpush.msra.mxu1 %v2902_v14  ;;  %4247 = vst [vmem:[#allocation46_spill] sm:$0xff] %v2918_v2  ;;  %v2924_v27 = vld [vmem:[#allocation11 + $0x1b0] sm:$0xff] }
  0x81   :  { %434 = vmatpush.msra.mxu0 %v2900_v35  ;;  %640 = vmatpush.msrb.mxu2 %v2900_v35  ;;  %4248 = vst [vmem:[#allocation47_spill] sm:$0xff] %v2924_v27  ;;  %v2926_v35 = vld [vmem:[#allocation13 + $0x50] sm:$0xff] }
  0x82   :  { %743 = vmatpush.msrb.mxu3 %v2902_v14  ;;  %536 = vmatpush.msra.mxu1 %v2910_v39  ;;  %4249 = vst [vmem:[#allocation48_spill] sm:$0xff] %v2926_v35  ;;  %v2932_v14 = vld [vmem:[#allocation11 + $0x188] sm:$0xff] }
  0x83   :  { %435 = vmatpush.msra.mxu0 %v2908_v52  ;;  %641 = vmatpush.msrb.mxu2 %v2908_v52  ;;  %4250 = vst [vmem:[#allocation49_spill] sm:$0xff] %v2932_v14  ;;  %v2934_v52 = vld [vmem:[#allocation13 + $0x48] sm:$0xff] }
  0x84   :  { %744 = vmatpush.msrb.mxu3 %v2910_v39  ;;  %537 = vmatpush.msra.mxu1 %v2918_v2  ;;  %4251 = vst [vmem:[#allocation50_spill] sm:$0xff] %v2934_v52  ;;  %v2938_v39 = vld [vmem:[#allocation10] sm:$0xf] }
  0x85   :  { %436 = vmatpush.msra.mxu0 %v2916_v31  ;;  %642 = vmatpush.msrb.mxu2 %v2916_v31  ;;  %v2944_v31 = vld [vmem:[#allocation13 + $0x40] sm:$0xff] }
  0x86   :  { %745 = vmatpush.msrb.mxu3 %v2918_v2  ;;  %538 = vmatpush.msra.mxu1 %v2926_v35  ;;  %v2942_v2 = vld [vmem:[#allocation11 + $0x160] sm:$0xff]  ;;  %4253 = vst [vmem:[#allocation52_spill] sm:$0xff] %v2944_v31 }
  0x87   :  { %437 = vmatpush.msra.mxu0 %v2924_v27  ;;  %643 = vmatpush.msrb.mxu2 %v2924_v27  ;;  %4252 = vst [vmem:[#allocation51_spill] sm:$0xff] %v2942_v2  ;;  %v2951_v27 = vld [vmem:[#allocation11 + $0x138] sm:$0xff] }
  0x88   :  { %746 = vmatpush.msrb.mxu3 %v2926_v35  ;;  %539 = vmatpush.msra.mxu1 %v2934_v52  ;;  %v172_v35 = vperm.slane %v2938_v39, 1  ;;  %4254 = vst [vmem:[#allocation53_spill] sm:$0xff] %v2951_v27 }
  0x89   :  { %438 = vmatpush.msra.mxu0 %v2932_v14  ;;  %644 = vmatpush.msrb.mxu2 %v2932_v14  ;;  %v2959_v14 = vld [vmem:[#allocation11 + $0x110] sm:$0xff] }
  0x8a   :  { %747 = vmatpush.msrb.mxu3 %v2934_v52  ;;  %540 = vmatpush.msra.mxu1 %v2944_v31  ;;  %4256 = vst [vmem:[#allocation55_spill] sm:$0xff] %v2959_v14  ;;  %v2961_v52 = vld [vmem:[#allocation13 + $0x30] sm:$0xff] }
  0x8b   :  { %439 = vmatpush.msra.mxu0 %v2942_v2  ;;  %645 = vmatpush.msrb.mxu2 %v2942_v2  ;;  %4257 = vst [vmem:[#allocation56_spill] sm:$0xff] %v2961_v52 }
  0x8c   :  { %748 = vmatpush.msrb.mxu3 %v2944_v31  ;;  %541 = vmatpush.msra.mxu1 %v2953_v44  ;;  %v2969_v31 = vld [vmem:[#allocation11 + $0xe8] sm:$0xff] }
  0x8d   :  { %440 = vmatpush.msra.mxu0 %v2951_v27  ;;  %646 = vmatpush.msrb.mxu2 %v2951_v27  ;;  %4259 = vst [vmem:[#allocation58_spill] sm:$0xff] %v2969_v31  ;;  %v2979_v27 = vld [vmem:[#allocation13 + $0x20] sm:$0xff] }
  0x8e   :  { %749 = vmatpush.msrb.mxu3 %v2953_v44  ;;  %542 = vmatpush.msra.mxu1 %v2961_v52  ;;  %v2977_v44 = vld [vmem:[#allocation11 + $0xc0] sm:$0xff]  ;;  %4262 = vst [vmem:[#allocation61_spill] sm:$0xff] %v2979_v27 }
  0x8f   :  { %441 = vmatpush.msra.mxu0 %v2959_v14  ;;  %647 = vmatpush.msrb.mxu2 %v2959_v14  ;;  %4261 = vst [vmem:[#allocation60_spill] sm:$0xff] %v2977_v44  ;;  %v2987_v14 = vld [vmem:[#allocation11 + $0x98] sm:$0xff] }
  0x90   :  { %750 = vmatpush.msrb.mxu3 %v2961_v52  ;;  %543 = vmatpush.msra.mxu1 %v2971_v42  ;;  %4263 = vst [vmem:[#allocation62_spill] sm:$0xff] %v2987_v14 }
  0x91   :  { %442 = vmatpush.msra.mxu0 %v2969_v31  ;;  %648 = vmatpush.msrb.mxu2 %v2969_v31  ;;  %v2995_v31 = vld [vmem:[#allocation11 + $0x70] sm:$0xff] }
  0x92   :  { %751 = vmatpush.msrb.mxu3 %v2971_v42  ;;  %544 = vmatpush.msra.mxu1 %v2979_v27  ;;  %4265 = vst [vmem:[#allocation64_spill] sm:$0xff] %v2995_v31 }
  0x93   :  { %443 = vmatpush.msra.mxu0 %v2977_v44  ;;  %649 = vmatpush.msrb.mxu2 %v2977_v44 }
  0x94   :  { %752 = vmatpush.msrb.mxu3 %v2979_v27  ;;  %545 = vmatpush.msra.mxu1 %v2989_v15  ;;  %v3007_v27 = vld [vmem:[#allocation13 + $0x8] sm:$0xff] }
  0x95   :  { %444 = vmatpush.msra.mxu0 %v2987_v14  ;;  %650 = vmatpush.msrb.mxu2 %v2987_v14  ;;  %4269 = vst [vmem:[#allocation68_spill] sm:$0xff] %v3007_v27 }
  0x96   :  { %753 = vmatpush.msrb.mxu3 %v2989_v15  ;;  %546 = vmatpush.msra.mxu1 %v2997_v38  ;;  %v3015_v15 = vld [vmem:[#allocation13] sm:$0xff] }
  0x97   :  { %445 = vmatpush.msra.mxu0 %v2995_v31  ;;  %651 = vmatpush.msrb.mxu2 %v2995_v31  ;;  %4271 = vst [vmem:[#allocation70_spill] sm:$0xff] %v3015_v15 }
  0x98   :  { %754 = vmatpush.msrb.mxu3 %v2997_v38  ;;  %547 = vmatpush.msra.mxu1 %v3007_v27 }
  0x9a   :  { %755 = vmatpush.msrb.mxu3 %v3007_v27  ;;  %548 = vmatpush.msra.mxu1 %v3015_v15 }
  0x9c   :  { %618 = vmatpush.msrb.mxu1 %v2676_v58  ;;  %756 = vmatpush.msrb.mxu3 %v3015_v15 }
  0x9e   :  { %619 = vmatpush.msrb.mxu1 %v2684_v61 }
  0xa0   :  { %620 = vmatpush.msrb.mxu1 %v2693_v0 }
  0xa2   :  { %621 = vmatpush.msrb.mxu1 %v2702_v5 }
  0xa4   :  { %622 = vmatpush.msrb.mxu1 %v2711_v9 }
  0xa6   :  { %623 = vmatpush.msrb.mxu1 %v2720_v13 }
  0xa8   :  { %624 = vmatpush.msrb.mxu1 %v2729_v17 }
  0xaa   :  { %625 = vmatpush.msrb.mxu1 %v2738_v21 }
  0xac   :  { %626 = vmatpush.msrb.mxu1 %v2747_v25 }
  0xae   :  { %627 = vmatpush.msrb.mxu1 %v2756_v29 }
  0xb0   :  { %628 = vmatpush.msrb.mxu1 %v2765_v33  ;;  %v264_v33 = vld [vmem:[#allocation3] sm:$0x1] }
  0xb2   :  { %629 = vmatpush.msrb.mxu1 %v2774_v37 }
  0xb4   :  { %v216_v23 = vpop.f32.mrf.mxu1  ;;  %630 = vmatpush.msrb.mxu1 %v2788_v43 }
  0xb5   :  { %v2967_v2 = vadd.f32 %v216_v23, %v172_v35  ;;  %v173_v35 = vperm.slane %v2938_v39, 2 }
  0xb6   :  { %631 = vmatpush.msrb.mxu1 %v2793_v45 }
  0xb7   :  { %4258 = vst [vmem:[#allocation57_spill] sm:$0xff] %v2967_v2 }
  0xb8   :  { %632 = vmatpush.msrb.mxu1 %v2799_v55 }
  0xba   :  { %v236_v19 = vpop.f32.mrf.mxu2  ;;  %633 = vmatpush.msrb.mxu1 %v2805_v6 }
  0xd4   :  { %v389_v23 = vpop.f32.mrf.mxu1 }
  0xd5   :  { %v453_v52 = vadd.f32 %v389_v23, %v2967_v2  ;;  %v3003_v23 = vadd.f32 %v236_v19, %v173_v35  ;;  %v3005_v2 = vld [vmem:[#allocation11 + $0x48] sm:$0xff] }
  0xd6   :  { %4268 = vst [vmem:[#allocation67_spill] sm:$0xff] %v3005_v2  ;;  %446 = vmatpush.msra.mxu0 %v3005_v2  ;;  %652 = vmatpush.msrb.mxu2 %v3005_v2 }
  0xd7   :  { %v2077_v42 = vmul.f32 -1.442695, %v453_v52  ;;  %4267 = vst [vmem:[#allocation66_spill] sm:$0xff] %v3003_v23  ;;  %v3009_v52 = vld [vmem:[#allocation11 + $0x20] sm:$0xff] }
  0xd8   :  { %4270 = vst [vmem:[#allocation69_spill] sm:$0xff] %v3009_v52  ;;  %447 = vmatpush.msra.mxu0 %v3009_v52  ;;  %653 = vmatpush.msrb.mxu2 %v3009_v52 }
  0xd9   :  { %2113 = vpow2.f32 %v2077_v42  ;;  %448 = vmatmul.f32.vlgmr.msra.gmra.mxu0 %v2783_v41 }
  0xda   :  { %v409_v14 = vpop.f32.mrf.mxu2  ;;  %598 = vmatpush.msrb.mxu0 %v2652_v47 }
  0xdb   :  { %v454_v19 = vadd.f32 %v409_v14, %v3003_v23  ;;  %v256_v23 = vpop.f32.mrf.mxu3 }
  0xdc   :  { %599 = vmatpush.msrb.mxu0 %v2658_v51 }
  0xdd   :  { %v2078_v42 = vmul.f32 -1.442695, %v454_v19 }
  0xde   :  { %600 = vmatpush.msrb.mxu0 %v2664_v54 }
  0xdf   :  { %v2114_v35 = vpop.eup %2113  ;;  %2115 = vpow2.f32 %v2078_v42  ;;  %v174_v42 = vperm.slane %v2938_v39, 3 }
  0xe0   :  { %v466_v14 = vadd.f32 1.0, %v2114_v35  ;;  %601 = vmatpush.msrb.mxu0 %v2671_v57 }
  0xe1   :  { %v3039_v52 = vadd.f32 %v256_v23, %v174_v42 }
  0xe2   :  { %2117 = vrcp.f32 %v466_v14  ;;  %602 = vmatpush.msrb.mxu0 %v2680_v60  ;;  %v494_v23 = vand.u32 2147483648, %v466_v14  ;;  %vm488_vm1 = vweird.f32 %v466_v14  ;;  %v492_v42 = vand.u32 2147483647, %v466_v14 }
  0xe3   :  { %4272 = vst [vmem:[#allocation71_spill] sm:$0xff] %v3039_v52  ;;  %v429_v2 = vpop.f32.mrf.mxu3 }
  0xe4   :  { %603 = vmatpush.msrb.mxu0 %v2688_v63  ;;  %v455_v31 = vadd.f32 %v429_v2, %v3039_v52  ;;  %vm493_vm5 = vcmp.eq.f32.partialorder %v492_v42, 8.507059e+37  ;;  %v4288_v42 = vld [vmem:[#allocation29_spill] sm:$0xff] }
  0xe5   :  { %v2116_v41 = vpop.eup %2115 }
  0xe6   :  { %v467_v19 = vadd.f32 1.0, %v2116_v41  ;;  %604 = vmatpush.msrb.mxu0 %v2697_v4 }
  0xe8   :  { %v2118_v35 = vpop.eup %2117  ;;  %2119 = vrcp.f32 %v467_v19  ;;  %605 = vmatpush.msrb.mxu0 %v2706_v8  ;;  %vm503_vm4 = vweird.f32 %v467_v19 }
  0xe9   :  { %v484_v15 = vmul.f32 %v2118_v35, %v466_v14  ;;  %vm489_vm0 = vweird.f32 %v2118_v35  ;;  %2121 = vtanh.f32 %v455_v31 }
  0xea   :  { %606 = vmatpush.msrb.mxu0 %v2715_v12  ;;  %vm3050_vm2 = vmor %vm488_vm1, %vm489_vm0 }
  0xeb   :  { %v485_v27 = vsub.f32 1.0, %v484_v15 }
  0xec   :  { %607 = vmatpush.msrb.mxu0 %v2724_v16 }
  0xed   :  { %v486_v41 = vmul.f32 %v2118_v35, %v485_v27  ;;  %v509_v27 = vand.u32 2147483648, %v467_v19 }
  0xee   :  { %v2120_v38 = vpop.eup %2119  ;;  %608 = vmatpush.msrb.mxu0 %v2733_v20 }
  0xef   :  { %v499_v44 = vmul.f32 %v2120_v38, %v467_v19  ;;  %v487_v17 = vadd.f32 %v2118_v35, %v486_v41  ;;  %vm504_vm3 = vweird.f32 %v2120_v38  ;;  %v507_v41 = vand.u32 2147483647, %v467_v19 }
  0xf0   :  { %609 = vmatpush.msrb.mxu0 %v2742_v24  ;;  %vm505_vm6 = vmor %vm503_vm4, %vm504_vm3  ;;  %v510_v31 = vor.u32 1.1754944e-38, %v509_v27  ;;  %v196_v27 = vpop.f32.mrf.mxu0 }
  0xf1   :  { %v500_v15 = vsub.f32 1.0, %v499_v44  ;;  %v491_v52 = vsel %vm3050_vm2, %v2118_v35, %v487_v17  ;;  %v495_v44 = vor.u32 1.1754944e-38, %v494_v23  ;;  %vm508_vm7 = vcmp.eq.f32.partialorder %v507_v41, 8.507059e+37  ;;  %v2122_v17 = vpop.eup %2121 }
  0xf2   :  { %610 = vmatpush.msrb.mxu0 %v2751_v28 }
  0xf3   :  { %v501_v2 = vmul.f32 %v2120_v38, %v500_v15  ;;  %v496_v20 = vsel %vm493_vm5, %v495_v44, %v491_v52  ;;  %v4287_v52 = vld [vmem:[#allocation36_spill] sm:$0xff] }
  0xf4   :  { %611 = vmatpush.msrb.mxu0 %v2760_v32  ;;  %v514_v23 = vmul.f32 %v496_v20, %v264_v33  ;;  %v4282_v20 = vld [vmem:[#allocation25_spill] sm:$0xff]  ;;  %v4284_v33 = vld [vmem:[#allocation26_spill] sm:$0xff] }
  0xf5   :  { %v502_v14 = vadd.f32 %v2120_v38, %v501_v2  ;;  %v171_v2 = vperm.slane %v2938_v39, 0  ;;  %v3109_v39 = vld [vmem:[%s3998_s5] sm:$0x1] }
  0xf6   :  { %612 = vmatpush.msrb.mxu0 %v2769_v36 }
  0xf7   :  { %v506_v15 = vsel %vm505_vm6, %v2120_v38, %v502_v14  ;;  %v4286_v38 = vld [vmem:[#allocation28_spill] sm:$0xff]  ;;  %v3103_v41 = vadd.f32 %v196_v27, %v171_v2 }
  0xf8   :  { %v511_v25 = vsel %vm508_vm7, %v510_v31, %v506_v15  ;;  %613 = vmatpush.msrb.mxu0 %v2778_v40 }
  0xf9   :  { %v515_v35 = vmul.f32 %v2122_v17, %v511_v25  ;;  %v369_v44 = vpop.f32.mrf.mxu0 }
  0xfa   :  { %771 = vmatpush.msra.mxu0 %v2795_v48  ;;  %v452_v14 = vadd.f32 %v369_v44, %v3103_v41 }
  0xfb   :  { %v3065_v19 = vadd.f32 %v515_v35, %v514_v23 }
  0xfc   :  { %772 = vmatpush.msra.mxu0 %v2801_v1  ;;  %v2076_v31 = vmul.f32 -1.442695, %v452_v14 }
  0xfd   :  { %549 = vmatmul.f32.vlgmr.msra.gmra.mxu1 %v3065_v19 }
  0xfe   :  { %791 = vmatpush.msra.mxu1 %v2650_v46  ;;  %773 = vmatpush.msra.mxu0 %v2807_v10  ;;  %v4275_v46 = vld [vmem:[#allocation30_spill] sm:$0xff]  ;;  %2123 = vpow2.f32 %v2076_v31 }
  0xff   :  { %4289 = vst [vmem:[#allocation30_spill] sm:$0xff] %v3103_v41 }
 0x100   :  { %792 = vmatpush.msra.mxu1 %v2656_v50  ;;  %774 = vmatpush.msra.mxu0 %v2811_v18  ;;  %v4276_v50 = vld [vmem:[#allocation19_spill] sm:$0xff] }
 0x102   :  { %793 = vmatpush.msra.mxu1 %v2662_v53  ;;  %775 = vmatpush.msra.mxu0 %v2816_v22  ;;  %v4277_v53 = vld [vmem:[#allocation31_spill] sm:$0xff] }
 0x104   :  { %794 = vmatpush.msra.mxu1 %v2669_v56  ;;  %776 = vmatpush.msra.mxu0 %v2820_v26  ;;  %v4278_v56 = vld [vmem:[#allocation21_spill] sm:$0xff]  ;;  %v2124_v15 = vpop.eup %2123 }
 0x105   :  { %v465_v17 = vadd.f32 1.0, %v2124_v15 }
 0x106   :  { %795 = vmatpush.msra.mxu1 %v2678_v59  ;;  %777 = vmatpush.msra.mxu0 %v2826_v30  ;;  %v4279_v59 = vld [vmem:[#allocation32_spill] sm:$0xff] }
 0x107   :  { %2125 = vrcp.f32 %v465_v17  ;;  %vm473_vm8 = vweird.f32 %v465_v17  ;;  %v477_v2 = vand.u32 2147483647, %v465_v17 }
 0x108   :  { %796 = vmatpush.msra.mxu1 %v2686_v62  ;;  %778 = vmatpush.msra.mxu0 %v2831_v34  ;;  %v4280_v62 = vld [vmem:[#allocation23_spill] sm:$0xff] }
 0x109   :  { %vm478_vm11 = vcmp.eq.f32.partialorder %v477_v2, 8.507059e+37  ;;  %v4319_v2 = vld [vmem:[#allocation62_spill] sm:$0xff] }
 0x10a   :  { %797 = vmatpush.msra.mxu1 %v2695_v3  ;;  %779 = vmatpush.msra.mxu0 %v2836_v49  ;;  %v4281_v3 = vld [vmem:[#allocation33_spill] sm:$0xff] }
 0x10c   :  { %798 = vmatpush.msra.mxu1 %v2704_v7  ;;  %780 = vmatpush.msra.mxu0 %v4275_v46  ;;  %v4283_v7 = vld [vmem:[#allocation34_spill] sm:$0xff] }
 0x10d   :  { %v2126_v25 = vpop.eup %2125 }
 0x10e   :  { %799 = vmatpush.msra.mxu1 %v2713_v11  ;;  %781 = vmatpush.msra.mxu0 %v4277_v53  ;;  %v4285_v11 = vld [vmem:[#allocation35_spill] sm:$0xff]  ;;  %v469_v35 = vmul.f32 %v2126_v25, %v465_v17  ;;  %vm474_vm9 = vweird.f32 %v2126_v25 }
 0x10f   :  { %vm475_vm10 = vmor %vm473_vm8, %vm474_vm9 }
 0x110   :  { %800 = vmatpush.msra.mxu1 %v4276_v50  ;;  %782 = vmatpush.msra.mxu0 %v4279_v59  ;;  %v470_v23 = vsub.f32 1.0, %v469_v35 }
 0x112   :  { %801 = vmatpush.msra.mxu1 %v4278_v56  ;;  %783 = vmatpush.msra.mxu0 %v4281_v3  ;;  %v471_v56 = vmul.f32 %v2126_v25, %v470_v23  ;;  %v4293_v23 = vld [vmem:[#allocation39_spill] sm:$0xff] }
 0x114   :  { %802 = vmatpush.msra.mxu1 %v4280_v62  ;;  %784 = vmatpush.msra.mxu0 %v4283_v7  ;;  %v472_v27 = vadd.f32 %v2126_v25, %v471_v56  ;;  %v4295_v56 = vld [vmem:[#allocation41_spill] sm:$0xff] }
 0x116   :  { %803 = vmatpush.msra.mxu1 %v4282_v20  ;;  %785 = vmatpush.msra.mxu0 %v4285_v11  ;;  %v476_v14 = vsel %vm475_vm10, %v2126_v25, %v472_v27  ;;  %v4292_v25 = vld [vmem:[#allocation38_spill] sm:$0xff] }
 0x117   :  { %v4315_v27 = vld [vmem:[#allocation58_spill] sm:$0xff] }
 0x118   :  { %804 = vmatpush.msra.mxu1 %v4284_v33  ;;  %786 = vmatpush.msra.mxu0 %v4287_v52  ;;  %v479_v33 = vand.u32 2147483648, %v465_v17  ;;  %v4291_v17 = vld [vmem:[#allocation37_spill] sm:$0xff] }
 0x11a   :  { %805 = vmatpush.msra.mxu1 %v4286_v38  ;;  %v480_v44 = vor.u32 1.1754944e-38, %v479_v33  ;;  %v4312_v33 = vld [vmem:[#allocation27_spill] sm:$0xff] }
 0x11c   :  { %806 = vmatpush.msra.mxu1 %v4288_v42  ;;  %v481_v15 = vsel %vm478_vm11, %v480_v44, %v476_v14  ;;  %v4320_v44 = vld [vmem:[#allocation63_spill] sm:$0xff]  ;;  %v4326_v14 = vld [vmem:[#allocation70_spill] sm:$0xff] }
 0x156   :  { %v449_v50 = vpop.f32.mrf.mxu0 }
 0x17a   :  { %v550_v62 = vpop.f32.mrf.mxu1 }
 0x17b   :  { %v553_v20 = vadd.f32 %v550_v62, %v449_v50  ;;  %v4294_v50 = vld [vmem:[#allocation40_spill] sm:$0xff] }
 0x17c   :  { %v4307_v62 = vld [vmem:[#allocation24_spill] sm:$0xff] }
 0x17d   :  { %v555_v38 = vadd.f32 %v3109_v39, %v553_v20  ;;  %v4309_v20 = vld [vmem:[#allocation53_spill] sm:$0xff] }
 0x17f   :  { %2127 = vtanh.f32 %v555_v38  ;;  %v4314_v38 = vld [vmem:[#allocation22_spill] sm:$0xff] }
 0x185   :  { %v2128_v31 = vpop.eup %2127 }
 0x186   :  { %v3112_v35 = vmul.f32 %v2128_v31, %v481_v15  ;;  %v4329_v31 = vld [vmem:[#allocation71_spill] sm:$0xff] }
 0x188   :  { %4290 = vst [vmem:[#allocation19_spill] sm:$0xff] %v3112_v35  ;;  %574 = vmatmul.f32.vlgmr.msra.gmra.mxu2 %v3112_v35  ;;  %594 = vmatmul.f32.vlgmr.msra.gmra.mxu3 %v3112_v35 }
 0x189   :  { %614 = vmatmul.f32.vlgmr.msrb.gmra.mxu0 %v3112_v35  ;;  %634 = vmatmul.f32.vlgmr.msrb.gmra.mxu1 %v3112_v35 }
 0x18a   :  { %811 = vmatpush.msra.mxu2 %v2652_v47  ;;  %831 = vmatpush.msra.mxu3 %v2676_v58  ;;  %v4296_v47 = vld [vmem:[#allocation42_spill] sm:$0xff]  ;;  %v4298_v58 = vld [vmem:[#allocation44_spill] sm:$0xff] }
 0x18b   :  { %851 = vmatpush.msrb.mxu0 %v4291_v17  ;;  %953 = vmatpush.msrb.mxu1 %v4292_v25 }
 0x18c   :  { %812 = vmatpush.msra.mxu2 %v2658_v51  ;;  %832 = vmatpush.msra.mxu3 %v2684_v61  ;;  %v4297_v51 = vld [vmem:[#allocation43_spill] sm:$0xff]  ;;  %v4300_v61 = vld [vmem:[#allocation46_spill] sm:$0xff] }
 0x18d   :  { %852 = vmatpush.msrb.mxu0 %v4293_v23  ;;  %954 = vmatpush.msrb.mxu1 %v4294_v50 }
 0x18e   :  { %813 = vmatpush.msra.mxu2 %v2664_v54  ;;  %833 = vmatpush.msra.mxu3 %v2693_v0  ;;  %v4299_v54 = vld [vmem:[#allocation45_spill] sm:$0xff]  ;;  %v4301_v0 = vld [vmem:[#allocation47_spill] sm:$0xff] }
 0x18f   :  { %853 = vmatpush.msrb.mxu0 %v4295_v56  ;;  %955 = vmatpush.msrb.mxu1 %v4296_v47 }
 0x190   :  { %654 = vmatmul.f32.vlgmr.msrb.gmra.mxu2 %v3112_v35  ;;  %834 = vmatpush.msra.mxu3 %v2702_v5  ;;  %v4302_v5 = vld [vmem:[#allocation20_spill] sm:$0xff] }
 0x191   :  { %814 = vmatpush.msra.mxu2 %v2671_v57  ;;  %854 = vmatpush.msrb.mxu0 %v4297_v51  ;;  %v4303_v57 = vld [vmem:[#allocation48_spill] sm:$0xff] }
 0x192   :  { %835 = vmatpush.msra.mxu3 %v2711_v9  ;;  %956 = vmatpush.msrb.mxu1 %v4298_v58  ;;  %v4304_v9 = vld [vmem:[#allocation49_spill] sm:$0xff] }
 0x193   :  { %815 = vmatpush.msra.mxu2 %v2680_v60  ;;  %855 = vmatpush.msrb.mxu0 %v4299_v54  ;;  %v4305_v60 = vld [vmem:[#allocation50_spill] sm:$0xff] }
 0x194   :  { %836 = vmatpush.msra.mxu3 %v2720_v13  ;;  %957 = vmatpush.msrb.mxu1 %v4300_v61  ;;  %v4306_v13 = vld [vmem:[#allocation51_spill] sm:$0xff] }
 0x195   :  { %816 = vmatpush.msra.mxu2 %v2688_v63  ;;  %856 = vmatpush.msrb.mxu0 %v4301_v0  ;;  %v4308_v63 = vld [vmem:[#allocation52_spill] sm:$0xff] }
 0x196   :  { %837 = vmatpush.msra.mxu3 %v4302_v5  ;;  %958 = vmatpush.msrb.mxu1 %v4303_v57 }
 0x197   :  { %817 = vmatpush.msra.mxu2 %v2697_v4  ;;  %857 = vmatpush.msrb.mxu0 %v4304_v9  ;;  %v4310_v4 = vld [vmem:[#allocation54_spill] sm:$0xff] }
 0x198   :  { %838 = vmatpush.msra.mxu3 %v2738_v21  ;;  %959 = vmatpush.msrb.mxu1 %v4305_v60  ;;  %v4311_v21 = vld [vmem:[#allocation55_spill] sm:$0xff] }
 0x199   :  { %818 = vmatpush.msra.mxu2 %v2706_v8  ;;  %858 = vmatpush.msrb.mxu0 %v4306_v13  ;;  %v4313_v8 = vld [vmem:[#allocation56_spill] sm:$0xff] }
 0x19a   :  { %839 = vmatpush.msra.mxu3 %v4307_v62  ;;  %960 = vmatpush.msrb.mxu1 %v4308_v63 }
 0x19b   :  { %819 = vmatpush.msra.mxu2 %v2715_v12  ;;  %859 = vmatpush.msrb.mxu0 %v4309_v20  ;;  %v4316_v12 = vld [vmem:[#allocation59_spill] sm:$0xff] }
 0x19c   :  { %840 = vmatpush.msra.mxu3 %v2756_v29  ;;  %961 = vmatpush.msrb.mxu1 %v4310_v4  ;;  %v4317_v29 = vld [vmem:[#allocation60_spill] sm:$0xff] }
 0x19d   :  { %820 = vmatpush.msra.mxu2 %v2724_v16  ;;  %860 = vmatpush.msrb.mxu0 %v4311_v21  ;;  %v4318_v16 = vld [vmem:[#allocation61_spill] sm:$0xff] }
 0x19e   :  { %841 = vmatpush.msra.mxu3 %v4312_v33  ;;  %962 = vmatpush.msrb.mxu1 %v4313_v8 }
 0x19f   :  { %821 = vmatpush.msra.mxu2 %v4314_v38  ;;  %861 = vmatpush.msrb.mxu0 %v4315_v27 }
 0x1a0   :  { %842 = vmatpush.msra.mxu3 %v2774_v37  ;;  %963 = vmatpush.msrb.mxu1 %v4316_v12  ;;  %v4321_v37 = vld [vmem:[#allocation64_spill] sm:$0xff] }
 0x1a1   :  { %822 = vmatpush.msra.mxu2 %v2742_v24  ;;  %862 = vmatpush.msrb.mxu0 %v4317_v29  ;;  %v4322_v24 = vld [vmem:[#allocation65_spill] sm:$0xff] }
 0x1a2   :  { %843 = vmatpush.msra.mxu3 %v2788_v43  ;;  %964 = vmatpush.msrb.mxu1 %v4318_v16  ;;  %v4323_v43 = vld [vmem:[#allocation67_spill] sm:$0xff] }
 0x1a3   :  { %823 = vmatpush.msra.mxu2 %v2751_v28  ;;  %863 = vmatpush.msrb.mxu0 %v4319_v2  ;;  %v4324_v28 = vld [vmem:[#allocation68_spill] sm:$0xff] }
 0x1a4   :  { %844 = vmatpush.msra.mxu3 %v2793_v45  ;;  %965 = vmatpush.msrb.mxu1 %v4320_v44  ;;  %v4325_v45 = vld [vmem:[#allocation69_spill] sm:$0xff] }
 0x1a5   :  { %824 = vmatpush.msra.mxu2 %v2760_v32  ;;  %864 = vmatpush.msrb.mxu0 %v4321_v37 }
 0x1a6   :  { %845 = vmatpush.msra.mxu3 %v2799_v55  ;;  %966 = vmatpush.msrb.mxu1 %v4322_v24 }
 0x1a7   :  { %825 = vmatpush.msra.mxu2 %v2769_v36  ;;  %865 = vmatpush.msrb.mxu0 %v4323_v43 }
 0x1a8   :  { %846 = vmatpush.msra.mxu3 %v2805_v6  ;;  %967 = vmatpush.msrb.mxu1 %v4324_v28 }
 0x1a9   :  { %826 = vmatpush.msra.mxu2 %v2778_v40  ;;  %866 = vmatpush.msrb.mxu0 %v4325_v45  ;;  %v4327_v40 = vld [vmem:[#allocation66_spill] sm:$0xff] }
 0x1aa   :  { %968 = vmatpush.msrb.mxu1 %v4326_v14 }
 0x1ab   :  { %983 = vmatpush.msrb.mxu2 %v2795_v48 }
 0x1ad   :  { %984 = vmatpush.msrb.mxu2 %v2801_v1 }
 0x1af   :  { %985 = vmatpush.msrb.mxu2 %v2807_v10  ;;  %v4328_v10 = vld [vmem:[#allocation57_spill] sm:$0xff] }
 0x1b1   :  { %986 = vmatpush.msrb.mxu2 %v2811_v18 }
 0x1b3   :  { %987 = vmatpush.msrb.mxu2 %v2816_v22 }
 0x1b5   :  { %988 = vmatpush.msrb.mxu2 %v2820_v26 }
 0x1b7   :  { %989 = vmatpush.msrb.mxu2 %v2826_v30 }
 0x1b9   :  { %990 = vmatpush.msrb.mxu2 %v2831_v34 }
 0x1bb   :  { %991 = vmatpush.msrb.mxu2 %v2836_v49 }
 0x1bd   :  { %992 = vmatpush.msrb.mxu2 %v4275_v46 }
 0x1bf   :  { %993 = vmatpush.msrb.mxu2 %v4277_v53 }
 0x1c1   :  { %994 = vmatpush.msrb.mxu2 %v4279_v59 }
 0x1c3   :  { %995 = vmatpush.msrb.mxu2 %v4281_v3 }
 0x1c5   :  { %996 = vmatpush.msrb.mxu2 %v4283_v7 }
 0x1c7   :  { %997 = vmatpush.msrb.mxu2 %v4285_v11 }
 0x1c9   :  { %998 = vmatpush.msrb.mxu2 %v4287_v52 }
 0x206   :  { %v615_v32 = vpop.f32.mrf.mxu0  ;;  %v635_v46 = vpop.f32.mrf.mxu1 }
 0x207   :  { %v664_v36 = vrot.slane %v615_v32, 7  ;;  %v665_v3 = vrot.slane %v635_v46, 7 }
 0x209   :  { %v672_v48 = vadd.f32 %v664_v36, %v4327_v40  ;;  %v673_v15 = vadd.f32 %v665_v3, %v4329_v31 }
 0x20b   :  { %v2081_v55 = vmul.f32 -1.442695, %v672_v48  ;;  %v595_v1 = vpop.f32.mrf.mxu3 }
 0x20c   :  { %v663_v6 = vrot.slane %v595_v1, 7 }
 0x20d   :  { %2129 = vpow2.f32 %v2081_v55 }
 0x20e   :  { %v671_v18 = vadd.f32 %v663_v6, %v4328_v10 }
 0x210   :  { %v2080_v22 = vmul.f32 -1.442695, %v671_v18 }
 0x212   :  { %2131 = vpow2.f32 %v2080_v22 }
 0x213   :  { %v2130_v26 = vpop.eup %2129 }
 0x214   :  { %v685_v30 = vadd.f32 1.0, %v2130_v26 }
 0x216   :  { %2133 = vrcp.f32 %v685_v30  ;;  %v727_v33 = vand.u32 2147483648, %v685_v30  ;;  %vm721_vm13 = vweird.f32 %v685_v30  ;;  %v725_v38 = vand.u32 2147483647, %v685_v30 }
 0x218   :  { %v2132_v34 = vpop.eup %2131  ;;  %v728_v6 = vor.u32 1.1754944e-38, %v727_v33  ;;  %vm726_vm0 = vcmp.eq.f32.partialorder %v725_v38, 8.507059e+37  ;;  %v3224_v33 = vld [vmem:[#allocation11 + $0x170] sm:$0xff]  ;;  %v3227_v38 = vld [vmem:[#allocation11 + $0x148] sm:$0xff] }
 0x219   :  { %v684_v49 = vadd.f32 1.0, %v2132_v34  ;;  %v733_v34 = vrot.slane %v3065_v19, 7  ;;  %v3212_v19 = vld [vmem:[#allocation11 + $0x210] sm:$0xff] }
 0x21b   :  { %2135 = vrcp.f32 %v684_v49  ;;  %v712_v36 = vand.u32 2147483648, %v684_v49  ;;  %v710_v1 = vand.u32 2147483647, %v684_v49  ;;  %vm706_vm1 = vweird.f32 %v684_v49 }
 0x21c   :  { %v2134_v53 = vpop.eup %2133  ;;  %2137 = vtanh.f32 %v673_v15  ;;  %v3206_v15 = vld [vmem:[#allocation11 + $0x260] sm:$0xff] }
 0x21d   :  { %v717_v59 = vmul.f32 %v2134_v53, %v685_v30  ;;  %vm722_vm12 = vweird.f32 %v2134_v53  ;;  %v713_v26 = vor.u32 1.1754944e-38, %v712_v36  ;;  %vm711_vm3 = vcmp.eq.f32.partialorder %v710_v1, 8.507059e+37  ;;  %v3233_v36 = vld [vmem:[#allocation11 + $0xf8] sm:$0xff]  ;;  %v3242_v1 = vld [vmem:[#allocation11 + $0x80] sm:$0xff] }
 0x21e   :  { %vm723_vm14 = vmor %vm721_vm13, %vm722_vm12  ;;  %4332 = vst [vmem:[#allocation32_spill] sm:$0xff] %v3242_v1 }
 0x21f   :  { %v718_v7 = vsub.f32 1.0, %v717_v59 }
 0x221   :  { %v719_v11 = vmul.f32 %v2134_v53, %v718_v7  ;;  %v2136_v52 = vpop.eup %2135 }
 0x222   :  { %v702_v62 = vmul.f32 %v2136_v52, %v684_v49  ;;  %vm707_vm15 = vweird.f32 %v2136_v52  ;;  %v2138_v30 = vpop.eup %2137  ;;  %v3209_v49 = vld [vmem:[#allocation11 + $0x238] sm:$0xff] }
 0x223   :  { %v720_v5 = vadd.f32 %v2134_v53, %v719_v11  ;;  %vm708_vm2 = vmor %vm706_vm1, %vm707_vm15 }
 0x224   :  { %v703_v32 = vsub.f32 1.0, %v702_v62  ;;  %v3221_v62 = vld [vmem:[#allocation11 + $0x198] sm:$0xff] }
 0x225   :  { %v724_v48 = vsel %vm723_vm14, %v2134_v53, %v720_v5  ;;  %v3218_v5 = vld [vmem:[#allocation11 + $0x1c0] sm:$0xff] }
 0x226   :  { %v704_v55 = vmul.f32 %v2136_v52, %v703_v32  ;;  %v729_v22 = vsel %vm726_vm0, %v728_v6, %v724_v48  ;;  %v3230_v32 = vld [vmem:[#allocation11 + $0x120] sm:$0xff]  ;;  %v3236_v48 = vld [vmem:[#allocation11 + $0xd0] sm:$0xff]  ;;  %v3245_v6 = vld [vmem:[#allocation11 + $0x58] sm:$0xff] }
 0x227   :  { %v736_v3 = vmul.f32 %v2138_v30, %v729_v22  ;;  %4330 = vst [vmem:[#allocation31_spill] sm:$0xff] %v3236_v48  ;;  %v575_v22 = vpop.f32.mrf.mxu2 }
 0x228   :  { %v705_v18 = vadd.f32 %v2136_v52, %v704_v55  ;;  %v3239_v55 = vld [vmem:[#allocation11 + $0xa8] sm:$0xff]  ;;  %4333 = vst [vmem:[#allocation23_spill] sm:$0xff] %v3245_v6 }
 0x229   :  { %4331 = vst [vmem:[#allocation21_spill] sm:$0xff] %v3239_v55 }
 0x22a   :  { %v709_v46 = vsel %vm708_vm2, %v2136_v52, %v705_v18  ;;  %v3215_v52 = vld [vmem:[#allocation11 + $0x1e8] sm:$0xff]  ;;  %v3248_v18 = vld [vmem:[#allocation11 + $0x30] sm:$0xff] }
 0x22b   :  { %v714_v59 = vsel %vm711_vm3, %v713_v26, %v709_v46  ;;  %4334 = vst [vmem:[#allocation33_spill] sm:$0xff] %v3248_v18  ;;  %v662_v26 = vrot.slane %v575_v22, 7  ;;  %vm2040_vm3 = vcmask 1040384  }
 0x22c   :  { %v735_v7 = vmul.f32 %v733_v34, %v714_v59 }
 0x22d   :  { %v670_v34 = vadd.f32 %v662_v26, %v3103_v41 }
 0x22e   :  { %v3203_v11 = vadd.f32 %v736_v3, %v735_v7 }
 0x22f   :  { %v2079_v46 = vmul.f32 -1.442695, %v670_v34  ;;  %v655_v35 = vpop.f32.mrf.mxu2 }
 0x230   :  { %v739_v53 = vrot.slane %v3203_v11, 1 }
 0x231   :  { %2139 = vpow2.f32 %v2079_v46 }
 0x232   :  { %757 = vmatmul.f32.vlgmr.msrb.gmra.mxu3 %v739_v53 }
 0x233   :  { %1003 = vmatpush.msrb.mxu3 %v3206_v15 }
 0x235   :  { %1004 = vmatpush.msrb.mxu3 %v3209_v49 }
 0x237   :  { %1005 = vmatpush.msrb.mxu3 %v3212_v19  ;;  %v2140_v30 = vpop.eup %2139 }
 0x238   :  { %v683_v59 = vadd.f32 1.0, %v2140_v30 }
 0x239   :  { %1006 = vmatpush.msrb.mxu3 %v3215_v52 }
 0x23a   :  { %2141 = vrcp.f32 %v683_v59  ;;  %v697_v22 = vand.u32 2147483648, %v683_v59  ;;  %vm691_vm5 = vweird.f32 %v683_v59  ;;  %v695_v26 = vand.u32 2147483647, %v683_v59 }
 0x23b   :  { %1007 = vmatpush.msrb.mxu3 %v3218_v5 }
 0x23c   :  { %v698_v30 = vor.u32 1.1754944e-38, %v697_v22  ;;  %vm696_vm7 = vcmp.eq.f32.partialorder %v695_v26, 8.507059e+37  ;;  %v3415_v22 = vld [vmem:[#allocation11 + $0xc8] sm:$0xff]  ;;  %v3418_v26 = vld [vmem:[#allocation11 + $0xa0] sm:$0xff] }
 0x23d   :  { %1008 = vmatpush.msrb.mxu3 %v3221_v62  ;;  %4364 = vst [vmem:[#allocation56_spill] sm:$0xff] %v3415_v22 }
 0x23e   :  { %4365 = vst [vmem:[#allocation22_spill] sm:$0xff] %v3418_v26 }
 0x23f   :  { %1009 = vmatpush.msrb.mxu3 %v3224_v33 }
 0x240   :  { %v2142_v3 = vpop.eup %2141 }
 0x241   :  { %1010 = vmatpush.msrb.mxu3 %v3227_v38  ;;  %v687_v7 = vmul.f32 %v2142_v3, %v683_v59  ;;  %vm692_vm4 = vweird.f32 %v2142_v3  ;;  %v3397_v59 = vld [vmem:[#allocation11 + $0x1b8] sm:$0xff] }
 0x242   :  { %vm693_vm6 = vmor %vm691_vm5, %vm692_vm4  ;;  %4358 = vst [vmem:[#allocation24_spill] sm:$0xff] %v3397_v59  ;;  %vm2042_vm5 = vcmask 1041408  }
 0x243   :  { %1011 = vmatpush.msrb.mxu3 %v3230_v32  ;;  %v688_v53 = vsub.f32 1.0, %v687_v7 }
 0x245   :  { %1012 = vmatpush.msrb.mxu3 %v3233_v36 }
 0x247   :  { %1013 = vmatpush.msrb.mxu3 %v3236_v48 }
 0x249   :  { %1014 = vmatpush.msrb.mxu3 %v3239_v55  ;;  %v689_v55 = vmul.f32 %v2142_v3, %v688_v53  ;;  %v3409_v53 = vld [vmem:[#allocation11 + $0x118] sm:$0xff] }
 0x24a   :  { %4362 = vst [vmem:[#allocation55_spill] sm:$0xff] %v3409_v53 }
 0x24b   :  { %1015 = vmatpush.msrb.mxu3 %v3242_v1 }
 0x24d   :  { %1016 = vmatpush.msrb.mxu3 %v3245_v6 }
 0x24f   :  { %1017 = vmatpush.msrb.mxu3 %v3248_v18 }
 0x251   :  { %1018 = vmatpush.msrb.mxu3 %v4288_v42  ;;  %v690_v42 = vadd.f32 %v2142_v3, %v689_v55  ;;  %v3257_v55 = vld [vmem:[#allocation11 + $0x268] sm:$0xff] }
 0x253   :  { %v694_v34 = vsel %vm693_vm6, %v2142_v3, %v690_v42  ;;  %v3406_v3 = vld [vmem:[#allocation11 + $0x140] sm:$0xff]  ;;  %v3412_v42 = vld [vmem:[#allocation11 + $0xf0] sm:$0xff] }
 0x254   :  { %v699_v48 = vsel %vm696_vm7, %v698_v30, %v694_v34  ;;  %4361 = vst [vmem:[#allocation54_spill] sm:$0xff] %v3406_v3  ;;  %v3421_v34 = vld [vmem:[#allocation11 + $0x78] sm:$0xff]  ;;  %v3427_v30 = vld [vmem:[#allocation11 + $0x28] sm:$0xff] }
 0x255   :  { %4363 = vst [vmem:[#allocation27_spill] sm:$0xff] %v3412_v42 }
 0x256   :  { %4366 = vst [vmem:[#allocation58_spill] sm:$0xff] %v3421_v34 }
 0x257   :  { %4368 = vst [vmem:[#allocation60_spill] sm:$0xff] %v3427_v30 }
 0x2b5   :  { %v758_v6 = vpop.f32.mrf.mxu3 }
 0x2b6   :  { %v761_v1 = vadd.f32 %v758_v6, %v655_v35  ;;  %v3273_v6 = vld [vmem:[#allocation11 + $0x218] sm:$0xff] }
 0x2b8   :  { %v762_v18 = vadd.f32 %v761_v1, %v3109_v39  ;;  %v3260_v1 = vld [vmem:[#allocation11 + $0x270] sm:$0xff] }
 0x2ba   :  { %2143 = vtanh.f32 %v762_v18  ;;  %v3276_v18 = vld [vmem:[#allocation11 + $0x220] sm:$0xff] }
 0x2c0   :  { %v2144_v46 = vpop.eup %2143 }
 0x2c1   :  { %v765_v41 = vrot.slane %v2144_v46, 7  ;;  %v3424_v46 = vld [vmem:[#allocation11 + $0x50] sm:$0xff] }
 0x2c2   :  { %4367 = vst [vmem:[#allocation59_spill] sm:$0xff] %v3424_v46 }
 0x2c3   :  { %v3254_v7 = vmul.f32 %v765_v41, %v699_v48  ;;  %v3265_v41 = vld [vmem:[#allocation11 + $0x240] sm:$0xff]  ;;  %v3268_v48 = vld [vmem:[#allocation11 + $0x248] sm:$0xff] }
 0x2c5   :  { %v769_v35 = vrot.slane %v3254_v7, 1 }
 0x2c7   :  { %787 = vmatmul.f32.vlgmr.msra.gmra.mxu0 %v769_v35  ;;  %807 = vmatmul.f32.vlgmr.msra.gmra.mxu1 %v769_v35 }
 0x2c8   :  { %827 = vmatmul.f32.vlgmr.msra.gmra.mxu2 %v769_v35  ;;  %847 = vmatmul.f32.vlgmr.msra.gmra.mxu3 %v769_v35 }
 0x2c9   :  { %1023 = vmatpush.msra.mxu0 %v3257_v55  ;;  %1043 = vmatpush.msra.mxu1 %v3260_v1 }
 0x2ca   :  { %1063 = vmatpush.msra.mxu2 %v4291_v17  ;;  %1165 = vmatpush.msra.mxu3 %v4292_v25  ;;  %v3281_v17 = vld [vmem:[#allocation11 + $0x1f8] sm:$0xff]  ;;  %v3284_v25 = vld [vmem:[#allocation11 + $0x1f0] sm:$0xff] }
 0x2cb   :  { %1024 = vmatpush.msra.mxu0 %v3265_v41  ;;  %1044 = vmatpush.msra.mxu1 %v3268_v48 }
 0x2cc   :  { %1064 = vmatpush.msra.mxu2 %v4293_v23  ;;  %1166 = vmatpush.msra.mxu3 %v4294_v50  ;;  %v3288_v23 = vld [vmem:[#allocation11 + $0x1d0] sm:$0xff]  ;;  %v3292_v50 = vld [vmem:[#allocation11 + $0x1c8] sm:$0xff] }
 0x2cd   :  { %1025 = vmatpush.msra.mxu0 %v3273_v6  ;;  %1045 = vmatpush.msra.mxu1 %v3276_v18 }
 0x2ce   :  { %1065 = vmatpush.msra.mxu2 %v4295_v56  ;;  %1167 = vmatpush.msra.mxu3 %v4296_v47  ;;  %v3296_v56 = vld [vmem:[#allocation11 + $0x1a8] sm:$0xff]  ;;  %v3300_v47 = vld [vmem:[#allocation11 + $0x1a0] sm:$0xff] }
 0x2cf   :  { %867 = vmatmul.f32.vlgmr.msrb.gmra.mxu0 %v769_v35  ;;  %1046 = vmatpush.msra.mxu1 %v3281_v17  ;;  %v3430_v35 = vld [vmem:[#allocation11] sm:$0xff] }
 0x2d0   :  { %1026 = vmatpush.msra.mxu0 %v3284_v25  ;;  %1066 = vmatpush.msra.mxu2 %v4297_v51  ;;  %v3304_v51 = vld [vmem:[#allocation11 + $0x180] sm:$0xff]  ;;  %4369 = vst [vmem:[#allocation61_spill] sm:$0xff] %v3430_v35 }
 0x2d1   :  { %1047 = vmatpush.msra.mxu1 %v3288_v23  ;;  %1168 = vmatpush.msra.mxu3 %v4298_v58  ;;  %v3308_v58 = vld [vmem:[#allocation11 + $0x178] sm:$0xff] }
 0x2d2   :  { %1027 = vmatpush.msra.mxu0 %v3292_v50  ;;  %1067 = vmatpush.msra.mxu2 %v4299_v54  ;;  %4335 = vst [vmem:[#allocation25_spill] sm:$0xff] %v3308_v58  ;;  %v3312_v54 = vld [vmem:[#allocation11 + $0x158] sm:$0xff] }
 0x2d3   :  { %1048 = vmatpush.msra.mxu1 %v3296_v56  ;;  %1169 = vmatpush.msra.mxu3 %v4300_v61  ;;  %4336 = vst [vmem:[#allocation34_spill] sm:$0xff] %v3312_v54  ;;  %v3316_v61 = vld [vmem:[#allocation11 + $0x150] sm:$0xff] }
 0x2d4   :  { %1028 = vmatpush.msra.mxu0 %v3300_v47  ;;  %1068 = vmatpush.msra.mxu2 %v4301_v0  ;;  %4337 = vst [vmem:[#allocation26_spill] sm:$0xff] %v3316_v61  ;;  %v3320_v0 = vld [vmem:[#allocation11 + $0x130] sm:$0xff] }
 0x2d5   :  { %1049 = vmatpush.msra.mxu1 %v3304_v51  ;;  %1170 = vmatpush.msra.mxu3 %v4303_v57  ;;  %4338 = vst [vmem:[#allocation35_spill] sm:$0xff] %v3320_v0  ;;  %v3324_v57 = vld [vmem:[#allocation11 + $0x128] sm:$0xff] }
 0x2d6   :  { %1029 = vmatpush.msra.mxu0 %v3308_v58  ;;  %1069 = vmatpush.msra.mxu2 %v4304_v9  ;;  %4339 = vst [vmem:[#allocation28_spill] sm:$0xff] %v3324_v57  ;;  %v3328_v9 = vld [vmem:[#allocation11 + $0x108] sm:$0xff] }
 0x2d7   :  { %1050 = vmatpush.msra.mxu1 %v3312_v54  ;;  %1171 = vmatpush.msra.mxu3 %v4305_v60  ;;  %4340 = vst [vmem:[#allocation36_spill] sm:$0xff] %v3328_v9  ;;  %v3332_v60 = vld [vmem:[#allocation11 + $0x100] sm:$0xff] }
 0x2d8   :  { %1030 = vmatpush.msra.mxu0 %v3316_v61  ;;  %1070 = vmatpush.msra.mxu2 %v4306_v13  ;;  %4341 = vst [vmem:[#allocation29_spill] sm:$0xff] %v3332_v60  ;;  %v3336_v13 = vld [vmem:[#allocation11 + $0xe0] sm:$0xff] }
 0x2d9   :  { %1051 = vmatpush.msra.mxu1 %v3320_v0  ;;  %1172 = vmatpush.msra.mxu3 %v4308_v63  ;;  %4342 = vst [vmem:[#allocation37_spill] sm:$0xff] %v3336_v13  ;;  %v3340_v63 = vld [vmem:[#allocation11 + $0xd8] sm:$0xff] }
 0x2da   :  { %1031 = vmatpush.msra.mxu0 %v3324_v57  ;;  %1071 = vmatpush.msra.mxu2 %v4309_v20  ;;  %4343 = vst [vmem:[#allocation38_spill] sm:$0xff] %v3340_v63  ;;  %v3344_v20 = vld [vmem:[#allocation11 + $0xb8] sm:$0xff] }
 0x2db   :  { %1052 = vmatpush.msra.mxu1 %v3328_v9  ;;  %1173 = vmatpush.msra.mxu3 %v4310_v4  ;;  %4344 = vst [vmem:[#allocation39_spill] sm:$0xff] %v3344_v20  ;;  %v3348_v4 = vld [vmem:[#allocation11 + $0xb0] sm:$0xff] }
 0x2dc   :  { %1032 = vmatpush.msra.mxu0 %v3332_v60  ;;  %1072 = vmatpush.msra.mxu2 %v4311_v21  ;;  %4345 = vst [vmem:[#allocation40_spill] sm:$0xff] %v3348_v4  ;;  %v3352_v21 = vld [vmem:[#allocation11 + $0x90] sm:$0xff] }
 0x2dd   :  { %1053 = vmatpush.msra.mxu1 %v3336_v13  ;;  %1174 = vmatpush.msra.mxu3 %v4313_v8  ;;  %4346 = vst [vmem:[#allocation41_spill] sm:$0xff] %v3352_v21  ;;  %v3356_v8 = vld [vmem:[#allocation11 + $0x88] sm:$0xff] }
 0x2de   :  { %1033 = vmatpush.msra.mxu0 %v3340_v63  ;;  %1073 = vmatpush.msra.mxu2 %v4315_v27  ;;  %4347 = vst [vmem:[#allocation42_spill] sm:$0xff] %v3356_v8  ;;  %v3360_v27 = vld [vmem:[#allocation11 + $0x68] sm:$0xff] }
 0x2df   :  { %1054 = vmatpush.msra.mxu1 %v3344_v20  ;;  %1175 = vmatpush.msra.mxu3 %v4316_v12  ;;  %4348 = vst [vmem:[#allocation43_spill] sm:$0xff] %v3360_v27  ;;  %v3364_v12 = vld [vmem:[#allocation11 + $0x60] sm:$0xff] }
 0x2e0   :  { %1034 = vmatpush.msra.mxu0 %v3348_v4  ;;  %1074 = vmatpush.msra.mxu2 %v4317_v29  ;;  %4349 = vst [vmem:[#allocation44_spill] sm:$0xff] %v3364_v12  ;;  %v3368_v29 = vld [vmem:[#allocation11 + $0x40] sm:$0xff] }
 0x2e1   :  { %1055 = vmatpush.msra.mxu1 %v3352_v21  ;;  %1176 = vmatpush.msra.mxu3 %v4318_v16  ;;  %4350 = vst [vmem:[#allocation45_spill] sm:$0xff] %v3368_v29  ;;  %v3372_v16 = vld [vmem:[#allocation11 + $0x38] sm:$0xff] }
 0x2e2   :  { %1035 = vmatpush.msra.mxu0 %v3356_v8  ;;  %1075 = vmatpush.msra.mxu2 %v4319_v2  ;;  %4351 = vst [vmem:[#allocation46_spill] sm:$0xff] %v3372_v16  ;;  %v3376_v2 = vld [vmem:[#allocation11 + $0x18] sm:$0xff] }
 0x2e3   :  { %1056 = vmatpush.msra.mxu1 %v3360_v27  ;;  %1177 = vmatpush.msra.mxu3 %v4320_v44  ;;  %4352 = vst [vmem:[#allocation47_spill] sm:$0xff] %v3376_v2  ;;  %v3380_v44 = vld [vmem:[#allocation11 + $0x10] sm:$0xff] }
 0x2e4   :  { %1036 = vmatpush.msra.mxu0 %v3364_v12  ;;  %1076 = vmatpush.msra.mxu2 %v4321_v37  ;;  %4353 = vst [vmem:[#allocation20_spill] sm:$0xff] %v3380_v44  ;;  %v3385_v37 = vld [vmem:[#allocation11 + $0x258] sm:$0xff] }
 0x2e5   :  { %1057 = vmatpush.msra.mxu1 %v3368_v29  ;;  %1178 = vmatpush.msra.mxu3 %v4322_v24  ;;  %4354 = vst [vmem:[#allocation48_spill] sm:$0xff] %v3385_v37  ;;  %v3388_v24 = vld [vmem:[#allocation11 + $0x230] sm:$0xff] }
 0x2e6   :  { %1037 = vmatpush.msra.mxu0 %v3372_v16  ;;  %1077 = vmatpush.msra.mxu2 %v4323_v43  ;;  %4355 = vst [vmem:[#allocation49_spill] sm:$0xff] %v3388_v24  ;;  %v3391_v43 = vld [vmem:[#allocation11 + $0x208] sm:$0xff] }
 0x2e7   :  { %1058 = vmatpush.msra.mxu1 %v3376_v2  ;;  %1179 = vmatpush.msra.mxu3 %v4324_v28  ;;  %4356 = vst [vmem:[#allocation50_spill] sm:$0xff] %v3391_v43  ;;  %v3394_v28 = vld [vmem:[#allocation11 + $0x1e0] sm:$0xff] }
 0x2e8   :  { %1038 = vmatpush.msra.mxu0 %v3380_v44  ;;  %1078 = vmatpush.msra.mxu2 %v4325_v45  ;;  %4357 = vst [vmem:[#allocation51_spill] sm:$0xff] %v3394_v28  ;;  %v3400_v45 = vld [vmem:[#allocation11 + $0x190] sm:$0xff] }
 0x2e9   :  { %1180 = vmatpush.msra.mxu3 %v4326_v14  ;;  %4359 = vst [vmem:[#allocation52_spill] sm:$0xff] %v3400_v45  ;;  %v3403_v14 = vld [vmem:[#allocation11 + $0x168] sm:$0xff] }
 0x2ea   :  { %1195 = vmatpush.msrb.mxu0 %v3385_v37  ;;  %4360 = vst [vmem:[#allocation53_spill] sm:$0xff] %v3403_v14 }
 0x2ec   :  { %1196 = vmatpush.msrb.mxu0 %v3388_v24 }
 0x2ee   :  { %1197 = vmatpush.msrb.mxu0 %v3391_v43 }
 0x2f0   :  { %1198 = vmatpush.msrb.mxu0 %v3394_v28 }
 0x2f2   :  { %1199 = vmatpush.msrb.mxu0 %v3397_v59 }
 0x2f4   :  { %1200 = vmatpush.msrb.mxu0 %v3400_v45 }
 0x2f6   :  { %1201 = vmatpush.msrb.mxu0 %v3403_v14 }
 0x2f8   :  { %1202 = vmatpush.msrb.mxu0 %v3406_v3 }
 0x2fa   :  { %1203 = vmatpush.msrb.mxu0 %v3409_v53 }
 0x2fc   :  { %1204 = vmatpush.msrb.mxu0 %v3412_v42 }
 0x2fe   :  { %1205 = vmatpush.msrb.mxu0 %v3415_v22 }
 0x300   :  { %1206 = vmatpush.msrb.mxu0 %v3418_v26 }
 0x302   :  { %1207 = vmatpush.msrb.mxu0 %v3421_v34 }
 0x304   :  { %1208 = vmatpush.msrb.mxu0 %v3424_v46 }
 0x306   :  { %1209 = vmatpush.msrb.mxu0 %v3427_v30 }
 0x308   :  { %1210 = vmatpush.msrb.mxu0 %v3430_v35 }
 0x344   :  { %v808_v22 = vpop.f32.mrf.mxu1 }
 0x345   :  { %v876_v42 = vrot.slane %v808_v22, 6 }
 0x347   :  { %v884_v26 = vadd.f32 %v876_v42, %v4328_v10 }
 0x349   :  { %v2083_v53 = vmul.f32 -1.442695, %v884_v26 }
 0x34b   :  { %v828_v3 = vpop.f32.mrf.mxu2  ;;  %2145 = vpow2.f32 %v2083_v53  ;;  %v848_v43 = vpop.f32.mrf.mxu3 }
 0x34c   :  { %v877_v34 = vrot.slane %v828_v3, 6  ;;  %v878_v22 = vrot.slane %v848_v43, 6 }
 0x34e   :  { %v885_v14 = vadd.f32 %v877_v34, %v4327_v40  ;;  %v886_v53 = vadd.f32 %v878_v22, %v4329_v31 }
 0x350   :  { %v2084_v45 = vmul.f32 -1.442695, %v885_v14 }
 0x351   :  { %v2146_v46 = vpop.eup %2145 }
 0x352   :  { %2147 = vpow2.f32 %v2084_v45  ;;  %v897_v59 = vadd.f32 1.0, %v2146_v46 }
 0x354   :  { %2149 = vrcp.f32 %v897_v59  ;;  %v925_v14 = vand.u32 2147483648, %v897_v59  ;;  %vm919_vm9 = vweird.f32 %v897_v59  ;;  %v923_v34 = vand.u32 2147483647, %v897_v59 }
 0x356   :  { %v926_v43 = vor.u32 1.1754944e-38, %v925_v14  ;;  %vm924_vm13 = vcmp.eq.f32.partialorder %v923_v34, 8.507059e+37 }
 0x358   :  { %v2148_v30 = vpop.eup %2147 }
 0x359   :  { %v898_v28 = vadd.f32 1.0, %v2148_v30 }
 0x35a   :  { %v2150_v24 = vpop.eup %2149 }
 0x35b   :  { %2151 = vrcp.f32 %v898_v28  ;;  %v915_v35 = vmul.f32 %v2150_v24, %v897_v59  ;;  %vm920_vm8 = vweird.f32 %v2150_v24  ;;  %v940_v46 = vand.u32 2147483648, %v898_v28 }
 0x35c   :  { %2153 = vtanh.f32 %v886_v53  ;;  %vm921_vm10 = vmor %vm919_vm9, %vm920_vm8  ;;  %v938_v40 = vand.u32 2147483647, %v898_v28  ;;  %vm934_vm12 = vweird.f32 %v898_v28 }
 0x35d   :  { %v916_v37 = vsub.f32 1.0, %v915_v35 }
 0x35e   :  { %vm939_vm15 = vcmp.eq.f32.partialorder %v938_v40, 8.507059e+37  ;;  %v4370_v40 = vld [vmem:[#allocation31_spill] sm:$0xff] }
 0x35f   :  { %v917_v42 = vmul.f32 %v2150_v24, %v916_v37  ;;  %v941_v37 = vor.u32 1.1754944e-38, %v940_v46 }
 0x361   :  { %v2152_v26 = vpop.eup %2151  ;;  %v918_v10 = vadd.f32 %v2150_v24, %v917_v42  ;;  %v945_v42 = vrot.slane %v3203_v11, 7  ;;  %v4373_v11 = vld [vmem:[#allocation23_spill] sm:$0xff] }
 0x362   :  { %v930_v3 = vmul.f32 %v2152_v26, %v898_v28  ;;  %vm935_vm11 = vweird.f32 %v2152_v26 }
 0x363   :  { %v922_v44 = vsel %vm921_vm10, %v2150_v24, %v918_v10  ;;  %vm936_vm14 = vmor %vm934_vm12, %vm935_vm11  ;;  %v4371_v10 = vld [vmem:[#allocation21_spill] sm:$0xff]  ;;  %v788_v24 = vpop.f32.mrf.mxu0 }
 0x364   :  { %v931_v45 = vsub.f32 1.0, %v930_v3  ;;  %v927_v22 = vsel %vm924_vm13, %v926_v43, %v922_v44  ;;  %v2154_v3 = vpop.eup %2153  ;;  %v3455_v44 = vld [vmem:[#allocation11 + $0x8] sm:$0xff]  ;;  %v875_v28 = vrot.slane %v788_v24, 6 }
 0x365   :  { %v947_v53 = vmul.f32 %v945_v42, %v927_v22  ;;  %4375 = vst [vmem:[#allocation62_spill] sm:$0xff] %v3455_v44 }
 0x366   :  { %v932_v30 = vmul.f32 %v2152_v26, %v931_v45 }
 0x368   :  { %v933_v35 = vadd.f32 %v2152_v26, %v932_v30 }
 0x36a   :  { %v937_v31 = vsel %vm936_vm14, %v2152_v26, %v933_v35  ;;  %v4376_v26 = vld [vmem:[#allocation30_spill] sm:$0xff] }
 0x36b   :  { %v942_v59 = vsel %vm939_vm15, %v941_v37, %v937_v31  ;;  %v4372_v31 = vld [vmem:[#allocation32_spill] sm:$0xff]  ;;  %v883_v14 = vadd.f32 %v875_v28, %v4376_v26  ;;  %v868_v22 = vpop.f32.mrf.mxu0 }
 0x36c   :  { %v948_v2 = vmul.f32 %v2154_v3, %v942_v59 }
 0x36d   :  { %v2082_v34 = vmul.f32 -1.442695, %v883_v14 }
 0x36e   :  { %v3437_v16 = vadd.f32 %v948_v2, %v947_v53  ;;  %v4374_v2 = vld [vmem:[#allocation33_spill] sm:$0xff] }
 0x36f   :  { %2155 = vpow2.f32 %v2082_v34 }
 0x370   :  { %v951_v45 = vrot.slane %v3437_v16, 2 }
 0x372   :  { %969 = vmatmul.f32.vlgmr.msrb.gmra.mxu1 %v951_v45 }
 0x373   :  { %1215 = vmatpush.msrb.mxu1 %v3206_v15 }
 0x375   :  { %1216 = vmatpush.msrb.mxu1 %v3209_v49  ;;  %v2156_v46 = vpop.eup %2155 }
 0x376   :  { %v896_v30 = vadd.f32 1.0, %v2156_v46 }
 0x377   :  { %1217 = vmatpush.msrb.mxu1 %v3212_v19 }
 0x378   :  { %2157 = vrcp.f32 %v896_v30  ;;  %v910_v24 = vand.u32 2147483648, %v896_v30  ;;  %vm904_vm1 = vweird.f32 %v896_v30  ;;  %v908_v28 = vand.u32 2147483647, %v896_v30 }
 0x379   :  { %1218 = vmatpush.msrb.mxu1 %v3215_v52 }
 0x37a   :  { %v911_v46 = vor.u32 1.1754944e-38, %v910_v24  ;;  %vm909_vm4 = vcmp.eq.f32.partialorder %v908_v28, 8.507059e+37  ;;  %v3502_v24 = vld [vmem:[#allocation13 + $0x58] sm:$0xff]  ;;  %v3506_v28 = vld [vmem:[#allocation11 + $0x1b0] sm:$0xff] }
 0x37b   :  { %1219 = vmatpush.msrb.mxu1 %v3218_v5 }
 0x37d   :  { %1220 = vmatpush.msrb.mxu1 %v3221_v62 }
 0x37e   :  { %v2158_v43 = vpop.eup %2157 }
 0x37f   :  { %1221 = vmatpush.msrb.mxu1 %v3224_v33  ;;  %v900_v35 = vmul.f32 %v2158_v43, %v896_v30  ;;  %vm905_vm0 = vweird.f32 %v2158_v43  ;;  %v3466_v30 = vld [vmem:[#allocation11 + $0x278] sm:$0xff] }
 0x380   :  { %vm906_vm2 = vmor %vm904_vm1, %vm905_vm0 }
 0x381   :  { %1222 = vmatpush.msrb.mxu1 %v3227_v38  ;;  %v901_v37 = vsub.f32 1.0, %v900_v35 }
 0x383   :  { %1223 = vmatpush.msrb.mxu1 %v3230_v32  ;;  %v902_v59 = vmul.f32 %v2158_v43, %v901_v37  ;;  %v4377_v37 = vld [vmem:[#allocation19_spill] sm:$0xff] }
 0x385   :  { %1224 = vmatpush.msrb.mxu1 %v3233_v36  ;;  %v903_v45 = vadd.f32 %v2158_v43, %v902_v59  ;;  %v3490_v59 = vld [vmem:[#allocation11 + $0x200] sm:$0xff] }
 0x387   :  { %1225 = vmatpush.msrb.mxu1 %v4370_v40  ;;  %v907_v14 = vsel %vm906_vm2, %v2158_v43, %v903_v45  ;;  %v3469_v43 = vld [vmem:[#allocation13 + $0x78] sm:$0xff]  ;;  %vm2044_vm2 = vcmask 1042432  }
 0x388   :  { %v912_v35 = vsel %vm909_vm4, %v911_v46, %v907_v14  ;;  %v3498_v45 = vld [vmem:[#allocation11 + $0x1d8] sm:$0xff]  ;;  %v3510_v14 = vld [vmem:[#allocation13 + $0x50] sm:$0xff]  ;;  %v3518_v46 = vld [vmem:[#allocation13 + $0x48] sm:$0xff] }
 0x389   :  { %1226 = vmatpush.msrb.mxu1 %v4371_v10  ;;  %4379 = vst [vmem:[#allocation64_spill] sm:$0xff] %v3518_v46 }
 0x38b   :  { %1227 = vmatpush.msrb.mxu1 %v4372_v31 }
 0x38d   :  { %1228 = vmatpush.msrb.mxu1 %v4373_v11 }
 0x38f   :  { %1229 = vmatpush.msrb.mxu1 %v4374_v2 }
 0x391   :  { %1230 = vmatpush.msrb.mxu1 %v3455_v44 }
 0x3ef   :  { %v970_v42 = vpop.f32.mrf.mxu1 }
 0x3f0   :  { %v973_v3 = vadd.f32 %v970_v42, %v868_v22  ;;  %v2041_v22 = vsel %vm2040_vm3, %v4377_v37, %v3254_v7  ;;  %v3474_v7 = vld [vmem:[#allocation11 + $0x250] sm:$0xff]  ;;  %v3526_v37 = vld [vmem:[#allocation13 + $0x40] sm:$0xff] }
 0x3f1   :  { %4381 = vst [vmem:[#allocation67_spill] sm:$0xff] %v3526_v37 }
 0x3f2   :  { %v974_v53 = vadd.f32 %v973_v3, %v3109_v39  ;;  %v3485_v3 = vld [vmem:[#allocation13 + $0x68] sm:$0xff] }
 0x3f4   :  { %2159 = vtanh.f32 %v974_v53  ;;  %v3494_v53 = vld [vmem:[#allocation13 + $0x60] sm:$0xff] }
 0x3fa   :  { %v2160_v34 = vpop.eup %2159 }
 0x3fb   :  { %v977_v26 = vrot.slane %v2160_v34, 6  ;;  %v3514_v34 = vld [vmem:[#allocation11 + $0x188] sm:$0xff] }
 0x3fc   :  { %4378 = vst [vmem:[#allocation63_spill] sm:$0xff] %v3514_v34 }
 0x3fd   :  { %v979_v44 = vmul.f32 %v977_v26, %v912_v35  ;;  %v3482_v26 = vld [vmem:[#allocation11 + $0x228] sm:$0xff]  ;;  %v3522_v35 = vld [vmem:[#allocation11 + $0x160] sm:$0xff] }
 0x3fe   :  { %4380 = vst [vmem:[#allocation65_spill] sm:$0xff] %v3522_v35 }
 0x3ff   :  { %v981_v39 = vrot.slane %v979_v44, 2  ;;  %v3462_v42 = vsel %vm2042_vm5, %v2041_v22, %v979_v44  ;;  %v3477_v44 = vld [vmem:[#allocation13 + $0x70] sm:$0xff]  ;;  %v3530_v22 = vld [vmem:[#allocation11 + $0x138] sm:$0xff] }
 0x400   :  { %4382 = vst [vmem:[#allocation68_spill] sm:$0xff] %v3530_v22 }
 0x401   :  { %999 = vmatmul.f32.vlgmr.msrb.gmra.mxu2 %v981_v39  ;;  %1019 = vmatmul.f32.vlgmr.msrb.gmra.mxu3 %v981_v39 }
 0x402   :  { %1039 = vmatmul.f32.vlgmr.msra.gmra.mxu0 %v981_v39  ;;  %1059 = vmatmul.f32.vlgmr.msra.gmra.mxu1 %v981_v39 }
 0x403   :  { %1235 = vmatpush.msrb.mxu2 %v3257_v55  ;;  %1255 = vmatpush.msrb.mxu3 %v3260_v1 }
 0x404   :  { %1275 = vmatpush.msra.mxu0 %v3466_v30  ;;  %1377 = vmatpush.msra.mxu1 %v3469_v43 }
 0x405   :  { %1236 = vmatpush.msrb.mxu2 %v3265_v41  ;;  %1256 = vmatpush.msrb.mxu3 %v3268_v48 }
 0x406   :  { %1276 = vmatpush.msra.mxu0 %v3474_v7  ;;  %1378 = vmatpush.msra.mxu1 %v3477_v44 }
 0x407   :  { %1237 = vmatpush.msrb.mxu2 %v3273_v6  ;;  %1257 = vmatpush.msrb.mxu3 %v3276_v18 }
 0x408   :  { %1277 = vmatpush.msra.mxu0 %v3482_v26  ;;  %1379 = vmatpush.msra.mxu1 %v3485_v3 }
 0x409   :  { %1079 = vmatmul.f32.vlgmr.msra.gmra.mxu2 %v981_v39  ;;  %1258 = vmatpush.msrb.mxu3 %v3281_v17  ;;  %v3534_v39 = vld [vmem:[#allocation13 + $0x38] sm:$0xff] }
 0x40a   :  { %1238 = vmatpush.msrb.mxu2 %v3284_v25  ;;  %1278 = vmatpush.msra.mxu0 %v3490_v59  ;;  %4383 = vst [vmem:[#allocation69_spill] sm:$0xff] %v3534_v39 }
 0x40b   :  { %1259 = vmatpush.msrb.mxu3 %v3288_v23  ;;  %1380 = vmatpush.msra.mxu1 %v3494_v53 }
 0x40c   :  { %1239 = vmatpush.msrb.mxu2 %v3292_v50  ;;  %1279 = vmatpush.msra.mxu0 %v3498_v45 }
 0x40d   :  { %1260 = vmatpush.msrb.mxu3 %v3296_v56  ;;  %1381 = vmatpush.msra.mxu1 %v3502_v24 }
 0x40e   :  { %1240 = vmatpush.msrb.mxu2 %v3300_v47  ;;  %1280 = vmatpush.msra.mxu0 %v3506_v28 }
 0x40f   :  { %1261 = vmatpush.msrb.mxu3 %v3304_v51  ;;  %1382 = vmatpush.msra.mxu1 %v3510_v14 }
 0x410   :  { %1241 = vmatpush.msrb.mxu2 %v3308_v58  ;;  %1281 = vmatpush.msra.mxu0 %v3514_v34 }
 0x411   :  { %1262 = vmatpush.msrb.mxu3 %v3312_v54  ;;  %1383 = vmatpush.msra.mxu1 %v3518_v46 }
 0x412   :  { %1242 = vmatpush.msrb.mxu2 %v3316_v61  ;;  %1282 = vmatpush.msra.mxu0 %v3522_v35  ;;  %v3538_v35 = vld [vmem:[#allocation11 + $0x110] sm:$0xff] }
 0x413   :  { %1263 = vmatpush.msrb.mxu3 %v3320_v0  ;;  %1384 = vmatpush.msra.mxu1 %v3526_v37  ;;  %4384 = vst [vmem:[#allocation70_spill] sm:$0xff] %v3538_v35  ;;  %v3542_v37 = vld [vmem:[#allocation13 + $0x30] sm:$0xff] }
 0x414   :  { %1243 = vmatpush.msrb.mxu2 %v3324_v57  ;;  %1283 = vmatpush.msra.mxu0 %v3530_v22  ;;  %4385 = vst [vmem:[#allocation31_spill] sm:$0xff] %v3542_v37  ;;  %v3546_v22 = vld [vmem:[#allocation11 + $0xe8] sm:$0xff] }
 0x415   :  { %1264 = vmatpush.msrb.mxu3 %v3328_v9  ;;  %1385 = vmatpush.msra.mxu1 %v3534_v39  ;;  %4386 = vst [vmem:[#allocation21_spill] sm:$0xff] %v3546_v22  ;;  %v3550_v39 = vld [vmem:[#allocation13 + $0x28] sm:$0xff] }
 0x416   :  { %1244 = vmatpush.msrb.mxu2 %v3332_v60  ;;  %1284 = vmatpush.msra.mxu0 %v3538_v35  ;;  %4387 = vst [vmem:[#allocation32_spill] sm:$0xff] %v3550_v39  ;;  %v3554_v35 = vld [vmem:[#allocation11 + $0xc0] sm:$0xff] }
 0x417   :  { %1265 = vmatpush.msrb.mxu3 %v3336_v13  ;;  %1386 = vmatpush.msra.mxu1 %v3542_v37  ;;  %4388 = vst [vmem:[#allocation23_spill] sm:$0xff] %v3554_v35  ;;  %v3558_v37 = vld [vmem:[#allocation13 + $0x20] sm:$0xff] }
 0x418   :  { %1245 = vmatpush.msrb.mxu2 %v3340_v63  ;;  %1285 = vmatpush.msra.mxu0 %v3546_v22  ;;  %4389 = vst [vmem:[#allocation33_spill] sm:$0xff] %v3558_v37  ;;  %v3562_v22 = vld [vmem:[#allocation11 + $0x98] sm:$0xff]  ;;  %v4417_v63 = vld [vmem:[#allocation66_spill] sm:$0xff] }
 0x419   :  { %1266 = vmatpush.msrb.mxu3 %v3344_v20  ;;  %1387 = vmatpush.msra.mxu1 %v3550_v39  ;;  %4390 = vst [vmem:[#allocation19_spill] sm:$0xff] %v3562_v22  ;;  %v3566_v39 = vld [vmem:[#allocation13 + $0x18] sm:$0xff]  ;;  %v4410_v20 = vld [vmem:[#allocation27_spill] sm:$0xff] }
 0x41a   :  { %1246 = vmatpush.msrb.mxu2 %v3348_v4  ;;  %1286 = vmatpush.msra.mxu0 %v3554_v35  ;;  %4391 = vst [vmem:[#allocation72_spill] sm:$0xff] %v3566_v39  ;;  %v3570_v35 = vld [vmem:[#allocation11 + $0x70] sm:$0xff]  ;;  %v4408_v4 = vld [vmem:[#allocation54_spill] sm:$0xff] }
 0x41b   :  { %1267 = vmatpush.msrb.mxu3 %v3352_v21  ;;  %1388 = vmatpush.msra.mxu1 %v3558_v37  ;;  %4392 = vst [vmem:[#allocation73_spill] sm:$0xff] %v3570_v35  ;;  %v3574_v37 = vld [vmem:[#allocation13 + $0x10] sm:$0xff] }
 0x41c   :  { %1247 = vmatpush.msrb.mxu2 %v3356_v8  ;;  %1287 = vmatpush.msra.mxu0 %v3562_v22  ;;  %4393 = vst [vmem:[#allocation74_spill] sm:$0xff] %v3574_v37  ;;  %v4394_v8 = vld [vmem:[#allocation46_spill] sm:$0xff]  ;;  %v3578_v22 = vld [vmem:[#allocation11 + $0x48] sm:$0xff]  ;;  %v4405_v21 = vld [vmem:[#allocation24_spill] sm:$0xff] }
 0x41d   :  { %1268 = vmatpush.msrb.mxu3 %v3360_v27  ;;  %1389 = vmatpush.msra.mxu1 %v3566_v39  ;;  %4395 = vst [vmem:[#allocation75_spill] sm:$0xff] %v3578_v22  ;;  %v4396_v27 = vld [vmem:[#allocation47_spill] sm:$0xff] }
 0x41e   :  { %1248 = vmatpush.msrb.mxu2 %v3364_v12  ;;  %1288 = vmatpush.msra.mxu0 %v3570_v35  ;;  %v3582_v39 = vld [vmem:[#allocation13 + $0x8] sm:$0xff]  ;;  %v4398_v12 = vld [vmem:[#allocation20_spill] sm:$0xff]  ;;  %v3586_v35 = vld [vmem:[#allocation11 + $0x20] sm:$0xff] }
 0x41f   :  { %1269 = vmatpush.msrb.mxu3 %v3368_v29  ;;  %1390 = vmatpush.msra.mxu1 %v3574_v37  ;;  %4397 = vst [vmem:[#allocation76_spill] sm:$0xff] %v3582_v39  ;;  %v3589_v29 = vld [vmem:[#allocation13] sm:$0xff]  ;;  %v4402_v37 = vld [vmem:[#allocation49_spill] sm:$0xff] }
 0x420   :  { %1249 = vmatpush.msrb.mxu2 %v4394_v8  ;;  %1289 = vmatpush.msra.mxu0 %v3578_v22  ;;  %4399 = vst [vmem:[#allocation77_spill] sm:$0xff] %v3586_v35  ;;  %v4401_v8 = vld [vmem:[#allocation48_spill] sm:$0xff]  ;;  %v4403_v22 = vld [vmem:[#allocation50_spill] sm:$0xff] }
 0x421   :  { %1270 = vmatpush.msrb.mxu3 %v4396_v27  ;;  %1391 = vmatpush.msra.mxu1 %v3582_v39  ;;  %4400 = vst [vmem:[#allocation78_spill] sm:$0xff] %v3589_v29  ;;  %v4404_v27 = vld [vmem:[#allocation51_spill] sm:$0xff]  ;;  %v4406_v39 = vld [vmem:[#allocation52_spill] sm:$0xff] }
 0x422   :  { %1250 = vmatpush.msrb.mxu2 %v4398_v12  ;;  %1290 = vmatpush.msra.mxu0 %v3586_v35  ;;  %v4407_v12 = vld [vmem:[#allocation53_spill] sm:$0xff]  ;;  %v4409_v35 = vld [vmem:[#allocation55_spill] sm:$0xff] }
 0x423   :  { %1392 = vmatpush.msra.mxu1 %v3589_v29  ;;  %v4411_v29 = vld [vmem:[#allocation56_spill] sm:$0xff] }
 0x424   :  { %1407 = vmatpush.msra.mxu2 %v4401_v8  ;;  %v4412_v8 = vld [vmem:[#allocation22_spill] sm:$0xff] }
 0x426   :  { %1408 = vmatpush.msra.mxu2 %v4402_v37  ;;  %v4413_v37 = vld [vmem:[#allocation58_spill] sm:$0xff] }
 0x428   :  { %1409 = vmatpush.msra.mxu2 %v4403_v22  ;;  %v4414_v22 = vld [vmem:[#allocation59_spill] sm:$0xff] }
 0x42a   :  { %1410 = vmatpush.msra.mxu2 %v4404_v27  ;;  %v4415_v27 = vld [vmem:[#allocation60_spill] sm:$0xff] }
 0x42c   :  { %1411 = vmatpush.msra.mxu2 %v4405_v21  ;;  %v4416_v21 = vld [vmem:[#allocation61_spill] sm:$0xff] }
 0x42e   :  { %1412 = vmatpush.msra.mxu2 %v4406_v39 }
 0x430   :  { %1413 = vmatpush.msra.mxu2 %v4407_v12 }
 0x432   :  { %1414 = vmatpush.msra.mxu2 %v4408_v4 }
 0x434   :  { %1415 = vmatpush.msra.mxu2 %v4409_v35 }
 0x436   :  { %1416 = vmatpush.msra.mxu2 %v4410_v20  ;;  %v4418_v20 = vld [vmem:[#allocation57_spill] sm:$0xff] }
 0x438   :  { %1417 = vmatpush.msra.mxu2 %v4411_v29 }
 0x43a   :  { %1418 = vmatpush.msra.mxu2 %v4412_v8 }
 0x43c   :  { %1419 = vmatpush.msra.mxu2 %v4413_v37 }
 0x43e   :  { %1420 = vmatpush.msra.mxu2 %v4414_v22 }
 0x440   :  { %1421 = vmatpush.msra.mxu2 %v4415_v27 }
 0x442   :  { %1422 = vmatpush.msra.mxu2 %v4416_v21 }
 0x47f   :  { %v1040_v39 = vpop.f32.mrf.mxu0  ;;  %v1060_v27 = vpop.f32.mrf.mxu1 }
 0x480   :  { %v1089_v12 = vrot.slane %v1040_v39, 5  ;;  %v1090_v39 = vrot.slane %v1060_v27, 5 }
 0x482   :  { %v1097_v4 = vadd.f32 %v1089_v12, %v4417_v63  ;;  %v4419_v63 = vld [vmem:[#allocation71_spill] sm:$0xff] }
 0x484   :  { %v2087_v13 = vmul.f32 -1.442695, %v1097_v4  ;;  %v1020_v35 = vpop.f32.mrf.mxu3 }
 0x485   :  { %v1088_v60 = vrot.slane %v1020_v35, 5  ;;  %v1098_v35 = vadd.f32 %v1090_v39, %v4419_v63 }
 0x486   :  { %2161 = vpow2.f32 %v2087_v13 }
 0x487   :  { %v1096_v29 = vadd.f32 %v1088_v60, %v4418_v20 }
 0x489   :  { %v2086_v9 = vmul.f32 -1.442695, %v1096_v29 }
 0x48b   :  { %2163 = vpow2.f32 %v2086_v9 }
 0x48c   :  { %v2162_v8 = vpop.eup %2161 }
 0x48d   :  { %v1110_v37 = vadd.f32 1.0, %v2162_v8 }
 0x48f   :  { %2165 = vrcp.f32 %v1110_v37  ;;  %v1152_v29 = vand.u32 2147483648, %v1110_v37  ;;  %vm1146_vm7 = vweird.f32 %v1110_v37  ;;  %v1150_v9 = vand.u32 2147483647, %v1110_v37 }
 0x491   :  { %v2164_v22 = vpop.eup %2163  ;;  %v1153_v27 = vor.u32 1.1754944e-38, %v1152_v29  ;;  %vm1151_vm10 = vcmp.eq.f32.partialorder %v1150_v9, 8.507059e+37 }
 0x492   :  { %v1109_v57 = vadd.f32 1.0, %v2164_v22 }
 0x494   :  { %2167 = vrcp.f32 %v1109_v57  ;;  %v1137_v22 = vand.u32 2147483648, %v1109_v57  ;;  %v1135_v54 = vand.u32 2147483647, %v1109_v57  ;;  %vm1131_vm11 = vweird.f32 %v1109_v57 }
 0x495   :  { %v2166_v0 = vpop.eup %2165  ;;  %2169 = vtanh.f32 %v1098_v35 }
 0x496   :  { %v1142_v21 = vmul.f32 %v2166_v0, %v1110_v37  ;;  %vm1147_vm6 = vweird.f32 %v2166_v0  ;;  %v1138_v39 = vor.u32 1.1754944e-38, %v1137_v22  ;;  %vm1136_vm13 = vcmp.eq.f32.partialorder %v1135_v54, 8.507059e+37 }
 0x497   :  { %vm1148_vm8 = vmor %vm1146_vm7, %vm1147_vm6 }
 0x498   :  { %v1143_v61 = vsub.f32 1.0, %v1142_v21 }
 0x49a   :  { %v1144_v12 = vmul.f32 %v2166_v0, %v1143_v61  ;;  %v2168_v4 = vpop.eup %2167 }
 0x49b   :  { %v1127_v60 = vmul.f32 %v2168_v4, %v1109_v57  ;;  %vm1132_vm9 = vweird.f32 %v2168_v4  ;;  %v2170_v37 = vpop.eup %2169 }
 0x49c   :  { %v1145_v13 = vadd.f32 %v2166_v0, %v1144_v12  ;;  %vm1133_vm12 = vmor %vm1131_vm11, %vm1132_vm9  ;;  %v1157_v12 = vrot.slane %v3437_v16, 7 }
 0x49d   :  { %v1128_v8 = vsub.f32 1.0, %v1127_v60 }
 0x49e   :  { %v1149_v20 = vsel %vm1148_vm8, %v2166_v0, %v1145_v13 }
 0x49f   :  { %v1129_v46 = vmul.f32 %v2168_v4, %v1128_v8  ;;  %v1154_v21 = vsel %vm1151_vm10, %v1153_v27, %v1149_v20  ;;  %v4436_v27 = vld [vmem:[#allocation37_spill] sm:$0xff] }
 0x4a0   :  { %v1160_v34 = vmul.f32 %v2170_v37, %v1154_v21  ;;  %v4438_v21 = vld [vmem:[#allocation38_spill] sm:$0xff]  ;;  %v4441_v37 = vld [vmem:[#allocation32_spill] sm:$0xff] }
 0x4a1   :  { %v1130_v61 = vadd.f32 %v2168_v4, %v1129_v46 }
 0x4a3   :  { %v1134_v63 = vsel %vm1133_vm12, %v2168_v4, %v1130_v61  ;;  %v4437_v61 = vld [vmem:[#allocation31_spill] sm:$0xff] }
 0x4a4   :  { %v1139_v60 = vsel %vm1136_vm13, %v1138_v39, %v1134_v63  ;;  %v4439_v39 = vld [vmem:[#allocation21_spill] sm:$0xff] }
 0x4a5   :  { %v1159_v35 = vmul.f32 %v1157_v12, %v1139_v60  ;;  %v4440_v12 = vld [vmem:[#allocation39_spill] sm:$0xff]  ;;  %v4442_v60 = vld [vmem:[#allocation40_spill] sm:$0xff] }
 0x4a7   :  { %v3612_v58 = vadd.f32 %v1160_v34, %v1159_v35  ;;  %v4443_v35 = vld [vmem:[#allocation23_spill] sm:$0xff] }
 0x4a9   :  { %v1163_v0 = vrot.slane %v3612_v58, 3 }
 0x4ab   :  { %1181 = vmatmul.f32.vlgmr.msra.gmra.mxu3 %v1163_v0  ;;  %v4444_v0 = vld [vmem:[#allocation41_spill] sm:$0xff] }
 0x4ac   :  { %1427 = vmatpush.msra.mxu3 %v3206_v15  ;;  %v4420_v15 = vld [vmem:[#allocation62_spill] sm:$0xff] }
 0x4ae   :  { %1428 = vmatpush.msra.mxu3 %v3209_v49  ;;  %v1000_v49 = vpop.f32.mrf.mxu2 }
 0x4b0   :  { %1429 = vmatpush.msra.mxu3 %v3212_v19  ;;  %v1087_v19 = vrot.slane %v1000_v49, 5  ;;  %v4445_v49 = vld [vmem:[#allocation33_spill] sm:$0xff] }
 0x4b2   :  { %1430 = vmatpush.msra.mxu3 %v3215_v52  ;;  %v4421_v52 = vld [vmem:[#allocation30_spill] sm:$0xff] }
 0x4b4   :  { %1431 = vmatpush.msra.mxu3 %v3218_v5  ;;  %v1095_v5 = vadd.f32 %v1087_v19, %v4421_v52  ;;  %v4446_v19 = vld [vmem:[#allocation42_spill] sm:$0xff] }
 0x4b6   :  { %1432 = vmatpush.msra.mxu3 %v3221_v62  ;;  %v2085_v62 = vmul.f32 -1.442695, %v1095_v5  ;;  %v1080_v57 = vpop.f32.mrf.mxu2  ;;  %v4447_v5 = vld [vmem:[#allocation19_spill] sm:$0xff] }
 0x4b8   :  { %1433 = vmatpush.msra.mxu3 %v3224_v33  ;;  %2171 = vpow2.f32 %v2085_v62  ;;  %v4448_v62 = vld [vmem:[#allocation43_spill] sm:$0xff] }
 0x4ba   :  { %1434 = vmatpush.msra.mxu3 %v3227_v38 }
 0x4bc   :  { %1435 = vmatpush.msra.mxu3 %v3230_v32 }
 0x4be   :  { %1436 = vmatpush.msra.mxu3 %v3233_v36  ;;  %v2172_v33 = vpop.eup %2171 }
 0x4bf   :  { %v1108_v38 = vadd.f32 1.0, %v2172_v33  ;;  %v4449_v33 = vld [vmem:[#allocation72_spill] sm:$0xff] }
 0x4c0   :  { %1437 = vmatpush.msra.mxu3 %v4370_v40  ;;  %v3635_v40 = vld [vmem:[%s3998_s5] sm:$0x1] }
 0x4c1   :  { %2173 = vrcp.f32 %v1108_v38  ;;  %vm1116_vm15 = vweird.f32 %v1108_v38 }
 0x4c2   :  { %1438 = vmatpush.msra.mxu3 %v4371_v10 }
 0x4c4   :  { %1439 = vmatpush.msra.mxu3 %v4372_v31 }
 0x4c6   :  { %1440 = vmatpush.msra.mxu3 %v4373_v11  ;;  %v1122_v11 = vand.u32 2147483648, %v1108_v38 }
 0x4c7   :  { %v2174_v32 = vpop.eup %2173 }
 0x4c8   :  { %1441 = vmatpush.msra.mxu3 %v4374_v2  ;;  %v1112_v36 = vmul.f32 %v2174_v32, %v1108_v38  ;;  %vm1117_vm14 = vweird.f32 %v2174_v32  ;;  %v1120_v2 = vand.u32 2147483647, %v1108_v38  ;;  %v1123_v4 = vor.u32 1.1754944e-38, %v1122_v11  ;;  %v4450_v38 = vld [vmem:[#allocation44_spill] sm:$0xff]  ;;  %v4460_v11 = vld [vmem:[#allocation78_spill] sm:$0xff] }
 0x4c9   :  { %vm1118_vm0 = vmor %vm1116_vm15, %vm1117_vm14  ;;  %vm2046_vm15 = vcmask 1043456  }
 0x4ca   :  { %1442 = vmatpush.msra.mxu3 %v4420_v15  ;;  %v1113_v54 = vsub.f32 1.0, %v1112_v36  ;;  %vm1121_vm1 = vcmp.eq.f32.partialorder %v1120_v2, 8.507059e+37  ;;  %v4452_v36 = vld [vmem:[#allocation45_spill] sm:$0xff]  ;;  %v4461_v2 = vld [vmem:[#allocation48_spill] sm:$0xff] }
 0x4cc   :  { %v1114_v16 = vmul.f32 %v2174_v32, %v1113_v54  ;;  %v4453_v54 = vld [vmem:[#allocation74_spill] sm:$0xff] }
 0x4ce   :  { %v1115_v31 = vadd.f32 %v2174_v32, %v1114_v16  ;;  %v4457_v16 = vld [vmem:[#allocation76_spill] sm:$0xff] }
 0x4d0   :  { %v1119_v34 = vsel %vm1118_vm0, %v2174_v32, %v1115_v31  ;;  %v4451_v32 = vld [vmem:[#allocation73_spill] sm:$0xff] }
 0x4d1   :  { %v1124_v29 = vsel %vm1121_vm1, %v1123_v4, %v1119_v34  ;;  %v4459_v31 = vld [vmem:[#allocation77_spill] sm:$0xff]  ;;  %v4464_v4 = vld [vmem:[#allocation51_spill] sm:$0xff] }
 0x4d2   :  { %v4462_v34 = vld [vmem:[#allocation49_spill] sm:$0xff] }
 0x52e   :  { %v1182_v63 = vpop.f32.mrf.mxu3 }
 0x52f   :  { %v1185_v20 = vadd.f32 %v1182_v63, %v1080_v57  ;;  %v4454_v57 = vld [vmem:[#allocation46_spill] sm:$0xff]  ;;  %v4455_v63 = vld [vmem:[#allocation75_spill] sm:$0xff] }
 0x531   :  { %v1186_v10 = vadd.f32 %v3635_v40, %v1185_v20  ;;  %v4456_v20 = vld [vmem:[#allocation47_spill] sm:$0xff] }
 0x533   :  { %2175 = vtanh.f32 %v1186_v10  ;;  %v4458_v10 = vld [vmem:[#allocation20_spill] sm:$0xff] }
 0x539   :  { %v2176_v46 = vpop.eup %2175 }
 0x53a   :  { %v1189_v13 = vrot.slane %v2176_v46, 5  ;;  %v4463_v46 = vld [vmem:[#allocation50_spill] sm:$0xff] }
 0x53c   :  { %v1191_v9 = vmul.f32 %v1189_v13, %v1124_v29  ;;  %v4465_v13 = vld [vmem:[#allocation24_spill] sm:$0xff] }
 0x53d   :  { %v4466_v29 = vld [vmem:[#allocation52_spill] sm:$0xff] }
 0x53e   :  { %v1193_v8 = vrot.slane %v1191_v9, 3  ;;  %v3639_v22 = vsel %vm2044_vm2, %v3462_v42, %v1191_v9  ;;  %v4435_v42 = vld [vmem:[#allocation70_spill] sm:$0xff]  ;;  %v4467_v9 = vld [vmem:[#allocation53_spill] sm:$0xff] }
 0x540   :  { %1211 = vmatmul.f32.vlgmr.msrb.gmra.mxu0 %v1193_v8  ;;  %1231 = vmatmul.f32.vlgmr.msrb.gmra.mxu1 %v1193_v8 }
 0x541   :  { %1251 = vmatmul.f32.vlgmr.msrb.gmra.mxu2 %v1193_v8  ;;  %1271 = vmatmul.f32.vlgmr.msrb.gmra.mxu3 %v1193_v8 }
 0x542   :  { %1447 = vmatpush.msrb.mxu0 %v3257_v55  ;;  %1467 = vmatpush.msrb.mxu1 %v3260_v1  ;;  %v4422_v55 = vld [vmem:[#allocation25_spill] sm:$0xff]  ;;  %v4423_v1 = vld [vmem:[#allocation63_spill] sm:$0xff] }
 0x543   :  { %1487 = vmatpush.msrb.mxu2 %v3466_v30  ;;  %1589 = vmatpush.msrb.mxu3 %v3469_v43 }
 0x544   :  { %1448 = vmatpush.msrb.mxu0 %v3265_v41  ;;  %1468 = vmatpush.msrb.mxu1 %v3268_v48  ;;  %v4424_v41 = vld [vmem:[#allocation34_spill] sm:$0xff]  ;;  %v4425_v48 = vld [vmem:[#allocation64_spill] sm:$0xff] }
 0x545   :  { %1488 = vmatpush.msrb.mxu2 %v3474_v7  ;;  %1590 = vmatpush.msrb.mxu3 %v3477_v44 }
 0x546   :  { %1449 = vmatpush.msrb.mxu0 %v3273_v6  ;;  %1469 = vmatpush.msrb.mxu1 %v3276_v18  ;;  %v4426_v6 = vld [vmem:[#allocation26_spill] sm:$0xff]  ;;  %v4427_v18 = vld [vmem:[#allocation65_spill] sm:$0xff] }
 0x547   :  { %1489 = vmatpush.msrb.mxu2 %v3482_v26  ;;  %1591 = vmatpush.msrb.mxu3 %v3485_v3 }
 0x548   :  { %1291 = vmatmul.f32.vlgmr.msra.gmra.mxu0 %v1193_v8  ;;  %1470 = vmatpush.msrb.mxu1 %v3281_v17  ;;  %v4428_v17 = vld [vmem:[#allocation35_spill] sm:$0xff]  ;;  %v4468_v8 = vld [vmem:[#allocation54_spill] sm:$0xff] }
 0x549   :  { %1450 = vmatpush.msrb.mxu0 %v3284_v25  ;;  %1490 = vmatpush.msrb.mxu2 %v3490_v59  ;;  %v4429_v25 = vld [vmem:[#allocation67_spill] sm:$0xff] }
 0x54a   :  { %1471 = vmatpush.msrb.mxu1 %v3288_v23  ;;  %1592 = vmatpush.msrb.mxu3 %v3494_v53  ;;  %v4430_v23 = vld [vmem:[#allocation28_spill] sm:$0xff] }
 0x54b   :  { %1451 = vmatpush.msrb.mxu0 %v3292_v50  ;;  %1491 = vmatpush.msrb.mxu2 %v3498_v45  ;;  %v4431_v50 = vld [vmem:[#allocation68_spill] sm:$0xff] }
 0x54c   :  { %1472 = vmatpush.msrb.mxu1 %v3296_v56  ;;  %1593 = vmatpush.msrb.mxu3 %v3502_v24  ;;  %v4432_v56 = vld [vmem:[#allocation36_spill] sm:$0xff] }
 0x54d   :  { %1452 = vmatpush.msrb.mxu0 %v3300_v47  ;;  %1492 = vmatpush.msrb.mxu2 %v3506_v28  ;;  %v4433_v47 = vld [vmem:[#allocation69_spill] sm:$0xff] }
 0x54e   :  { %1473 = vmatpush.msrb.mxu1 %v3304_v51  ;;  %1594 = vmatpush.msrb.mxu3 %v3510_v14  ;;  %v4434_v51 = vld [vmem:[#allocation29_spill] sm:$0xff] }
 0x54f   :  { %1453 = vmatpush.msrb.mxu0 %v4422_v55  ;;  %1493 = vmatpush.msrb.mxu2 %v4423_v1  ;;  %v4469_v55 = vld [vmem:[#allocation55_spill] sm:$0xff] }
 0x550   :  { %1474 = vmatpush.msrb.mxu1 %v4424_v41  ;;  %1595 = vmatpush.msrb.mxu3 %v4425_v48  ;;  %v4470_v41 = vld [vmem:[#allocation27_spill] sm:$0xff] }
 0x551   :  { %1454 = vmatpush.msrb.mxu0 %v4426_v6  ;;  %1494 = vmatpush.msrb.mxu2 %v4427_v18  ;;  %v4471_v6 = vld [vmem:[#allocation56_spill] sm:$0xff] }
 0x552   :  { %1475 = vmatpush.msrb.mxu1 %v4428_v17  ;;  %1596 = vmatpush.msrb.mxu3 %v4429_v25  ;;  %v4472_v17 = vld [vmem:[#allocation22_spill] sm:$0xff] }
 0x553   :  { %1455 = vmatpush.msrb.mxu0 %v4430_v23  ;;  %1495 = vmatpush.msrb.mxu2 %v4431_v50  ;;  %v4473_v23 = vld [vmem:[#allocation58_spill] sm:$0xff] }
 0x554   :  { %1476 = vmatpush.msrb.mxu1 %v4432_v56  ;;  %1597 = vmatpush.msrb.mxu3 %v4433_v47  ;;  %v4474_v56 = vld [vmem:[#allocation59_spill] sm:$0xff] }
 0x555   :  { %1456 = vmatpush.msrb.mxu0 %v4434_v51  ;;  %1496 = vmatpush.msrb.mxu2 %v4435_v42  ;;  %v4475_v51 = vld [vmem:[#allocation60_spill] sm:$0xff] }
 0x556   :  { %1477 = vmatpush.msrb.mxu1 %v4436_v27  ;;  %1598 = vmatpush.msrb.mxu3 %v4437_v61  ;;  %v4476_v27 = vld [vmem:[#allocation61_spill] sm:$0xff] }
 0x557   :  { %1457 = vmatpush.msrb.mxu0 %v4438_v21  ;;  %1497 = vmatpush.msrb.mxu2 %v4439_v39 }
 0x558   :  { %1478 = vmatpush.msrb.mxu1 %v4440_v12  ;;  %1599 = vmatpush.msrb.mxu3 %v4441_v37 }
 0x559   :  { %1458 = vmatpush.msrb.mxu0 %v4442_v60  ;;  %1498 = vmatpush.msrb.mxu2 %v4443_v35  ;;  %v4477_v60 = vld [vmem:[#allocation57_spill] sm:$0xff] }
 0x55a   :  { %1479 = vmatpush.msrb.mxu1 %v4444_v0  ;;  %1600 = vmatpush.msrb.mxu3 %v4445_v49 }
 0x55b   :  { %1459 = vmatpush.msrb.mxu0 %v4446_v19  ;;  %1499 = vmatpush.msrb.mxu2 %v4447_v5 }
 0x55c   :  { %1480 = vmatpush.msrb.mxu1 %v4448_v62  ;;  %1601 = vmatpush.msrb.mxu3 %v4449_v33 }
 0x55d   :  { %1460 = vmatpush.msrb.mxu0 %v4450_v38  ;;  %1500 = vmatpush.msrb.mxu2 %v4451_v32 }
 0x55e   :  { %1481 = vmatpush.msrb.mxu1 %v4452_v36  ;;  %1602 = vmatpush.msrb.mxu3 %v4453_v54  ;;  %v4478_v36 = vld [vmem:[#allocation66_spill] sm:$0xff] }
 0x55f   :  { %1461 = vmatpush.msrb.mxu0 %v4454_v57  ;;  %1501 = vmatpush.msrb.mxu2 %v4455_v63 }
 0x560   :  { %1482 = vmatpush.msrb.mxu1 %v4456_v20  ;;  %1603 = vmatpush.msrb.mxu3 %v4457_v16 }
 0x561   :  { %1462 = vmatpush.msrb.mxu0 %v4458_v10  ;;  %1502 = vmatpush.msrb.mxu2 %v4459_v31 }
 0x562   :  { %1604 = vmatpush.msrb.mxu3 %v4460_v11 }
 0x563   :  { %1619 = vmatpush.msra.mxu0 %v4461_v2 }
 0x565   :  { %1620 = vmatpush.msra.mxu0 %v4462_v34 }
 0x567   :  { %1621 = vmatpush.msra.mxu0 %v4463_v46 }
 0x569   :  { %1622 = vmatpush.msra.mxu0 %v4464_v4 }
 0x56b   :  { %1623 = vmatpush.msra.mxu0 %v4465_v13 }
 0x56d   :  { %1624 = vmatpush.msra.mxu0 %v4466_v29 }
 0x56f   :  { %1625 = vmatpush.msra.mxu0 %v4467_v9 }
 0x571   :  { %1626 = vmatpush.msra.mxu0 %v4468_v8 }
 0x573   :  { %1627 = vmatpush.msra.mxu0 %v4469_v55 }
 0x575   :  { %1628 = vmatpush.msra.mxu0 %v4470_v41 }
 0x577   :  { %1629 = vmatpush.msra.mxu0 %v4471_v6  ;;  %v4479_v6 = vld [vmem:[#allocation71_spill] sm:$0xff] }
 0x579   :  { %1630 = vmatpush.msra.mxu0 %v4472_v17 }
 0x57b   :  { %1631 = vmatpush.msra.mxu0 %v4473_v23 }
 0x57d   :  { %1632 = vmatpush.msra.mxu0 %v4474_v56 }
 0x57f   :  { %1633 = vmatpush.msra.mxu0 %v4475_v51 }
 0x581   :  { %1634 = vmatpush.msra.mxu0 %v4476_v27 }
 0x5bd   :  { %v1232_v21 = vpop.f32.mrf.mxu1 }
 0x5be   :  { %v1300_v12 = vrot.slane %v1232_v21, 4 }
 0x5c0   :  { %v1308_v0 = vadd.f32 %v1300_v12, %v4477_v60 }
 0x5c2   :  { %v2089_v19 = vmul.f32 -1.442695, %v1308_v0 }
 0x5c4   :  { %v1252_v62 = vpop.f32.mrf.mxu2  ;;  %2177 = vpow2.f32 %v2089_v19  ;;  %v1272_v4 = vpop.f32.mrf.mxu3 }
 0x5c5   :  { %v1301_v38 = vrot.slane %v1252_v62, 4  ;;  %v1302_v9 = vrot.slane %v1272_v4, 4 }
 0x5c7   :  { %v1309_v57 = vadd.f32 %v1301_v38, %v4478_v36  ;;  %v1310_v17 = vadd.f32 %v1302_v9, %v4479_v6 }
 0x5c9   :  { %v2090_v20 = vmul.f32 -1.442695, %v1309_v57 }
 0x5ca   :  { %v2178_v10 = vpop.eup %2177 }
 0x5cb   :  { %2179 = vpow2.f32 %v2090_v20  ;;  %v1321_v2 = vadd.f32 1.0, %v2178_v10 }
 0x5cd   :  { %2181 = vrcp.f32 %v1321_v2  ;;  %v1349_v51 = vand.u32 2147483648, %v1321_v2  ;;  %vm1343_vm4 = vweird.f32 %v1321_v2  ;;  %v1347_v21 = vand.u32 2147483647, %v1321_v2 }
 0x5cf   :  { %v1350_v38 = vor.u32 1.1754944e-38, %v1349_v51  ;;  %vm1348_vm8 = vcmp.eq.f32.partialorder %v1347_v21, 8.507059e+37  ;;  %v3746_v51 = vld [vmem:[#allocation11 + $0x170] sm:$0xff]  ;;  %v3752_v21 = vld [vmem:[#allocation11 + $0x120] sm:$0xff] }
 0x5d0   :  { %4480 = vst [vmem:[#allocation62_spill] sm:$0xff] %v3752_v21 }
 0x5d1   :  { %v2180_v34 = vpop.eup %2179 }
 0x5d2   :  { %v1322_v46 = vadd.f32 1.0, %v2180_v34  ;;  %v1369_v34 = vrot.slane %v3612_v58, 7  ;;  %v3734_v58 = vld [vmem:[#allocation11 + $0x210] sm:$0xff] }
 0x5d3   :  { %v2182_v13 = vpop.eup %2181 }
 0x5d4   :  { %2183 = vrcp.f32 %v1322_v46  ;;  %v1339_v29 = vmul.f32 %v2182_v13, %v1321_v2  ;;  %vm1344_vm3 = vweird.f32 %v2182_v13  ;;  %v1364_v12 = vand.u32 2147483648, %v1322_v46 }
 0x5d5   :  { %2185 = vtanh.f32 %v1310_v17  ;;  %vm1345_vm5 = vmor %vm1343_vm4, %vm1344_vm3  ;;  %v1362_v19 = vand.u32 2147483647, %v1322_v46  ;;  %vm1358_vm7 = vweird.f32 %v1322_v46 }
 0x5d6   :  { %v1340_v8 = vsub.f32 1.0, %v1339_v29  ;;  %v1365_v20 = vor.u32 1.1754944e-38, %v1364_v12  ;;  %v3755_v12 = vld [vmem:[#allocation11 + $0xf8] sm:$0xff] }
 0x5d7   :  { %vm1363_vm10 = vcmp.eq.f32.partialorder %v1362_v19, 8.507059e+37  ;;  %4481 = vst [vmem:[#allocation25_spill] sm:$0xff] %v3755_v12  ;;  %v3761_v19 = vld [vmem:[#allocation11 + $0xa8] sm:$0xff] }
 0x5d8   :  { %v1341_v55 = vmul.f32 %v2182_v13, %v1340_v8  ;;  %4483 = vst [vmem:[#allocation34_spill] sm:$0xff] %v3761_v19 }
 0x5da   :  { %v2184_v41 = vpop.eup %2183  ;;  %v1342_v56 = vadd.f32 %v2182_v13, %v1341_v55 }
 0x5db   :  { %v1354_v23 = vmul.f32 %v2184_v41, %v1322_v46  ;;  %vm1359_vm6 = vweird.f32 %v2184_v41  ;;  %v2186_v29 = vpop.eup %2185  ;;  %v3731_v46 = vld [vmem:[#allocation11 + $0x238] sm:$0xff] }
 0x5dc   :  { %v1346_v62 = vsel %vm1345_vm5, %v2182_v13, %v1342_v56  ;;  %vm1360_vm9 = vmor %vm1358_vm7, %vm1359_vm6  ;;  %v3728_v13 = vld [vmem:[#allocation11 + $0x260] sm:$0xff]  ;;  %v3743_v56 = vld [vmem:[#allocation11 + $0x198] sm:$0xff] }
 0x5dd   :  { %v1355_v27 = vsub.f32 1.0, %v1354_v23  ;;  %v1351_v10 = vsel %vm1348_vm8, %v1350_v38, %v1346_v62  ;;  %v3740_v23 = vld [vmem:[#allocation11 + $0x1c0] sm:$0xff]  ;;  %v3767_v38 = vld [vmem:[#allocation11 + $0x58] sm:$0xff] }
 0x5de   :  { %v1371_v8 = vmul.f32 %v1369_v34, %v1351_v10  ;;  %v3764_v62 = vld [vmem:[#allocation11 + $0x80] sm:$0xff]  ;;  %4485 = vst [vmem:[#allocation26_spill] sm:$0xff] %v3767_v38 }
 0x5df   :  { %v1356_v0 = vmul.f32 %v2184_v41, %v1355_v27  ;;  %v3749_v27 = vld [vmem:[#allocation11 + $0x148] sm:$0xff]  ;;  %4484 = vst [vmem:[#allocation64_spill] sm:$0xff] %v3764_v62 }
 0x5e1   :  { %v1357_v57 = vadd.f32 %v2184_v41, %v1356_v0  ;;  %v3758_v0 = vld [vmem:[#allocation11 + $0xd0] sm:$0xff] }
 0x5e2   :  { %4482 = vst [vmem:[#allocation63_spill] sm:$0xff] %v3758_v0 }
 0x5e3   :  { %v1361_v4 = vsel %vm1360_vm9, %v2184_v41, %v1357_v57  ;;  %v3737_v41 = vld [vmem:[#allocation11 + $0x1e8] sm:$0xff]  ;;  %v3770_v57 = vld [vmem:[#allocation11 + $0x30] sm:$0xff] }
 0x5e4   :  { %v1366_v2 = vsel %vm1363_vm10, %v1365_v20, %v1361_v4  ;;  %4486 = vst [vmem:[#allocation65_spill] sm:$0xff] %v3770_v57  ;;  %v1212_v20 = vpop.f32.mrf.mxu0 }
 0x5e5   :  { %v1372_v9 = vmul.f32 %v2186_v29, %v1366_v2  ;;  %v1299_v10 = vrot.slane %v1212_v20, 4 }
 0x5e7   :  { %v3725_v55 = vadd.f32 %v1372_v9, %v1371_v8  ;;  %v1307_v34 = vadd.f32 %v1299_v10, %v4421_v52 }
 0x5e9   :  { %v1375_v17 = vrot.slane %v3725_v55, 4  ;;  %v2088_v4 = vmul.f32 -1.442695, %v1307_v34 }
 0x5eb   :  { %1393 = vmatmul.f32.vlgmr.msra.gmra.mxu1 %v1375_v17  ;;  %2187 = vpow2.f32 %v2088_v4 }
 0x5ec   :  { %1639 = vmatpush.msra.mxu1 %v3728_v13 }
 0x5ee   :  { %1640 = vmatpush.msra.mxu1 %v3731_v46 }
 0x5f0   :  { %1641 = vmatpush.msra.mxu1 %v3734_v58 }
 0x5f1   :  { %v2188_v29 = vpop.eup %2187 }
 0x5f2   :  { %1642 = vmatpush.msra.mxu1 %v3737_v41  ;;  %v1320_v2 = vadd.f32 1.0, %v2188_v29 }
 0x5f4   :  { %1643 = vmatpush.msra.mxu1 %v3740_v23  ;;  %2189 = vrcp.f32 %v1320_v2  ;;  %v1334_v20 = vand.u32 2147483648, %v1320_v2  ;;  %vm1328_vm12 = vweird.f32 %v1320_v2  ;;  %v1332_v10 = vand.u32 2147483647, %v1320_v2 }
 0x5f6   :  { %1644 = vmatpush.msra.mxu1 %v3743_v56  ;;  %v1335_v29 = vor.u32 1.1754944e-38, %v1334_v20  ;;  %vm1333_vm14 = vcmp.eq.f32.partialorder %v1332_v10, 8.507059e+37  ;;  %v2397_v20 = vld [vmem:[#allocation11 + $0x78] sm:$0xff]  ;;  %v2398_v10 = vld [vmem:[#allocation11 + $0x50] sm:$0xff] }
 0x5f8   :  { %1645 = vmatpush.msra.mxu1 %v3746_v51 }
 0x5fa   :  { %1646 = vmatpush.msra.mxu1 %v3749_v27  ;;  %v2190_v9 = vpop.eup %2189 }
 0x5fb   :  { %v1324_v8 = vmul.f32 %v2190_v9, %v1320_v2  ;;  %vm1329_vm11 = vweird.f32 %v2190_v9  ;;  %v2390_v2 = vld [vmem:[#allocation11 + $0x190] sm:$0xff] }
 0x5fc   :  { %1647 = vmatpush.msra.mxu1 %v3752_v21  ;;  %vm1330_vm13 = vmor %vm1328_vm12, %vm1329_vm11  ;;  %vm2048_vm12 = vcmask 1044480  }
 0x5fd   :  { %v1325_v17 = vsub.f32 1.0, %v1324_v8 }
 0x5fe   :  { %1648 = vmatpush.msra.mxu1 %v3755_v12 }
 0x600   :  { %1649 = vmatpush.msra.mxu1 %v3758_v0  ;;  %v1326_v0 = vmul.f32 %v2190_v9, %v1325_v17  ;;  %v2393_v17 = vld [vmem:[#allocation11 + $0x118] sm:$0xff] }
 0x602   :  { %1650 = vmatpush.msra.mxu1 %v3761_v19 }
 0x604   :  { %1651 = vmatpush.msra.mxu1 %v3764_v62  ;;  %v1292_v62 = vpop.f32.mrf.mxu0 }
 0x606   :  { %1652 = vmatpush.msra.mxu1 %v3767_v38 }
 0x608   :  { %1653 = vmatpush.msra.mxu1 %v3770_v57 }
 0x60a   :  { %1654 = vmatpush.msra.mxu1 %v4420_v15  ;;  %v1327_v15 = vadd.f32 %v2190_v9, %v1326_v0  ;;  %v3779_v0 = vld [vmem:[#allocation11 + $0x268] sm:$0xff] }
 0x60c   :  { %v1331_v34 = vsel %vm1330_vm13, %v2190_v9, %v1327_v15  ;;  %v2392_v9 = vld [vmem:[#allocation11 + $0x140] sm:$0xff] }
 0x60d   :  { %v1336_v12 = vsel %vm1333_vm14, %v1335_v29, %v1331_v34  ;;  %v2396_v15 = vld [vmem:[#allocation11 + $0xa0] sm:$0xff]  ;;  %v2399_v34 = vld [vmem:[#allocation11 + $0x28] sm:$0xff] }
 0x668   :  { %v1394_v38 = vpop.f32.mrf.mxu1 }
 0x669   :  { %v1397_v19 = vadd.f32 %v1394_v38, %v1292_v62  ;;  %v3798_v38 = vld [vmem:[#allocation11 + $0x220] sm:$0xff] }
 0x66b   :  { %v1398_v57 = vadd.f32 %v3635_v40, %v1397_v19  ;;  %v3782_v19 = vld [vmem:[#allocation11 + $0x270] sm:$0xff] }
 0x66d   :  { %2191 = vtanh.f32 %v1398_v57  ;;  %v2389_v57 = vld [vmem:[#allocation11 + $0x1b8] sm:$0xff] }
 0x673   :  { %v2192_v4 = vpop.eup %2191 }
 0x674   :  { %v1401_v52 = vrot.slane %v2192_v4, 4  ;;  %v2400_v4 = vld [vmem:[#allocation11] sm:$0xff] }
 0x676   :  { %v1403_v8 = vmul.f32 %v1401_v52, %v1336_v12  ;;  %v3787_v52 = vld [vmem:[#allocation11 + $0x240] sm:$0xff]  ;;  %v3795_v12 = vld [vmem:[#allocation11 + $0x218] sm:$0xff] }
 0x678   :  { %v1405_v21 = vrot.slane %v1403_v8, 4  ;;  %v3777_v62 = vsel %vm2046_vm15, %v3639_v22, %v1403_v8  ;;  %v3790_v22 = vld [vmem:[#allocation11 + $0x248] sm:$0xff] }
 0x67a   :  { %1423 = vmatmul.f32.vlgmr.msra.gmra.mxu2 %v1405_v21  ;;  %1443 = vmatmul.f32.vlgmr.msra.gmra.mxu3 %v1405_v21 }
 0x67b   :  { %1463 = vmatmul.f32.vlgmr.msrb.gmra.mxu0 %v1405_v21  ;;  %1483 = vmatmul.f32.vlgmr.msrb.gmra.mxu1 %v1405_v21 }
 0x67c   :  { %1659 = vmatpush.msra.mxu2 %v3779_v0  ;;  %1679 = vmatpush.msra.mxu3 %v3782_v19 }
 0x67d   :  { %1699 = vmatpush.msrb.mxu0 %v3466_v30  ;;  %1801 = vmatpush.msrb.mxu1 %v3469_v43  ;;  %v3803_v30 = vld [vmem:[#allocation11 + $0x1f8] sm:$0xff]  ;;  %v3806_v43 = vld [vmem:[#allocation11 + $0x1f0] sm:$0xff] }
 0x67e   :  { %1660 = vmatpush.msra.mxu2 %v3787_v52  ;;  %1680 = vmatpush.msra.mxu3 %v3790_v22 }
 0x67f   :  { %1700 = vmatpush.msrb.mxu0 %v3474_v7  ;;  %1802 = vmatpush.msrb.mxu1 %v3477_v44  ;;  %v3810_v7 = vld [vmem:[#allocation11 + $0x1d0] sm:$0xff]  ;;  %v3814_v44 = vld [vmem:[#allocation11 + $0x1c8] sm:$0xff] }
 0x680   :  { %1661 = vmatpush.msra.mxu2 %v3795_v12  ;;  %1681 = vmatpush.msra.mxu3 %v3798_v38 }
 0x681   :  { %1701 = vmatpush.msrb.mxu0 %v3482_v26  ;;  %1803 = vmatpush.msrb.mxu1 %v3485_v3  ;;  %v3818_v26 = vld [vmem:[#allocation11 + $0x1a8] sm:$0xff]  ;;  %v3822_v3 = vld [vmem:[#allocation11 + $0x1a0] sm:$0xff] }
 0x682   :  { %1503 = vmatmul.f32.vlgmr.msrb.gmra.mxu2 %v1405_v21  ;;  %1682 = vmatpush.msra.mxu3 %v3803_v30  ;;  %v2387_v21 = vld [vmem:[#allocation11 + $0x208] sm:$0xff] }
 0x683   :  { %1662 = vmatpush.msra.mxu2 %v3806_v43  ;;  %1702 = vmatpush.msrb.mxu0 %v3490_v59  ;;  %v3826_v59 = vld [vmem:[#allocation11 + $0x180] sm:$0xff] }
 0x684   :  { %1683 = vmatpush.msra.mxu3 %v3810_v7  ;;  %1804 = vmatpush.msrb.mxu1 %v3494_v53  ;;  %v3830_v53 = vld [vmem:[#allocation11 + $0x178] sm:$0xff] }
 0x685   :  { %1663 = vmatpush.msra.mxu2 %v3814_v44  ;;  %1703 = vmatpush.msrb.mxu0 %v3498_v45  ;;  %v3834_v45 = vld [vmem:[#allocation11 + $0x158] sm:$0xff] }
 0x686   :  { %1684 = vmatpush.msra.mxu3 %v3818_v26  ;;  %1805 = vmatpush.msrb.mxu1 %v3502_v24  ;;  %v3838_v24 = vld [vmem:[#allocation11 + $0x150] sm:$0xff] }
 0x687   :  { %1664 = vmatpush.msra.mxu2 %v3822_v3  ;;  %1704 = vmatpush.msrb.mxu0 %v3506_v28  ;;  %v3842_v28 = vld [vmem:[#allocation11 + $0x130] sm:$0xff] }
 0x688   :  { %1685 = vmatpush.msra.mxu3 %v3826_v59  ;;  %1806 = vmatpush.msrb.mxu1 %v3510_v14  ;;  %v3846_v14 = vld [vmem:[#allocation11 + $0x128] sm:$0xff] }
 0x689   :  { %1665 = vmatpush.msra.mxu2 %v3830_v53  ;;  %1705 = vmatpush.msrb.mxu0 %v4423_v1  ;;  %v3850_v1 = vld [vmem:[#allocation11 + $0x108] sm:$0xff] }
 0x68a   :  { %1686 = vmatpush.msra.mxu3 %v3834_v45  ;;  %1807 = vmatpush.msrb.mxu1 %v4425_v48  ;;  %v3854_v48 = vld [vmem:[#allocation11 + $0x100] sm:$0xff] }
 0x68b   :  { %1666 = vmatpush.msra.mxu2 %v3838_v24  ;;  %1706 = vmatpush.msrb.mxu0 %v4427_v18  ;;  %v3858_v18 = vld [vmem:[#allocation11 + $0xe0] sm:$0xff] }
 0x68c   :  { %1687 = vmatpush.msra.mxu3 %v3842_v28  ;;  %1808 = vmatpush.msrb.mxu1 %v4429_v25  ;;  %v3862_v25 = vld [vmem:[#allocation11 + $0xd8] sm:$0xff] }
 0x68d   :  { %1667 = vmatpush.msra.mxu2 %v3846_v14  ;;  %1707 = vmatpush.msrb.mxu0 %v4431_v50  ;;  %v3866_v50 = vld [vmem:[#allocation11 + $0xb8] sm:$0xff] }
 0x68e   :  { %1688 = vmatpush.msra.mxu3 %v3850_v1  ;;  %1809 = vmatpush.msrb.mxu1 %v4433_v47  ;;  %v3870_v47 = vld [vmem:[#allocation11 + $0xb0] sm:$0xff] }
 0x68f   :  { %1668 = vmatpush.msra.mxu2 %v3854_v48  ;;  %1708 = vmatpush.msrb.mxu0 %v4435_v42  ;;  %v3874_v42 = vld [vmem:[#allocation11 + $0x90] sm:$0xff] }
 0x690   :  { %1689 = vmatpush.msra.mxu3 %v3858_v18  ;;  %1810 = vmatpush.msrb.mxu1 %v4437_v61  ;;  %v3878_v61 = vld [vmem:[#allocation11 + $0x88] sm:$0xff] }
 0x691   :  { %1669 = vmatpush.msra.mxu2 %v3862_v25  ;;  %1709 = vmatpush.msrb.mxu0 %v4439_v39  ;;  %v3882_v39 = vld [vmem:[#allocation11 + $0x68] sm:$0xff] }
 0x692   :  { %1690 = vmatpush.msra.mxu3 %v3866_v50  ;;  %1811 = vmatpush.msrb.mxu1 %v4441_v37  ;;  %v3886_v37 = vld [vmem:[#allocation11 + $0x60] sm:$0xff] }
 0x693   :  { %1670 = vmatpush.msra.mxu2 %v3870_v47  ;;  %1710 = vmatpush.msrb.mxu0 %v4443_v35  ;;  %v3890_v35 = vld [vmem:[#allocation11 + $0x40] sm:$0xff] }
 0x694   :  { %1691 = vmatpush.msra.mxu3 %v3874_v42  ;;  %1812 = vmatpush.msrb.mxu1 %v4445_v49  ;;  %v3894_v49 = vld [vmem:[#allocation11 + $0x38] sm:$0xff] }
 0x695   :  { %1671 = vmatpush.msra.mxu2 %v3878_v61  ;;  %1711 = vmatpush.msrb.mxu0 %v4447_v5  ;;  %v3898_v5 = vld [vmem:[#allocation11 + $0x18] sm:$0xff] }
 0x696   :  { %1692 = vmatpush.msra.mxu3 %v3882_v39  ;;  %1813 = vmatpush.msrb.mxu1 %v4449_v33  ;;  %v3902_v33 = vld [vmem:[#allocation11 + $0x10] sm:$0xff] }
 0x697   :  { %1672 = vmatpush.msra.mxu2 %v3886_v37  ;;  %1712 = vmatpush.msrb.mxu0 %v4451_v32  ;;  %4487 = vst [vmem:[#allocation35_spill] sm:$0xff] %v3902_v33  ;;  %v2385_v32 = vld [vmem:[#allocation11 + $0x258] sm:$0xff] }
 0x698   :  { %1693 = vmatpush.msra.mxu3 %v3890_v35  ;;  %1814 = vmatpush.msrb.mxu1 %v4453_v54  ;;  %v2386_v54 = vld [vmem:[#allocation11 + $0x230] sm:$0xff] }
 0x699   :  { %1673 = vmatpush.msra.mxu2 %v3894_v49  ;;  %1713 = vmatpush.msrb.mxu0 %v4455_v63  ;;  %v2388_v63 = vld [vmem:[#allocation11 + $0x1e0] sm:$0xff] }
 0x69a   :  { %1694 = vmatpush.msra.mxu3 %v3898_v5  ;;  %1815 = vmatpush.msrb.mxu1 %v4457_v16  ;;  %v2391_v16 = vld [vmem:[#allocation11 + $0x168] sm:$0xff] }
 0x69b   :  { %1674 = vmatpush.msra.mxu2 %v3902_v33  ;;  %1714 = vmatpush.msrb.mxu0 %v4459_v31  ;;  %v2394_v31 = vld [vmem:[#allocation11 + $0xf0] sm:$0xff] }
 0x69c   :  { %1816 = vmatpush.msrb.mxu1 %v4460_v11  ;;  %v2395_v11 = vld [vmem:[#allocation11 + $0xc8] sm:$0xff] }
 0x69d   :  { %1831 = vmatpush.msrb.mxu2 %v2385_v32 }
 0x69f   :  { %1832 = vmatpush.msrb.mxu2 %v2386_v54 }
 0x6a1   :  { %1833 = vmatpush.msrb.mxu2 %v2387_v21 }
 0x6a3   :  { %1834 = vmatpush.msrb.mxu2 %v2388_v63 }
 0x6a5   :  { %1835 = vmatpush.msrb.mxu2 %v2389_v57 }
 0x6a7   :  { %1836 = vmatpush.msrb.mxu2 %v2390_v2 }
 0x6a9   :  { %1837 = vmatpush.msrb.mxu2 %v2391_v16 }
 0x6ab   :  { %1838 = vmatpush.msrb.mxu2 %v2392_v9 }
 0x6ad   :  { %1839 = vmatpush.msrb.mxu2 %v2393_v17 }
 0x6af   :  { %1840 = vmatpush.msrb.mxu2 %v2394_v31 }
 0x6b1   :  { %1841 = vmatpush.msrb.mxu2 %v2395_v11 }
 0x6b3   :  { %1842 = vmatpush.msrb.mxu2 %v2396_v15 }
 0x6b5   :  { %1843 = vmatpush.msrb.mxu2 %v2397_v20 }
 0x6b7   :  { %1844 = vmatpush.msrb.mxu2 %v2398_v10 }
 0x6b9   :  { %1845 = vmatpush.msrb.mxu2 %v2399_v34 }
 0x6bb   :  { %1846 = vmatpush.msrb.mxu2 %v2400_v4 }
 0x6f8   :  { %v1464_v29 = vpop.f32.mrf.mxu0  ;;  %v1484_v11 = vpop.f32.mrf.mxu1 }
 0x6f9   :  { %v1513_v8 = vrot.slane %v1464_v29, 3  ;;  %v1514_v10 = vrot.slane %v1484_v11, 3 }
 0x6fb   :  { %v1521_v32 = vadd.f32 %v1513_v8, %v4478_v36  ;;  %v1522_v8 = vadd.f32 %v1514_v10, %v4479_v6 }
 0x6fd   :  { %v2093_v54 = vmul.f32 -1.442695, %v1521_v32  ;;  %v1444_v21 = vpop.f32.mrf.mxu3 }
 0x6fe   :  { %v1512_v63 = vrot.slane %v1444_v21, 3 }
 0x6ff   :  { %2193 = vpow2.f32 %v2093_v54 }
 0x700   :  { %v1520_v57 = vadd.f32 %v1512_v63, %v4477_v60 }
 0x702   :  { %v2092_v2 = vmul.f32 -1.442695, %v1520_v57 }
 0x704   :  { %2195 = vpow2.f32 %v2092_v2 }
 0x705   :  { %v2194_v16 = vpop.eup %2193 }
 0x706   :  { %v1534_v9 = vadd.f32 1.0, %v2194_v16 }
 0x708   :  { %2197 = vrcp.f32 %v1534_v9  ;;  %v1576_v21 = vand.u32 2147483648, %v1534_v9  ;;  %vm1570_vm1 = vweird.f32 %v1534_v9  ;;  %v1574_v63 = vand.u32 2147483647, %v1534_v9 }
 0x70a   :  { %v2196_v17 = vpop.eup %2195  ;;  %v1577_v11 = vor.u32 1.1754944e-38, %v1576_v21  ;;  %vm1575_vm4 = vcmp.eq.f32.partialorder %v1574_v63, 8.507059e+37 }
 0x70b   :  { %v1533_v31 = vadd.f32 1.0, %v2196_v17 }
 0x70d   :  { %2199 = vrcp.f32 %v1533_v31  ;;  %v1561_v2 = vand.u32 2147483648, %v1533_v31  ;;  %v1559_v36 = vand.u32 2147483647, %v1533_v31  ;;  %vm1555_vm5 = vweird.f32 %v1533_v31 }
 0x70e   :  { %v2198_v15 = vpop.eup %2197  ;;  %2201 = vtanh.f32 %v1522_v8 }
 0x70f   :  { %v1566_v20 = vmul.f32 %v2198_v15, %v1534_v9  ;;  %vm1571_vm0 = vweird.f32 %v2198_v15  ;;  %v1562_v10 = vor.u32 1.1754944e-38, %v1561_v2  ;;  %vm1560_vm7 = vcmp.eq.f32.partialorder %v1559_v36, 8.507059e+37  ;;  %v4489_v36 = vld [vmem:[#allocation25_spill] sm:$0xff] }
 0x710   :  { %vm1572_vm2 = vmor %vm1570_vm1, %vm1571_vm0 }
 0x711   :  { %v1567_v34 = vsub.f32 1.0, %v1566_v20 }
 0x713   :  { %v1568_v4 = vmul.f32 %v2198_v15, %v1567_v34  ;;  %v2200_v29 = vpop.eup %2199 }
 0x714   :  { %v1551_v54 = vmul.f32 %v2200_v29, %v1533_v31  ;;  %vm1556_vm3 = vweird.f32 %v2200_v29  ;;  %v2202_v9 = vpop.eup %2201 }
 0x715   :  { %v1569_v32 = vadd.f32 %v2198_v15, %v1568_v4  ;;  %vm1557_vm6 = vmor %vm1555_vm5, %vm1556_vm3  ;;  %v1581_v4 = vrot.slane %v3725_v55, 7  ;;  %v4491_v55 = vld [vmem:[#allocation34_spill] sm:$0xff] }
 0x716   :  { %v1552_v57 = vsub.f32 1.0, %v1551_v54 }
 0x717   :  { %v1573_v16 = vsel %vm1572_vm2, %v2198_v15, %v1569_v32 }
 0x718   :  { %v1553_v17 = vmul.f32 %v2200_v29, %v1552_v57  ;;  %v1578_v34 = vsel %vm1575_vm4, %v1577_v11, %v1573_v16 }
 0x719   :  { %v1584_v60 = vmul.f32 %v2202_v9, %v1578_v34 }
 0x71a   :  { %v1554_v20 = vadd.f32 %v2200_v29, %v1553_v17 }
 0x71c   :  { %v1558_v6 = vsel %vm1557_vm6, %v2200_v29, %v1554_v20 }
 0x71d   :  { %v1563_v54 = vsel %vm1560_vm7, %v1562_v10, %v1558_v6  ;;  %v4490_v6 = vld [vmem:[#allocation63_spill] sm:$0xff] }
 0x71e   :  { %v1583_v8 = vmul.f32 %v1581_v4, %v1563_v54 }
 0x720   :  { %v3911_v33 = vadd.f32 %v1584_v60, %v1583_v8  ;;  %v4488_v60 = vld [vmem:[#allocation62_spill] sm:$0xff] }
 0x722   :  { %v1587_v15 = vrot.slane %v3911_v33, 5 }
 0x724   :  { %1605 = vmatmul.f32.vlgmr.msrb.gmra.mxu3 %v1587_v15 }
 0x725   :  { %1851 = vmatpush.msrb.mxu3 %v3728_v13  ;;  %v4492_v13 = vld [vmem:[#allocation64_spill] sm:$0xff] }
 0x727   :  { %1852 = vmatpush.msrb.mxu3 %v3731_v46  ;;  %v4493_v46 = vld [vmem:[#allocation26_spill] sm:$0xff] }
 0x729   :  { %1853 = vmatpush.msrb.mxu3 %v3734_v58  ;;  %v4494_v58 = vld [vmem:[#allocation65_spill] sm:$0xff] }
 0x72b   :  { %1854 = vmatpush.msrb.mxu3 %v3737_v41  ;;  %v2401_v41 = vld [vmem:[#allocation11 + $0x8] sm:$0xff] }
 0x72d   :  { %1855 = vmatpush.msrb.mxu3 %v3740_v23  ;;  %v1424_v23 = vpop.f32.mrf.mxu2 }
 0x72f   :  { %1856 = vmatpush.msrb.mxu3 %v3743_v56  ;;  %v1511_v56 = vrot.slane %v1424_v23, 3 }
 0x731   :  { %1857 = vmatpush.msrb.mxu3 %v3746_v51  ;;  %v4495_v51 = vld [vmem:[#allocation30_spill] sm:$0xff] }
 0x733   :  { %1858 = vmatpush.msrb.mxu3 %v3749_v27  ;;  %v1519_v27 = vadd.f32 %v1511_v56, %v4495_v51  ;;  %v4497_v56 = vld [vmem:[#allocation57_spill] sm:$0xff] }
 0x735   :  { %1859 = vmatpush.msrb.mxu3 %v4488_v60  ;;  %v2091_v31 = vmul.f32 -1.442695, %v1519_v27  ;;  %v1504_v2 = vpop.f32.mrf.mxu2 }
 0x737   :  { %1860 = vmatpush.msrb.mxu3 %v4489_v36  ;;  %2203 = vpow2.f32 %v2091_v31 }
 0x739   :  { %1861 = vmatpush.msrb.mxu3 %v4490_v6 }
 0x73b   :  { %1862 = vmatpush.msrb.mxu3 %v4491_v55 }
 0x73d   :  { %1863 = vmatpush.msrb.mxu3 %v4492_v13  ;;  %v2204_v29 = vpop.eup %2203  ;;  %v2403_v13 = vld [vmem:[#allocation13 + $0x78] sm:$0xff] }
 0x73e   :  { %v1532_v32 = vadd.f32 1.0, %v2204_v29  ;;  %v4498_v29 = vld [vmem:[#allocation66_spill] sm:$0xff] }
 0x73f   :  { %1864 = vmatpush.msrb.mxu3 %v4493_v46  ;;  %v2404_v46 = vld [vmem:[#allocation11 + $0x250] sm:$0xff] }
 0x740   :  { %2205 = vrcp.f32 %v1532_v32  ;;  %v1546_v10 = vand.u32 2147483648, %v1532_v32  ;;  %vm1540_vm9 = vweird.f32 %v1532_v32  ;;  %v1544_v4 = vand.u32 2147483647, %v1532_v32 }
 0x741   :  { %1865 = vmatpush.msrb.mxu3 %v4494_v58  ;;  %v2406_v58 = vld [vmem:[#allocation11 + $0x228] sm:$0xff] }
 0x742   :  { %v1547_v8 = vor.u32 1.1754944e-38, %v1546_v10  ;;  %vm1545_vm11 = vcmp.eq.f32.partialorder %v1544_v4, 8.507059e+37 }
 0x743   :  { %1866 = vmatpush.msrb.mxu3 %v2401_v41  ;;  %v2433_v41 = vld [vmem:[#allocation13] sm:$0xff] }
 0x746   :  { %v2206_v21 = vpop.eup %2205 }
 0x747   :  { %v1536_v63 = vmul.f32 %v2206_v21, %v1532_v32  ;;  %vm1541_vm8 = vweird.f32 %v2206_v21 }
 0x748   :  { %vm1542_vm10 = vmor %vm1540_vm9, %vm1541_vm8  ;;  %vm2050_vm9 = vcmask 1045504  }
 0x749   :  { %v1537_v57 = vsub.f32 1.0, %v1536_v63 }
 0x74b   :  { %v1538_v11 = vmul.f32 %v2206_v21, %v1537_v57 }
 0x74d   :  { %v1539_v34 = vadd.f32 %v2206_v21, %v1538_v11 }
 0x74f   :  { %v1543_v9 = vsel %vm1542_vm10, %v2206_v21, %v1539_v34 }
 0x750   :  { %v1548_v60 = vsel %vm1545_vm11, %v1547_v8, %v1543_v9  ;;  %v4499_v9 = vld [vmem:[#allocation71_spill] sm:$0xff] }
 0x7a7   :  { %v1606_v16 = vpop.f32.mrf.mxu3 }
 0x7a8   :  { %v1609_v17 = vadd.f32 %v1606_v16, %v1504_v2 }
 0x7aa   :  { %v1610_v20 = vadd.f32 %v3635_v40, %v1609_v17  ;;  %v2402_v40 = vld [vmem:[#allocation11 + $0x278] sm:$0xff] }
 0x7ac   :  { %2207 = vtanh.f32 %v1610_v20 }
 0x7b2   :  { %v2208_v54 = vpop.eup %2207 }
 0x7b3   :  { %v1613_v15 = vrot.slane %v2208_v54, 3 }
 0x7b5   :  { %v1615_v36 = vmul.f32 %v1613_v15, %v1548_v60 }
 0x7b7   :  { %v1617_v6 = vrot.slane %v1615_v36, 5  ;;  %v3932_v55 = vsel %vm2048_vm12, %v3777_v62, %v1615_v36  ;;  %v2405_v62 = vld [vmem:[#allocation13 + $0x70] sm:$0xff] }
 0x7b9   :  { %1635 = vmatmul.f32.vlgmr.msra.gmra.mxu0 %v1617_v6  ;;  %1655 = vmatmul.f32.vlgmr.msra.gmra.mxu1 %v1617_v6 }
 0x7ba   :  { %1675 = vmatmul.f32.vlgmr.msra.gmra.mxu2 %v1617_v6  ;;  %1695 = vmatmul.f32.vlgmr.msra.gmra.mxu3 %v1617_v6 }
 0x7bb   :  { %1871 = vmatpush.msra.mxu0 %v3779_v0  ;;  %1891 = vmatpush.msra.mxu1 %v3782_v19  ;;  %v2407_v0 = vld [vmem:[#allocation13 + $0x68] sm:$0xff]  ;;  %v2408_v19 = vld [vmem:[#allocation11 + $0x200] sm:$0xff] }
 0x7bc   :  { %1911 = vmatpush.msra.mxu2 %v2402_v40  ;;  %2013 = vmatpush.msra.mxu3 %v2403_v13 }
 0x7bd   :  { %1872 = vmatpush.msra.mxu0 %v3787_v52  ;;  %1892 = vmatpush.msra.mxu1 %v3790_v22  ;;  %v2409_v52 = vld [vmem:[#allocation13 + $0x60] sm:$0xff]  ;;  %v2410_v22 = vld [vmem:[#allocation11 + $0x1d8] sm:$0xff] }
 0x7be   :  { %1912 = vmatpush.msra.mxu2 %v2404_v46  ;;  %2014 = vmatpush.msra.mxu3 %v2405_v62 }
 0x7bf   :  { %1873 = vmatpush.msra.mxu0 %v3795_v12  ;;  %1893 = vmatpush.msra.mxu1 %v3798_v38  ;;  %v2411_v12 = vld [vmem:[#allocation13 + $0x58] sm:$0xff]  ;;  %v2412_v38 = vld [vmem:[#allocation11 + $0x1b0] sm:$0xff] }
 0x7c0   :  { %1913 = vmatpush.msra.mxu2 %v2406_v58  ;;  %2015 = vmatpush.msra.mxu3 %v2407_v0 }
 0x7c1   :  { %1715 = vmatmul.f32.vlgmr.msrb.gmra.mxu0 %v1617_v6  ;;  %1894 = vmatpush.msra.mxu1 %v3803_v30  ;;  %v2413_v30 = vld [vmem:[#allocation13 + $0x50] sm:$0xff] }
 0x7c2   :  { %1874 = vmatpush.msra.mxu0 %v3806_v43  ;;  %1914 = vmatpush.msra.mxu2 %v2408_v19  ;;  %v2414_v43 = vld [vmem:[#allocation11 + $0x188] sm:$0xff] }
 0x7c3   :  { %1895 = vmatpush.msra.mxu1 %v3810_v7  ;;  %2016 = vmatpush.msra.mxu3 %v2409_v52  ;;  %v2415_v7 = vld [vmem:[#allocation13 + $0x48] sm:$0xff] }
 0x7c4   :  { %1875 = vmatpush.msra.mxu0 %v3814_v44  ;;  %1915 = vmatpush.msra.mxu2 %v2410_v22  ;;  %v2416_v44 = vld [vmem:[#allocation11 + $0x160] sm:$0xff]  ;;  %v1793_v22 = vrot.slane %v3911_v33, 7 }
 0x7c5   :  { %1896 = vmatpush.msra.mxu1 %v3818_v26  ;;  %2017 = vmatpush.msra.mxu3 %v2411_v12  ;;  %v2417_v26 = vld [vmem:[#allocation13 + $0x40] sm:$0xff] }
 0x7c6   :  { %1876 = vmatpush.msra.mxu0 %v3822_v3  ;;  %1916 = vmatpush.msra.mxu2 %v2412_v38  ;;  %v2418_v3 = vld [vmem:[#allocation11 + $0x138] sm:$0xff] }
 0x7c7   :  { %1897 = vmatpush.msra.mxu1 %v3826_v59  ;;  %2018 = vmatpush.msra.mxu3 %v2413_v30  ;;  %v2419_v59 = vld [vmem:[#allocation13 + $0x38] sm:$0xff] }
 0x7c8   :  { %1877 = vmatpush.msra.mxu0 %v3830_v53  ;;  %1917 = vmatpush.msra.mxu2 %v2414_v43  ;;  %v2420_v53 = vld [vmem:[#allocation11 + $0x110] sm:$0xff] }
 0x7c9   :  { %1898 = vmatpush.msra.mxu1 %v3834_v45  ;;  %2019 = vmatpush.msra.mxu3 %v2415_v7  ;;  %v2421_v45 = vld [vmem:[#allocation13 + $0x30] sm:$0xff] }
 0x7ca   :  { %1878 = vmatpush.msra.mxu0 %v3838_v24  ;;  %1918 = vmatpush.msra.mxu2 %v2416_v44  ;;  %v2422_v24 = vld [vmem:[#allocation11 + $0xe8] sm:$0xff] }
 0x7cb   :  { %1899 = vmatpush.msra.mxu1 %v3842_v28  ;;  %2020 = vmatpush.msra.mxu3 %v2417_v26  ;;  %v2423_v28 = vld [vmem:[#allocation13 + $0x28] sm:$0xff] }
 0x7cc   :  { %1879 = vmatpush.msra.mxu0 %v3846_v14  ;;  %1919 = vmatpush.msra.mxu2 %v2418_v3  ;;  %v2424_v14 = vld [vmem:[#allocation11 + $0xc0] sm:$0xff] }
 0x7cd   :  { %1900 = vmatpush.msra.mxu1 %v3850_v1  ;;  %2021 = vmatpush.msra.mxu3 %v2419_v59  ;;  %v2425_v1 = vld [vmem:[#allocation13 + $0x20] sm:$0xff] }
 0x7ce   :  { %1880 = vmatpush.msra.mxu0 %v3854_v48  ;;  %1920 = vmatpush.msra.mxu2 %v2420_v53  ;;  %v2426_v48 = vld [vmem:[#allocation11 + $0x98] sm:$0xff] }
 0x7cf   :  { %1901 = vmatpush.msra.mxu1 %v3858_v18  ;;  %2022 = vmatpush.msra.mxu3 %v2421_v45  ;;  %v2427_v18 = vld [vmem:[#allocation13 + $0x18] sm:$0xff] }
 0x7d0   :  { %1881 = vmatpush.msra.mxu0 %v3862_v25  ;;  %1921 = vmatpush.msra.mxu2 %v2422_v24  ;;  %v2428_v25 = vld [vmem:[#allocation11 + $0x70] sm:$0xff] }
 0x7d1   :  { %1902 = vmatpush.msra.mxu1 %v3866_v50  ;;  %2023 = vmatpush.msra.mxu3 %v2423_v28  ;;  %v2429_v50 = vld [vmem:[#allocation13 + $0x10] sm:$0xff] }
 0x7d2   :  { %1882 = vmatpush.msra.mxu0 %v3870_v47  ;;  %1922 = vmatpush.msra.mxu2 %v2424_v14  ;;  %v2430_v47 = vld [vmem:[#allocation11 + $0x48] sm:$0xff] }
 0x7d3   :  { %1903 = vmatpush.msra.mxu1 %v3874_v42  ;;  %2024 = vmatpush.msra.mxu3 %v2425_v1  ;;  %v2431_v42 = vld [vmem:[#allocation13 + $0x8] sm:$0xff] }
 0x7d4   :  { %1883 = vmatpush.msra.mxu0 %v3878_v61  ;;  %1923 = vmatpush.msra.mxu2 %v2426_v48  ;;  %v4496_v61 = vld [vmem:[#allocation35_spill] sm:$0xff] }
 0x7d5   :  { %1904 = vmatpush.msra.mxu1 %v3882_v39  ;;  %2025 = vmatpush.msra.mxu3 %v2427_v18  ;;  %v2432_v39 = vld [vmem:[#allocation11 + $0x20] sm:$0xff] }
 0x7d6   :  { %1884 = vmatpush.msra.mxu0 %v3886_v37  ;;  %1924 = vmatpush.msra.mxu2 %v2428_v25 }
 0x7d7   :  { %1905 = vmatpush.msra.mxu1 %v3890_v35  ;;  %2026 = vmatpush.msra.mxu3 %v2429_v50 }
 0x7d8   :  { %1885 = vmatpush.msra.mxu0 %v3894_v49  ;;  %1925 = vmatpush.msra.mxu2 %v2430_v47  ;;  %v3977_v47 = vld [vmem:[%s3998_s5] sm:$0x1]  ;;  %s2599_s5 = smov [#allocation14]  }
 0x7d9   :  { %1906 = vmatpush.msra.mxu1 %v3898_v5  ;;  %2027 = vmatpush.msra.mxu3 %v2431_v42  ;;  %s2062_s29 = sshll.u32 %s2599_s5, 4  ;;  %s2063_s29 = int_to_ptr.vmem [resolvable:$true] %s2062_s29 }
 0x7da   :  { %1886 = vmatpush.msra.mxu0 %v4496_v61  ;;  %1926 = vmatpush.msra.mxu2 %v2432_v39 }
 0x7db   :  { %2028 = vmatpush.msra.mxu3 %v2433_v41 }
 0x836   :  { %v1656_v37 = vpop.f32.mrf.mxu1  ;;  %v1636_v3 = vpop.f32.mrf.mxu0 }
 0x837   :  { %v1724_v23 = vrot.slane %v1656_v37, 2  ;;  %v1723_v59 = vrot.slane %v1636_v3, 2 }
 0x839   :  { %v1732_v35 = vadd.f32 %v1724_v23, %v4497_v56  ;;  %v1731_v53 = vadd.f32 %v1723_v59, %v4495_v51 }
 0x83b   :  { %v2095_v27 = vmul.f32 -1.442695, %v1732_v35  ;;  %v2094_v45 = vmul.f32 -1.442695, %v1731_v53 }
 0x83d   :  { %v1676_v31 = vpop.f32.mrf.mxu2  ;;  %2209 = vpow2.f32 %v2095_v27  ;;  %v1696_v16 = vpop.f32.mrf.mxu3 }
 0x83e   :  { %v1725_v49 = vrot.slane %v1676_v31, 2  ;;  %v1726_v20 = vrot.slane %v1696_v16, 2  ;;  %v1716_v48 = vpop.f32.mrf.mxu0 }
 0x840   :  { %v1733_v32 = vadd.f32 %v1725_v49, %v4498_v29  ;;  %v1734_v54 = vadd.f32 %v1726_v20, %v4499_v9 }
 0x842   :  { %v2096_v21 = vmul.f32 -1.442695, %v1733_v32 }
 0x843   :  { %v2210_v5 = vpop.eup %2209 }
 0x844   :  { %2211 = vpow2.f32 %v2096_v21  ;;  %v1745_v63 = vadd.f32 1.0, %v2210_v5 }
 0x846   :  { %2213 = vrcp.f32 %v1745_v63  ;;  %v1773_v60 = vand.u32 2147483648, %v1745_v63  ;;  %vm1767_vm14 = vweird.f32 %v1745_v63  ;;  %v1771_v6 = vand.u32 2147483647, %v1745_v63 }
 0x848   :  { %v1774_v58 = vor.u32 1.1754944e-38, %v1773_v60  ;;  %vm1772_vm2 = vcmp.eq.f32.partialorder %v1771_v6, 8.507059e+37 }
 0x84a   :  { %v2212_v57 = vpop.eup %2211 }
 0x84b   :  { %v1746_v2 = vadd.f32 1.0, %v2212_v57 }
 0x84c   :  { %v2214_v17 = vpop.eup %2213 }
 0x84d   :  { %2215 = vrcp.f32 %v1746_v2  ;;  %v1763_v11 = vmul.f32 %v2214_v17, %v1745_v63  ;;  %vm1768_vm13 = vweird.f32 %v2214_v17  ;;  %v1788_v40 = vand.u32 2147483648, %v1746_v2 }
 0x84e   :  { %2217 = vtanh.f32 %v1734_v54  ;;  %vm1769_vm15 = vmor %vm1767_vm14, %vm1768_vm13  ;;  %v1786_v46 = vand.u32 2147483647, %v1746_v2  ;;  %vm1782_vm1 = vweird.f32 %v1746_v2 }
 0x84f   :  { %v1764_v34 = vsub.f32 1.0, %v1763_v11  ;;  %v1789_v19 = vor.u32 1.1754944e-38, %v1788_v40  ;;  %2219 = vpow2.f32 %v2094_v45 }
 0x850   :  { %vm1787_vm4 = vcmp.eq.f32.partialorder %v1786_v46, 8.507059e+37 }
 0x851   :  { %v1765_v10 = vmul.f32 %v2214_v17, %v1764_v34 }
 0x853   :  { %v2216_v4 = vpop.eup %2215  ;;  %v1766_v15 = vadd.f32 %v2214_v17, %v1765_v10 }
 0x854   :  { %v1778_v8 = vmul.f32 %v2216_v4, %v1746_v2  ;;  %vm1783_vm0 = vweird.f32 %v2216_v4  ;;  %v2218_v38 = vpop.eup %2217 }
 0x855   :  { %v1770_v62 = vsel %vm1769_vm15, %v2214_v17, %v1766_v15  ;;  %vm1784_vm3 = vmor %vm1782_vm1, %vm1783_vm0  ;;  %v2220_v24 = vpop.eup %2219 }
 0x856   :  { %v1779_v36 = vsub.f32 1.0, %v1778_v8  ;;  %v1775_v52 = vsel %vm1772_vm2, %v1774_v58, %v1770_v62  ;;  %v1744_v28 = vadd.f32 1.0, %v2220_v24 }
 0x857   :  { %v1795_v7 = vmul.f32 %v1793_v22, %v1775_v52 }
 0x858   :  { %v1780_v13 = vmul.f32 %v2216_v4, %v1779_v36  ;;  %2221 = vrcp.f32 %v1744_v28  ;;  %v1758_v39 = vand.u32 2147483648, %v1744_v28  ;;  %vm1752_vm6 = vweird.f32 %v1744_v28 }
 0x859   :  { %v1756_v41 = vand.u32 2147483647, %v1744_v28 }
 0x85a   :  { %v1781_v0 = vadd.f32 %v2216_v4, %v1780_v13  ;;  %v1759_v35 = vor.u32 1.1754944e-38, %v1758_v39 }
 0x85b   :  { %vm1757_vm8 = vcmp.eq.f32.partialorder %v1756_v41, 8.507059e+37 }
 0x85c   :  { %v1785_v12 = vsel %vm1784_vm3, %v2216_v4, %v1781_v0 }
 0x85d   :  { %v1790_v30 = vsel %vm1787_vm4, %v1789_v19, %v1785_v12 }
 0x85e   :  { %v1796_v43 = vmul.f32 %v2218_v38, %v1790_v30  ;;  %v2222_v33 = vpop.eup %2221 }
 0x85f   :  { %v1748_v14 = vmul.f32 %v2222_v33, %v1744_v28  ;;  %vm1753_vm5 = vweird.f32 %v2222_v33 }
 0x860   :  { %v3970_v44 = vadd.f32 %v1796_v43, %v1795_v7  ;;  %vm1754_vm7 = vmor %vm1752_vm6, %vm1753_vm5  ;;  %vm2052_vm6 = vcmask 1046528  }
 0x861   :  { %v1749_v1 = vsub.f32 1.0, %v1748_v14 }
 0x862   :  { %v1799_v26 = vrot.slane %v3970_v44, 6  ;;  %v2005_v43 = vrot.slane %v3970_v44, 7 }
 0x863   :  { %v1750_v50 = vmul.f32 %v2222_v33, %v1749_v1 }
 0x864   :  { %1817 = vmatmul.f32.vlgmr.msrb.gmra.mxu1 %v1799_v26 }
 0x865   :  { %v1751_v61 = vadd.f32 %v2222_v33, %v1750_v50 }
 0x867   :  { %v1755_v37 = vsel %vm1754_vm7, %v2222_v33, %v1751_v61 }
 0x868   :  { %v1760_v31 = vsel %vm1757_vm8, %v1759_v35, %v1755_v37 }
 0x8e1   :  { %v1818_v18 = vpop.f32.mrf.mxu1 }
 0x8e2   :  { %v1821_v25 = vadd.f32 %v1818_v18, %v1716_v48 }
 0x8e4   :  { %v1822_v42 = vadd.f32 %v3977_v47, %v1821_v25 }
 0x8e6   :  { %2223 = vtanh.f32 %v1822_v42 }
 0x8ec   :  { %v2224_v23 = vpop.eup %2223 }
 0x8ed   :  { %v1825_v27 = vrot.slane %v2224_v23, 2 }
 0x8ef   :  { %v1827_v49 = vmul.f32 %v1825_v27, %v1760_v31 }
 0x8f1   :  { %v1829_v32 = vrot.slane %v1827_v49, 6  ;;  %v3981_v21 = vsel %vm2050_vm9, %v3932_v55, %v1827_v49 }
 0x8f3   :  { %1847 = vmatmul.f32.vlgmr.msrb.gmra.mxu2 %v1829_v32  ;;  %1867 = vmatmul.f32.vlgmr.msrb.gmra.mxu3 %v1829_v32 }
 0x8f4   :  { %1887 = vmatmul.f32.vlgmr.msra.gmra.mxu0 %v1829_v32  ;;  %1907 = vmatmul.f32.vlgmr.msra.gmra.mxu1 %v1829_v32 }
 0x8fb   :  { %1927 = vmatmul.f32.vlgmr.msra.gmra.mxu2 %v1829_v32 }
 0x971   :  { %v1888_v5 = vpop.f32.mrf.mxu0  ;;  %v1908_v54 = vpop.f32.mrf.mxu1 }
 0x972   :  { %v1937_v63 = vrot.slane %v1888_v5, 1  ;;  %v1938_v60 = vrot.slane %v1908_v54, 1 }
 0x974   :  { %v1945_v57 = vadd.f32 %v1937_v63, %v4498_v29  ;;  %v1946_v40 = vadd.f32 %v1938_v60, %v4499_v9 }
 0x976   :  { %v2099_v2 = vmul.f32 -1.442695, %v1945_v57  ;;  %v1868_v16 = vpop.f32.mrf.mxu3  ;;  %v1848_v28 = vpop.f32.mrf.mxu2 }
 0x977   :  { %v1936_v17 = vrot.slane %v1868_v16, 1  ;;  %v1935_v33 = vrot.slane %v1848_v28, 1 }
 0x978   :  { %2225 = vpow2.f32 %v2099_v2 }
 0x979   :  { %v1944_v11 = vadd.f32 %v1936_v17, %v4497_v56  ;;  %v1943_v14 = vadd.f32 %v1935_v33, %v4495_v51 }
 0x97b   :  { %v2098_v20 = vmul.f32 -1.442695, %v1944_v11  ;;  %v2097_v1 = vmul.f32 -1.442695, %v1943_v14 }
 0x97d   :  { %2227 = vpow2.f32 %v2098_v20 }
 0x97e   :  { %v2226_v34 = vpop.eup %2225  ;;  %v1928_v42 = vpop.f32.mrf.mxu2 }
 0x97f   :  { %v1958_v55 = vadd.f32 1.0, %v2226_v34 }
 0x981   :  { %2229 = vrcp.f32 %v1958_v55  ;;  %v2000_v46 = vand.u32 2147483648, %v1958_v55  ;;  %vm1994_vm11 = vweird.f32 %v1958_v55  ;;  %v1998_v62 = vand.u32 2147483647, %v1958_v55 }
 0x983   :  { %v2228_v10 = vpop.eup %2227  ;;  %v2001_v12 = vor.u32 1.1754944e-38, %v2000_v46  ;;  %vm1999_vm14 = vcmp.eq.f32.partialorder %v1998_v62, 8.507059e+37 }
 0x984   :  { %v1957_v4 = vadd.f32 1.0, %v2228_v10 }
 0x986   :  { %2231 = vrcp.f32 %v1957_v4  ;;  %v1985_v0 = vand.u32 2147483648, %v1957_v4  ;;  %v1983_v22 = vand.u32 2147483647, %v1957_v4  ;;  %vm1979_vm15 = vweird.f32 %v1957_v4 }
 0x987   :  { %v2230_v8 = vpop.eup %2229  ;;  %2233 = vtanh.f32 %v1946_v40 }
 0x988   :  { %v1990_v15 = vmul.f32 %v2230_v8, %v1958_v55  ;;  %vm1995_vm10 = vweird.f32 %v2230_v8  ;;  %v1986_v9 = vor.u32 1.1754944e-38, %v1985_v0  ;;  %vm1984_vm1 = vcmp.eq.f32.partialorder %v1983_v22, 8.507059e+37 }
 0x989   :  { %vm1996_vm12 = vmor %vm1994_vm11, %vm1995_vm10  ;;  %2235 = vpow2.f32 %v2097_v1 }
 0x98a   :  { %v1991_v36 = vsub.f32 1.0, %v1990_v15 }
 0x98c   :  { %v1992_v29 = vmul.f32 %v2230_v8, %v1991_v36  ;;  %v2232_v6 = vpop.eup %2231 }
 0x98d   :  { %v1975_v56 = vmul.f32 %v2232_v6, %v1957_v4  ;;  %vm1980_vm13 = vweird.f32 %v2232_v6  ;;  %v2234_v26 = vpop.eup %2233 }
 0x98e   :  { %v1993_v13 = vadd.f32 %v2230_v8, %v1992_v29  ;;  %vm1981_vm0 = vmor %vm1979_vm15, %vm1980_vm13 }
 0x98f   :  { %v1976_v58 = vsub.f32 1.0, %v1975_v56  ;;  %v2236_v48 = vpop.eup %2235 }
 0x990   :  { %v1997_v19 = vsel %vm1996_vm12, %v2230_v8, %v1993_v13  ;;  %v1956_v18 = vadd.f32 1.0, %v2236_v48 }
 0x991   :  { %v1977_v52 = vmul.f32 %v2232_v6, %v1976_v58  ;;  %v2002_v30 = vsel %vm1999_vm14, %v2001_v12, %v1997_v19 }
 0x992   :  { %v2008_v59 = vmul.f32 %v2234_v26, %v2002_v30  ;;  %2237 = vrcp.f32 %v1956_v18  ;;  %v1970_v35 = vand.u32 2147483648, %v1956_v18  ;;  %vm1964_vm3 = vweird.f32 %v1956_v18 }
 0x993   :  { %v1978_v38 = vadd.f32 %v2232_v6, %v1977_v52  ;;  %v1968_v51 = vand.u32 2147483647, %v1956_v18 }
 0x994   :  { %v1971_v49 = vor.u32 1.1754944e-38, %v1970_v35 }
 0x995   :  { %v1982_v7 = vsel %vm1981_vm0, %v2232_v6, %v1978_v38  ;;  %vm1969_vm5 = vcmp.eq.f32.partialorder %v1968_v51, 8.507059e+37 }
 0x996   :  { %v1987_v3 = vsel %vm1984_vm1, %v1986_v9, %v1982_v7 }
 0x997   :  { %v2007_v53 = vmul.f32 %v2005_v43, %v1987_v3 }
 0x998   :  { %v2238_v44 = vpop.eup %2237 }
 0x999   :  { %v2009_v45 = vadd.f32 %v2008_v59, %v2007_v53  ;;  %v1960_v25 = vmul.f32 %v2238_v44, %v1956_v18  ;;  %vm1965_vm2 = vweird.f32 %v2238_v44 }
 0x99a   :  { %vm1966_vm4 = vmor %vm1964_vm3, %vm1965_vm2 }
 0x99b   :  { %v2011_v24 = vrot.slane %v2009_v45, 7  ;;  %2056 = vst [vmem:[#allocation3 - $0x7] sm:$0x80] %v2009_v45  ;;  %v1961_v50 = vsub.f32 1.0, %v1960_v25 }
 0x99d   :  { %2029 = vmatmul.f32.vlgmr.msra.gmra.mxu3 %v2011_v24  ;;  %v1962_v41 = vmul.f32 %v2238_v44, %v1961_v50 }
 0x99f   :  { %v1963_v23 = vadd.f32 %v2238_v44, %v1962_v41 }
 0x9a1   :  { %v1967_v27 = vsel %vm1966_vm4, %v2238_v44, %v1963_v23 }
 0x9a2   :  { %v1972_v5 = vsel %vm1969_vm5, %v1971_v49, %v1967_v27 }
 0xa20   :  { %v2030_v61 = vpop.f32.mrf.mxu3 }
 0xa21   :  { %v2033_v39 = vadd.f32 %v2030_v61, %v1928_v42 }
 0xa23   :  { %v2034_v37 = vadd.f32 %v3977_v47, %v2033_v39 }
 0xa25   :  { %2239 = vtanh.f32 %v2034_v37 }
 0xa2b   :  { %v2240_v31 = vpop.eup %2239 }
 0xa2c   :  { %v2037_v32 = vrot.slane %v2240_v31, 1 }
 0xa2e   :  { %v2039_v47 = vmul.f32 %v2037_v32, %v1972_v5 }
 0xa30   :  { %2055 = vst [vmem:[#allocation2 - $0x7] sm:$0x80] %v2039_v47  ;;  %v2053_v63 = vsel %vm2052_vm6, %v3981_v21, %v2039_v47 }
 0xa31   :  { %2054 = vst [vmem:[#allocation14] sm:$0xff] %v2053_v63 }
 0xa32   :  { %2067 = dma.vmem_to_hbm [thread:$0]  %s2063_s29, 128, %s2065_s8, [#allocation7]  }
 0xa33   :  { %2585 = dma.done.wait [#allocation7], 128  }
 0xa34   :  { %2586 = vsyncadd [#allocation7], 4294967168 }
 0xa35   :  { %2072 = vsyncpa [#allocation6], 1 }
 0xa36   :  { %2073 = vsyncpa [#allocation9], 1 }
 0xa37   :  { %2074 = vsyncpa [#allocation12], 1 }
 0xa38   :  { %2075 = vsyncpa [#allocation7], 1 }

</bundles_post_ra>
